<compile_context>
chip_gen: v5e
topology: v5e:2x2
jax: 0.10.0
libtpu: 0.0.40
codegen_flags: <defaults>
</compile_context>

<pallas_src>
import jax
import jax.numpy as jnp
from jax.experimental import pallas as pl
from jax.experimental.pallas import tpu as pltpu

LEAK = 0.2
BN_EPS = 1e-5
OUT_DIM = 784

# Packed-parameter order fed to the kernel (after the z activation).
PARAM_ORDER = (
    "w1", "s1", "b1",
    "w2", "s2", "g1", "be1",
    "w3", "s3", "g2", "be2",
    "w4", "s4", "g3", "be3",
    "w5", "s5", "b5",
)


def _leaky_relu(h):
    return jnp.where(h > 0, h, LEAK * h)


def _deq(w_ref):
    # int8 -> f32 -> bf16.  |q| <= 127 is exact in bf16; the per-channel
    # scale is applied after the matmul (folded into BN / the output FMA).
    return w_ref[...].astype(jnp.float32).astype(jnp.bfloat16)


def generator_kernel(
    z_ref,
    w1_ref, s1_ref, b1_ref,
    w2_ref, s2_ref, g1_ref, be1_ref,
    w3_ref, s3_ref, g2_ref, be2_ref,
    w4_ref, s4_ref, g3_ref, be3_ref,
    w5_ref, s5_ref, b5_ref,
    out_ref,
):
    # Layer 1: Linear + LeakyReLU (bias kept: no BN after it).
    hq = jnp.dot(z_ref[...], _deq(w1_ref), preferred_element_type=jnp.float32)
    h = _leaky_relu(hq * s1_ref[...] + b1_ref[...])

    # Layers 2-4: Linear (bias dropped: cancels exactly through training-mode
    # BN) + fused BatchNorm + LeakyReLU.  Unrolled at trace time.
    for w_ref, s_ref, g_ref, be_ref in (
        (w2_ref, s2_ref, g1_ref, be1_ref),
        (w3_ref, s3_ref, g2_ref, be2_ref),
        (w4_ref, s4_ref, g3_ref, be3_ref),
    ):
        hq = jnp.dot(h.astype(jnp.bfloat16), _deq(w_ref),
                     preferred_element_type=jnp.float32)
        sc = s_ref[...]                           # int8 dequant scale (1,dout)
        # One-pass batch statistics on the un-scaled matmul result.
        mu_q = jnp.mean(hq, axis=0, keepdims=True)
        ex2_q = jnp.mean(hq * hq, axis=0, keepdims=True)
        var_q = ex2_q - mu_q * mu_q               # biased batch var / sc^2
        s_bn = g_ref[...] * jax.lax.rsqrt(var_q * (sc * sc) + BN_EPS)
        t = be_ref[...] - (mu_q * sc) * s_bn
        h = _leaky_relu(hq * (s_bn * sc) + t)     # one FMA per tile

    # Layer 5: Linear + tanh.
    hq = jnp.dot(h.astype(jnp.bfloat16), _deq(w5_ref),
                 preferred_element_type=jnp.float32)
    out_ref[...] = jnp.tanh(hq * s5_ref[...] + b5_ref[...])


def init_params(key, latent_dim):
    """PyTorch-style f32 params (uniform +-1/sqrt(fan_in), BN weight=1/bias=0)."""
    dims = [(latent_dim, 128), (128, 256), (256, 512), (512, 1024), (1024, OUT_DIM)]
    params = {}
    keys = jax.random.split(key, 2 * len(dims))
    for i, (din, dout) in enumerate(dims, start=1):
        bound = 1.0 / (din ** 0.5)
        kw, kb = keys[2 * (i - 1)], keys[2 * (i - 1) + 1]
        params[f"w{i}"] = jax.random.uniform(kw, (din, dout), jnp.float32, -bound, bound)
        params[f"b{i}"] = jax.random.uniform(kb, (1, dout), jnp.float32, -bound, bound)
    for i, d in enumerate([256, 512, 1024], start=1):
        params[f"g{i}"] = jnp.ones((1, d), jnp.float32)
        params[f"be{i}"] = jnp.zeros((1, d), jnp.float32)
    return params


def _quantize_int8(w):
    """Symmetric per-output-channel int8 quantization: w ~= q * scale."""
    amax = jnp.max(jnp.abs(w), axis=0, keepdims=True)
    scale = jnp.maximum(amax, 1e-12) / 127.0
    q = jnp.clip(jnp.round(w / scale), -127.0, 127.0).astype(jnp.int8)
    return q, scale.astype(jnp.float32)


def pack_params(params):
    """One-time packing for the kernel: int8 weights + per-channel scales."""
    packed = {}
    for i in range(1, 6):
        q, s = _quantize_int8(params[f"w{i}"])
        packed[f"w{i}"] = q
        packed[f"s{i}"] = s
    packed["b1"] = params["b1"]
    packed["b5"] = params["b5"]
    for i in range(1, 4):
        packed[f"g{i}"] = params[f"g{i}"]
        packed[f"be{i}"] = params[f"be{i}"]
    return packed


def generator_forward(z, packed, *, block_batch=256):
    B, latent = z.shape
    TB = min(B, block_batch)
    assert B % TB == 0, "batch must be a multiple of the batch block"
    grid = (B // TB,)

    in_specs = [pl.BlockSpec((TB, latent), lambda i: (i, 0))]
    args = [z.astype(jnp.bfloat16)]
    for name in PARAM_ORDER:
        arr = packed[name]
        # Constant block index: parameter stays VMEM-resident across the grid.
        in_specs.append(pl.BlockSpec(arr.shape, lambda i: (0, 0)))
        args.append(arr)

    return pl.pallas_call(
        generator_kernel,
        out_shape=jax.ShapeDtypeStruct((B, OUT_DIM), jnp.float32),
        grid=grid,
        in_specs=in_specs,
        out_specs=pl.BlockSpec((TB, OUT_DIM), lambda i: (i, 0)),
        compiler_params=pltpu.CompilerParams(
            dimension_semantics=("parallel",),
            vmem_limit_bytes=32 << 20),
    )(*args)


def generator_forward_ref(z, params, packed):
    """Pure-JAX reference: the literal PyTorch graph (bias on every Linear,
    unfused two-pass BatchNorm) with the same matmul arithmetic as the kernel
    (int8 weights dequantized to bf16, f32 accumulation, post-matmul scale)."""
    def mm(x, i):
        wq = packed[f"w{i}"].astype(jnp.float32).astype(jnp.bfloat16)
        acc = jnp.dot(x.astype(jnp.bfloat16), wq,
                      preferred_element_type=jnp.float32)
        return acc * packed[f"s{i}"]

    h = _leaky_relu(mm(z, 1) + params["b1"])
    for li, bi in ((2, 1), (3, 2), (4, 3)):
        h = mm(h, li) + params[f"b{li}"]
        mu = jnp.mean(h, axis=0, keepdims=True)
        var = jnp.mean((h - mu) ** 2, axis=0, keepdims=True)
        h = (h - mu) * jax.lax.rsqrt(var + BN_EPS) * params[f"g{bi}"] + params[f"be{bi}"]
        h = _leaky_relu(h)
    h = mm(h, 5) + params["b5"]
    return jnp.tanh(h)


if __name__ == "__main__":
    B, LATENT = 8, 32
    key = jax.random.PRNGKey(0)
    k_param, k_z = jax.random.split(key)
    params = init_params(k_param, LATENT)
    packed = pack_params(params)
    z = jax.random.normal(k_z, (B, LATENT), jnp.float32)

    out = jax.block_until_ready(generator_forward(z, packed))
    ref = jax.block_until_ready(generator_forward_ref(z, params, packed))

    assert out.shape == (B, OUT_DIM)
    max_err = float(jnp.max(jnp.abs(out - ref)))
    assert jnp.allclose(out, ref, atol=1e-2, rtol=1e-2), max_err
    print("KERNEL_OK")
</pallas_src>

<mosaic_0001>
module attributes {stable_mosaic.version = 11 : i64} {
  func.func @generator_kernel(%arg0: i32, %arg1: memref<8x32xbf16, #tpu.memory_space<vmem>>, %arg2: memref<32x128xi8, #tpu.memory_space<vmem>>, %arg3: memref<1x128xf32, #tpu.memory_space<vmem>>, %arg4: memref<1x128xf32, #tpu.memory_space<vmem>>, %arg5: memref<128x256xi8, #tpu.memory_space<vmem>>, %arg6: memref<1x256xf32, #tpu.memory_space<vmem>>, %arg7: memref<1x256xf32, #tpu.memory_space<vmem>>, %arg8: memref<1x256xf32, #tpu.memory_space<vmem>>, %arg9: memref<256x512xi8, #tpu.memory_space<vmem>>, %arg10: memref<1x512xf32, #tpu.memory_space<vmem>>, %arg11: memref<1x512xf32, #tpu.memory_space<vmem>>, %arg12: memref<1x512xf32, #tpu.memory_space<vmem>>, %arg13: memref<512x1024xi8, #tpu.memory_space<vmem>>, %arg14: memref<1x1024xf32, #tpu.memory_space<vmem>>, %arg15: memref<1x1024xf32, #tpu.memory_space<vmem>>, %arg16: memref<1x1024xf32, #tpu.memory_space<vmem>>, %arg17: memref<1024x784xi8, #tpu.memory_space<vmem>>, %arg18: memref<1x784xf32, #tpu.memory_space<vmem>>, %arg19: memref<1x784xf32, #tpu.memory_space<vmem>>, %arg20: memref<8x784xf32, #tpu.memory_space<vmem>>) attributes {dimension_semantics = [#tpu.dimension_semantics<parallel>], iteration_bounds = array<i64: 1>, scalar_prefetch = 0 : i64, scratch_operands = 0 : i64, tpu.core_type = #tpu.core_type<tc>, window_params = [{transform_indices = @transform_0, window_bounds = array<i64: 8, 32>}, {pipeline_mode = #tpu.pipeline_mode<synchronous>, transform_indices = @transform_1, window_bounds = array<i64: 32, 128>}, {pipeline_mode = #tpu.pipeline_mode<synchronous>, transform_indices = @transform_2, window_bounds = array<i64: 1, 128>}, {pipeline_mode = #tpu.pipeline_mode<synchronous>, transform_indices = @transform_3, window_bounds = array<i64: 1, 128>}, {pipeline_mode = #tpu.pipeline_mode<synchronous>, transform_indices = @transform_4, window_bounds = array<i64: 128, 256>}, {pipeline_mode = #tpu.pipeline_mode<synchronous>, transform_indices = @transform_5, window_bounds = array<i64: 1, 256>}, {pipeline_mode = #tpu.pipeline_mode<synchronous>, transform_indices = @transform_6, window_bounds = array<i64: 1, 256>}, {pipeline_mode = #tpu.pipeline_mode<synchronous>, transform_indices = @transform_7, window_bounds = array<i64: 1, 256>}, {pipeline_mode = #tpu.pipeline_mode<synchronous>, transform_indices = @transform_8, window_bounds = array<i64: 256, 512>}, {pipeline_mode = #tpu.pipeline_mode<synchronous>, transform_indices = @transform_9, window_bounds = array<i64: 1, 512>}, {pipeline_mode = #tpu.pipeline_mode<synchronous>, transform_indices = @transform_10, window_bounds = array<i64: 1, 512>}, {pipeline_mode = #tpu.pipeline_mode<synchronous>, transform_indices = @transform_11, window_bounds = array<i64: 1, 512>}, {pipeline_mode = #tpu.pipeline_mode<synchronous>, transform_indices = @transform_12, window_bounds = array<i64: 512, 1024>}, {pipeline_mode = #tpu.pipeline_mode<synchronous>, transform_indices = @transform_13, window_bounds = array<i64: 1, 1024>}, {pipeline_mode = #tpu.pipeline_mode<synchronous>, transform_indices = @transform_14, window_bounds = array<i64: 1, 1024>}, {pipeline_mode = #tpu.pipeline_mode<synchronous>, transform_indices = @transform_15, window_bounds = array<i64: 1, 1024>}, {pipeline_mode = #tpu.pipeline_mode<synchronous>, transform_indices = @transform_16, window_bounds = array<i64: 1024, 784>}, {pipeline_mode = #tpu.pipeline_mode<synchronous>, transform_indices = @transform_17, window_bounds = array<i64: 1, 784>}, {pipeline_mode = #tpu.pipeline_mode<synchronous>, transform_indices = @transform_18, window_bounds = array<i64: 1, 784>}, {transform_indices = @transform_19, window_bounds = array<i64: 8, 784>}]} {
    %c0 = arith.constant 0 : index
    %c0_0 = arith.constant 0 : index
    %0 = vector.load %arg1[%c0, %c0_0] : memref<8x32xbf16, #tpu.memory_space<vmem>>, vector<8x32xbf16>
    %c0_1 = arith.constant 0 : index
    %c0_2 = arith.constant 0 : index
    %1 = vector.load %arg2[%c0_1, %c0_2] : memref<32x128xi8, #tpu.memory_space<vmem>>, vector<32x128xi8>
    %2 = arith.sitofp %1 : vector<32x128xi8> to vector<32x128xf32>
    %3 = arith.truncf %2 : vector<32x128xf32> to vector<32x128xbf16>
    %cst = arith.constant dense<0.000000e+00> : vector<8x128xf32>
    %4 = tpu.matmul %0, %3, %cst {dimension_numbers = #tpu.dot_dimension_numbers<[1], [0], [0], [1], [0, 0, 1, 1], [], []>} : vector<8x32xbf16>, vector<32x128xbf16>, vector<8x128xf32> -> vector<8x128xf32>
    %c0_3 = arith.constant 0 : index
    %c0_4 = arith.constant 0 : index
    %5 = vector.load %arg3[%c0_3, %c0_4] : memref<1x128xf32, #tpu.memory_space<vmem>>, vector<1x128xf32>
    %6 = vector.broadcast %5 : vector<1x128xf32> to vector<8x128xf32>
    %7 = arith.mulf %4, %6 : vector<8x128xf32>
    %c0_5 = arith.constant 0 : index
    %c0_6 = arith.constant 0 : index
    %8 = vector.load %arg4[%c0_5, %c0_6] : memref<1x128xf32, #tpu.memory_space<vmem>>, vector<1x128xf32>
    %9 = vector.broadcast %8 : vector<1x128xf32> to vector<8x128xf32>
    %10 = arith.addf %7, %9 : vector<8x128xf32>
    %cst_7 = arith.constant 0.000000e+00 : f32
    %11 = vector.broadcast %cst_7 : f32 to vector<8x128xf32>
    %12 = arith.cmpf ogt, %10, %11 : vector<8x128xf32>
    %cst_8 = arith.constant 2.000000e-01 : f32
    %13 = vector.broadcast %cst_8 : f32 to vector<8x128xf32>
    %14 = arith.mulf %13, %10 : vector<8x128xf32>
    %15 = arith.select %12, %10, %14 : vector<8x128xi1>, vector<8x128xf32>
    %16 = arith.truncf %15 : vector<8x128xf32> to vector<8x128xbf16>
    %c0_9 = arith.constant 0 : index
    %c0_10 = arith.constant 0 : index
    %17 = vector.load %arg5[%c0_9, %c0_10] : memref<128x256xi8, #tpu.memory_space<vmem>>, vector<128x256xi8>
    %18 = arith.sitofp %17 : vector<128x256xi8> to vector<128x256xf32>
    %19 = arith.truncf %18 : vector<128x256xf32> to vector<128x256xbf16>
    %cst_11 = arith.constant dense<0.000000e+00> : vector<8x256xf32>
    %20 = tpu.matmul %16, %19, %cst_11 {dimension_numbers = #tpu.dot_dimension_numbers<[1], [0], [0], [1], [0, 0, 1, 1], [], []>} : vector<8x128xbf16>, vector<128x256xbf16>, vector<8x256xf32> -> vector<8x256xf32>
    %c0_12 = arith.constant 0 : index
    %c0_13 = arith.constant 0 : index
    %21 = vector.load %arg6[%c0_12, %c0_13] : memref<1x256xf32, #tpu.memory_space<vmem>>, vector<1x256xf32>
    %cst_14 = arith.constant dense<0.000000e+00> : vector<256xf32>
    %22 = vector.multi_reduction <add>, %20, %cst_14 [0] : vector<8x256xf32> to vector<256xf32>
    %23 = vector.shape_cast %22 : vector<256xf32> to vector<1x256xf32>
    %cst_15 = arith.constant 8.000000e+00 : f32
    %24 = vector.broadcast %cst_15 : f32 to vector<1x256xf32>
    %25 = arith.divf %23, %24 : vector<1x256xf32>
    %26 = arith.mulf %20, %20 : vector<8x256xf32>
    %cst_16 = arith.constant dense<0.000000e+00> : vector<256xf32>
    %27 = vector.multi_reduction <add>, %26, %cst_16 [0] : vector<8x256xf32> to vector<256xf32>
    %28 = vector.shape_cast %27 : vector<256xf32> to vector<1x256xf32>
    %cst_17 = arith.constant 8.000000e+00 : f32
    %29 = vector.broadcast %cst_17 : f32 to vector<1x256xf32>
    %30 = arith.divf %28, %29 : vector<1x256xf32>
    %31 = arith.mulf %25, %25 : vector<1x256xf32>
    %32 = arith.subf %30, %31 : vector<1x256xf32>
    %c0_18 = arith.constant 0 : index
    %c0_19 = arith.constant 0 : index
    %33 = vector.load %arg7[%c0_18, %c0_19] : memref<1x256xf32, #tpu.memory_space<vmem>>, vector<1x256xf32>
    %34 = arith.mulf %21, %21 : vector<1x256xf32>
    %35 = arith.mulf %32, %34 : vector<1x256xf32>
    %cst_20 = arith.constant 9.99999974E-6 : f32
    %36 = vector.broadcast %cst_20 : f32 to vector<1x256xf32>
    %37 = arith.addf %35, %36 : vector<1x256xf32>
    %38 = math.rsqrt %37 : vector<1x256xf32>
    %39 = arith.mulf %33, %38 : vector<1x256xf32>
    %c0_21 = arith.constant 0 : index
    %c0_22 = arith.constant 0 : index
    %40 = vector.load %arg8[%c0_21, %c0_22] : memref<1x256xf32, #tpu.memory_space<vmem>>, vector<1x256xf32>
    %41 = arith.mulf %25, %21 : vector<1x256xf32>
    %42 = arith.mulf %41, %39 : vector<1x256xf32>
    %43 = arith.subf %40, %42 : vector<1x256xf32>
    %44 = arith.mulf %39, %21 : vector<1x256xf32>
    %45 = vector.broadcast %44 : vector<1x256xf32> to vector<8x256xf32>
    %46 = arith.mulf %20, %45 : vector<8x256xf32>
    %47 = vector.broadcast %43 : vector<1x256xf32> to vector<8x256xf32>
    %48 = arith.addf %46, %47 : vector<8x256xf32>
    %cst_23 = arith.constant 0.000000e+00 : f32
    %49 = vector.broadcast %cst_23 : f32 to vector<8x256xf32>
    %50 = arith.cmpf ogt, %48, %49 : vector<8x256xf32>
    %cst_24 = arith.constant 2.000000e-01 : f32
    %51 = vector.broadcast %cst_24 : f32 to vector<8x256xf32>
    %52 = arith.mulf %51, %48 : vector<8x256xf32>
    %53 = arith.select %50, %48, %52 : vector<8x256xi1>, vector<8x256xf32>
    %54 = arith.truncf %53 : vector<8x256xf32> to vector<8x256xbf16>
    %c0_25 = arith.constant 0 : index
    %c0_26 = arith.constant 0 : index
    %55 = vector.load %arg9[%c0_25, %c0_26] : memref<256x512xi8, #tpu.memory_space<vmem>>, vector<256x512xi8>
    %56 = arith.sitofp %55 : vector<256x512xi8> to vector<256x512xf32>
    %57 = arith.truncf %56 : vector<256x512xf32> to vector<256x512xbf16>
    %cst_27 = arith.constant dense<0.000000e+00> : vector<8x512xf32>
    %58 = tpu.matmul %54, %57, %cst_27 {dimension_numbers = #tpu.dot_dimension_numbers<[1], [0], [0], [1], [0, 0, 1, 1], [], []>} : vector<8x256xbf16>, vector<256x512xbf16>, vector<8x512xf32> -> vector<8x512xf32>
    %c0_28 = arith.constant 0 : index
    %c0_29 = arith.constant 0 : index
    %59 = vector.load %arg10[%c0_28, %c0_29] : memref<1x512xf32, #tpu.memory_space<vmem>>, vector<1x512xf32>
    %cst_30 = arith.constant dense<0.000000e+00> : vector<512xf32>
    %60 = vector.multi_reduction <add>, %58, %cst_30 [0] : vector<8x512xf32> to vector<512xf32>
    %61 = vector.shape_cast %60 : vector<512xf32> to vector<1x512xf32>
    %cst_31 = arith.constant 8.000000e+00 : f32
    %62 = vector.broadcast %cst_31 : f32 to vector<1x512xf32>
    %63 = arith.divf %61, %62 : vector<1x512xf32>
    %64 = arith.mulf %58, %58 : vector<8x512xf32>
    %cst_32 = arith.constant dense<0.000000e+00> : vector<512xf32>
    %65 = vector.multi_reduction <add>, %64, %cst_32 [0] : vector<8x512xf32> to vector<512xf32>
    %66 = vector.shape_cast %65 : vector<512xf32> to vector<1x512xf32>
    %cst_33 = arith.constant 8.000000e+00 : f32
    %67 = vector.broadcast %cst_33 : f32 to vector<1x512xf32>
    %68 = arith.divf %66, %67 : vector<1x512xf32>
    %69 = arith.mulf %63, %63 : vector<1x512xf32>
    %70 = arith.subf %68, %69 : vector<1x512xf32>
    %c0_34 = arith.constant 0 : index
    %c0_35 = arith.constant 0 : index
    %71 = vector.load %arg11[%c0_34, %c0_35] : memref<1x512xf32, #tpu.memory_space<vmem>>, vector<1x512xf32>
    %72 = arith.mulf %59, %59 : vector<1x512xf32>
    %73 = arith.mulf %70, %72 : vector<1x512xf32>
    %cst_36 = arith.constant 9.99999974E-6 : f32
    %74 = vector.broadcast %cst_36 : f32 to vector<1x512xf32>
    %75 = arith.addf %73, %74 : vector<1x512xf32>
    %76 = math.rsqrt %75 : vector<1x512xf32>
    %77 = arith.mulf %71, %76 : vector<1x512xf32>
    %c0_37 = arith.constant 0 : index
    %c0_38 = arith.constant 0 : index
    %78 = vector.load %arg12[%c0_37, %c0_38] : memref<1x512xf32, #tpu.memory_space<vmem>>, vector<1x512xf32>
    %79 = arith.mulf %63, %59 : vector<1x512xf32>
    %80 = arith.mulf %79, %77 : vector<1x512xf32>
    %81 = arith.subf %78, %80 : vector<1x512xf32>
    %82 = arith.mulf %77, %59 : vector<1x512xf32>
    %83 = vector.broadcast %82 : vector<1x512xf32> to vector<8x512xf32>
    %84 = arith.mulf %58, %83 : vector<8x512xf32>
    %85 = vector.broadcast %81 : vector<1x512xf32> to vector<8x512xf32>
    %86 = arith.addf %84, %85 : vector<8x512xf32>
    %cst_39 = arith.constant 0.000000e+00 : f32
    %87 = vector.broadcast %cst_39 : f32 to vector<8x512xf32>
    %88 = arith.cmpf ogt, %86, %87 : vector<8x512xf32>
    %cst_40 = arith.constant 2.000000e-01 : f32
    %89 = vector.broadcast %cst_40 : f32 to vector<8x512xf32>
    %90 = arith.mulf %89, %86 : vector<8x512xf32>
    %91 = arith.select %88, %86, %90 : vector<8x512xi1>, vector<8x512xf32>
    %92 = arith.truncf %91 : vector<8x512xf32> to vector<8x512xbf16>
    %c0_41 = arith.constant 0 : index
    %c0_42 = arith.constant 0 : index
    %93 = vector.load %arg13[%c0_41, %c0_42] : memref<512x1024xi8, #tpu.memory_space<vmem>>, vector<512x1024xi8>
    %94 = arith.sitofp %93 : vector<512x1024xi8> to vector<512x1024xf32>
    %95 = arith.truncf %94 : vector<512x1024xf32> to vector<512x1024xbf16>
    %cst_43 = arith.constant dense<0.000000e+00> : vector<8x1024xf32>
    %96 = tpu.matmul %92, %95, %cst_43 {dimension_numbers = #tpu.dot_dimension_numbers<[1], [0], [0], [1], [0, 0, 1, 1], [], []>} : vector<8x512xbf16>, vector<512x1024xbf16>, vector<8x1024xf32> -> vector<8x1024xf32>
    %c0_44 = arith.constant 0 : index
    %c0_45 = arith.constant 0 : index
    %97 = vector.load %arg14[%c0_44, %c0_45] : memref<1x1024xf32, #tpu.memory_space<vmem>>, vector<1x1024xf32>
    %cst_46 = arith.constant dense<0.000000e+00> : vector<1024xf32>
    %98 = vector.multi_reduction <add>, %96, %cst_46 [0] : vector<8x1024xf32> to vector<1024xf32>
    %99 = vector.shape_cast %98 : vector<1024xf32> to vector<1x1024xf32>
    %cst_47 = arith.constant 8.000000e+00 : f32
    %100 = vector.broadcast %cst_47 : f32 to vector<1x1024xf32>
    %101 = arith.divf %99, %100 : vector<1x1024xf32>
    %102 = arith.mulf %96, %96 : vector<8x1024xf32>
    %cst_48 = arith.constant dense<0.000000e+00> : vector<1024xf32>
    %103 = vector.multi_reduction <add>, %102, %cst_48 [0] : vector<8x1024xf32> to vector<1024xf32>
    %104 = vector.shape_cast %103 : vector<1024xf32> to vector<1x1024xf32>
    %cst_49 = arith.constant 8.000000e+00 : f32
    %105 = vector.broadcast %cst_49 : f32 to vector<1x1024xf32>
    %106 = arith.divf %104, %105 : vector<1x1024xf32>
    %107 = arith.mulf %101, %101 : vector<1x1024xf32>
    %108 = arith.subf %106, %107 : vector<1x1024xf32>
    %c0_50 = arith.constant 0 : index
    %c0_51 = arith.constant 0 : index
    %109 = vector.load %arg15[%c0_50, %c0_51] : memref<1x1024xf32, #tpu.memory_space<vmem>>, vector<1x1024xf32>
    %110 = arith.mulf %97, %97 : vector<1x1024xf32>
    %111 = arith.mulf %108, %110 : vector<1x1024xf32>
    %cst_52 = arith.constant 9.99999974E-6 : f32
    %112 = vector.broadcast %cst_52 : f32 to vector<1x1024xf32>
    %113 = arith.addf %111, %112 : vector<1x1024xf32>
    %114 = math.rsqrt %113 : vector<1x1024xf32>
    %115 = arith.mulf %109, %114 : vector<1x1024xf32>
    %c0_53 = arith.constant 0 : index
    %c0_54 = arith.constant 0 : index
    %116 = vector.load %arg16[%c0_53, %c0_54] : memref<1x1024xf32, #tpu.memory_space<vmem>>, vector<1x1024xf32>
    %117 = arith.mulf %101, %97 : vector<1x1024xf32>
    %118 = arith.mulf %117, %115 : vector<1x1024xf32>
    %119 = arith.subf %116, %118 : vector<1x1024xf32>
    %120 = arith.mulf %115, %97 : vector<1x1024xf32>
    %121 = vector.broadcast %120 : vector<1x1024xf32> to vector<8x1024xf32>
    %122 = arith.mulf %96, %121 : vector<8x1024xf32>
    %123 = vector.broadcast %119 : vector<1x1024xf32> to vector<8x1024xf32>
    %124 = arith.addf %122, %123 : vector<8x1024xf32>
    %cst_55 = arith.constant 0.000000e+00 : f32
    %125 = vector.broadcast %cst_55 : f32 to vector<8x1024xf32>
    %126 = arith.cmpf ogt, %124, %125 : vector<8x1024xf32>
    %cst_56 = arith.constant 2.000000e-01 : f32
    %127 = vector.broadcast %cst_56 : f32 to vector<8x1024xf32>
    %128 = arith.mulf %127, %124 : vector<8x1024xf32>
    %129 = arith.select %126, %124, %128 : vector<8x1024xi1>, vector<8x1024xf32>
    %130 = arith.truncf %129 : vector<8x1024xf32> to vector<8x1024xbf16>
    %c0_57 = arith.constant 0 : index
    %c0_58 = arith.constant 0 : index
    %131 = vector.load %arg17[%c0_57, %c0_58] : memref<1024x784xi8, #tpu.memory_space<vmem>>, vector<1024x784xi8>
    %132 = arith.sitofp %131 : vector<1024x784xi8> to vector<1024x784xf32>
    %133 = arith.truncf %132 : vector<1024x784xf32> to vector<1024x784xbf16>
    %cst_59 = arith.constant dense<0.000000e+00> : vector<8x784xf32>
    %134 = tpu.matmul %130, %133, %cst_59 {dimension_numbers = #tpu.dot_dimension_numbers<[1], [0], [0], [1], [0, 0, 1, 1], [], []>} : vector<8x1024xbf16>, vector<1024x784xbf16>, vector<8x784xf32> -> vector<8x784xf32>
    %c0_60 = arith.constant 0 : index
    %c0_61 = arith.constant 0 : index
    %135 = vector.load %arg18[%c0_60, %c0_61] : memref<1x784xf32, #tpu.memory_space<vmem>>, vector<1x784xf32>
    %136 = vector.broadcast %135 : vector<1x784xf32> to vector<8x784xf32>
    %137 = arith.mulf %134, %136 : vector<8x784xf32>
    %c0_62 = arith.constant 0 : index
    %c0_63 = arith.constant 0 : index
    %138 = vector.load %arg19[%c0_62, %c0_63] : memref<1x784xf32, #tpu.memory_space<vmem>>, vector<1x784xf32>
    %139 = vector.broadcast %138 : vector<1x784xf32> to vector<8x784xf32>
    %140 = arith.addf %137, %139 : vector<8x784xf32>
    %141 = math.tanh %140 : vector<8x784xf32>
    %c0_64 = arith.constant 0 : index
    %c0_65 = arith.constant 0 : index
    %142 = vector.load %arg20[%c0_64, %c0_65] : memref<8x784xf32, #tpu.memory_space<vmem>>, vector<8x784xf32>
    tpu.vector_store %arg20[%c0_64, %c0_65], %141 {strides = array<i32>} : memref<8x784xf32, #tpu.memory_space<vmem>>, vector<8x784xf32>,
    return
  }
  func.func @transform_0(%arg0: i32) -> (i32, i32) {
    %c0_i32 = arith.constant 0 : i32
    %c0_i32_0 = arith.constant 0 : i32
    return %arg0, %c0_i32 : i32, i32
  }
  func.func @transform_1(%arg0: i32) -> (i32, i32) {
    %c0_i32 = arith.constant 0 : i32
    %c0_i32_0 = arith.constant 0 : i32
    %c0_i32_1 = arith.constant 0 : i32
    return %c0_i32, %c0_i32_0 : i32, i32
  }
  func.func @transform_2(%arg0: i32) -> (i32, i32) {
    %c0_i32 = arith.constant 0 : i32
    %c0_i32_0 = arith.constant 0 : i32
    %c0_i32_1 = arith.constant 0 : i32
    return %c0_i32, %c0_i32_0 : i32, i32
  }
  func.func @transform_3(%arg0: i32) -> (i32, i32) {
    %c0_i32 = arith.constant 0 : i32
    %c0_i32_0 = arith.constant 0 : i32
    %c0_i32_1 = arith.constant 0 : i32
    return %c0_i32, %c0_i32_0 : i32, i32
  }
  func.func @transform_4(%arg0: i32) -> (i32, i32) {
    %c0_i32 = arith.constant 0 : i32
    %c0_i32_0 = arith.constant 0 : i32
    %c0_i32_1 = arith.constant 0 : i32
    return %c0_i32, %c0_i32_0 : i32, i32
  }
  func.func @transform_5(%arg0: i32) -> (i32, i32) {
    %c0_i32 = arith.constant 0 : i32
    %c0_i32_0 = arith.constant 0 : i32
    %c0_i32_1 = arith.constant 0 : i32
    return %c0_i32, %c0_i32_0 : i32, i32
  }
  func.func @transform_6(%arg0: i32) -> (i32, i32) {
    %c0_i32 = arith.constant 0 : i32
    %c0_i32_0 = arith.constant 0 : i32
    %c0_i32_1 = arith.constant 0 : i32
    return %c0_i32, %c0_i32_0 : i32, i32
  }
  func.func @transform_7(%arg0: i32) -> (i32, i32) {
    %c0_i32 = arith.constant 0 : i32
    %c0_i32_0 = arith.constant 0 : i32
    %c0_i32_1 = arith.constant 0 : i32
    return %c0_i32, %c0_i32_0 : i32, i32
  }
  func.func @transform_8(%arg0: i32) -> (i32, i32) {
    %c0_i32 = arith.constant 0 : i32
    %c0_i32_0 = arith.constant 0 : i32
    %c0_i32_1 = arith.constant 0 : i32
    return %c0_i32, %c0_i32_0 : i32, i32
  }
  func.func @transform_9(%arg0: i32) -> (i32, i32) {
    %c0_i32 = arith.constant 0 : i32
    %c0_i32_0 = arith.constant 0 : i32
    %c0_i32_1 = arith.constant 0 : i32
    return %c0_i32, %c0_i32_0 : i32, i32
  }
  func.func @transform_10(%arg0: i32) -> (i32, i32) {
    %c0_i32 = arith.constant 0 : i32
    %c0_i32_0 = arith.constant 0 : i32
    %c0_i32_1 = arith.constant 0 : i32
    return %c0_i32, %c0_i32_0 : i32, i32
  }
  func.func @transform_11(%arg0: i32) -> (i32, i32) {
    %c0_i32 = arith.constant 0 : i32
    %c0_i32_0 = arith.constant 0 : i32
    %c0_i32_1 = arith.constant 0 : i32
    return %c0_i32, %c0_i32_0 : i32, i32
  }
  func.func @transform_12(%arg0: i32) -> (i32, i32) {
    %c0_i32 = arith.constant 0 : i32
    %c0_i32_0 = arith.constant 0 : i32
    %c0_i32_1 = arith.constant 0 : i32
    return %c0_i32, %c0_i32_0 : i32, i32
  }
  func.func @transform_13(%arg0: i32) -> (i32, i32) {
    %c0_i32 = arith.constant 0 : i32
    %c0_i32_0 = arith.constant 0 : i32
    %c0_i32_1 = arith.constant 0 : i32
    return %c0_i32, %c0_i32_0 : i32, i32
  }
  func.func @transform_14(%arg0: i32) -> (i32, i32) {
    %c0_i32 = arith.constant 0 : i32
    %c0_i32_0 = arith.constant 0 : i32
    %c0_i32_1 = arith.constant 0 : i32
    return %c0_i32, %c0_i32_0 : i32, i32
  }
  func.func @transform_15(%arg0: i32) -> (i32, i32) {
    %c0_i32 = arith.constant 0 : i32
    %c0_i32_0 = arith.constant 0 : i32
    %c0_i32_1 = arith.constant 0 : i32
    return %c0_i32, %c0_i32_0 : i32, i32
  }
  func.func @transform_16(%arg0: i32) -> (i32, i32) {
    %c0_i32 = arith.constant 0 : i32
    %c0_i32_0 = arith.constant 0 : i32
    %c0_i32_1 = arith.constant 0 : i32
    return %c0_i32, %c0_i32_0 : i32, i32
  }
  func.func @transform_17(%arg0: i32) -> (i32, i32) {
    %c0_i32 = arith.constant 0 : i32
    %c0_i32_0 = arith.constant 0 : i32
    %c0_i32_1 = arith.constant 0 : i32
    return %c0_i32, %c0_i32_0 : i32, i32
  }
  func.func @transform_18(%arg0: i32) -> (i32, i32) {
    %c0_i32 = arith.constant 0 : i32
    %c0_i32_0 = arith.constant 0 : i32
    %c0_i32_1 = arith.constant 0 : i32
    return %c0_i32, %c0_i32_0 : i32, i32
  }
  func.func @transform_19(%arg0: i32) -> (i32, i32) {
    %c0_i32 = arith.constant 0 : i32
    %c0_i32_0 = arith.constant 0 : i32
    return %arg0, %c0_i32 : i32, i32
  }
}

</mosaic_0001>

<bundles_post_ra>
// kernel: tpu_custom_call.1
= control target key start
LH: loop header
LB: loop body
LE: loop exit
PB: predicated region body
PF: predicated region fallthrough
CT: control target
= control target key end

     0   :  { %s9198_s0 = inlined_call_operand.vmem [shape: bf16[8,32], index: 0, kind: input, shape index: {}]   ;;  %s9199_s1 = inlined_call_operand.vmem [shape: s8[32,128], index: 1, kind: input, shape index: {}]   ;;  %s9200_s2 = inlined_call_operand.vmem [shape: f32[1,128], index: 2, kind: input, shape index: {}]   ;;  %s9201_s3 = inlined_call_operand.vmem [shape: f32[1,128], index: 3, kind: input, shape index: {}]   ;;  %s9202_s4 = inlined_call_operand.vmem [shape: s8[128,256], index: 4, kind: input, shape index: {}]   ;;  %s9203_s5 = inlined_call_operand.vmem [shape: f32[1,256], index: 5, kind: input, shape index: {}]   ;;  %s9204_s6 = inlined_call_operand.vmem [shape: f32[1,256], index: 6, kind: input, shape index: {}]   ;;  %s9205_s7 = inlined_call_operand.vmem [shape: f32[1,256], index: 7, kind: input, shape index: {}]   ;;  %s9206_s8 = inlined_call_operand.vmem [shape: s8[256,512], index: 8, kind: input, shape index: {}]   ;;  %s9207_s9 = inlined_call_operand.vmem [shape: f32[1,512], index: 9, kind: input, shape index: {}]   ;;  %s9208_s10 = inlined_call_operand.vmem [shape: f32[1,512], index: 10, kind: input, shape index: {}]   ;;  %s9209_s11 = inlined_call_operand.vmem [shape: f32[1,512], index: 11, kind: input, shape index: {}]   ;;  %s9210_s12 = inlined_call_operand.vmem [shape: s8[512,1024], index: 12, kind: input, shape index: {}]   ;;  %s9211_s13 = inlined_call_operand.vmem [shape: f32[1,1024], index: 13, kind: input, shape index: {}]   ;;  %s9212_s14 = inlined_call_operand.vmem [shape: f32[1,1024], index: 14, kind: input, shape index: {}]   ;;  %s9213_s15 = inlined_call_operand.vmem [shape: f32[1,1024], index: 15, kind: input, shape index: {}]   ;;  %s9214_s16 = inlined_call_operand.vmem [shape: s8[1024,784], index: 16, kind: input, shape index: {}]   ;;  %s9215_s17 = inlined_call_operand.vmem [shape: f32[1,784], index: 17, kind: input, shape index: {}]   ;;  %s9216_s18 = inlined_call_operand.vmem [shape: f32[1,784], index: 18, kind: input, shape index: {}]   ;;  %s9217_s19 = inlined_call_operand.hbm [shape: f32[8,784], index: 19, kind: output, shape index: {}]  }
   0x1   :  { %9218 = sst [smem:[#allocation5_spill]] %s9198_s0 }
   0x2   :  { %9219 = sst [smem:[#allocation6_spill]] %s9199_s1 }
   0x3   :  { %9220 = sst [smem:[#allocation7_spill]] %s9200_s2 }
   0x4   :  { %9221 = sst [smem:[#allocation8_spill]] %s9201_s3 }
   0x5   :  { %s9222_s20 = sld [smem:[#allocation6_spill]]  ;;  %v113_v1 = vld [vmem:[%s9202_s4 + $0x30] sm:$0xff]  ;;  %v114_v6 = vld [vmem:[%s9202_s4 + $0x38] sm:$0xff]  ;;  %vm76_vm0 = vcmask 261120  }
   0x6   :  { %v143_v7 = vunpack.c.2.s8 %v113_v1  ;;  %v145_v8 = vunpack.c.3.s8 %v113_v1  ;;  %v144_v9 = vunpack.c.2.s8 %v114_v6  ;;  %v146_v10 = vunpack.c.3.s8 %v114_v6 }
   0xb   :  { %v65_v0 = vld [vmem:[%s9222_s20] sm:$0xff] }
   0xc   :  { %v68_v2 = vunpack.c.2.s8 %v65_v0  ;;  %v69_v3 = vunpack.c.3.s8 %v65_v0  ;;  %v66_v4 = vunpack.c.0.s8 %v65_v0  ;;  %v67_v5 = vunpack.c.1.s8 %v65_v0 }
   0xe   :  { %v72_v11 = vcvt.s32.f32 %v68_v2  ;;  %v73_v12 = vcvt.s32.f32 %v69_v3  ;;  %v70_v13 = vcvt.s32.f32 %v66_v4  ;;  %v71_v14 = vcvt.s32.f32 %v67_v5 }
   0xf   :  { %24 = vsyncpa [#allocation3], 0  ;;  %v175_v15 = vcvt.s32.f32 %v143_v7  ;;  %v177_v16 = vcvt.s32.f32 %v145_v8  ;;  %v176_v17 = vcvt.s32.f32 %v144_v9  ;;  %v178_v18 = vcvt.s32.f32 %v146_v10  ;;  %v111_v19 = vld [vmem:[%s9202_s4 + $0x20] sm:$0xff]  ;;  %v112_v24 = vld [vmem:[%s9202_s4 + $0x28] sm:$0xff]  ;;  %s9223_s20 = sld [smem:[#allocation5_spill]] }
  0x10   :  { %v75_v20 = vpack.c.bf16 %v73_v12, %v72_v11  ;;  %v74_v21 = vpack.c.bf16 %v71_v14, %v70_v13  ;;  %v139_v22 = vunpack.c.0.s8 %v113_v1  ;;  %v141_v23 = vunpack.c.1.s8 %v113_v1  ;;  %v109_v41 = vld [vmem:[%s9202_s4 + $0x10] sm:$0xff]  ;;  %v110_v46 = vld [vmem:[%s9202_s4 + $0x18] sm:$0xff]  ;;  %v107_v14 = vld [vmem:[%s9202_s4] sm:$0xff]  ;;  %s9224_s24 = sld [smem:[#allocation7_spill]] }
  0x11   :  { %v193_v25 = vpack.c.bf16 %v177_v16, %v175_v15  ;;  %v194_v26 = vpack.c.bf16 %v178_v18, %v176_v17  ;;  %v140_v27 = vunpack.c.0.s8 %v114_v6  ;;  %v142_v28 = vunpack.c.1.s8 %v114_v6  ;;  %v108_v15 = vld [vmem:[%s9202_s4 + $0x8] sm:$0xff]  ;;  %s9225_s26 = sld [smem:[#allocation8_spill]] }
  0x12   :  { %86 = vmatpush.bf16.msra.mxu0 %v75_v20  ;;  %v171_v29 = vcvt.s32.f32 %v139_v22  ;;  %v173_v30 = vcvt.s32.f32 %v141_v23  ;;  %v135_v31 = vunpack.c.2.s8 %v111_v19  ;;  %v137_v32 = vunpack.c.3.s8 %v111_v19 }
  0x13   :  { %195 = vmatpush.bf16.msra.mxu1 %v193_v25  ;;  %208 = vmatpush.bf16.msra.mxu2 %v194_v26  ;;  %v172_v33 = vcvt.s32.f32 %v140_v27  ;;  %v174_v34 = vcvt.s32.f32 %v142_v28  ;;  %v136_v35 = vunpack.c.2.s8 %v112_v24  ;;  %v138_v36 = vunpack.c.3.s8 %v112_v24 }
  0x14   :  { %v191_v37 = vpack.c.bf16 %v173_v30, %v171_v29  ;;  %v167_v38 = vcvt.s32.f32 %v135_v31  ;;  %v169_v39 = vcvt.s32.f32 %v137_v32  ;;  %v131_v40 = vunpack.c.0.s8 %v111_v19 }
  0x15   :  { %v192_v42 = vpack.c.bf16 %v174_v34, %v172_v33  ;;  %v168_v43 = vcvt.s32.f32 %v136_v35  ;;  %v170_v44 = vcvt.s32.f32 %v138_v36  ;;  %v133_v45 = vunpack.c.1.s8 %v111_v19  ;;  %v64_v47 = vld [vmem:[%s9223_s20] sm:$0xf] }
  0x16   :  { %87 = vmatpush.bf16.msra.mxu0 %v74_v21  ;;  %v189_v48 = vpack.c.bf16 %v169_v39, %v167_v38  ;;  %v163_v49 = vcvt.s32.f32 %v131_v40  ;;  %v132_v50 = vunpack.c.0.s8 %v112_v24  ;;  %v134_v51 = vunpack.c.1.s8 %v112_v24  ;;  %v6559_v36 = vld [vmem:[%s9224_s24] ss:$0 sm:$0xff] }
  0x17   :  { %196 = vmatpush.bf16.msra.mxu1 %v191_v37  ;;  %209 = vmatpush.bf16.msra.mxu2 %v192_v42  ;;  %v190_v52 = vpack.c.bf16 %v170_v44, %v168_v43  ;;  %v165_v53 = vcvt.s32.f32 %v133_v45  ;;  %v127_v54 = vunpack.c.2.s8 %v109_v41  ;;  %v129_v55 = vunpack.c.3.s8 %v109_v41  ;;  %v6560_v37 = vld [vmem:[%s9225_s26] ss:$0 sm:$0xff] }
  0x18   :  { %v164_v56 = vcvt.s32.f32 %v132_v50  ;;  %v166_v57 = vcvt.s32.f32 %v134_v51  ;;  %v128_v58 = vunpack.c.2.s8 %v110_v46  ;;  %v130_v59 = vunpack.c.3.s8 %v110_v46  ;;  %v6778_v51 = vld [vmem:[%s9203_s5] sm:$0x3] }
  0x19   :  { %6556 = vmatmul.msk.bf16.vlgmr.msra.gmra.mxu0 %vm76_vm0, %v64_v47  ;;  %v187_v60 = vpack.c.bf16 %v165_v53, %v163_v49  ;;  %v159_v61 = vcvt.s32.f32 %v127_v54  ;;  %v161_v63 = vcvt.s32.f32 %v129_v55  ;;  %v123_v1 = vunpack.c.0.s8 %v109_v41  ;;  %v357_v55 = vld [vmem:[%s9206_s8 + $0x60] sm:$0xff] }
  0x1a   :  { %v188_v62 = vpack.c.bf16 %v166_v57, %v164_v56  ;;  %v160_v0 = vcvt.s32.f32 %v128_v58  ;;  %v162_v2 = vcvt.s32.f32 %v130_v59  ;;  %v125_v3 = vunpack.c.1.s8 %v109_v41  ;;  %v373_v56 = vld [vmem:[%s9206_s8 + $0xe0] sm:$0xff]  ;;  %v358_v57 = vld [vmem:[%s9206_s8 + $0x68] sm:$0xff] }
  0x1b   :  { %197 = vmatpush.bf16.msra.mxu1 %v189_v48  ;;  %210 = vmatpush.bf16.msra.mxu2 %v190_v52  ;;  %v124_v4 = vunpack.c.0.s8 %v110_v46  ;;  %v126_v5 = vunpack.c.1.s8 %v110_v46  ;;  %v185_v6 = vpack.c.bf16 %v161_v63, %v159_v61  ;;  %v155_v7 = vcvt.s32.f32 %v123_v1 }
  0x1c   :  { %v186_v8 = vpack.c.bf16 %v162_v2, %v160_v0  ;;  %v157_v9 = vcvt.s32.f32 %v125_v3  ;;  %v119_v16 = vunpack.c.2.s8 %v107_v14  ;;  %v121_v17 = vunpack.c.3.s8 %v107_v14 }
  0x1d   :  { %v156_v10 = vcvt.s32.f32 %v124_v4  ;;  %v158_v11 = vcvt.s32.f32 %v126_v5  ;;  %v120_v18 = vunpack.c.2.s8 %v108_v15  ;;  %v122_v19 = vunpack.c.3.s8 %v108_v15 }
  0x1e   :  { %v183_v12 = vpack.c.bf16 %v157_v9, %v155_v7  ;;  %v151_v20 = vcvt.s32.f32 %v119_v16  ;;  %v153_v21 = vcvt.s32.f32 %v121_v17  ;;  %v115_v26 = vunpack.c.0.s8 %v107_v14 }
  0x1f   :  { %198 = vmatpush.bf16.msra.mxu1 %v187_v60  ;;  %211 = vmatpush.bf16.msra.mxu2 %v188_v62  ;;  %v184_v13 = vpack.c.bf16 %v158_v11, %v156_v10  ;;  %v152_v22 = vcvt.s32.f32 %v120_v18  ;;  %v154_v23 = vcvt.s32.f32 %v122_v19  ;;  %v117_v27 = vunpack.c.1.s8 %v107_v14  ;;  %v374_v62 = vld [vmem:[%s9206_s8 + $0xe8] sm:$0xff] }
  0x20   :  { %v181_v24 = vpack.c.bf16 %v153_v21, %v151_v20  ;;  %v116_v28 = vunpack.c.0.s8 %v108_v15  ;;  %v118_v29 = vunpack.c.1.s8 %v108_v15  ;;  %v147_v30 = vcvt.s32.f32 %v115_v26 }
  0x21   :  { %v182_v25 = vpack.c.bf16 %v154_v23, %v152_v22  ;;  %v149_v31 = vcvt.s32.f32 %v117_v27  ;;  %v6636_v45 = vmov 8.0   ;;  %v6784_v53 = vmul.f32 %v6778_v51, %v6778_v51  ;;  %v353_v27 = vld [vmem:[%s9206_s8 + $0x40] sm:$0xff] }
  0x22   :  { %v148_v32 = vcvt.s32.f32 %v116_v28  ;;  %v150_v33 = vcvt.s32.f32 %v118_v29  ;;  %6561 = vrcp.f32 %v6636_v45  ;;  %v303_v54 = vperm.slane %v6778_v51, 0  ;;  %v369_v28 = vld [vmem:[%s9206_s8 + $0xc0] sm:$0xff] }
  0x23   :  { %199 = vmatpush.bf16.msra.mxu1 %v185_v6  ;;  %212 = vmatpush.bf16.msra.mxu2 %v186_v8  ;;  %v179_v34 = vpack.c.bf16 %v149_v31, %v147_v30  ;;  %v433_v58 = vunpack.c.2.s8 %v357_v55  ;;  %v437_v59 = vunpack.c.3.s8 %v357_v55  ;;  %v497_v60 = vunpack.c.2.s8 %v373_v56 }
  0x24   :  { %v180_v35 = vpack.c.bf16 %v150_v33, %v148_v32  ;;  %v501_v61 = vunpack.c.3.s8 %v373_v56  ;;  %v434_v63 = vunpack.c.2.s8 %v358_v57  ;;  %v438_v0 = vunpack.c.3.s8 %v358_v57  ;;  %v6809_v33 = vld [vmem:[%s9206_s8 + $0x48] sm:$0xff] }
  0x25   :  { %v498_v1 = vunpack.c.2.s8 %v374_v62  ;;  %v502_v2 = vunpack.c.3.s8 %v374_v62  ;;  %v561_v3 = vcvt.s32.f32 %v433_v58  ;;  %v565_v4 = vcvt.s32.f32 %v437_v59 }
  0x26   :  { %v625_v5 = vcvt.s32.f32 %v497_v60  ;;  %v629_v6 = vcvt.s32.f32 %v501_v61  ;;  %v266_v7 = vperm.slane %v6784_v53, 0  ;;  %v562_v8 = vcvt.s32.f32 %v434_v63 }
  0x27   :  { %200 = vmatpush.bf16.msra.mxu1 %v183_v12  ;;  %213 = vmatpush.bf16.msra.mxu2 %v184_v13  ;;  %v566_v9 = vcvt.s32.f32 %v438_v0  ;;  %v626_v10 = vcvt.s32.f32 %v498_v1  ;;  %v661_v11 = vpack.c.bf16 %v565_v4, %v561_v3  ;;  %v630_v13 = vcvt.s32.f32 %v502_v2 }
  0x28   :  { %v6562_v46 = vpop.eup %6561  ;;  %v693_v12 = vpack.c.bf16 %v629_v6, %v625_v5  ;;  %v425_v14 = vunpack.c.0.s8 %v357_v55  ;;  %v429_v16 = vunpack.c.1.s8 %v357_v55  ;;  %v489_v17 = vunpack.c.0.s8 %v373_v56 }
  0x29   :  { %v235_v47 = vmul.f32 8.0, %v6562_v46  ;;  %vm239_vm2 = vweird.f32 %v6562_v46  ;;  %v662_v15 = vpack.c.bf16 %v566_v9, %v562_v8  ;;  %v493_v18 = vunpack.c.1.s8 %v373_v56  ;;  %697 = vmatpush.bf16.msra.mxu3 %v661_v11 }
  0x2a   :  { %710 = vmatpush.bf16.msrb.mxu0 %v693_v12  ;;  %v694_v19 = vpack.c.bf16 %v630_v13, %v626_v10  ;;  %v553_v20 = vcvt.s32.f32 %v425_v14  ;;  %v426_v21 = vunpack.c.0.s8 %v358_v57  ;;  %v430_v22 = vunpack.c.1.s8 %v358_v57 }
  0x2b   :  { %201 = vmatpush.bf16.msra.mxu1 %v181_v24  ;;  %214 = vmatpush.bf16.msra.mxu2 %v182_v25  ;;  %v236_v48 = vsub.f32 1.0, %v235_v47  ;;  %v557_v23 = vcvt.s32.f32 %v429_v16  ;;  %v617_v24 = vcvt.s32.f32 %v489_v17  ;;  %v621_v25 = vcvt.s32.f32 %v493_v18  ;;  %v6818_v47 = vld [vmem:[%s9206_s8 + $0xc8] sm:$0xff] }
  0x2c   :  { %v490_v26 = vunpack.c.0.s8 %v374_v62  ;;  %v554_v29 = vcvt.s32.f32 %v426_v21  ;;  %v558_v30 = vcvt.s32.f32 %v430_v22  ;;  %v494_v31 = vunpack.c.1.s8 %v374_v62 }
  0x2d   :  { %v237_v49 = vmul.f32 %v6562_v46, %v236_v48  ;;  %v417_v32 = vunpack.c.2.s8 %v353_v27  ;;  %v418_v45 = vunpack.c.2.s8 %v6809_v33  ;;  %v482_v62 = vunpack.c.2.s8 %v6818_v47 }
  0x2e   :  { %v486_v63 = vunpack.c.3.s8 %v6818_v47  ;;  %v409_v2 = vunpack.c.0.s8 %v353_v27  ;;  %v413_v3 = vunpack.c.1.s8 %v353_v27  ;;  %v473_v12 = vunpack.c.0.s8 %v369_v28 }
  0x2f   :  { %202 = vmatpush.bf16.msra.mxu1 %v179_v34  ;;  %215 = vmatpush.bf16.msra.mxu2 %v180_v35  ;;  %v238_v50 = vadd.f32 %v6562_v46, %v237_v49  ;;  %v657_v34 = vpack.c.bf16 %v557_v23, %v553_v20  ;;  %v689_v35 = vpack.c.bf16 %v621_v25, %v617_v24  ;;  %v546_v58 = vcvt.s32.f32 %v418_v45 }
  0x30   :  { %v610_v6 = vcvt.s32.f32 %v482_v62  ;;  %v614_v8 = vcvt.s32.f32 %v486_v63  ;;  %v537_v10 = vcvt.s32.f32 %v409_v2  ;;  %v541_v11 = vcvt.s32.f32 %v413_v3 }
  0x31   :  { %v6780_v52 = vsel %vm239_vm2, %v6562_v46, %v238_v50  ;;  %698 = vmatpush.bf16.msra.mxu3 %v657_v34  ;;  %711 = vmatpush.bf16.msrb.mxu0 %v689_v35  ;;  %v422_v46 = vunpack.c.3.s8 %v6809_v33  ;;  %v477_v13 = vunpack.c.1.s8 %v369_v28  ;;  %v601_v21 = vcvt.s32.f32 %v473_v12 }
  0x32   :  { %v649_v20 = vpack.c.bf16 %v541_v11, %v537_v10  ;;  %v366_v10 = vld [vmem:[%s9206_s8 + $0xa8] sm:$0xff]  ;;  %vm297_vm8 = vcmask 1040384  }
  0x33   :  { %723 = vmatpush.bf16.msrb.mxu1 %v662_v15  ;;  %736 = vmatpush.bf16.msrb.mxu2 %v694_v19  ;;  %v550_v59 = vcvt.s32.f32 %v422_v46  ;;  %v686_v19 = vpack.c.bf16 %v614_v8, %v610_v6  ;;  %v605_v22 = vcvt.s32.f32 %v477_v13 }
  0x35   :  { %v654_v1 = vpack.c.bf16 %v550_v59, %v546_v58  ;;  %v304_v58 = vperm.slane %v6778_v51, 1  ;;  %v350_v59 = vld [vmem:[%s9206_s8 + $0x28] sm:$0xff] }
  0x36   :  { %v402_v6 = vunpack.c.2.s8 %v350_v59  ;;  %v406_v8 = vunpack.c.3.s8 %v350_v59 }
  0x96   :  { %v89_v38 = vpop.f32.mrf.mxu0 }
  0x97   :  { %v97_v39 = vmul.f32 %v6559_v36, %v89_v38  ;;  %v618_v36 = vcvt.s32.f32 %v490_v26  ;;  %v658_v38 = vpack.c.bf16 %v558_v30, %v554_v29  ;;  %v414_v29 = vunpack.c.1.s8 %v6809_v33 }
  0x98   :  { %v474_v30 = vunpack.c.0.s8 %v6818_v47 }
  0x99   :  { %v102_v40 = vadd.f32 %v6560_v37, %v97_v39  ;;  %v421_v37 = vunpack.c.3.s8 %v353_v27  ;;  %v622_v39 = vcvt.s32.f32 %v494_v31  ;;  %724 = vmatpush.bf16.msrb.mxu1 %v658_v38  ;;  %v681_v27 = vpack.c.bf16 %v605_v22, %v601_v21 }
  0x9a   :  { %v542_v38 = vcvt.s32.f32 %v414_v29  ;;  %v466_v22 = vunpack.c.2.s8 %v366_v10 }
  0x9b   :  { %vm103_vm1 = vcmp.gt.f32.partialorder %v102_v40, 0.0  ;;  %v104_v41 = vmul.f32 0.2, %v102_v40  ;;  %v690_v50 = vpack.c.bf16 %v622_v39, %v618_v36  ;;  %v6838_v36 = vld [vmem:[%s9206_s8 + $0x20] sm:$0xff]  ;;  %v478_v39 = vunpack.c.1.s8 %v6818_v47 }
  0x9c   :  { %v397_v29 = vunpack.c.1.s8 %v6838_v36 }
  0x9d   :  { %v105_v42 = vsel %vm103_vm1, %v102_v40, %v104_v41  ;;  %v545_v40 = vcvt.s32.f32 %v417_v32  ;;  %v481_v41 = vunpack.c.2.s8 %v369_v28  ;;  %737 = vmatpush.bf16.msrb.mxu2 %v690_v50  ;;  %725 = vmatpush.bf16.msrb.mxu1 %v654_v1  ;;  %v405_v50 = vunpack.c.3.s8 %v6838_v36 }
  0x9e   :  { %v91_v43 = vpop.f32.mrf.mxu0  ;;  %v106_v44 = vpack.c.bf16 %v105_v42, %v105_v42 }
  0x9f   :  { %v549_v43 = vcvt.s32.f32 %v421_v37  ;;  %v609_v55 = vcvt.s32.f32 %v481_v41  ;;  %v533_v2 = vcvt.s32.f32 %v405_v50  ;;  %v361_v50 = vld [vmem:[%s9206_s8 + $0x80] sm:$0xff] }
  0xa0   :  { %203 = vmatmul.bf16.vlgmr.msra.gmra.mxu1 %v106_v44  ;;  %216 = vmatmul.bf16.vlgmr.msra.gmra.mxu2 %v106_v44  ;;  %v485_v44 = vunpack.c.3.s8 %v369_v28  ;;  %v410_v28 = vunpack.c.0.s8 %v6809_v33 }
  0xa1   :  { %v653_v56 = vpack.c.bf16 %v549_v43, %v545_v40  ;;  %738 = vmatpush.bf16.msrb.mxu2 %v686_v19  ;;  %v602_v40 = vcvt.s32.f32 %v474_v30 }
  0xa2   :  { %v613_v57 = vcvt.s32.f32 %v485_v44  ;;  %v538_v37 = vcvt.s32.f32 %v410_v28 }
  0xa3   :  { %699 = vmatpush.bf16.msra.mxu3 %v653_v56 }
  0xa4   :  { %v685_v0 = vpack.c.bf16 %v613_v57, %v609_v55  ;;  %v650_v46 = vpack.c.bf16 %v542_v38, %v538_v37  ;;  %v365_v55 = vld [vmem:[%s9206_s8 + $0xa0] sm:$0xff] }
  0xa5   :  { %v465_v3 = vunpack.c.2.s8 %v365_v55  ;;  %v457_v30 = vunpack.c.0.s8 %v365_v55  ;;  %v6874_v37 = vld [vmem:[%s9206_s8] sm:$0xff] }
  0xa6   :  { %712 = vmatpush.bf16.msrb.mxu0 %v685_v0  ;;  %726 = vmatpush.bf16.msrb.mxu1 %v650_v46 }
  0xa7   :  { %700 = vmatpush.bf16.msra.mxu3 %v649_v20 }
  0xaa   :  { %713 = vmatpush.bf16.msrb.mxu0 %v681_v27  ;;  %v393_v27 = vunpack.c.0.s8 %v6838_v36 }
 0x11d   :  { %v6811_v42 = vpop.f32.mrf.mxu1 }
 0x11e   :  { %v222_v48 = vrot.slane %v6811_v42, 4  ;;  %v243_v49 = vmul.f32 %v6811_v42, %v6811_v42 }
 0x120   :  { %v223_v60 = vadd.f32 %v222_v48, %v6811_v42  ;;  %v245_v61 = vrot.slane %v243_v49, 4  ;;  %v606_v48 = vcvt.s32.f32 %v478_v39 }
 0x122   :  { %v224_v4 = vrot.slane %v223_v60, 2  ;;  %v246_v5 = vadd.f32 %v245_v61, %v243_v49  ;;  %v401_v49 = vunpack.c.2.s8 %v6838_v36  ;;  %v267_v61 = vperm.slane %v6784_v53, 1 }
 0x123   :  { %v6826_v9 = vpop.f32.mrf.mxu2  ;;  %v682_v62 = vpack.c.bf16 %v606_v48, %v602_v40  ;;  %v525_v40 = vcvt.s32.f32 %v397_v29  ;;  %v462_v48 = vunpack.c.1.s8 %v366_v10 }
 0x124   :  { %v225_v14 = vadd.f32 %v224_v4, %v223_v60  ;;  %v247_v15 = vrot.slane %v246_v5, 2  ;;  %v228_v16 = vrot.slane %v6826_v9, 4  ;;  %v244_v17 = vmul.f32 %v6826_v9, %v6826_v9 }
 0x125   :  { %v206_v18 = vpop.f32.mrf.mxu1  ;;  %v529_v63 = vcvt.s32.f32 %v401_v49  ;;  %739 = vmatpush.bf16.msrb.mxu2 %v682_v62  ;;  %v385_v49 = vunpack.c.2.s8 %v6874_v37  ;;  %v590_v62 = vcvt.s32.f32 %v462_v48 }
 0x126   :  { %v226_v23 = vrot.slane %v225_v14, 1  ;;  %v248_v24 = vadd.f32 %v247_v15, %v246_v5  ;;  %v229_v25 = vadd.f32 %v228_v16, %v6826_v9  ;;  %v251_v26 = vrot.slane %v244_v17, 4 }
 0x127   :  { %v469_v5 = vunpack.c.3.s8 %v365_v55  ;;  %v645_v13 = vpack.c.bf16 %v533_v2, %v529_v63  ;;  %v534_v18 = vcvt.s32.f32 %v406_v8  ;;  %v513_v63 = vcvt.s32.f32 %v385_v49  ;;  %v360_v49 = vld [vmem:[%s9206_s8 + $0x78] sm:$0xff] }
 0x128   :  { %v227_v31 = vadd.f32 %v226_v23, %v225_v14  ;;  %v249_v32 = vrot.slane %v248_v24, 1  ;;  %v230_v34 = vrot.slane %v229_v25, 2  ;;  %v252_v35 = vadd.f32 %v251_v26, %v244_v17 }
 0x129   :  { %v593_v14 = vcvt.s32.f32 %v465_v3  ;;  %v597_v16 = vcvt.s32.f32 %v469_v5  ;;  %v530_v17 = vcvt.s32.f32 %v402_v6  ;;  %701 = vmatpush.bf16.msra.mxu3 %v645_v13  ;;  %v594_v26 = vcvt.s32.f32 %v466_v22 }
 0x12a   :  { %v241_v41 = vmul.f32 %v6780_v52, %v227_v31  ;;  %v250_v33 = vadd.f32 %v249_v32, %v248_v24  ;;  %v231_v43 = vadd.f32 %v230_v34, %v229_v25  ;;  %v253_v44 = vrot.slane %v252_v35, 2 }
 0x12b   :  { %v219_v45 = vpop.f32.mrf.mxu2  ;;  %v646_v23 = vpack.c.bf16 %v534_v18, %v530_v17  ;;  %v470_v24 = vunpack.c.3.s8 %v366_v10  ;;  %v521_v31 = vcvt.s32.f32 %v393_v27  ;;  %v461_v32 = vunpack.c.1.s8 %v365_v55 }
 0x12c   :  { %v257_v56 = vmul.f32 %v250_v33, %v6780_v52  ;;  %v259_v47 = vmul.f32 %v241_v41, %v241_v41  ;;  %v232_v57 = vrot.slane %v231_v43, 1  ;;  %v254_v60 = vadd.f32 %v253_v44, %v252_v35 }
 0x12d   :  { %v6863_v20 = vmul.f32 %v303_v54, %v241_v41  ;;  %727 = vmatpush.bf16.msrb.mxu1 %v646_v23  ;;  %v598_v54 = vcvt.s32.f32 %v470_v24  ;;  %v394_v34 = vunpack.c.0.s8 %v350_v59  ;;  %v398_v35 = vunpack.c.1.s8 %v350_v59  ;;  %v346_v59 = vld [vmem:[%s9206_s8 + $0x8] sm:$0xff] }
 0x12e   :  { %v261_v0 = vsub.f32 %v257_v56, %v259_v47  ;;  %v233_v1 = vadd.f32 %v232_v57, %v231_v43  ;;  %v255_v4 = vrot.slane %v254_v60, 1  ;;  %v585_v41 = vcvt.s32.f32 %v457_v30 }
 0x12f   :  { %v678_v39 = vpack.c.bf16 %v598_v54, %v594_v26  ;;  %v589_v33 = vcvt.s32.f32 %v461_v32  ;;  %v522_v43 = vcvt.s32.f32 %v394_v34  ;;  %v526_v44 = vcvt.s32.f32 %v398_v35  ;;  %v355_v32 = vld [vmem:[%s9206_s8 + $0x50] sm:$0xff] }
 0x130   :  { %v270_v11 = vmul.f32 %v266_v7, %v261_v0  ;;  %v242_v12 = vmul.f32 %v6780_v52, %v233_v1  ;;  %v256_v15 = vadd.f32 %v255_v4, %v254_v60  ;;  %v677_v7 = vpack.c.bf16 %v597_v16, %v593_v14 }
 0x131   :  { %v458_v45 = vunpack.c.0.s8 %v366_v10  ;;  %740 = vmatpush.bf16.msrb.mxu2 %v678_v39  ;;  %v641_v36 = vpack.c.bf16 %v525_v40, %v521_v31  ;;  %v673_v56 = vpack.c.bf16 %v589_v33, %v585_v41  ;;  %v642_v47 = vpack.c.bf16 %v526_v44, %v522_v43  ;;  %v359_v39 = vld [vmem:[%s9206_s8 + $0x70] sm:$0xff] }
 0x132   :  { %v6859_v19 = vadd.f32 1e-05, %v270_v11  ;;  %v260_v21 = vmul.f32 %v242_v12, %v242_v12  ;;  %v258_v53 = vmul.f32 %v256_v15, %v6780_v52  ;;  %v6867_v25 = vmul.f32 %v304_v58, %v242_v12  ;;  %714 = vmatpush.bf16.msrb.mxu0 %v677_v7  ;;  %v375_v43 = vld [vmem:[%s9206_s8 + $0xf0] sm:$0xff] }
 0x133   :  { %v586_v57 = vcvt.s32.f32 %v458_v45  ;;  %v389_v58 = vunpack.c.3.s8 %v6874_v37  ;;  %702 = vmatpush.bf16.msra.mxu3 %v641_v36  ;;  %728 = vmatpush.bf16.msrb.mxu1 %v642_v47  ;;  %v449_v1 = vunpack.c.2.s8 %v361_v50  ;;  %v453_v3 = vunpack.c.3.s8 %v361_v50 }
 0x134   :  { %6563 = vrsqrt.f32 %v6859_v19  ;;  %v262_v28 = vsub.f32 %v258_v53, %v260_v21  ;;  %vm280_vm3 = vweird.f32 %v6859_v19  ;;  %v386_v4 = vunpack.c.2.s8 %v346_v59 }
 0x135   :  { %v517_v0 = vcvt.s32.f32 %v389_v58  ;;  %v390_v5 = vunpack.c.3.s8 %v346_v59  ;;  %v674_v6 = vpack.c.bf16 %v590_v62, %v586_v57  ;;  %v577_v10 = vcvt.s32.f32 %v449_v1  ;;  %v6939_v62 = vld [vmem:[%s9206_s8 + $0xf8] sm:$0xff] }
 0x136   :  { %v271_v38 = vmul.f32 %v267_v61, %v262_v28  ;;  %v6896_v61 = vld [vmem:[%s9206_s8 + $0x88] sm:$0xff]  ;;  %715 = vmatpush.bf16.msrb.mxu0 %v673_v56  ;;  %v581_v13 = vcvt.s32.f32 %v453_v3  ;;  %v514_v14 = vcvt.s32.f32 %v386_v4  ;;  %v377_v18 = vunpack.c.0.s8 %v6874_v37 }
 0x137   :  { %v637_v8 = vpack.c.bf16 %v517_v0, %v513_v63  ;;  %v450_v11 = vunpack.c.2.s8 %v6896_v61  ;;  %v518_v15 = vcvt.s32.f32 %v390_v5  ;;  %741 = vmatpush.bf16.msrb.mxu2 %v674_v6  ;;  %v454_v16 = vunpack.c.3.s8 %v6896_v61 }
 0x138   :  { %v6876_v46 = vadd.f32 1e-05, %v271_v38  ;;  %v381_v21 = vunpack.c.1.s8 %v6874_v37  ;;  %v669_v7 = vpack.c.bf16 %v581_v13, %v577_v10  ;;  %v441_v24 = vunpack.c.0.s8 %v361_v50 }
 0x139   :  { %703 = vmatpush.bf16.msra.mxu3 %v637_v8  ;;  %v578_v17 = vcvt.s32.f32 %v450_v11  ;;  %v638_v23 = vpack.c.bf16 %v518_v15, %v514_v14  ;;  %v582_v27 = vcvt.s32.f32 %v454_v16  ;;  %v505_v28 = vcvt.s32.f32 %v377_v18  ;;  %v263_v16 = vld [vmem:[%s9204_s6] sm:$0x3] }
 0x13a   :  { %v6882_v55 = vpop.eup %6563  ;;  %6565 = vrsqrt.f32 %v6876_v46  ;;  %vm290_vm5 = vweird.f32 %v6876_v46  ;;  %716 = vmatpush.bf16.msrb.mxu0 %v669_v7  ;;  %v509_v29 = vcvt.s32.f32 %v381_v21  ;;  %v445_v30 = vunpack.c.1.s8 %v361_v50 }
 0x13b   :  { %v275_v60 = vmul.f32 %v6882_v55, %v6859_v19  ;;  %vm281_vm4 = vweird.f32 %v6882_v55  ;;  %729 = vmatpush.bf16.msrb.mxu1 %v638_v23  ;;  %v569_v31 = vcvt.s32.f32 %v441_v24  ;;  %v670_v35 = vpack.c.bf16 %v582_v27, %v578_v17 }
 0x13c   :  { %vm6916_vm7 = vmor %vm280_vm3, %vm281_vm4  ;;  %v378_v37 = vunpack.c.0.s8 %v346_v59  ;;  %v382_v38 = vunpack.c.1.s8 %v346_v59  ;;  %v633_v19 = vpack.c.bf16 %v509_v29, %v505_v28  ;;  %v573_v41 = vcvt.s32.f32 %v445_v30 }
 0x13d   :  { %v276_v2 = vmul.f32 %v6882_v55, %v275_v60  ;;  %v442_v33 = vunpack.c.0.s8 %v6896_v61  ;;  %742 = vmatpush.bf16.msrb.mxu2 %v670_v35  ;;  %v446_v48 = vunpack.c.1.s8 %v6896_v61  ;;  %v435_v56 = vunpack.c.2.s8 %v359_v39 }
 0x13e   :  { %v506_v45 = vcvt.s32.f32 %v378_v37  ;;  %v510_v36 = vcvt.s32.f32 %v382_v38  ;;  %704 = vmatpush.bf16.msra.mxu3 %v633_v19  ;;  %v665_v50 = vpack.c.bf16 %v573_v41, %v569_v31  ;;  %v439_v47 = vunpack.c.3.s8 %v359_v39 }
 0x13f   :  { %v277_v12 = vmul.f32 0.5, %v276_v2  ;;  %v574_v59 = vcvt.s32.f32 %v446_v48  ;;  %v499_v60 = vunpack.c.2.s8 %v375_v43  ;;  %v563_v61 = vcvt.s32.f32 %v435_v56 }
 0x140   :  { %v6903_v22 = vpop.eup %6565  ;;  %v634_v58 = vpack.c.bf16 %v510_v36, %v506_v45  ;;  %717 = vmatpush.bf16.msrb.mxu0 %v665_v50  ;;  %v567_v63 = vcvt.s32.f32 %v439_v47  ;;  %v503_v0 = vunpack.c.3.s8 %v375_v43  ;;  %v436_v1 = vunpack.c.2.s8 %v360_v49  ;;  %v371_v36 = vld [vmem:[%s9206_s8 + $0xd0] sm:$0xff] }
 0x141   :  { %v278_v53 = vsub.f32 1.5, %v277_v12  ;;  %v285_v26 = vmul.f32 %v6903_v22, %v6876_v46  ;;  %vm291_vm6 = vweird.f32 %v6903_v22  ;;  %v627_v4 = vcvt.s32.f32 %v499_v60 }
 0x142   :  { %730 = vmatpush.bf16.msrb.mxu1 %v634_v58  ;;  %v440_v5 = vunpack.c.3.s8 %v360_v49  ;;  %vm292_vm9 = vmor %vm290_vm5, %vm291_vm6  ;;  %v663_v6 = vpack.c.bf16 %v567_v63, %v563_v61  ;;  %v631_v8 = vcvt.s32.f32 %v503_v0  ;;  %v564_v10 = vcvt.s32.f32 %v436_v1 }
 0x143   :  { %v6910_v54 = vmul.f32 %v6882_v55, %v278_v53  ;;  %v286_v34 = vmul.f32 %v6903_v22, %v285_v26  ;;  %v500_v11 = vunpack.c.2.s8 %v6939_v62  ;;  %v504_v14 = vunpack.c.3.s8 %v6939_v62 }
 0x144   :  { %v568_v13 = vcvt.s32.f32 %v440_v5  ;;  %v427_v15 = vunpack.c.0.s8 %v359_v39  ;;  %749 = vmatpush.bf16.msrb.mxu3 %v663_v6  ;;  %v695_v46 = vpack.c.bf16 %v631_v8, %v627_v4  ;;  %v431_v21 = vunpack.c.1.s8 %v359_v39 }
 0x145   :  { %v283_v40 = vsel %vm6916_vm7, %v6882_v55, %v6910_v54  ;;  %v287_v44 = vmul.f32 0.5, %v286_v34  ;;  %v570_v55 = vcvt.s32.f32 %v442_v33  ;;  %v628_v18 = vcvt.s32.f32 %v500_v11 }
 0x146   :  { %v664_v53 = vpack.c.bf16 %v568_v13, %v564_v10  ;;  %v632_v7 = vcvt.s32.f32 %v504_v14  ;;  %v555_v23 = vcvt.s32.f32 %v427_v15  ;;  %v491_v24 = vunpack.c.0.s8 %v375_v43  ;;  %762 = vmatpush.bf16.msra.mxu0 %v695_v46 }
 0x147   :  { %v288_v57 = vsub.f32 1.5, %v287_v44  ;;  %v666_v3 = vpack.c.bf16 %v574_v59, %v570_v55  ;;  %v559_v26 = vcvt.s32.f32 %v431_v21  ;;  %v495_v27 = vunpack.c.1.s8 %v375_v43  ;;  %v372_v59 = vld [vmem:[%s9206_s8 + $0xd8] sm:$0xff] }
 0x148   :  { %v428_v28 = vunpack.c.0.s8 %v360_v49  ;;  %775 = vmatpush.bf16.msra.mxu1 %v664_v53  ;;  %v696_v29 = vpack.c.bf16 %v632_v7, %v628_v18  ;;  %v619_v30 = vcvt.s32.f32 %v491_v24  ;;  %v432_v31 = vunpack.c.1.s8 %v360_v49 }
 0x149   :  { %v289_v2 = vmul.f32 %v6903_v22, %v288_v57  ;;  %743 = vmatpush.bf16.msrb.mxu2 %v666_v3  ;;  %v659_v34 = vpack.c.bf16 %v559_v26, %v555_v23  ;;  %v623_v35 = vcvt.s32.f32 %v495_v27  ;;  %v492_v38 = vunpack.c.0.s8 %v6939_v62 }
 0x14a   :  { %v556_v37 = vcvt.s32.f32 %v428_v28  ;;  %v560_v41 = vcvt.s32.f32 %v432_v31  ;;  %v496_v43 = vunpack.c.1.s8 %v6939_v62  ;;  %v419_v45 = vunpack.c.2.s8 %v355_v32 }
 0x14b   :  { %v293_v12 = vsel %vm292_vm9, %v6903_v22, %v289_v2  ;;  %750 = vmatpush.bf16.msrb.mxu3 %v659_v34  ;;  %v691_v33 = vpack.c.bf16 %v623_v35, %v619_v30  ;;  %v620_v44 = vcvt.s32.f32 %v492_v38  ;;  %v423_v57 = vunpack.c.3.s8 %v355_v32  ;;  %v351_v30 = vld [vmem:[%s9206_s8 + $0x30] sm:$0xff] }
 0x14c   :  { %v296_v17 = vrot.slane %v293_v12, 7  ;;  %v660_v56 = vpack.c.bf16 %v560_v41, %v556_v37  ;;  %v624_v47 = vcvt.s32.f32 %v496_v43  ;;  %v547_v58 = vcvt.s32.f32 %v419_v45 }
 0x14d   :  { %788 = vmatpush.bf16.msra.mxu2 %v696_v29  ;;  %763 = vmatpush.bf16.msra.mxu0 %v691_v33  ;;  %v483_v61 = vunpack.c.2.s8 %v371_v36  ;;  %v551_v0 = vcvt.s32.f32 %v423_v57  ;;  %v487_v1 = vunpack.c.3.s8 %v371_v36  ;;  %v484_v6 = vunpack.c.2.s8 %v372_v59 }
 0x14e   :  { %v298_v22 = vsel %vm297_vm8, %v283_v40, %v296_v17  ;;  %776 = vmatpush.bf16.msra.mxu1 %v660_v56  ;;  %v692_v63 = vpack.c.bf16 %v624_v47, %v620_v44  ;;  %v415_v46 = vunpack.c.1.s8 %v355_v32  ;;  %v475_v7 = vunpack.c.0.s8 %v371_v36  ;;  %v368_v56 = vld [vmem:[%s9206_s8 + $0xb8] sm:$0xff] }
 0x14f   :  { %v300_v54 = vmul.f32 %v298_v22, %v263_v16  ;;  %v611_v4 = vcvt.s32.f32 %v483_v61  ;;  %v655_v10 = vpack.c.bf16 %v551_v0, %v547_v58  ;;  %v615_v11 = vcvt.s32.f32 %v487_v1 }
 0x150   :  { %v612_v14 = vcvt.s32.f32 %v484_v6  ;;  %v543_v24 = vcvt.s32.f32 %v415_v46  ;;  %v479_v22 = vunpack.c.1.s8 %v371_v36  ;;  %v603_v28 = vcvt.s32.f32 %v475_v7 }
 0x151   :  { %v310_v39 = vperm.slane %v300_v54, 0  ;;  %v311_v40 = vperm.slane %v300_v54, 1  ;;  %v322_v19 = vmul.f32 %v300_v54, %v6778_v51  ;;  %v356_v51 = vld [vmem:[%s9206_s8 + $0x58] sm:$0xff]  ;;  %789 = vmatpush.bf16.msra.mxu2 %v692_v63  ;;  %751 = vmatpush.bf16.msrb.mxu3 %v655_v10  ;;  %v687_v17 = vpack.c.bf16 %v615_v11, %v611_v4 }
 0x152   :  { %v420_v2 = vunpack.c.2.s8 %v356_v51  ;;  %v424_v5 = vunpack.c.3.s8 %v356_v51  ;;  %v412_v26 = vunpack.c.0.s8 %v356_v51  ;;  %v416_v54 = vunpack.c.1.s8 %v356_v51 }
 0x153   :  { %v314_v48 = vmul.f32 %v310_v39, %v6863_v20  ;;  %v315_v49 = vmul.f32 %v311_v40, %v6867_v25  ;;  %v324_v50 = vperm.slane %v322_v19, 0  ;;  %v325_v55 = vperm.slane %v322_v19, 1  ;;  %v301_v20 = vld [vmem:[%s9205_s7] sm:$0x3]  ;;  %764 = vmatpush.bf16.msra.mxu0 %v687_v17  ;;  %v367_v40 = vld [vmem:[%s9206_s8 + $0xb0] sm:$0xff] }
 0x154   :  { %v548_v12 = vcvt.s32.f32 %v420_v2  ;;  %v552_v13 = vcvt.s32.f32 %v424_v5  ;;  %v476_v29 = vunpack.c.0.s8 %v372_v59  ;;  %v540_v34 = vcvt.s32.f32 %v412_v26 }
 0x155   :  { %v318_v25 = vrot.slane %v315_v49, 7  ;;  %v328_v60 = vmul.f32 %v324_v50, %v6811_v42  ;;  %v329_v62 = vmul.f32 %v325_v55, %v6826_v9  ;;  %v488_v42 = vunpack.c.3.s8 %v372_v59 }
 0x156   :  { %v411_v9 = vunpack.c.0.s8 %v355_v32  ;;  %v656_v18 = vpack.c.bf16 %v552_v13, %v548_v12  ;;  %v607_v32 = vcvt.s32.f32 %v479_v22  ;;  %v480_v35 = vunpack.c.1.s8 %v372_v59 }
 0x157   :  { %v319_v3 = vsel %vm297_vm8, %v314_v48, %v318_v25  ;;  %v616_v21 = vcvt.s32.f32 %v488_v42  ;;  %v544_v37 = vcvt.s32.f32 %v416_v54  ;;  %v604_v38 = vcvt.s32.f32 %v476_v29  ;;  %v352_v48 = vld [vmem:[%s9206_s8 + $0x38] sm:$0xff] }
 0x158   :  { %v321_v8 = vsub.f32 %v301_v20, %v319_v3  ;;  %v539_v53 = vcvt.s32.f32 %v411_v9  ;;  %777 = vmatpush.bf16.msra.mxu1 %v656_v18  ;;  %v683_v19 = vpack.c.bf16 %v607_v32, %v603_v28  ;;  %v608_v41 = vcvt.s32.f32 %v480_v35  ;;  %v347_v9 = vld [vmem:[%s9206_s8 + $0x10] sm:$0xff]  ;;  %v348_v28 = vld [vmem:[%s9206_s8 + $0x18] sm:$0xff] }
 0x159   :  { %v688_v27 = vpack.c.bf16 %v616_v21, %v612_v14  ;;  %v403_v43 = vunpack.c.2.s8 %v351_v30  ;;  %v652_v44 = vpack.c.bf16 %v544_v37, %v540_v34  ;;  %v407_v36 = vunpack.c.3.s8 %v351_v30  ;;  %v363_v18 = vld [vmem:[%s9206_s8 + $0x90] sm:$0xff]  ;;  %v364_v32 = vld [vmem:[%s9206_s8 + $0x98] sm:$0xff] }
 0x15a   :  { %v331_v15 = vperm.slane %v321_v8, 0  ;;  %v332_v16 = vperm.slane %v321_v8, 1  ;;  %v651_v31 = vpack.c.bf16 %v543_v24, %v539_v53  ;;  %765 = vmatpush.bf16.msra.mxu0 %v683_v19  ;;  %v684_v49 = vpack.c.bf16 %v608_v41, %v604_v38 }
 0x15b   :  { %790 = vmatpush.bf16.msra.mxu2 %v688_v27  ;;  %v531_v55 = vcvt.s32.f32 %v403_v43  ;;  %v467_v51 = vunpack.c.2.s8 %v367_v40  ;;  %v535_v58 = vcvt.s32.f32 %v407_v36  ;;  %v471_v59 = vunpack.c.3.s8 %v367_v40 }
 0x15c   :  { %v336_v23 = vadd.f32 %v332_v16, %v329_v62  ;;  %v335_v39 = vadd.f32 %v331_v15, %v328_v60  ;;  %752 = vmatpush.bf16.msrb.mxu3 %v651_v31  ;;  %778 = vmatpush.bf16.msra.mxu1 %v652_v44  ;;  %v404_v60 = vunpack.c.2.s8 %v352_v48  ;;  %v408_v62 = vunpack.c.3.s8 %v352_v48 }
 0x15d   :  { %v595_v25 = vcvt.s32.f32 %v467_v51  ;;  %v647_v61 = vpack.c.bf16 %v535_v58, %v531_v55  ;;  %v599_v63 = vcvt.s32.f32 %v471_v59  ;;  %v468_v0 = vunpack.c.2.s8 %v368_v56 }
 0x15e   :  { %vm338_vm10 = vcmp.gt.f32.partialorder %v336_v23, 0.0  ;;  %v340_v33 = vmul.f32 0.2, %v336_v23  ;;  %vm337_vm11 = vcmp.gt.f32.partialorder %v335_v39, 0.0  ;;  %v339_v45 = vmul.f32 0.2, %v335_v39 }
 0x15f   :  { %791 = vmatpush.bf16.msra.mxu2 %v684_v49  ;;  %v472_v1 = vunpack.c.3.s8 %v368_v56  ;;  %v532_v2 = vcvt.s32.f32 %v404_v60  ;;  %v536_v3 = vcvt.s32.f32 %v408_v62  ;;  %v395_v4 = vunpack.c.0.s8 %v351_v30 }
 0x160   :  { %v342_v50 = vsel %vm338_vm10, %v336_v23, %v340_v33  ;;  %v341_v47 = vsel %vm337_vm11, %v335_v39, %v339_v45  ;;  %v399_v5 = vunpack.c.1.s8 %v351_v30  ;;  %753 = vmatpush.bf16.msrb.mxu3 %v647_v61  ;;  %v679_v6 = vpack.c.bf16 %v599_v63, %v595_v25 }
 0x161   :  { %v6988_v57 = vpack.c.bf16 %v342_v50, %v342_v50  ;;  %v6990_v20 = vpack.c.bf16 %v341_v47, %v341_v47  ;;  %v596_v8 = vcvt.s32.f32 %v468_v0  ;;  %v600_v10 = vcvt.s32.f32 %v472_v1 }
 0x162   :  { %v459_v11 = vunpack.c.0.s8 %v367_v40  ;;  %v648_v12 = vpack.c.bf16 %v536_v3, %v532_v2  ;;  %v523_v13 = vcvt.s32.f32 %v395_v4  ;;  %v527_v42 = vcvt.s32.f32 %v399_v5  ;;  %766 = vmatpush.bf16.msra.mxu0 %v679_v6 }
 0x163   :  { %718 = vmatmul.bf16.vlgmr.msrb.gmra.mxu0 %v6988_v57  ;;  %744 = vmatmul.bf16.vlgmr.msrb.gmra.mxu2 %v6988_v57  ;;  %v463_v14 = vunpack.c.1.s8 %v367_v40  ;;  %v680_v15 = vpack.c.bf16 %v600_v10, %v596_v8  ;;  %v396_v17 = vunpack.c.0.s8 %v352_v48  ;;  %v400_v46 = vunpack.c.1.s8 %v352_v48 }
 0x164   :  { %705 = vmatmul.bf16.vlgmr.msra.gmra.mxu3 %v6990_v20  ;;  %731 = vmatmul.bf16.vlgmr.msrb.gmra.mxu1 %v6990_v20  ;;  %v587_v16 = vcvt.s32.f32 %v459_v11  ;;  %v643_v21 = vpack.c.bf16 %v527_v42, %v523_v13  ;;  %v460_v7 = vunpack.c.0.s8 %v368_v56  ;;  %v464_v23 = vunpack.c.1.s8 %v368_v56 }
 0x165   :  { %779 = vmatpush.bf16.msra.mxu1 %v648_v12  ;;  %v591_v53 = vcvt.s32.f32 %v463_v14  ;;  %792 = vmatpush.bf16.msra.mxu2 %v680_v15  ;;  %v524_v24 = vcvt.s32.f32 %v396_v17  ;;  %v528_v22 = vcvt.s32.f32 %v400_v46  ;;  %v387_v26 = vunpack.c.2.s8 %v347_v9 }
 0x166   :  { %v391_v27 = vunpack.c.3.s8 %v347_v9  ;;  %754 = vmatpush.bf16.msrb.mxu3 %v643_v21  ;;  %v588_v29 = vcvt.s32.f32 %v460_v7  ;;  %v592_v30 = vcvt.s32.f32 %v464_v23  ;;  %v451_v31 = vunpack.c.2.s8 %v363_v18 }
 0x167   :  { %v675_v54 = vpack.c.bf16 %v591_v53, %v587_v16  ;;  %v644_v34 = vpack.c.bf16 %v528_v22, %v524_v24  ;;  %v515_v35 = vcvt.s32.f32 %v387_v26  ;;  %v455_v38 = vunpack.c.3.s8 %v363_v18  ;;  %v1049_v16 = vld [vmem:[%s9210_s12 + $0xc0] sm:$0xff] }
 0x168   :  { %v519_v37 = vcvt.s32.f32 %v391_v27  ;;  %v676_v39 = vpack.c.bf16 %v592_v30, %v588_v29  ;;  %v579_v40 = vcvt.s32.f32 %v451_v31  ;;  %v388_v19 = vunpack.c.2.s8 %v348_v28  ;;  %v7035_v53 = vld [vmem:[%s9210_s12 + $0x3c0] sm:$0xff] }
 0x169   :  { %767 = vmatpush.bf16.msra.mxu0 %v675_v54  ;;  %v392_v41 = vunpack.c.3.s8 %v348_v28  ;;  %780 = vmatpush.bf16.msra.mxu1 %v644_v34  ;;  %v583_v43 = vcvt.s32.f32 %v455_v38  ;;  %v452_v44 = vunpack.c.2.s8 %v364_v32  ;;  %v456_v45 = vunpack.c.3.s8 %v364_v32 }
 0x16a   :  { %v639_v33 = vpack.c.bf16 %v519_v37, %v515_v35  ;;  %793 = vmatpush.bf16.msra.mxu2 %v676_v39  ;;  %v516_v36 = vcvt.s32.f32 %v388_v19  ;;  %v379_v49 = vunpack.c.0.s8 %v347_v9  ;;  %v383_v50 = vunpack.c.1.s8 %v347_v9  ;;  %v7015_v9 = vld [vmem:[%s9207_s9] sm:$0xf] }
 0x16b   :  { %v520_v48 = vcvt.s32.f32 %v392_v41  ;;  %v671_v55 = vpack.c.bf16 %v583_v43, %v579_v40  ;;  %v580_v51 = vcvt.s32.f32 %v452_v44  ;;  %v584_v56 = vcvt.s32.f32 %v456_v45 }
 0x16c   :  { %755 = vmatpush.bf16.msrb.mxu3 %v639_v33  ;;  %v443_v47 = vunpack.c.0.s8 %v363_v18  ;;  %v507_v59 = vcvt.s32.f32 %v379_v49  ;;  %v511_v25 = vcvt.s32.f32 %v383_v50  ;;  %v447_v60 = vunpack.c.1.s8 %v363_v18 }
 0x16d   :  { %v640_v58 = vpack.c.bf16 %v520_v48, %v516_v36  ;;  %768 = vmatpush.bf16.msra.mxu0 %v671_v55  ;;  %v672_v62 = vpack.c.bf16 %v584_v56, %v580_v51  ;;  %v380_v63 = vunpack.c.0.s8 %v348_v28  ;;  %v384_v0 = vunpack.c.1.s8 %v348_v28 }
 0x16e   :  { %v571_v61 = vcvt.s32.f32 %v443_v47  ;;  %v635_v1 = vpack.c.bf16 %v511_v25, %v507_v59  ;;  %v575_v2 = vcvt.s32.f32 %v447_v60  ;;  %v444_v3 = vunpack.c.0.s8 %v364_v32 }
 0x16f   :  { %781 = vmatpush.bf16.msra.mxu1 %v640_v58  ;;  %v448_v4 = vunpack.c.1.s8 %v364_v32  ;;  %794 = vmatpush.bf16.msra.mxu2 %v672_v62  ;;  %v508_v5 = vcvt.s32.f32 %v380_v63  ;;  %v512_v6 = vcvt.s32.f32 %v384_v0  ;;  %v7019_v15 = vmul.f32 %v7015_v9, %v7015_v9 }
 0x170   :  { %756 = vmatpush.bf16.msrb.mxu3 %v635_v1  ;;  %v667_v8 = vpack.c.bf16 %v575_v2, %v571_v61  ;;  %v572_v10 = vcvt.s32.f32 %v444_v3  ;;  %v1265_v17 = vunpack.c.2.s8 %v1049_v16  ;;  %v1273_v46 = vunpack.c.3.s8 %v1049_v16 }
 0x171   :  { %v576_v11 = vcvt.s32.f32 %v448_v4  ;;  %v636_v12 = vpack.c.bf16 %v512_v6, %v508_v5  ;;  %v1649_v24 = vunpack.c.2.s8 %v7035_v53  ;;  %v1657_v22 = vunpack.c.3.s8 %v7035_v53 }
 0x172   :  { %769 = vmatpush.bf16.msra.mxu0 %v667_v8  ;;  %v1777_v27 = vcvt.s32.f32 %v1265_v17  ;;  %v1785_v28 = vcvt.s32.f32 %v1273_v46  ;;  %v1249_v45 = vunpack.c.0.s8 %v1049_v16  ;;  %v1257_v50 = vunpack.c.1.s8 %v1049_v16 }
 0x173   :  { %v668_v13 = vpack.c.bf16 %v576_v11, %v572_v10  ;;  %782 = vmatpush.bf16.msra.mxu1 %v636_v12  ;;  %v2161_v35 = vcvt.s32.f32 %v1649_v24  ;;  %v2169_v19 = vcvt.s32.f32 %v1657_v22  ;;  %v873_v62 = vperm.slane %v7019_v15, 0 }
 0x174   :  { %757 = vmatmul.bf16.vlgmr.msrb.gmra.mxu3 %v6990_v20  ;;  %v2233_v39 = vpack.c.bf16 %v1785_v28, %v1777_v27  ;;  %v1761_v56 = vcvt.s32.f32 %v1249_v45  ;;  %v1769_v25 = vcvt.s32.f32 %v1257_v50  ;;  %v945_v3 = vperm.slane %v7015_v9, 0 }
 0x175   :  { %795 = vmatpush.bf16.msra.mxu2 %v668_v13  ;;  %770 = vmatmul.bf16.vlgmr.msra.gmra.mxu0 %v6988_v57  ;;  %v2425_v49 = vpack.c.bf16 %v2169_v19, %v2161_v35  ;;  %v1633_v16 = vunpack.c.0.s8 %v7035_v53  ;;  %v946_v46 = vperm.slane %v7015_v9, 1  ;;  %v874_v24 = vperm.slane %v7019_v15, 1 }
 0x176   :  { %783 = vmatmul.bf16.vlgmr.msra.gmra.mxu1 %v6990_v20  ;;  %v1081_v20 = vld [vmem:[%s9210_s12 + $0x1c0] sm:$0xff]  ;;  %2433 = vmatpush.bf16.msra.mxu3 %v2233_v39  ;;  %v2225_v5 = vpack.c.bf16 %v1769_v25, %v1761_v56  ;;  %v1641_v28 = vunpack.c.1.s8 %v7035_v53  ;;  %vm937_vm6 = vcmask 1042434   ;;  %vm939_vm7 = vcmask 1041408  }
 0x177   :  { %v1393_v18 = vunpack.c.2.s8 %v1081_v20  ;;  %v1401_v21 = vunpack.c.3.s8 %v1081_v20  ;;  %v1377_v47 = vunpack.c.0.s8 %v1081_v20  ;;  %v1385_v60 = vunpack.c.1.s8 %v1081_v20  ;;  %v7077_v53 = vld [vmem:[%s9210_s12 + $0x180] sm:$0xff] }
 0x178   :  { %796 = vmatmul.bf16.vlgmr.msra.gmra.mxu2 %v6988_v57  ;;  %v7030_v57 = vld [vmem:[%s9210_s12 + $0x2c0] sm:$0xff]  ;;  %v2153_v39 = vcvt.s32.f32 %v1641_v28  ;;  %v1361_v25 = vunpack.c.2.s8 %v7077_v53 }
 0x179   :  { %v1521_v7 = vunpack.c.2.s8 %v7030_v57  ;;  %v1529_v23 = vunpack.c.3.s8 %v7030_v57  ;;  %v1905_v54 = vcvt.s32.f32 %v1393_v18  ;;  %v1913_v29 = vcvt.s32.f32 %v1401_v21  ;;  %2472 = vmatpush.bf16.msrb.mxu2 %v2425_v49  ;;  %v7062_v21 = vld [vmem:[%s9210_s12 + $0x80] sm:$0xff] }
 0x17a   :  { %v1889_v0 = vcvt.s32.f32 %v1377_v47  ;;  %v1897_v11 = vcvt.s32.f32 %v1385_v60  ;;  %v1505_v12 = vunpack.c.0.s8 %v7030_v57  ;;  %2434 = vmatpush.bf16.msra.mxu3 %v2225_v5  ;;  %v947_v49 = vperm.slane %v7015_v9, 2 }
 0x17b   :  { %v2033_v32 = vcvt.s32.f32 %v1521_v7  ;;  %v2041_v34 = vcvt.s32.f32 %v1529_v23  ;;  %v2297_v40 = vpack.c.bf16 %v1913_v29, %v1905_v54  ;;  %v948_v47 = vperm.slane %v7015_v9, 3 }
 0x17c   :  { %v2289_v18 = vpack.c.bf16 %v1897_v11, %v1889_v0  ;;  %v2017_v22 = vcvt.s32.f32 %v1505_v12  ;;  %v1369_v60 = vunpack.c.3.s8 %v7077_v53 }
 0x17d   :  { %v2361_v44 = vpack.c.bf16 %v2041_v34, %v2033_v32  ;;  %2446 = vmatpush.bf16.msrb.mxu0 %v2297_v40  ;;  %v1233_v32 = vunpack.c.2.s8 %v7062_v21 }
 0x17f   :  { %2459 = vmatpush.bf16.msrb.mxu1 %v2361_v44  ;;  %v7082_v44 = vld [vmem:[%s9210_s12 + $0x280] sm:$0xff] }
 0x181   :  { %2447 = vmatpush.bf16.msrb.mxu0 %v2289_v18 }
 0x1e0   :  { %v719_v42 = vpop.f32.mrf.mxu0 }
 0x1e1   :  { %v732_v14 = vpop.f32.mrf.mxu1 }
 0x1e6   :  { %v745_v26 = vpop.f32.mrf.mxu2 }
 0x1e7   :  { %v706_v30 = vpop.f32.mrf.mxu3  ;;  %v7041_v31 = vadd.f32 %v745_v26, %v732_v14  ;;  %v1513_v14 = vunpack.c.1.s8 %v7030_v57 }
 0x1e8   :  { %v7043_v37 = vadd.f32 %v719_v42, %v706_v30  ;;  %v721_v38 = vpop.f32.mrf.mxu0  ;;  %v2145_v30 = vcvt.s32.f32 %v1633_v16 }
 0x1e9   :  { %v808_v41 = vrot.slane %v7041_v31, 4  ;;  %v831_v33 = vmul.f32 %v7041_v31, %v7041_v31  ;;  %v734_v43 = vpop.f32.mrf.mxu1  ;;  %v2025_v57 = vcvt.s32.f32 %v1513_v14 }
 0x1ea   :  { %v802_v36 = vrot.slane %v7043_v37, 4  ;;  %v830_v48 = vmul.f32 %v7043_v37, %v7043_v37  ;;  %v1745_v43 = vcvt.s32.f32 %v1233_v32  ;;  %v2417_v50 = vpack.c.bf16 %v2153_v39, %v2145_v30 }
 0x1eb   :  { %v809_v55 = vadd.f32 %v808_v41, %v7041_v31  ;;  %v840_v51 = vrot.slane %v831_v33, 4  ;;  %v2353_v38 = vpack.c.bf16 %v2025_v57, %v2017_v22  ;;  %v875_v57 = vperm.slane %v7019_v15, 2 }
 0x1ec   :  { %v803_v58 = vadd.f32 %v802_v36, %v7043_v37  ;;  %v834_v59 = vrot.slane %v830_v48, 4  ;;  %2473 = vmatpush.bf16.msrb.mxu2 %v2417_v50  ;;  %v1225_v39 = vunpack.c.1.s8 %v7062_v21 }
 0x1ed   :  { %v810_v61 = vrot.slane %v809_v55, 2  ;;  %v841_v63 = vadd.f32 %v840_v51, %v831_v33  ;;  %v1241_v33 = vunpack.c.3.s8 %v7062_v21  ;;  %2460 = vmatpush.bf16.msrb.mxu1 %v2353_v38  ;;  %v1217_v38 = vunpack.c.0.s8 %v7062_v21 }
 0x1ee   :  { %v804_v1 = vrot.slane %v803_v58, 2  ;;  %v835_v2 = vadd.f32 %v834_v59, %v830_v48  ;;  %v747_v4 = vpop.f32.mrf.mxu2 }
 0x1ef   :  { %v811_v6 = vadd.f32 %v810_v61, %v809_v55  ;;  %v842_v8 = vrot.slane %v841_v63, 2  ;;  %v708_v10 = vpop.f32.mrf.mxu3  ;;  %v7091_v55 = vld [vmem:[%s9210_s12 + $0x380] sm:$0xff]  ;;  %v1489_v61 = vunpack.c.2.s8 %v7082_v44  ;;  %v1729_v50 = vcvt.s32.f32 %v1217_v38 }
 0x1f0   :  { %v805_v13 = vadd.f32 %v804_v1, %v803_v58  ;;  %v836_v42 = vrot.slane %v835_v2, 2  ;;  %v1753_v58 = vcvt.s32.f32 %v1241_v33  ;;  %v1617_v4 = vunpack.c.2.s8 %v7091_v55 }
 0x1f1   :  { %v812_v20 = vrot.slane %v811_v6, 1  ;;  %v843_v17 = vadd.f32 %v842_v8, %v841_v63  ;;  %v1873_v8 = vcvt.s32.f32 %v1361_v25  ;;  %v1881_v10 = vcvt.s32.f32 %v1369_v60 }
 0x1f2   :  { %v806_v7 = vrot.slane %v805_v13, 1  ;;  %v837_v23 = vadd.f32 %v836_v42, %v835_v2  ;;  %v771_v41 = vpop.f32.mrf.mxu0  ;;  %v2217_v1 = vpack.c.bf16 %v1753_v58, %v1745_v43  ;;  %v1497_v2 = vunpack.c.3.s8 %v7082_v44 }
 0x1f3   :  { %v813_v26 = vadd.f32 %v812_v20, %v811_v6  ;;  %v844_v27 = vrot.slane %v843_v17, 1  ;;  %v784_v48 = vpop.f32.mrf.mxu1  ;;  %v2001_v12 = vcvt.s32.f32 %v1489_v61  ;;  %v1625_v42 = vunpack.c.3.s8 %v7091_v55 }
 0x1f4   :  { %v807_v54 = vadd.f32 %v806_v7, %v805_v13  ;;  %v838_v29 = vrot.slane %v837_v23, 1  ;;  %2435 = vmatpush.bf16.msra.mxu3 %v2217_v1  ;;  %v2009_v13 = vcvt.s32.f32 %v1497_v2  ;;  %v2129_v22 = vcvt.s32.f32 %v1617_v4 }
 0x1f5   :  { %v7068_v34 = vmul.f32 %v813_v26, %v6780_v52  ;;  %v845_v35 = vadd.f32 %v844_v27, %v843_v17  ;;  %v2281_v17 = vpack.c.bf16 %v1881_v10, %v1873_v8  ;;  %v1345_v43 = vunpack.c.0.s8 %v7077_v53 }
 0x1f6   :  { %v7071_v40 = vmul.f32 %v807_v54, %v6780_v52  ;;  %v839_v19 = vadd.f32 %v838_v29, %v837_v23  ;;  %v876_v29 = vperm.slane %v7019_v15, 3 }
 0x1f7   :  { %v859_v45 = vmul.f32 %v845_v35, %v6780_v52  ;;  %v863_v36 = vmul.f32 %v7068_v34, %v7068_v34  ;;  %v758_v0 = vpop.f32.mrf.mxu3  ;;  %2448 = vmatpush.bf16.msrb.mxu0 %v2281_v17  ;;  %v7134_v60 = vmul.f32 %v946_v46, %v7068_v34  ;;  %v1481_v17 = vunpack.c.1.s8 %v7082_v44 }
 0x1f8   :  { %v858_v51 = vmul.f32 %v839_v19, %v6780_v52  ;;  %v862_v56 = vmul.f32 %v7071_v40, %v7071_v40  ;;  %v7102_v6 = vadd.f32 %v771_v41, %v758_v0  ;;  %v7141_v1 = vmul.f32 %v945_v3, %v7071_v40 }
 0x1f9   :  { %v867_v59 = vsub.f32 %v859_v45, %v863_v36  ;;  %v1353_v45 = vunpack.c.1.s8 %v7077_v53  ;;  %v1993_v38 = vcvt.s32.f32 %v1481_v17 }
 0x1fa   :  { %v866_v63 = vsub.f32 %v858_v51, %v862_v56  ;;  %v814_v16 = vrot.slane %v7102_v6, 4  ;;  %v832_v20 = vmul.f32 %v7102_v6, %v7102_v6  ;;  %v773_v23 = vpop.f32.mrf.mxu0  ;;  %v1737_v51 = vcvt.s32.f32 %v1225_v39 }
 0x1fb   :  { %v882_v5 = vmul.f32 %v874_v24, %v867_v59  ;;  %v797_v7 = vpop.f32.mrf.mxu2  ;;  %v2345_v24 = vpack.c.bf16 %v2009_v13, %v2001_v12  ;;  %v786_v28 = vpop.f32.mrf.mxu1  ;;  %v1857_v59 = vcvt.s32.f32 %v1345_v43  ;;  %v1865_v21 = vcvt.s32.f32 %v1353_v45 }
 0x1fc   :  { %v881_v11 = vmul.f32 %v873_v62, %v866_v63  ;;  %v2137_v62 = vcvt.s32.f32 %v1625_v42  ;;  %v815_v26 = vadd.f32 %v814_v16, %v7102_v6  ;;  %v846_v27 = vrot.slane %v832_v20, 4 }
 0x1fd   :  { %v7107_v14 = vadd.f32 1e-05, %v882_v5  ;;  %v7118_v54 = vadd.f32 %v797_v7, %v784_v48  ;;  %2461 = vmatpush.bf16.msrb.mxu1 %v2345_v24  ;;  %v2209_v0 = vpack.c.bf16 %v1737_v51, %v1729_v50  ;;  %v2273_v3 = vpack.c.bf16 %v1865_v21, %v1857_v59  ;;  %v1033_v51 = vld [vmem:[%s9210_s12 + $0x40] sm:$0xff] }
 0x1fe   :  { %v7112_v18 = vadd.f32 1e-05, %v881_v11  ;;  %v2409_v30 = vpack.c.bf16 %v2137_v62, %v2129_v22  ;;  %v816_v32 = vrot.slane %v815_v26, 2  ;;  %v847_v35 = vadd.f32 %v846_v27, %v832_v20 }
 0x1ff   :  { %6567 = vrsqrt.f32 %v7107_v14  ;;  %v820_v19 = vrot.slane %v7118_v54, 4  ;;  %v833_v41 = vmul.f32 %v7118_v54, %v7118_v54  ;;  %v760_v33 = vpop.f32.mrf.mxu3  ;;  %2436 = vmatpush.bf16.msra.mxu3 %v2209_v0  ;;  %v1473_v11 = vunpack.c.0.s8 %v7082_v44  ;;  %2449 = vmatpush.bf16.msrb.mxu0 %v2273_v3 }
 0x200   :  { %6569 = vrsqrt.f32 %v7112_v18  ;;  %2474 = vmatpush.bf16.msrb.mxu2 %v2409_v30  ;;  %v817_v36 = vadd.f32 %v816_v32, %v815_v26  ;;  %v848_v48 = vrot.slane %v847_v35, 2  ;;  %vm905_vm12 = vweird.f32 %v7107_v14 }
 0x201   :  { %v821_v56 = vadd.f32 %v820_v19, %v7118_v54  ;;  %v852_v58 = vrot.slane %v833_v41, 4  ;;  %v1985_v44 = vcvt.s32.f32 %v1473_v11  ;;  %v1601_v33 = vunpack.c.0.s8 %v7091_v55 }
 0x202   :  { %v818_v61 = vrot.slane %v817_v36, 1  ;;  %v849_v63 = vadd.f32 %v848_v48, %v847_v35  ;;  %v1609_v50 = vunpack.c.1.s8 %v7091_v55  ;;  %vm895_vm0 = vweird.f32 %v7112_v18 }
 0x203   :  { %v822_v4 = vrot.slane %v821_v56, 2  ;;  %v853_v5 = vadd.f32 %v852_v58, %v833_v41  ;;  %v799_v8 = vpop.f32.mrf.mxu2  ;;  %v2337_v48 = vpack.c.bf16 %v1993_v38, %v1985_v44  ;;  %v2113_v21 = vcvt.s32.f32 %v1601_v33  ;;  %v7225_v33 = vld [vmem:[%s9210_s12] sm:$0xff] }
 0x204   :  { %v819_v34 = vadd.f32 %v818_v61, %v817_v36  ;;  %v850_v10 = vrot.slane %v849_v63, 1  ;;  %v1201_v0 = vunpack.c.2.s8 %v1033_v51  ;;  %v1129_v8 = vld [vmem:[%s9210_s12 + $0x340] sm:$0xff] }
 0x205   :  { %v7129_v25 = vpop.eup %6567  ;;  %v823_v13 = vadd.f32 %v822_v4, %v821_v56  ;;  %v854_v42 = vrot.slane %v853_v5, 2  ;;  %2462 = vmatpush.bf16.msrb.mxu1 %v2337_v48  ;;  %v1577_v48 = vunpack.c.1.s8 %v1129_v8 }
 0x206   :  { %v7136_v53 = vpop.eup %6569  ;;  %v900_v2 = vmul.f32 %v7129_v25, %v7107_v14  ;;  %v828_v16 = vmul.f32 %v819_v34, %v6780_v52  ;;  %v851_v20 = vadd.f32 %v850_v10, %v849_v63  ;;  %vm906_vm13 = vweird.f32 %v7129_v25 }
 0x207   :  { %v890_v46 = vmul.f32 %v7136_v53, %v7112_v18  ;;  %v824_v23 = vrot.slane %v823_v13, 1  ;;  %v855_v24 = vadd.f32 %v854_v42, %v853_v5  ;;  %vm896_vm14 = vweird.f32 %v7136_v53  ;;  %vm7164_vm15 = vmor %vm905_vm12, %vm906_vm13 }
 0x208   :  { %v901_v12 = vmul.f32 %v7129_v25, %v900_v2  ;;  %v860_v62 = vmul.f32 %v851_v20, %v6780_v52  ;;  %v864_v26 = vmul.f32 %v828_v16, %v828_v16  ;;  %v7186_v55 = vmul.f32 %v947_v49, %v828_v16  ;;  %vm7194_vm1 = vmor %vm895_vm0, %vm896_vm14  ;;  %v1097_v49 = vld [vmem:[%s9210_s12 + $0x240] sm:$0xff] }
 0x209   :  { %v891_v40 = vmul.f32 %v7136_v53, %v890_v46  ;;  %v825_v28 = vadd.f32 %v824_v23, %v823_v13  ;;  %v856_v30 = vrot.slane %v855_v24, 1  ;;  %v2121_v63 = vcvt.s32.f32 %v1609_v50 }
 0x20a   :  { %v902_v7 = vmul.f32 0.5, %v901_v12  ;;  %v868_v35 = vsub.f32 %v860_v62, %v864_v26  ;;  %v1209_v2 = vunpack.c.3.s8 %v1033_v51  ;;  %v1713_v10 = vcvt.s32.f32 %v1201_v0  ;;  %v7237_v0 = vld [vmem:[%s9210_s12 + $0x200] sm:$0xff] }
 0x20b   :  { %v892_v22 = vmul.f32 0.5, %v891_v40  ;;  %v829_v19 = vmul.f32 %v825_v28, %v6780_v52  ;;  %v857_v41 = vadd.f32 %v856_v30, %v855_v24  ;;  %v2401_v34 = vpack.c.bf16 %v2121_v63, %v2113_v21  ;;  %v1057_v63 = vld [vmem:[%s9210_s12 + $0x100] sm:$0xff] }
 0x20c   :  { %v903_v27 = vsub.f32 1.5, %v902_v7  ;;  %v883_v36 = vmul.f32 %v875_v57, %v868_v35  ;;  %v1065_v57 = vld [vmem:[%s9210_s12 + $0x140] sm:$0xff]  ;;  %v1721_v11 = vcvt.s32.f32 %v1209_v2  ;;  %v1457_v42 = vunpack.c.2.s8 %v1097_v49 }
 0x20d   :  { %v893_v32 = vsub.f32 1.5, %v892_v22  ;;  %v861_v56 = vmul.f32 %v857_v41, %v6780_v52  ;;  %v865_v58 = vmul.f32 %v829_v19, %v829_v19  ;;  %v7190_v18 = vmul.f32 %v948_v47, %v829_v19  ;;  %2475 = vmatpush.bf16.msrb.mxu2 %v2401_v34 }
 0x20e   :  { %v904_v39 = vmul.f32 %v7129_v25, %v903_v27  ;;  %v7182_v59 = vadd.f32 1e-05, %v883_v36  ;;  %v1329_v5 = vunpack.c.2.s8 %v1065_v57  ;;  %v1337_v12 = vunpack.c.3.s8 %v1065_v57 }
 0x20f   :  { %v894_v43 = vmul.f32 %v7136_v53, %v893_v32  ;;  %v869_v61 = vsub.f32 %v861_v56, %v865_v58  ;;  %v1465_v3 = vunpack.c.3.s8 %v1097_v49  ;;  %v1585_v16 = vunpack.c.2.s8 %v1129_v8 }
 0x210   :  { %v908_v14 = vsel %vm7164_vm15, %v7129_v25, %v904_v39  ;;  %6571 = vrsqrt.f32 %v7182_v59  ;;  %v1841_v13 = vcvt.s32.f32 %v1329_v5  ;;  %v1593_v20 = vunpack.c.3.s8 %v1129_v8 }
 0x211   :  { %v898_v47 = vsel %vm7194_vm1, %v7136_v53, %v894_v43  ;;  %v933_v4 = vrot.slane %v908_v14, 7  ;;  %v884_v46 = vmul.f32 %v876_v29, %v869_v61  ;;  %v2201_v53 = vpack.c.bf16 %v1721_v11, %v1713_v10 }
 0x212   :  { %v1849_v17 = vcvt.s32.f32 %v1337_v12  ;;  %v1969_v7 = vcvt.s32.f32 %v1457_v42  ;;  %v1977_v23 = vcvt.s32.f32 %v1465_v3  ;;  %v1185_v24 = vunpack.c.0.s8 %v1033_v51 }
 0x213   :  { %v7210_v40 = vadd.f32 1e-05, %v884_v46  ;;  %v7214_v15 = vsel %vm297_vm8, %v898_v47, %v933_v4  ;;  %2437 = vmatpush.bf16.msra.mxu3 %v2201_v53  ;;  %v2097_v29 = vcvt.s32.f32 %v1585_v16  ;;  %v2105_v22 = vcvt.s32.f32 %v1593_v20  ;;  %v7246_v4 = vld [vmem:[%s9210_s12 + $0x300] sm:$0xff] }
 0x214   :  { %v2265_v26 = vpack.c.bf16 %v1849_v17, %v1841_v13  ;;  %v2329_v27 = vpack.c.bf16 %v1977_v23, %v1969_v7  ;;  %v1193_v28 = vunpack.c.1.s8 %v1033_v51  ;;  %v1697_v30 = vcvt.s32.f32 %v1185_v24 }
 0x215   :  { %6573 = vrsqrt.f32 %v7210_v40  ;;  %vm915_vm2 = vweird.f32 %v7182_v59  ;;  %v2393_v35 = vpack.c.bf16 %v2105_v22, %v2097_v29  ;;  %v1313_v44 = vunpack.c.0.s8 %v1065_v57 }
 0x216   :  { %v7216_v62 = vpop.eup %6571  ;;  %2450 = vmatpush.bf16.msrb.mxu0 %v2265_v26  ;;  %2463 = vmatpush.bf16.msrb.mxu1 %v2329_v27  ;;  %v1705_v38 = vcvt.s32.f32 %v1193_v28  ;;  %v1321_v39 = vunpack.c.1.s8 %v1065_v57  ;;  %v1441_v19 = vunpack.c.0.s8 %v1097_v49  ;;  %v1449_v41 = vunpack.c.1.s8 %v1097_v49 }
 0x217   :  { %v910_v32 = vmul.f32 %v7216_v62, %v7182_v59  ;;  %vm916_vm3 = vweird.f32 %v7216_v62  ;;  %2476 = vmatpush.bf16.msrb.mxu2 %v2393_v35  ;;  %v1825_v45 = vcvt.s32.f32 %v1313_v44  ;;  %v1569_v36 = vunpack.c.0.s8 %v1129_v8 }
 0x218   :  { %v2193_v50 = vpack.c.bf16 %v1705_v38, %v1697_v30  ;;  %v1833_v51 = vcvt.s32.f32 %v1321_v39  ;;  %v1953_v14 = vcvt.s32.f32 %v1441_v19  ;;  %v1961_v56 = vcvt.s32.f32 %v1449_v41  ;;  %vm917_vm9 = vmor %vm915_vm2, %vm916_vm3 }
 0x219   :  { %v911_v43 = vmul.f32 %v7216_v62, %v910_v32  ;;  %v2081_v21 = vcvt.s32.f32 %v1569_v36  ;;  %v2089_v25 = vcvt.s32.f32 %v1577_v48  ;;  %v1169_v61 = vunpack.c.2.s8 %v7225_v33 }
 0x21a   :  { %vm925_vm4 = vweird.f32 %v7210_v40  ;;  %2438 = vmatpush.bf16.msra.mxu3 %v2193_v50  ;;  %v2257_v49 = vpack.c.bf16 %v1833_v51, %v1825_v45  ;;  %v2321_v47 = vpack.c.bf16 %v1961_v56, %v1953_v14  ;;  %v1177_v46 = vunpack.c.3.s8 %v7225_v33 }
 0x21b   :  { %v7228_v58 = vpop.eup %6573  ;;  %v912_v57 = vmul.f32 0.5, %v911_v43  ;;  %v2385_v8 = vpack.c.bf16 %v2089_v25, %v2081_v21  ;;  %v1681_v34 = vcvt.s32.f32 %v1169_v61  ;;  %v1297_v11 = vunpack.c.2.s8 %v1057_v63 }
 0x21c   :  { %v920_v2 = vmul.f32 %v7228_v58, %v7210_v40  ;;  %vm926_vm5 = vweird.f32 %v7228_v58  ;;  %2451 = vmatpush.bf16.msrb.mxu0 %v2257_v49  ;;  %2464 = vmatpush.bf16.msrb.mxu1 %v2321_v47  ;;  %v1305_v12 = vunpack.c.3.s8 %v1057_v63  ;;  %v1425_v13 = vunpack.c.2.s8 %v7237_v0  ;;  %v7278_v40 = vld [vmem:[%s9210_s12 + $0x1c8] sm:$0xff] }
 0x21d   :  { %v913_v5 = vsub.f32 1.5, %v912_v57  ;;  %2477 = vmatpush.bf16.msrb.mxu2 %v2385_v8  ;;  %v1689_v3 = vcvt.s32.f32 %v1177_v46  ;;  %v1433_v53 = vunpack.c.3.s8 %v7237_v0  ;;  %v1553_v16 = vunpack.c.2.s8 %v7246_v4  ;;  %vm927_vm10 = vmor %vm925_vm4, %vm926_vm5  ;;  %v7290_v47 = vld [vmem:[%s9210_s12 + $0x2c8] sm:$0xff] }
 0x21e   :  { %v921_v10 = vmul.f32 %v7228_v58, %v920_v2  ;;  %v1809_v17 = vcvt.s32.f32 %v1297_v11  ;;  %v1817_v7 = vcvt.s32.f32 %v1305_v12  ;;  %v1937_v23 = vcvt.s32.f32 %v1425_v13 }
 0x21f   :  { %v914_v42 = vmul.f32 %v7216_v62, %v913_v5  ;;  %v2185_v29 = vpack.c.bf16 %v1689_v3, %v1681_v34  ;;  %v1945_v22 = vcvt.s32.f32 %v1433_v53  ;;  %v1561_v26 = vunpack.c.3.s8 %v7246_v4 }
 0x220   :  { %v922_v20 = vmul.f32 0.5, %v921_v10  ;;  %v2249_v30 = vpack.c.bf16 %v1817_v7, %v1809_v17  ;;  %v2065_v32 = vcvt.s32.f32 %v1553_v16  ;;  %v1153_v59 = vunpack.c.0.s8 %v7225_v33 }
 0x221   :  { %v918_v24 = vsel %vm917_vm9, %v7216_v62, %v914_v42  ;;  %2439 = vmatpush.bf16.msra.mxu3 %v2185_v29  ;;  %v2313_v35 = vpack.c.bf16 %v1945_v22, %v1937_v23  ;;  %v2073_v44 = vcvt.s32.f32 %v1561_v26  ;;  %v1161_v38 = vunpack.c.1.s8 %v7225_v33  ;;  %v7272_v33 = vld [vmem:[%s9210_s12 + $0xc8] sm:$0xff] }
 0x222   :  { %v934_v27 = vrot.slane %v918_v24, 6  ;;  %v923_v28 = vsub.f32 1.5, %v922_v20  ;;  %2452 = vmatpush.bf16.msrb.mxu0 %v2249_v30  ;;  %v1281_v19 = vunpack.c.0.s8 %v1057_v63  ;;  %v1289_v62 = vunpack.c.1.s8 %v1057_v63  ;;  %v870_v63 = vld [vmem:[%s9208_s10] sm:$0xf] }
 0x223   :  { %v1409_v41 = vunpack.c.0.s8 %v7237_v0  ;;  %2465 = vmatpush.bf16.msrb.mxu1 %v2313_v35  ;;  %v2377_v43 = vpack.c.bf16 %v2073_v44, %v2065_v32  ;;  %v1665_v45 = vcvt.s32.f32 %v1153_v59  ;;  %v1673_v36 = vcvt.s32.f32 %v1161_v38 }
 0x224   :  { %v924_v39 = vmul.f32 %v7228_v58, %v923_v28  ;;  %v1417_v48 = vunpack.c.1.s8 %v7237_v0  ;;  %v1793_v51 = vcvt.s32.f32 %v1281_v19  ;;  %v1801_v14 = vcvt.s32.f32 %v1289_v62 }
 0x225   :  { %v1921_v56 = vcvt.s32.f32 %v1409_v41  ;;  %2478 = vmatpush.bf16.msrb.mxu2 %v2377_v43  ;;  %v2177_v21 = vpack.c.bf16 %v1673_v36, %v1665_v45  ;;  %v1537_v61 = vunpack.c.0.s8 %v7246_v4  ;;  %v1266_v2 = vunpack.c.2.s8 %v7272_v33  ;;  %v943_v36 = vld [vmem:[%s9209_s11] sm:$0xf] }
 0x226   :  { %v928_v50 = vsel %vm927_vm10, %v7228_v58, %v924_v39  ;;  %v1929_v25 = vcvt.s32.f32 %v1417_v48  ;;  %v2241_v0 = vpack.c.bf16 %v1801_v14, %v1793_v51  ;;  %v1545_v58 = vunpack.c.1.s8 %v7246_v4  ;;  %v7297_v4 = vld [vmem:[%s9210_s12 + $0x3c8] sm:$0xff] }
 0x227   :  { %v935_v57 = vrot.slane %v928_v50, 5  ;;  %v1274_v49 = vunpack.c.3.s8 %v7272_v33  ;;  %2440 = vmatpush.bf16.msra.mxu3 %v2177_v21  ;;  %v2049_v46 = vcvt.s32.f32 %v1537_v61  ;;  %v1394_v34 = vunpack.c.2.s8 %v7278_v40 }
 0x228   :  { %v2305_v8 = vpack.c.bf16 %v1929_v25, %v1921_v56  ;;  %2453 = vmatpush.bf16.msrb.mxu0 %v2241_v0  ;;  %v2057_v11 = vcvt.s32.f32 %v1545_v58  ;;  %v1778_v12 = vcvt.s32.f32 %v1266_v2  ;;  %v1402_v3 = vunpack.c.3.s8 %v7278_v40 }
 0x229   :  { %v938_v5 = vsel %vm937_vm6, %v934_v27, %v935_v57  ;;  %v1786_v13 = vcvt.s32.f32 %v1274_v49  ;;  %v1906_v53 = vcvt.s32.f32 %v1394_v34  ;;  %v1522_v16 = vunpack.c.2.s8 %v7290_v47 }
 0x22a   :  { %v940_v10 = vsel %vm939_vm7, %v7214_v15, %v938_v5  ;;  %2466 = vmatpush.bf16.msrb.mxu1 %v2305_v8  ;;  %v2369_v20 = vpack.c.bf16 %v2057_v11, %v2049_v46  ;;  %v1530_v7 = vunpack.c.3.s8 %v7290_v47  ;;  %v1650_v23 = vunpack.c.2.s8 %v7297_v4 }
 0x22b   :  { %v942_v42 = vmul.f32 %v940_v10, %v870_v63  ;;  %v2234_v17 = vpack.c.bf16 %v1786_v13, %v1778_v12  ;;  %v1914_v27 = vcvt.s32.f32 %v1402_v3  ;;  %v2034_v28 = vcvt.s32.f32 %v1522_v16  ;;  %v1042_v16 = vld [vmem:[%s9210_s12 + $0x88] sm:$0xff] }
 0x22c   :  { %2479 = vmatpush.bf16.msrb.mxu2 %v2369_v20  ;;  %v2042_v30 = vcvt.s32.f32 %v1530_v7  ;;  %v1658_v14 = vunpack.c.3.s8 %v7297_v4  ;;  %v2162_v57 = vcvt.s32.f32 %v1650_v23  ;;  %v1250_v21 = vunpack.c.0.s8 %v7272_v33  ;;  %v1074_v20 = vld [vmem:[%s9210_s12 + $0x188] sm:$0xff] }
 0x22d   :  { %v958_v24 = vperm.slane %v942_v42, 0  ;;  %v959_v29 = vperm.slane %v942_v42, 1  ;;  %v960_v15 = vperm.slane %v942_v42, 2  ;;  %v961_v22 = vperm.slane %v942_v42, 3  ;;  %2485 = vmatpush.bf16.msrb.mxu3 %v2234_v17 }
 0x22e   :  { %v982_v26 = vmul.f32 %v942_v42, %v7015_v9  ;;  %v2298_v45 = vpack.c.bf16 %v1914_v27, %v1906_v53  ;;  %v2362_v51 = vpack.c.bf16 %v2042_v30, %v2034_v28  ;;  %v1386_v25 = vunpack.c.1.s8 %v7278_v40 }
 0x22f   :  { %v966_v32 = vmul.f32 %v958_v24, %v7141_v1  ;;  %v967_v35 = vmul.f32 %v959_v29, %v7134_v60  ;;  %v968_v44 = vmul.f32 %v960_v15, %v7186_v55  ;;  %v969_v59 = vmul.f32 %v961_v22, %v7190_v18  ;;  %v1106_v24 = vld [vmem:[%s9210_s12 + $0x288] sm:$0xff] }
 0x230   :  { %v984_v38 = vperm.slane %v982_v26, 0  ;;  %v985_v39 = vperm.slane %v982_v26, 1  ;;  %v986_v19 = vperm.slane %v982_v26, 2  ;;  %v987_v62 = vperm.slane %v982_v26, 3  ;;  %2498 = vmatpush.bf16.msra.mxu0 %v2298_v45  ;;  %2511 = vmatpush.bf16.msra.mxu1 %v2362_v51 }
 0x231   :  { %v974_v41 = vrot.slane %v967_v35, 7  ;;  %v975_v43 = vrot.slane %v968_v44, 6  ;;  %v976_v9 = vrot.slane %v969_v59, 5  ;;  %v1762_v61 = vcvt.s32.f32 %v1250_v21 }
 0x232   :  { %v992_v1 = vmul.f32 %v984_v38, %v7043_v37  ;;  %v993_v60 = vmul.f32 %v985_v39, %v7041_v31  ;;  %v994_v55 = vmul.f32 %v986_v19, %v7102_v6  ;;  %v995_v18 = vmul.f32 %v987_v62, %v7118_v54  ;;  %v1138_v38 = vld [vmem:[%s9210_s12 + $0x388] sm:$0xff] }
 0x233   :  { %v977_v48 = vsel %vm297_vm8, %v966_v32, %v974_v41  ;;  %v978_v50 = vsel %vm937_vm6, %v975_v43, %v976_v9  ;;  %v1258_v37 = vunpack.c.1.s8 %v7272_v33  ;;  %v2170_v6 = vcvt.s32.f32 %v1658_v14 }
 0x234   :  { %v979_v56 = vsel %vm939_vm7, %v977_v48, %v978_v50  ;;  %v1378_v54 = vunpack.c.0.s8 %v7278_v40  ;;  %v1506_v0 = vunpack.c.0.s8 %v7290_v47  ;;  %v1514_v58 = vunpack.c.1.s8 %v7290_v47 }
 0x235   :  { %v981_v31 = vsub.f32 %v943_v36, %v979_v56  ;;  %v1770_v63 = vcvt.s32.f32 %v1258_v37  ;;  %v2426_v46 = vpack.c.bf16 %v2170_v6, %v2162_v57  ;;  %v1898_v10 = vcvt.s32.f32 %v1386_v25 }
 0x236   :  { %v1890_v33 = vcvt.s32.f32 %v1378_v54  ;;  %v2018_v3 = vcvt.s32.f32 %v1506_v0  ;;  %v2026_v47 = vcvt.s32.f32 %v1514_v58  ;;  %v1634_v53 = vunpack.c.0.s8 %v7297_v4 }
 0x237   :  { %v997_v2 = vperm.slane %v981_v31, 0  ;;  %v998_v49 = vperm.slane %v981_v31, 1  ;;  %v999_v5 = vperm.slane %v981_v31, 2  ;;  %v1000_v8 = vperm.slane %v981_v31, 3  ;;  %2524 = vmatpush.bf16.msra.mxu2 %v2426_v46  ;;  %v1034_v31 = vld [vmem:[%s9210_s12 + $0x48] sm:$0xff] }
 0x238   :  { %v2226_v34 = vpack.c.bf16 %v1770_v63, %v1762_v61  ;;  %v2290_v42 = vpack.c.bf16 %v1898_v10, %v1890_v33  ;;  %v1642_v23 = vunpack.c.1.s8 %v7297_v4  ;;  %v2354_v22 = vpack.c.bf16 %v2026_v47, %v2018_v3  ;;  %v1098_v33 = vld [vmem:[%s9210_s12 + $0x248] sm:$0xff] }
 0x239   :  { %v7327_v11 = vadd.f32 %v997_v2, %v992_v1  ;;  %v7329_v12 = vadd.f32 %v998_v49, %v993_v60  ;;  %v7331_v13 = vadd.f32 %v999_v5, %v994_v55  ;;  %v1008_v40 = vadd.f32 %v1000_v8, %v995_v18  ;;  %v1066_v49 = vld [vmem:[%s9210_s12 + $0x148] sm:$0xff] }
 0x23a   :  { %2486 = vmatpush.bf16.msrb.mxu3 %v2226_v34  ;;  %2499 = vmatpush.bf16.msra.mxu0 %v2290_v42  ;;  %v2146_v26 = vcvt.s32.f32 %v1634_v53  ;;  %v2154_v27 = vcvt.s32.f32 %v1642_v23  ;;  %v1234_v28 = vunpack.c.2.s8 %v1042_v16  ;;  %v1242_v30 = vunpack.c.3.s8 %v1042_v16  ;;  %v1130_v47 = vld [vmem:[%s9210_s12 + $0x348] sm:$0xff] }
 0x23b   :  { %vm1012_vm11 = vcmp.gt.f32.partialorder %v1008_v40, 0.0  ;;  %v7341_v17 = vmul.f32 0.2, %v7327_v11  ;;  %v7344_v7 = vmul.f32 0.2, %v7329_v12  ;;  %v1362_v32 = vunpack.c.2.s8 %v1074_v20  ;;  %2512 = vmatpush.bf16.msra.mxu1 %v2354_v22 }
 0x23c   :  { %v7351_v29 = vmul.f32 0.2, %v7331_v13  ;;  %v1016_v15 = vmul.f32 0.2, %v1008_v40  ;;  %v1370_v44 = vunpack.c.3.s8 %v1074_v20  ;;  %v1490_v59 = vunpack.c.2.s8 %v1106_v24 }
 0x23d   :  { %v1498_v4 = vunpack.c.3.s8 %v1106_v24  ;;  %v2418_v19 = vpack.c.bf16 %v2154_v27, %v2146_v26  ;;  %v1746_v62 = vcvt.s32.f32 %v1234_v28  ;;  %v1754_v41 = vcvt.s32.f32 %v1242_v30 }
 0x23e   :  { %v1020_v35 = vsel %vm1012_vm11, %v1008_v40, %v1016_v15  ;;  %v1874_v43 = vcvt.s32.f32 %v1362_v32  ;;  %v1882_v9 = vcvt.s32.f32 %v1370_v44  ;;  %v2002_v45 = vcvt.s32.f32 %v1490_v59 }
 0x23f   :  { %v7356_v39 = vpack.c.bf16 %v1020_v35, %v1020_v35  ;;  %v2010_v36 = vcvt.s32.f32 %v1498_v4  ;;  %2525 = vmatpush.bf16.msra.mxu2 %v2418_v19  ;;  %v2218_v1 = vpack.c.bf16 %v1754_v41, %v1746_v62  ;;  %v1618_v60 = vunpack.c.2.s8 %v1138_v38 }
 0x240   :  { %v1626_v55 = vunpack.c.3.s8 %v1138_v38  ;;  %v1218_v18 = vunpack.c.0.s8 %v1042_v16  ;;  %v2282_v48 = vpack.c.bf16 %v1882_v9, %v1874_v43  ;;  %v1226_v51 = vunpack.c.1.s8 %v1042_v16 }
 0x241   :  { %v2346_v50 = vpack.c.bf16 %v2010_v36, %v2002_v45  ;;  %v1346_v14 = vunpack.c.0.s8 %v1074_v20  ;;  %2480 = vmatmul.bf16.vlgmr.msrb.gmra.mxu2 %v7356_v39  ;;  %2487 = vmatpush.bf16.msrb.mxu3 %v2218_v1  ;;  %v2130_v56 = vcvt.s32.f32 %v1618_v60  ;;  %v1354_v37 = vunpack.c.1.s8 %v1074_v20  ;;  %v1026_v1 = vld [vmem:[%s9210_s12 + $0x8] sm:$0xff] }
 0x242   :  { %v2138_v57 = vcvt.s32.f32 %v1626_v55  ;;  %v1730_v21 = vcvt.s32.f32 %v1218_v18  ;;  %2500 = vmatpush.bf16.msra.mxu0 %v2282_v48  ;;  %v1738_v6 = vcvt.s32.f32 %v1226_v51  ;;  %v1474_v25 = vunpack.c.0.s8 %v1106_v24 }
 0x243   :  { %2513 = vmatpush.bf16.msra.mxu1 %v2346_v50  ;;  %v1858_v54 = vcvt.s32.f32 %v1346_v14  ;;  %v1482_v61 = vunpack.c.1.s8 %v1106_v24  ;;  %v1866_v0 = vcvt.s32.f32 %v1354_v37  ;;  %v1602_v58 = vunpack.c.0.s8 %v1138_v38 }
 0x244   :  { %v2410_v63 = vpack.c.bf16 %v2138_v57, %v2130_v56  ;;  %v1610_v2 = vunpack.c.1.s8 %v1138_v38  ;;  %v2210_v5 = vpack.c.bf16 %v1738_v6, %v1730_v21  ;;  %v1986_v8 = vcvt.s32.f32 %v1474_v25  ;;  %v1058_v57 = vld [vmem:[%s9210_s12 + $0x108] sm:$0xff] }
 0x245   :  { %v1994_v46 = vcvt.s32.f32 %v1482_v61  ;;  %v1202_v34 = vunpack.c.2.s8 %v1034_v31  ;;  %v2274_v10 = vpack.c.bf16 %v1866_v0, %v1858_v54  ;;  %v2114_v40 = vcvt.s32.f32 %v1602_v58  ;;  %v1090_v54 = vld [vmem:[%s9210_s12 + $0x208] sm:$0xff] }
 0x246   :  { %2526 = vmatpush.bf16.msra.mxu2 %v2410_v63  ;;  %v2122_v42 = vcvt.s32.f32 %v1610_v2  ;;  %v1210_v3 = vunpack.c.3.s8 %v1034_v31  ;;  %2488 = vmatpush.bf16.msrb.mxu3 %v2210_v5  ;;  %v1330_v20 = vunpack.c.2.s8 %v1066_v49  ;;  %v1338_v23 = vunpack.c.3.s8 %v1066_v49  ;;  %v1122_v58 = vld [vmem:[%s9210_s12 + $0x308] sm:$0xff] }
 0x247   :  { %v2338_v53 = vpack.c.bf16 %v1994_v46, %v1986_v8  ;;  %v1714_v16 = vcvt.s32.f32 %v1202_v34  ;;  %2501 = vmatpush.bf16.msra.mxu0 %v2274_v10  ;;  %v1458_v22 = vunpack.c.2.s8 %v1098_v33  ;;  %v1466_v26 = vunpack.c.3.s8 %v1098_v33 }
 0x248   :  { %v2402_v24 = vpack.c.bf16 %v2122_v42, %v2114_v40  ;;  %v1722_v15 = vcvt.s32.f32 %v1210_v3  ;;  %v1842_v27 = vcvt.s32.f32 %v1330_v20  ;;  %v1850_v28 = vcvt.s32.f32 %v1338_v23 }
 0x249   :  { %2514 = vmatpush.bf16.msra.mxu1 %v2338_v53  ;;  %v1586_v30 = vunpack.c.2.s8 %v1130_v47  ;;  %v1594_v32 = vunpack.c.3.s8 %v1130_v47  ;;  %v1970_v44 = vcvt.s32.f32 %v1458_v22  ;;  %v1978_v59 = vcvt.s32.f32 %v1466_v26 }
 0x24a   :  { %2527 = vmatpush.bf16.msra.mxu2 %v2402_v24  ;;  %v2202_v35 = vpack.c.bf16 %v1722_v15, %v1714_v16  ;;  %v1186_v4 = vunpack.c.0.s8 %v1034_v31  ;;  %v2266_v38 = vpack.c.bf16 %v1850_v28, %v1842_v27  ;;  %v1194_v41 = vunpack.c.1.s8 %v1034_v31 }
 0x24b   :  { %v2098_v19 = vcvt.s32.f32 %v1586_v30  ;;  %v2106_v62 = vcvt.s32.f32 %v1594_v32  ;;  %v2330_v43 = vpack.c.bf16 %v1978_v59, %v1970_v44  ;;  %v1314_v45 = vunpack.c.0.s8 %v1066_v49 }
 0x24c   :  { %2489 = vmatpush.bf16.msrb.mxu3 %v2202_v35  ;;  %v1698_v9 = vcvt.s32.f32 %v1186_v4  ;;  %v1322_v36 = vunpack.c.1.s8 %v1066_v49  ;;  %2502 = vmatpush.bf16.msra.mxu0 %v2266_v38  ;;  %v1706_v55 = vcvt.s32.f32 %v1194_v41  ;;  %v1442_v18 = vunpack.c.0.s8 %v1098_v33 }
 0x24d   :  { %v2394_v60 = vpack.c.bf16 %v2106_v62, %v2098_v19  ;;  %v1450_v48 = vunpack.c.1.s8 %v1098_v33  ;;  %2515 = vmatpush.bf16.msra.mxu1 %v2330_v43  ;;  %v1826_v50 = vcvt.s32.f32 %v1314_v45  ;;  %v1570_v14 = vunpack.c.0.s8 %v1130_v47 }
 0x24e   :  { %v1834_v51 = vcvt.s32.f32 %v1322_v36  ;;  %v1578_v56 = vunpack.c.1.s8 %v1130_v47  ;;  %v2194_v21 = vpack.c.bf16 %v1706_v55, %v1698_v9  ;;  %v1954_v37 = vcvt.s32.f32 %v1442_v18  ;;  %v1051_v36 = vld [vmem:[%s9210_s12 + $0xd0] sm:$0xff] }
 0x24f   :  { %2528 = vmatpush.bf16.msra.mxu2 %v2394_v60  ;;  %v1962_v31 = vcvt.s32.f32 %v1450_v48  ;;  %v1170_v6 = vunpack.c.2.s8 %v1026_v1  ;;  %v2082_v61 = vcvt.s32.f32 %v1570_v14  ;;  %v1178_v0 = vunpack.c.3.s8 %v1026_v1  ;;  %v1083_v48 = vld [vmem:[%s9210_s12 + $0x1d0] sm:$0xff] }
 0x250   :  { %v2258_v25 = vpack.c.bf16 %v1834_v51, %v1826_v50  ;;  %v2090_v63 = vcvt.s32.f32 %v1578_v56  ;;  %2490 = vmatpush.bf16.msrb.mxu3 %v2194_v21  ;;  %v1298_v5 = vunpack.c.2.s8 %v1058_v57  ;;  %v1306_v8 = vunpack.c.3.s8 %v1058_v57  ;;  %v1115_v14 = vld [vmem:[%s9210_s12 + $0x2d0] sm:$0xff] }
 0x251   :  { %v2322_v2 = vpack.c.bf16 %v1962_v31, %v1954_v37  ;;  %v1682_v49 = vcvt.s32.f32 %v1170_v6  ;;  %v1690_v34 = vcvt.s32.f32 %v1178_v0  ;;  %v1426_v33 = vunpack.c.2.s8 %v1090_v54  ;;  %v1147_v21 = vld [vmem:[%s9210_s12 + $0x3d0] sm:$0xff] }
 0x252   :  { %2503 = vmatpush.bf16.msra.mxu0 %v2258_v25  ;;  %v2386_v46 = vpack.c.bf16 %v2090_v63, %v2082_v61  ;;  %v1434_v10 = vunpack.c.3.s8 %v1090_v54  ;;  %v1810_v40 = vcvt.s32.f32 %v1298_v5  ;;  %v1818_v42 = vcvt.s32.f32 %v1306_v8 }
 0x253   :  { %2516 = vmatpush.bf16.msra.mxu1 %v2322_v2  ;;  %v1554_v3 = vunpack.c.2.s8 %v1122_v58  ;;  %v1562_v47 = vunpack.c.3.s8 %v1122_v58  ;;  %v2186_v53 = vpack.c.bf16 %v1690_v34, %v1682_v49  ;;  %v1938_v16 = vcvt.s32.f32 %v1426_v33 }
 0x254   :  { %2529 = vmatpush.bf16.msra.mxu2 %v2386_v46  ;;  %v1946_v20 = vcvt.s32.f32 %v1434_v10  ;;  %v1154_v23 = vunpack.c.0.s8 %v1026_v1  ;;  %v2250_v24 = vpack.c.bf16 %v1818_v42, %v1810_v40  ;;  %v1162_v26 = vunpack.c.1.s8 %v1026_v1 }
 0x255   :  { %v2066_v15 = vcvt.s32.f32 %v1554_v3  ;;  %v2074_v22 = vcvt.s32.f32 %v1562_v47  ;;  %2491 = vmatpush.bf16.msrb.mxu3 %v2186_v53  ;;  %v1282_v30 = vunpack.c.0.s8 %v1058_v57  ;;  %v1290_v32 = vunpack.c.1.s8 %v1058_v57  ;;  %v1043_v47 = vld [vmem:[%s9210_s12 + $0x90] sm:$0xff] }
 0x256   :  { %v2314_v27 = vpack.c.bf16 %v1946_v20, %v1938_v16  ;;  %v1666_v28 = vcvt.s32.f32 %v1154_v23  ;;  %2504 = vmatpush.bf16.msra.mxu0 %v2250_v24  ;;  %v1674_v44 = vcvt.s32.f32 %v1162_v26  ;;  %v1410_v59 = vunpack.c.0.s8 %v1090_v54 }
 0x257   :  { %v2378_v35 = vpack.c.bf16 %v2074_v22, %v2066_v15  ;;  %v1418_v4 = vunpack.c.1.s8 %v1090_v54  ;;  %v1794_v38 = vcvt.s32.f32 %v1282_v30  ;;  %v1802_v19 = vcvt.s32.f32 %v1290_v32 }
 0x258   :  { %2517 = vmatpush.bf16.msra.mxu1 %v2314_v27  ;;  %v1538_v62 = vunpack.c.0.s8 %v1122_v58  ;;  %v1546_v41 = vunpack.c.1.s8 %v1122_v58  ;;  %v2178_v43 = vpack.c.bf16 %v1674_v44, %v1666_v28  ;;  %v1922_v9 = vcvt.s32.f32 %v1410_v59  ;;  %v1075_v27 = vld [vmem:[%s9210_s12 + $0x190] sm:$0xff] }
 0x259   :  { %2530 = vmatpush.bf16.msra.mxu2 %v2378_v35  ;;  %v1930_v45 = vcvt.s32.f32 %v1418_v4  ;;  %vm1009_vm12 = vcmp.gt.f32.partialorder %v7327_v11, 0.0  ;;  %v2242_v1 = vpack.c.bf16 %v1802_v19, %v1794_v38  ;;  %vm1010_vm13 = vcmp.gt.f32.partialorder %v7329_v12, 0.0  ;;  %v1107_v44 = vld [vmem:[%s9210_s12 + $0x290] sm:$0xff] }
 0x25a   :  { %v2050_v60 = vcvt.s32.f32 %v1538_v62  ;;  %v2058_v55 = vcvt.s32.f32 %v1546_v41  ;;  %v1017_v18 = vsel %vm1009_vm12, %v7327_v11, %v7341_v17  ;;  %2492 = vmatpush.bf16.msrb.mxu3 %v2178_v43  ;;  %vm1011_vm14 = vcmp.gt.f32.partialorder %v7331_v13, 0.0  ;;  %v1139_v62 = vld [vmem:[%s9210_s12 + $0x390] sm:$0xff] }
 0x25b   :  { %v2306_v50 = vpack.c.bf16 %v1930_v45, %v1922_v9  ;;  %v7392_v51 = vpack.c.bf16 %v1017_v18, %v1017_v18  ;;  %2505 = vmatpush.bf16.msra.mxu0 %v2242_v1  ;;  %v1018_v11 = vsel %vm1010_vm13, %v7329_v12, %v7344_v7  ;;  %v1019_v17 = vsel %vm1011_vm14, %v7331_v13, %v7351_v29 }
 0x25c   :  { %v2370_v56 = vpack.c.bf16 %v2058_v55, %v2050_v60  ;;  %v1267_v57 = vunpack.c.2.s8 %v1051_v36  ;;  %v7407_v37 = vpack.c.bf16 %v1018_v11, %v1018_v11  ;;  %v7409_v31 = vpack.c.bf16 %v1019_v17, %v1019_v17 }
 0x25d   :  { %2518 = vmatpush.bf16.msra.mxu1 %v2306_v50  ;;  %2441 = vmatmul.bf16.vlgmr.msra.gmra.mxu3 %v7392_v51  ;;  %v1275_v6 = vunpack.c.3.s8 %v1051_v36  ;;  %v1395_v54 = vunpack.c.2.s8 %v1083_v48  ;;  %v1403_v12 = vunpack.c.3.s8 %v1083_v48  ;;  %v1523_v7 = vunpack.c.2.s8 %v1115_v14 }
 0x25e   :  { %2531 = vmatpush.bf16.msra.mxu2 %v2370_v56  ;;  %v1779_v25 = vcvt.s32.f32 %v1267_v57  ;;  %v1531_v61 = vunpack.c.3.s8 %v1115_v14  ;;  %2454 = vmatmul.bf16.vlgmr.msrb.gmra.mxu0 %v7407_v37  ;;  %v1651_v63 = vunpack.c.2.s8 %v1147_v21  ;;  %v1659_v0 = vunpack.c.3.s8 %v1147_v21 }
 0x25f   :  { %2467 = vmatmul.bf16.vlgmr.msrb.gmra.mxu1 %v7409_v31  ;;  %v1787_v13 = vcvt.s32.f32 %v1275_v6  ;;  %v1907_v29 = vcvt.s32.f32 %v1395_v54  ;;  %v1915_v58 = vcvt.s32.f32 %v1403_v12  ;;  %v2035_v2 = vcvt.s32.f32 %v1523_v7 }
 0x260   :  { %v2043_v49 = vcvt.s32.f32 %v1531_v61  ;;  %v1251_v5 = vunpack.c.0.s8 %v1051_v36  ;;  %v2163_v46 = vcvt.s32.f32 %v1651_v63  ;;  %v2171_v34 = vcvt.s32.f32 %v1659_v0 }
 0x261   :  { %v2235_v8 = vpack.c.bf16 %v1787_v13, %v1779_v25  ;;  %v1259_v33 = vunpack.c.1.s8 %v1051_v36  ;;  %2532 = vmatmul.bf16.vlgmr.msra.gmra.mxu2 %v7356_v39  ;;  %v2299_v10 = vpack.c.bf16 %v1915_v58, %v1907_v29  ;;  %v1379_v3 = vunpack.c.0.s8 %v1083_v48 }
 0x262   :  { %v2363_v40 = vpack.c.bf16 %v2043_v49, %v2035_v2  ;;  %v1763_v42 = vcvt.s32.f32 %v1251_v5  ;;  %v2427_v53 = vpack.c.bf16 %v2171_v34, %v2163_v46  ;;  %v1387_v20 = vunpack.c.1.s8 %v1083_v48  ;;  %v1035_v2 = vld [vmem:[%s9210_s12 + $0x50] sm:$0xff] }
 0x263   :  { %2537 = vmatpush.bf16.msra.mxu3 %v2235_v8  ;;  %v1771_v16 = vcvt.s32.f32 %v1259_v33  ;;  %v1507_v23 = vunpack.c.0.s8 %v1115_v14  ;;  %2550 = vmatpush.bf16.msrb.mxu0 %v2299_v10  ;;  %v1891_v24 = vcvt.s32.f32 %v1379_v3  ;;  %v1515_v15 = vunpack.c.1.s8 %v1115_v14  ;;  %v1067_v34 = vld [vmem:[%s9210_s12 + $0x150] sm:$0xff] }
 0x264   :  { %2563 = vmatpush.bf16.msrb.mxu1 %v2363_v40  ;;  %v1635_v22 = vunpack.c.0.s8 %v1147_v21  ;;  %v1643_v26 = vunpack.c.1.s8 %v1147_v21  ;;  %2576 = vmatpush.bf16.msrb.mxu2 %v2427_v53  ;;  %v1899_v30 = vcvt.s32.f32 %v1387_v20  ;;  %v1235_v35 = vunpack.c.2.s8 %v1043_v47  ;;  %v1099_v3 = vld [vmem:[%s9210_s12 + $0x250] sm:$0xff] }
 0x265   :  { %v2227_v28 = vpack.c.bf16 %v1771_v16, %v1763_v42  ;;  %v2019_v32 = vcvt.s32.f32 %v1507_v23  ;;  %v2027_v59 = vcvt.s32.f32 %v1515_v15  ;;  %v1243_v19 = vunpack.c.3.s8 %v1043_v47  ;;  %v1131_v23 = vld [vmem:[%s9210_s12 + $0x350] sm:$0xff] }
 0x266   :  { %v2147_v4 = vcvt.s32.f32 %v1635_v22  ;;  %v2155_v38 = vcvt.s32.f32 %v1643_v26  ;;  %v2291_v41 = vpack.c.bf16 %v1899_v30, %v1891_v24  ;;  %v1747_v43 = vcvt.s32.f32 %v1235_v35 }
 0x267   :  { %2538 = vmatpush.bf16.msra.mxu3 %v2227_v28  ;;  %v1363_v9 = vunpack.c.2.s8 %v1075_v27  ;;  %v1371_v45 = vunpack.c.3.s8 %v1075_v27  ;;  %v2355_v36 = vpack.c.bf16 %v2027_v59, %v2019_v32  ;;  %v1755_v60 = vcvt.s32.f32 %v1243_v19 }
 0x268   :  { %v2419_v1 = vpack.c.bf16 %v2155_v38, %v2147_v4  ;;  %v1491_v55 = vunpack.c.2.s8 %v1107_v44  ;;  %2551 = vmatpush.bf16.msrb.mxu0 %v2291_v41  ;;  %v1499_v50 = vunpack.c.3.s8 %v1107_v44  ;;  %v1619_v14 = vunpack.c.2.s8 %v1139_v62 }
 0x269   :  { %v1875_v18 = vcvt.s32.f32 %v1363_v9  ;;  %v1883_v48 = vcvt.s32.f32 %v1371_v45  ;;  %2564 = vmatpush.bf16.msrb.mxu1 %v2355_v36  ;;  %v2219_v56 = vpack.c.bf16 %v1755_v60, %v1747_v43  ;;  %v1627_v17 = vunpack.c.3.s8 %v1139_v62 }
 0x26a   :  { %2577 = vmatpush.bf16.msrb.mxu2 %v2419_v1  ;;  %v2003_v11 = vcvt.s32.f32 %v1491_v55  ;;  %v1219_v57 = vunpack.c.0.s8 %v1043_v47  ;;  %v2011_v6 = vcvt.s32.f32 %v1499_v50  ;;  %v2131_v54 = vcvt.s32.f32 %v1619_v14 }
 0x26b   :  { %v2283_v21 = vpack.c.bf16 %v1883_v48, %v1875_v18  ;;  %v1227_v25 = vunpack.c.1.s8 %v1043_v47  ;;  %2539 = vmatpush.bf16.msra.mxu3 %v2219_v56  ;;  %v2139_v12 = vcvt.s32.f32 %v1627_v17  ;;  %v1347_v61 = vunpack.c.0.s8 %v1075_v27 }
 0x26c   :  { %v1731_v7 = vcvt.s32.f32 %v1219_v57  ;;  %v1355_v13 = vunpack.c.1.s8 %v1075_v27  ;;  %v2347_v29 = vpack.c.bf16 %v2011_v6, %v2003_v11  ;;  %v1475_v0 = vunpack.c.0.s8 %v1107_v44  ;;  %v1027_v11 = vld [vmem:[%s9210_s12 + $0x10] sm:$0xff] }
 0x26d   :  { %2552 = vmatpush.bf16.msrb.mxu0 %v2283_v21  ;;  %v1739_v63 = vcvt.s32.f32 %v1227_v25  ;;  %v1483_v58 = vunpack.c.1.s8 %v1107_v44  ;;  %2493 = vmatmul.bf16.vlgmr.msrb.gmra.mxu3 %v7392_v51  ;;  %v2411_v49 = vpack.c.bf16 %v2139_v12, %v2131_v54  ;;  %v1859_v5 = vcvt.s32.f32 %v1347_v61  ;;  %v1059_v54 = vld [vmem:[%s9210_s12 + $0x110] sm:$0xff] }
 0x26e   :  { %v1867_v8 = vcvt.s32.f32 %v1355_v13  ;;  %v1603_v46 = vunpack.c.0.s8 %v1139_v62  ;;  %2565 = vmatpush.bf16.msrb.mxu1 %v2347_v29  ;;  %v1987_v10 = vcvt.s32.f32 %v1475_v0  ;;  %v1611_v42 = vunpack.c.1.s8 %v1139_v62  ;;  %2506 = vmatmul.bf16.vlgmr.msra.gmra.mxu0 %v7407_v37  ;;  %v1091_v13 = vld [vmem:[%s9210_s12 + $0x210] sm:$0xff] }
 0x26f   :  { %v2211_v33 = vpack.c.bf16 %v1739_v63, %v1731_v7  ;;  %v1995_v40 = vcvt.s32.f32 %v1483_v58  ;;  %2578 = vmatpush.bf16.msrb.mxu2 %v2411_v49  ;;  %2519 = vmatmul.bf16.vlgmr.msra.gmra.mxu1 %v7409_v31  ;;  %v1203_v16 = vunpack.c.2.s8 %v1035_v2  ;;  %v1211_v20 = vunpack.c.3.s8 %v1035_v2 }
 0x270   :  { %v2275_v47 = vpack.c.bf16 %v1867_v8, %v1859_v5  ;;  %v2115_v53 = vcvt.s32.f32 %v1603_v46  ;;  %v2123_v15 = vcvt.s32.f32 %v1611_v42  ;;  %v1331_v22 = vunpack.c.2.s8 %v1067_v34 }
 0x271   :  { %2540 = vmatpush.bf16.msra.mxu3 %v2211_v33  ;;  %v2339_v24 = vpack.c.bf16 %v1995_v40, %v1987_v10  ;;  %v1339_v26 = vunpack.c.3.s8 %v1067_v34  ;;  %v1715_v27 = vcvt.s32.f32 %v1203_v16  ;;  %v1723_v28 = vcvt.s32.f32 %v1211_v20 }
 0x272   :  { %2553 = vmatpush.bf16.msrb.mxu0 %v2275_v47  ;;  %v1459_v30 = vunpack.c.2.s8 %v1099_v3  ;;  %v1467_v32 = vunpack.c.3.s8 %v1099_v3  ;;  %v2403_v35 = vpack.c.bf16 %v2123_v15, %v2115_v53  ;;  %v1843_v44 = vcvt.s32.f32 %v1331_v22 }
 0x273   :  { %2566 = vmatpush.bf16.msrb.mxu1 %v2339_v24  ;;  %v1851_v59 = vcvt.s32.f32 %v1339_v26  ;;  %v1587_v4 = vunpack.c.2.s8 %v1131_v23  ;;  %v2203_v38 = vpack.c.bf16 %v1723_v28, %v1715_v27  ;;  %v1595_v41 = vunpack.c.3.s8 %v1131_v23 }
 0x274   :  { %v1971_v19 = vcvt.s32.f32 %v1459_v30  ;;  %v1979_v62 = vcvt.s32.f32 %v1467_v32  ;;  %2579 = vmatpush.bf16.msrb.mxu2 %v2403_v35  ;;  %v1187_v45 = vunpack.c.0.s8 %v1035_v2  ;;  %v1195_v36 = vunpack.c.1.s8 %v1035_v2  ;;  %v1123_v2 = vld [vmem:[%s9210_s12 + $0x310] sm:$0xff] }
 0x275   :  { %v2267_v43 = vpack.c.bf16 %v1851_v59, %v1843_v44  ;;  %v2099_v9 = vcvt.s32.f32 %v1587_v4  ;;  %2541 = vmatpush.bf16.msra.mxu3 %v2203_v38  ;;  %v2107_v60 = vcvt.s32.f32 %v1595_v41  ;;  %v1315_v55 = vunpack.c.0.s8 %v1067_v34 }
 0x276   :  { %v2331_v1 = vpack.c.bf16 %v1979_v62, %v1971_v19  ;;  %v1323_v18 = vunpack.c.1.s8 %v1067_v34  ;;  %v1699_v48 = vcvt.s32.f32 %v1187_v45  ;;  %v1707_v50 = vcvt.s32.f32 %v1195_v36  ;;  %v1052_v19 = vld [vmem:[%s9210_s12 + $0xd8] sm:$0xff] }
 0x277   :  { %2554 = vmatpush.bf16.msrb.mxu0 %v2267_v43  ;;  %v1443_v14 = vunpack.c.0.s8 %v1099_v3  ;;  %v1451_v56 = vunpack.c.1.s8 %v1099_v3  ;;  %v2395_v17 = vpack.c.bf16 %v2107_v60, %v2099_v9  ;;  %v1827_v57 = vcvt.s32.f32 %v1315_v55  ;;  %v1084_v45 = vld [vmem:[%s9210_s12 + $0x1d8] sm:$0xff] }
 0x278   :  { %2567 = vmatpush.bf16.msrb.mxu1 %v2331_v1  ;;  %v1835_v21 = vcvt.s32.f32 %v1323_v18  ;;  %v1571_v6 = vunpack.c.0.s8 %v1131_v23  ;;  %v2195_v25 = vpack.c.bf16 %v1707_v50, %v1699_v48  ;;  %v1579_v61 = vunpack.c.1.s8 %v1131_v23  ;;  %v1116_v18 = vld [vmem:[%s9210_s12 + $0x2d8] sm:$0xff] }
 0x279   :  { %v1955_v12 = vcvt.s32.f32 %v1443_v14  ;;  %v1963_v7 = vcvt.s32.f32 %v1451_v56  ;;  %2580 = vmatpush.bf16.msrb.mxu2 %v2395_v17  ;;  %v1171_v0 = vunpack.c.2.s8 %v1027_v11  ;;  %v1179_v58 = vunpack.c.3.s8 %v1027_v11 }
 0x27a   :  { %v2259_v29 = vpack.c.bf16 %v1835_v21, %v1827_v57  ;;  %v2083_v63 = vcvt.s32.f32 %v1571_v6  ;;  %2542 = vmatpush.bf16.msra.mxu3 %v2195_v25  ;;  %v2091_v5 = vcvt.s32.f32 %v1579_v61  ;;  %v1299_v8 = vunpack.c.2.s8 %v1059_v54 }
 0x27b   :  { %v2323_v49 = vpack.c.bf16 %v1963_v7, %v1955_v12  ;;  %v1307_v46 = vunpack.c.3.s8 %v1059_v54  ;;  %v1683_v34 = vcvt.s32.f32 %v1171_v0  ;;  %v1691_v33 = vcvt.s32.f32 %v1179_v58 }
 0x27c   :  { %2555 = vmatpush.bf16.msrb.mxu0 %v2259_v29  ;;  %v1427_v10 = vunpack.c.2.s8 %v1091_v13  ;;  %v1435_v40 = vunpack.c.3.s8 %v1091_v13  ;;  %v2387_v42 = vpack.c.bf16 %v2091_v5, %v2083_v63  ;;  %v1811_v3 = vcvt.s32.f32 %v1299_v8 }
 0x27d   :  { %2568 = vmatpush.bf16.msrb.mxu1 %v2323_v49  ;;  %v1819_v47 = vcvt.s32.f32 %v1307_v46  ;;  %v1555_v53 = vunpack.c.2.s8 %v1123_v2  ;;  %v2187_v16 = vpack.c.bf16 %v1691_v33, %v1683_v34  ;;  %v1563_v24 = vunpack.c.3.s8 %v1123_v2 }
 0x27e   :  { %v1939_v20 = vcvt.s32.f32 %v1427_v10  ;;  %v1947_v23 = vcvt.s32.f32 %v1435_v40  ;;  %2581 = vmatpush.bf16.msrb.mxu2 %v2387_v42  ;;  %v1155_v26 = vunpack.c.0.s8 %v1027_v11  ;;  %v1163_v27 = vunpack.c.1.s8 %v1027_v11  ;;  %v1148_v11 = vld [vmem:[%s9210_s12 + $0x3d8] sm:$0xff] }
 0x27f   :  { %v2251_v15 = vpack.c.bf16 %v1819_v47, %v1811_v3  ;;  %v2067_v22 = vcvt.s32.f32 %v1555_v53  ;;  %2543 = vmatpush.bf16.msra.mxu3 %v2187_v16  ;;  %v2075_v30 = vcvt.s32.f32 %v1563_v24  ;;  %v1283_v32 = vunpack.c.0.s8 %v1059_v54 }
 0x280   :  { %v2315_v28 = vpack.c.bf16 %v1947_v23, %v1939_v20  ;;  %v1291_v35 = vunpack.c.1.s8 %v1059_v54  ;;  %v1667_v44 = vcvt.s32.f32 %v1155_v26  ;;  %v1675_v59 = vcvt.s32.f32 %v1163_v27  ;;  %v1044_v20 = vld [vmem:[%s9210_s12 + $0x98] sm:$0xff] }
 0x281   :  { %2556 = vmatpush.bf16.msrb.mxu0 %v2251_v15  ;;  %v1411_v4 = vunpack.c.0.s8 %v1091_v13  ;;  %v1419_v38 = vunpack.c.1.s8 %v1091_v13  ;;  %v2379_v62 = vpack.c.bf16 %v2075_v30, %v2067_v22  ;;  %v1795_v41 = vcvt.s32.f32 %v1283_v32  ;;  %v1076_v26 = vld [vmem:[%s9210_s12 + $0x198] sm:$0xff] }
 0x282   :  { %2569 = vmatpush.bf16.msrb.mxu1 %v2315_v28  ;;  %v1803_v43 = vcvt.s32.f32 %v1291_v35  ;;  %v1539_v9 = vunpack.c.0.s8 %v1123_v2  ;;  %v2179_v36 = vpack.c.bf16 %v1675_v59, %v1667_v44  ;;  %v1547_v55 = vunpack.c.1.s8 %v1123_v2  ;;  %v1108_v35 = vld [vmem:[%s9210_s12 + $0x298] sm:$0xff] }
 0x283   :  { %v1923_v1 = vcvt.s32.f32 %v1411_v4  ;;  %v1931_v60 = vcvt.s32.f32 %v1419_v38  ;;  %2582 = vmatpush.bf16.msrb.mxu2 %v2379_v62  ;;  %v1268_v14 = vunpack.c.2.s8 %v1052_v19  ;;  %v1276_v56 = vunpack.c.3.s8 %v1052_v19 }
 0x284   :  { %v2243_v48 = vpack.c.bf16 %v1803_v43, %v1795_v41  ;;  %v2051_v50 = vcvt.s32.f32 %v1539_v9  ;;  %2544 = vmatpush.bf16.msra.mxu3 %v2179_v36  ;;  %v2059_v57 = vcvt.s32.f32 %v1547_v55  ;;  %v1396_v21 = vunpack.c.2.s8 %v1084_v45 }
 0x285   :  { %v2307_v17 = vpack.c.bf16 %v1931_v60, %v1923_v1  ;;  %v1404_v6 = vunpack.c.3.s8 %v1084_v45  ;;  %v1780_v54 = vcvt.s32.f32 %v1268_v14  ;;  %v1788_v25 = vcvt.s32.f32 %v1276_v56 }
 0x286   :  { %2557 = vmatpush.bf16.msrb.mxu0 %v2243_v48  ;;  %v1524_v12 = vunpack.c.2.s8 %v1116_v18  ;;  %v1532_v7 = vunpack.c.3.s8 %v1116_v18  ;;  %v2371_v61 = vpack.c.bf16 %v2059_v57, %v2051_v50  ;;  %v1908_v13 = vcvt.s32.f32 %v1396_v21 }
 0x287   :  { %2570 = vmatpush.bf16.msrb.mxu1 %v2307_v17  ;;  %v1916_v29 = vcvt.s32.f32 %v1404_v6  ;;  %v1652_v63 = vunpack.c.2.s8 %v1148_v11  ;;  %v2236_v0 = vpack.c.bf16 %v1788_v25, %v1780_v54  ;;  %v1660_v49 = vunpack.c.3.s8 %v1148_v11  ;;  %2545 = vmatmul.bf16.vlgmr.msra.gmra.mxu3 %v7392_v51 }
 0x288   :  { %v2036_v58 = vcvt.s32.f32 %v1524_v12  ;;  %v2044_v2 = vcvt.s32.f32 %v1532_v7  ;;  %2583 = vmatpush.bf16.msrb.mxu2 %v2371_v61  ;;  %v1252_v46 = vunpack.c.0.s8 %v1052_v19  ;;  %v1260_v34 = vunpack.c.1.s8 %v1052_v19  ;;  %v1140_v19 = vld [vmem:[%s9210_s12 + $0x398] sm:$0xff] }
 0x289   :  { %v2300_v5 = vpack.c.bf16 %v1916_v29, %v1908_v13  ;;  %v2164_v8 = vcvt.s32.f32 %v1652_v63  ;;  %2558 = vmatmul.bf16.vlgmr.msrb.gmra.mxu0 %v7407_v37  ;;  %2589 = vmatpush.bf16.msrb.mxu3 %v2236_v0  ;;  %v2172_v10 = vcvt.s32.f32 %v1660_v49  ;;  %v1380_v40 = vunpack.c.0.s8 %v1084_v45 }
 0x28a   :  { %v2364_v33 = vpack.c.bf16 %v2044_v2, %v2036_v58  ;;  %2571 = vmatmul.bf16.vlgmr.msrb.gmra.mxu1 %v7409_v31  ;;  %v1388_v42 = vunpack.c.1.s8 %v1084_v45  ;;  %v1764_v3 = vcvt.s32.f32 %v1252_v46  ;;  %v1772_v47 = vcvt.s32.f32 %v1260_v34  ;;  %v1036_v58 = vld [vmem:[%s9210_s12 + $0x58] sm:$0xff] }
 0x28b   :  { %2602 = vmatpush.bf16.msra.mxu0 %v2300_v5  ;;  %v1508_v53 = vunpack.c.0.s8 %v1116_v18  ;;  %v1516_v16 = vunpack.c.1.s8 %v1116_v18  ;;  %v2428_v23 = vpack.c.bf16 %v2172_v10, %v2164_v8  ;;  %2584 = vmatmul.bf16.vlgmr.msrb.gmra.mxu2 %v7356_v39  ;;  %v1892_v24 = vcvt.s32.f32 %v1380_v40  ;;  %v1068_v46 = vld [vmem:[%s9210_s12 + $0x158] sm:$0xff] }
 0x28c   :  { %2615 = vmatpush.bf16.msra.mxu1 %v2364_v33  ;;  %v1900_v15 = vcvt.s32.f32 %v1388_v42  ;;  %v1636_v22 = vunpack.c.0.s8 %v1148_v11  ;;  %v2228_v27 = vpack.c.bf16 %v1772_v47, %v1764_v3  ;;  %v1644_v32 = vunpack.c.1.s8 %v1148_v11  ;;  %v1100_v42 = vld [vmem:[%s9210_s12 + $0x258] sm:$0xff] }
 0x28d   :  { %v2020_v28 = vcvt.s32.f32 %v1508_v53  ;;  %v2028_v30 = vcvt.s32.f32 %v1516_v16  ;;  %2628 = vmatpush.bf16.msra.mxu2 %v2428_v23  ;;  %v1236_v4 = vunpack.c.2.s8 %v1044_v20  ;;  %v1244_v38 = vunpack.c.3.s8 %v1044_v20 }
 0x28e   :  { %v2292_v44 = vpack.c.bf16 %v1900_v15, %v1892_v24  ;;  %v2148_v59 = vcvt.s32.f32 %v1636_v22  ;;  %2590 = vmatpush.bf16.msrb.mxu3 %v2228_v27  ;;  %v2156_v41 = vcvt.s32.f32 %v1644_v32  ;;  %v1364_v43 = vunpack.c.2.s8 %v1076_v26 }
 0x28f   :  { %v2356_v62 = vpack.c.bf16 %v2028_v30, %v2020_v28  ;;  %v1372_v9 = vunpack.c.3.s8 %v1076_v26  ;;  %v1748_v45 = vcvt.s32.f32 %v1236_v4  ;;  %v1756_v36 = vcvt.s32.f32 %v1244_v38 }
 0x290   :  { %2603 = vmatpush.bf16.msra.mxu0 %v2292_v44  ;;  %v1492_v1 = vunpack.c.2.s8 %v1108_v35  ;;  %v1500_v60 = vunpack.c.3.s8 %v1108_v35  ;;  %v2420_v55 = vpack.c.bf16 %v2156_v41, %v2148_v59  ;;  %v1876_v18 = vcvt.s32.f32 %v1364_v43 }
 0x291   :  { %2616 = vmatpush.bf16.msra.mxu1 %v2356_v62  ;;  %v1884_v48 = vcvt.s32.f32 %v1372_v9  ;;  %v1620_v50 = vunpack.c.2.s8 %v1140_v19  ;;  %v2220_v14 = vpack.c.bf16 %v1756_v36, %v1748_v45  ;;  %v1628_v17 = vunpack.c.3.s8 %v1140_v19 }
 0x292   :  { %v2004_v56 = vcvt.s32.f32 %v1492_v1  ;;  %v2012_v11 = vcvt.s32.f32 %v1500_v60  ;;  %2629 = vmatpush.bf16.msra.mxu2 %v2420_v55  ;;  %v1220_v6 = vunpack.c.0.s8 %v1044_v20  ;;  %v1228_v54 = vunpack.c.1.s8 %v1044_v20  ;;  %v1132_v20 = vld [vmem:[%s9210_s12 + $0x358] sm:$0xff] }
 0x293   :  { %v2284_v57 = vpack.c.bf16 %v1884_v48, %v1876_v18  ;;  %v2132_v21 = vcvt.s32.f32 %v1620_v50  ;;  %2591 = vmatpush.bf16.msrb.mxu3 %v2220_v14  ;;  %v2140_v12 = vcvt.s32.f32 %v1628_v17  ;;  %v1348_v7 = vunpack.c.0.s8 %v1076_v26 }
 0x294   :  { %v2348_v25 = vpack.c.bf16 %v2012_v11, %v2004_v56  ;;  %v1356_v61 = vunpack.c.1.s8 %v1076_v26  ;;  %v1732_v13 = vcvt.s32.f32 %v1220_v6  ;;  %v1740_v29 = vcvt.s32.f32 %v1228_v54  ;;  %v1028_v56 = vld [vmem:[%s9210_s12 + $0x18] sm:$0xff] }
 0x295   :  { %2604 = vmatpush.bf16.msra.mxu0 %v2284_v57  ;;  %v1476_v63 = vunpack.c.0.s8 %v1108_v35  ;;  %v1484_v0 = vunpack.c.1.s8 %v1108_v35  ;;  %v2412_v2 = vpack.c.bf16 %v2140_v12, %v2132_v21  ;;  %v1860_v49 = vcvt.s32.f32 %v1348_v7  ;;  %v1060_v6 = vld [vmem:[%s9210_s12 + $0x118] sm:$0xff] }
 0x296   :  { %2617 = vmatpush.bf16.msra.mxu1 %v2348_v25  ;;  %v1868_v5 = vcvt.s32.f32 %v1356_v61  ;;  %v1604_v8 = vunpack.c.0.s8 %v1140_v19  ;;  %v2212_v34 = vpack.c.bf16 %v1740_v29, %v1732_v13  ;;  %v1612_v40 = vunpack.c.1.s8 %v1140_v19  ;;  %v1092_v61 = vld [vmem:[%s9210_s12 + $0x218] sm:$0xff] }
 0x297   :  { %v1988_v33 = vcvt.s32.f32 %v1476_v63  ;;  %v1996_v10 = vcvt.s32.f32 %v1484_v0  ;;  %2630 = vmatpush.bf16.msra.mxu2 %v2412_v2  ;;  %v1204_v53 = vunpack.c.2.s8 %v1036_v58  ;;  %v1212_v16 = vunpack.c.3.s8 %v1036_v58 }
 0x298   :  { %v2276_v3 = vpack.c.bf16 %v1868_v5, %v1860_v49  ;;  %v2116_v47 = vcvt.s32.f32 %v1604_v8  ;;  %2592 = vmatpush.bf16.msrb.mxu3 %v2212_v34  ;;  %v2124_v24 = vcvt.s32.f32 %v1612_v40  ;;  %v1332_v15 = vunpack.c.2.s8 %v1068_v46 }
 0x299   :  { %v2340_v23 = vpack.c.bf16 %v1996_v10, %v1988_v33  ;;  %v1340_v22 = vunpack.c.3.s8 %v1068_v46  ;;  %v1716_v26 = vcvt.s32.f32 %v1204_v53  ;;  %v1724_v27 = vcvt.s32.f32 %v1212_v16 }
 0x29a   :  { %2605 = vmatpush.bf16.msra.mxu0 %v2276_v3  ;;  %v1460_v28 = vunpack.c.2.s8 %v1100_v42  ;;  %v1468_v30 = vunpack.c.3.s8 %v1100_v42  ;;  %v2404_v32 = vpack.c.bf16 %v2124_v24, %v2116_v47  ;;  %v1844_v35 = vcvt.s32.f32 %v1332_v15 }
 0x29b   :  { %2618 = vmatpush.bf16.msra.mxu1 %v2340_v23  ;;  %v1852_v44 = vcvt.s32.f32 %v1340_v22  ;;  %v1588_v59 = vunpack.c.2.s8 %v1132_v20  ;;  %v2204_v4 = vpack.c.bf16 %v1724_v27, %v1716_v26  ;;  %v1596_v62 = vunpack.c.3.s8 %v1132_v20 }
 0x29c   :  { %v1972_v38 = vcvt.s32.f32 %v1460_v28  ;;  %v1980_v19 = vcvt.s32.f32 %v1468_v30  ;;  %2631 = vmatpush.bf16.msra.mxu2 %v2404_v32  ;;  %v1188_v9 = vunpack.c.0.s8 %v1036_v58  ;;  %v1196_v45 = vunpack.c.1.s8 %v1036_v58  ;;  %v1124_v58 = vld [vmem:[%s9210_s12 + $0x318] sm:$0xff] }
 0x29d   :  { %v2268_v41 = vpack.c.bf16 %v1852_v44, %v1844_v35  ;;  %v2100_v43 = vcvt.s32.f32 %v1588_v59  ;;  %2593 = vmatpush.bf16.msrb.mxu3 %v2204_v4  ;;  %v2108_v1 = vcvt.s32.f32 %v1596_v62  ;;  %v1316_v60 = vunpack.c.0.s8 %v1068_v46 }
 0x29e   :  { %v2332_v36 = vpack.c.bf16 %v1980_v19, %v1972_v38  ;;  %v1324_v55 = vunpack.c.1.s8 %v1068_v46  ;;  %v1700_v18 = vcvt.s32.f32 %v1188_v9  ;;  %v1708_v48 = vcvt.s32.f32 %v1196_v45  ;;  %v1053_v38 = vld [vmem:[%s9210_s12 + $0xe0] sm:$0xff] }
 0x29f   :  { %2606 = vmatpush.bf16.msra.mxu0 %v2268_v41  ;;  %v1444_v50 = vunpack.c.0.s8 %v1100_v42  ;;  %v1452_v14 = vunpack.c.1.s8 %v1100_v42  ;;  %v2396_v11 = vpack.c.bf16 %v2108_v1, %v2100_v43  ;;  %v1828_v17 = vcvt.s32.f32 %v1316_v60  ;;  %v1085_v9 = vld [vmem:[%s9210_s12 + $0x1e0] sm:$0xff] }
 0x2a0   :  { %2619 = vmatpush.bf16.msra.mxu1 %v2332_v36  ;;  %v1836_v57 = vcvt.s32.f32 %v1324_v55  ;;  %v1572_v21 = vunpack.c.0.s8 %v1132_v20  ;;  %v2196_v54 = vpack.c.bf16 %v1708_v48, %v1700_v18  ;;  %v1580_v7 = vunpack.c.1.s8 %v1132_v20  ;;  %v1117_v55 = vld [vmem:[%s9210_s12 + $0x2e0] sm:$0xff] }
 0x2a1   :  { %v1956_v25 = vcvt.s32.f32 %v1444_v50  ;;  %v1964_v12 = vcvt.s32.f32 %v1452_v14  ;;  %2632 = vmatpush.bf16.msra.mxu2 %v2396_v11  ;;  %v1172_v63 = vunpack.c.2.s8 %v1028_v56  ;;  %v1180_v0 = vunpack.c.3.s8 %v1028_v56 }
 0x2a2   :  { %v2260_v13 = vpack.c.bf16 %v1836_v57, %v1828_v17  ;;  %v2084_v29 = vcvt.s32.f32 %v1572_v21  ;;  %2594 = vmatpush.bf16.msrb.mxu3 %v2196_v54  ;;  %v2092_v49 = vcvt.s32.f32 %v1580_v7  ;;  %v1300_v5 = vunpack.c.2.s8 %v1060_v6 }
 0x2a3   :  { %v2324_v2 = vpack.c.bf16 %v1964_v12, %v1956_v25  ;;  %v1308_v8 = vunpack.c.3.s8 %v1060_v6  ;;  %v1684_v46 = vcvt.s32.f32 %v1172_v63  ;;  %v1692_v34 = vcvt.s32.f32 %v1180_v0 }
 0x2a4   :  { %2607 = vmatpush.bf16.msra.mxu0 %v2260_v13  ;;  %v1428_v33 = vunpack.c.2.s8 %v1092_v61  ;;  %v1436_v10 = vunpack.c.3.s8 %v1092_v61  ;;  %v2388_v40 = vpack.c.bf16 %v2092_v49, %v2084_v29  ;;  %v1812_v42 = vcvt.s32.f32 %v1300_v5 }
 0x2a5   :  { %2620 = vmatpush.bf16.msra.mxu1 %v2324_v2  ;;  %v1820_v3 = vcvt.s32.f32 %v1308_v8  ;;  %v1556_v47 = vunpack.c.2.s8 %v1124_v58  ;;  %v2188_v53 = vpack.c.bf16 %v1692_v34, %v1684_v46  ;;  %v1564_v23 = vunpack.c.3.s8 %v1124_v58 }
 0x2a6   :  { %v1940_v16 = vcvt.s32.f32 %v1428_v33  ;;  %v1948_v20 = vcvt.s32.f32 %v1436_v10  ;;  %2633 = vmatpush.bf16.msra.mxu2 %v2388_v40  ;;  %v1156_v22 = vunpack.c.0.s8 %v1028_v56  ;;  %v1164_v26 = vunpack.c.1.s8 %v1028_v56  ;;  %v1149_v56 = vld [vmem:[%s9210_s12 + $0x3e0] sm:$0xff] }
 0x2a7   :  { %v2252_v24 = vpack.c.bf16 %v1820_v3, %v1812_v42  ;;  %v2068_v15 = vcvt.s32.f32 %v1556_v47  ;;  %2595 = vmatpush.bf16.msrb.mxu3 %v2188_v53  ;;  %v2076_v28 = vcvt.s32.f32 %v1564_v23  ;;  %v1284_v30 = vunpack.c.0.s8 %v1060_v6 }
 0x2a8   :  { %v2316_v27 = vpack.c.bf16 %v1948_v20, %v1940_v16  ;;  %v1292_v32 = vunpack.c.1.s8 %v1060_v6  ;;  %v1668_v35 = vcvt.s32.f32 %v1156_v22  ;;  %v1676_v44 = vcvt.s32.f32 %v1164_v26  ;;  %v1045_v16 = vld [vmem:[%s9210_s12 + $0xa0] sm:$0xff] }
 0x2a9   :  { %2608 = vmatpush.bf16.msra.mxu0 %v2252_v24  ;;  %v1412_v59 = vunpack.c.0.s8 %v1092_v61  ;;  %v1420_v4 = vunpack.c.1.s8 %v1092_v61  ;;  %v2380_v19 = vpack.c.bf16 %v2076_v28, %v2068_v15  ;;  %v1796_v62 = vcvt.s32.f32 %v1284_v30  ;;  %v1077_v22 = vld [vmem:[%s9210_s12 + $0x1a0] sm:$0xff] }
 0x2aa   :  { %2621 = vmatpush.bf16.msra.mxu1 %v2316_v27  ;;  %v1804_v41 = vcvt.s32.f32 %v1292_v32  ;;  %v1540_v43 = vunpack.c.0.s8 %v1124_v58  ;;  %v2180_v45 = vpack.c.bf16 %v1676_v44, %v1668_v35  ;;  %v1548_v60 = vunpack.c.1.s8 %v1124_v58  ;;  %v1109_v32 = vld [vmem:[%s9210_s12 + $0x2a0] sm:$0xff] }
 0x2ab   :  { %v1924_v36 = vcvt.s32.f32 %v1412_v59  ;;  %v1932_v1 = vcvt.s32.f32 %v1420_v4  ;;  %2634 = vmatpush.bf16.msra.mxu2 %v2380_v19  ;;  %v1269_v50 = vunpack.c.2.s8 %v1053_v38  ;;  %v1277_v14 = vunpack.c.3.s8 %v1053_v38 }
 0x2ac   :  { %v2244_v18 = vpack.c.bf16 %v1804_v41, %v1796_v62  ;;  %v2052_v48 = vcvt.s32.f32 %v1540_v43  ;;  %2596 = vmatpush.bf16.msrb.mxu3 %v2180_v45  ;;  %v2060_v17 = vcvt.s32.f32 %v1548_v60  ;;  %v1397_v57 = vunpack.c.2.s8 %v1085_v9 }
 0x2ad   :  { %v2308_v11 = vpack.c.bf16 %v1932_v1, %v1924_v36  ;;  %v1405_v21 = vunpack.c.3.s8 %v1085_v9  ;;  %v1781_v6 = vcvt.s32.f32 %v1269_v50  ;;  %v1789_v54 = vcvt.s32.f32 %v1277_v14 }
 0x2ae   :  { %2609 = vmatpush.bf16.msra.mxu0 %v2244_v18  ;;  %v1525_v25 = vunpack.c.2.s8 %v1117_v55  ;;  %v1533_v12 = vunpack.c.3.s8 %v1117_v55  ;;  %v2372_v7 = vpack.c.bf16 %v2060_v17, %v2052_v48  ;;  %v1909_v61 = vcvt.s32.f32 %v1397_v57 }
 0x2af   :  { %2622 = vmatpush.bf16.msra.mxu1 %v2308_v11  ;;  %v1917_v13 = vcvt.s32.f32 %v1405_v21  ;;  %v1653_v29 = vunpack.c.2.s8 %v1149_v56  ;;  %v2237_v63 = vpack.c.bf16 %v1789_v54, %v1781_v6  ;;  %v1661_v2 = vunpack.c.3.s8 %v1149_v56  ;;  %2597 = vmatmul.bf16.vlgmr.msrb.gmra.mxu3 %v7392_v51 }
 0x2b0   :  { %v2037_v0 = vcvt.s32.f32 %v1525_v25  ;;  %v2045_v58 = vcvt.s32.f32 %v1533_v12  ;;  %2635 = vmatpush.bf16.msra.mxu2 %v2372_v7  ;;  %v1253_v8 = vunpack.c.0.s8 %v1053_v38  ;;  %v1261_v46 = vunpack.c.1.s8 %v1053_v38  ;;  %v1141_v38 = vld [vmem:[%s9210_s12 + $0x3a0] sm:$0xff] }
 0x2b1   :  { %v2301_v49 = vpack.c.bf16 %v1917_v13, %v1909_v61  ;;  %v2165_v5 = vcvt.s32.f32 %v1653_v29  ;;  %2610 = vmatmul.bf16.vlgmr.msra.gmra.mxu0 %v7407_v37  ;;  %2641 = vmatpush.bf16.msra.mxu3 %v2237_v63  ;;  %v2173_v33 = vcvt.s32.f32 %v1661_v2  ;;  %v1381_v10 = vunpack.c.0.s8 %v1085_v9 }
 0x2b2   :  { %v2365_v34 = vpack.c.bf16 %v2045_v58, %v2037_v0  ;;  %2623 = vmatmul.bf16.vlgmr.msra.gmra.mxu1 %v7409_v31  ;;  %v1389_v40 = vunpack.c.1.s8 %v1085_v9  ;;  %v1765_v42 = vcvt.s32.f32 %v1253_v8  ;;  %v1773_v3 = vcvt.s32.f32 %v1261_v46  ;;  %v1037_v0 = vld [vmem:[%s9210_s12 + $0x60] sm:$0xff] }
 0x2b3   :  { %2654 = vmatpush.bf16.msrb.mxu0 %v2301_v49  ;;  %v1509_v47 = vunpack.c.0.s8 %v1117_v55  ;;  %v1517_v53 = vunpack.c.1.s8 %v1117_v55  ;;  %v2429_v20 = vpack.c.bf16 %v2173_v33, %v2165_v5  ;;  %2636 = vmatmul.bf16.vlgmr.msra.gmra.mxu2 %v7356_v39  ;;  %v1893_v23 = vcvt.s32.f32 %v1381_v10  ;;  %v1069_v8 = vld [vmem:[%s9210_s12 + $0x160] sm:$0xff] }
 0x2b4   :  { %2667 = vmatpush.bf16.msrb.mxu1 %v2365_v34  ;;  %v1901_v24 = vcvt.s32.f32 %v1389_v40  ;;  %v1637_v15 = vunpack.c.0.s8 %v1149_v56  ;;  %v2229_v26 = vpack.c.bf16 %v1773_v3, %v1765_v42  ;;  %v1645_v30 = vunpack.c.1.s8 %v1149_v56  ;;  %v1101_v40 = vld [vmem:[%s9210_s12 + $0x260] sm:$0xff] }
 0x2b5   :  { %v2021_v27 = vcvt.s32.f32 %v1509_v47  ;;  %v2029_v28 = vcvt.s32.f32 %v1517_v53  ;;  %2680 = vmatpush.bf16.msrb.mxu2 %v2429_v20  ;;  %v1237_v59 = vunpack.c.2.s8 %v1045_v16  ;;  %v1245_v4 = vunpack.c.3.s8 %v1045_v16 }
 0x2b6   :  { %v2293_v35 = vpack.c.bf16 %v1901_v24, %v1893_v23  ;;  %v2149_v44 = vcvt.s32.f32 %v1637_v15  ;;  %2642 = vmatpush.bf16.msra.mxu3 %v2229_v26  ;;  %v2157_v62 = vcvt.s32.f32 %v1645_v30  ;;  %v1365_v41 = vunpack.c.2.s8 %v1077_v22 }
 0x2b7   :  { %v2357_v19 = vpack.c.bf16 %v2029_v28, %v2021_v27  ;;  %v1373_v43 = vunpack.c.3.s8 %v1077_v22  ;;  %v1749_v9 = vcvt.s32.f32 %v1237_v59  ;;  %v1757_v45 = vcvt.s32.f32 %v1245_v4 }
 0x2b8   :  { %2655 = vmatpush.bf16.msrb.mxu0 %v2293_v35  ;;  %v1493_v36 = vunpack.c.2.s8 %v1109_v32  ;;  %v1501_v1 = vunpack.c.3.s8 %v1109_v32  ;;  %v2421_v60 = vpack.c.bf16 %v2157_v62, %v2149_v44  ;;  %v1877_v55 = vcvt.s32.f32 %v1365_v41 }
 0x2b9   :  { %2668 = vmatpush.bf16.msrb.mxu1 %v2357_v19  ;;  %v1885_v18 = vcvt.s32.f32 %v1373_v43  ;;  %v1621_v48 = vunpack.c.2.s8 %v1141_v38  ;;  %v2221_v50 = vpack.c.bf16 %v1757_v45, %v1749_v9  ;;  %v1629_v11 = vunpack.c.3.s8 %v1141_v38 }
 0x2ba   :  { %v2005_v14 = vcvt.s32.f32 %v1493_v36  ;;  %v2013_v56 = vcvt.s32.f32 %v1501_v1  ;;  %2681 = vmatpush.bf16.msrb.mxu2 %v2421_v60  ;;  %v1221_v21 = vunpack.c.0.s8 %v1045_v16  ;;  %v1229_v6 = vunpack.c.1.s8 %v1045_v16  ;;  %v1133_v16 = vld [vmem:[%s9210_s12 + $0x360] sm:$0xff] }
 0x2bb   :  { %v2285_v17 = vpack.c.bf16 %v1885_v18, %v1877_v55  ;;  %v2133_v57 = vcvt.s32.f32 %v1621_v48  ;;  %2643 = vmatpush.bf16.msra.mxu3 %v2221_v50  ;;  %v2141_v25 = vcvt.s32.f32 %v1629_v11  ;;  %v1349_v12 = vunpack.c.0.s8 %v1077_v22 }
 0x2bc   :  { %v2349_v54 = vpack.c.bf16 %v2013_v56, %v2005_v14  ;;  %v1357_v7 = vunpack.c.1.s8 %v1077_v22  ;;  %v1733_v61 = vcvt.s32.f32 %v1221_v21  ;;  %v1741_v13 = vcvt.s32.f32 %v1229_v6  ;;  %v1029_v14 = vld [vmem:[%s9210_s12 + $0x20] sm:$0xff] }
 0x2bd   :  { %2656 = vmatpush.bf16.msrb.mxu0 %v2285_v17  ;;  %v1477_v29 = vunpack.c.0.s8 %v1109_v32  ;;  %v1485_v63 = vunpack.c.1.s8 %v1109_v32  ;;  %v2413_v58 = vpack.c.bf16 %v2141_v25, %v2133_v57  ;;  %v1861_v2 = vcvt.s32.f32 %v1349_v12  ;;  %v1061_v21 = vld [vmem:[%s9210_s12 + $0x120] sm:$0xff] }
 0x2be   :  { %2669 = vmatpush.bf16.msrb.mxu1 %v2349_v54  ;;  %v1869_v49 = vcvt.s32.f32 %v1357_v7  ;;  %v1605_v5 = vunpack.c.0.s8 %v1141_v38  ;;  %v2213_v46 = vpack.c.bf16 %v1741_v13, %v1733_v61  ;;  %v1613_v10 = vunpack.c.1.s8 %v1141_v38  ;;  %v1093_v7 = vld [vmem:[%s9210_s12 + $0x220] sm:$0xff] }
 0x2bf   :  { %v1989_v34 = vcvt.s32.f32 %v1477_v29  ;;  %v1997_v33 = vcvt.s32.f32 %v1485_v63  ;;  %2682 = vmatpush.bf16.msrb.mxu2 %v2413_v58  ;;  %v1205_v47 = vunpack.c.2.s8 %v1037_v0  ;;  %v1213_v53 = vunpack.c.3.s8 %v1037_v0 }
 0x2c0   :  { %v2277_v42 = vpack.c.bf16 %v1869_v49, %v1861_v2  ;;  %v2117_v3 = vcvt.s32.f32 %v1605_v5  ;;  %2644 = vmatpush.bf16.msra.mxu3 %v2213_v46  ;;  %v2125_v23 = vcvt.s32.f32 %v1613_v10  ;;  %v1333_v24 = vunpack.c.2.s8 %v1069_v8 }
 0x2c1   :  { %v2341_v20 = vpack.c.bf16 %v1997_v33, %v1989_v34  ;;  %v1341_v15 = vunpack.c.3.s8 %v1069_v8  ;;  %v1717_v22 = vcvt.s32.f32 %v1205_v47  ;;  %v1725_v26 = vcvt.s32.f32 %v1213_v53 }
 0x2c2   :  { %2657 = vmatpush.bf16.msrb.mxu0 %v2277_v42  ;;  %v1461_v27 = vunpack.c.2.s8 %v1101_v40  ;;  %v1469_v28 = vunpack.c.3.s8 %v1101_v40  ;;  %v2405_v30 = vpack.c.bf16 %v2125_v23, %v2117_v3  ;;  %v1845_v32 = vcvt.s32.f32 %v1333_v24 }
 0x2c3   :  { %2670 = vmatpush.bf16.msrb.mxu1 %v2341_v20  ;;  %v1853_v35 = vcvt.s32.f32 %v1341_v15  ;;  %v1589_v44 = vunpack.c.2.s8 %v1133_v16  ;;  %v2205_v59 = vpack.c.bf16 %v1725_v26, %v1717_v22  ;;  %v1597_v19 = vunpack.c.3.s8 %v1133_v16 }
 0x2c4   :  { %v1973_v4 = vcvt.s32.f32 %v1461_v27  ;;  %v1981_v38 = vcvt.s32.f32 %v1469_v28  ;;  %2683 = vmatpush.bf16.msrb.mxu2 %v2405_v30  ;;  %v1189_v43 = vunpack.c.0.s8 %v1037_v0  ;;  %v1197_v9 = vunpack.c.1.s8 %v1037_v0  ;;  %v1125_v0 = vld [vmem:[%s9210_s12 + $0x320] sm:$0xff] }
 0x2c5   :  { %v2269_v62 = vpack.c.bf16 %v1853_v35, %v1845_v32  ;;  %v2101_v41 = vcvt.s32.f32 %v1589_v44  ;;  %2645 = vmatpush.bf16.msra.mxu3 %v2205_v59  ;;  %v2109_v36 = vcvt.s32.f32 %v1597_v19  ;;  %v1317_v1 = vunpack.c.0.s8 %v1069_v8 }
 0x2c6   :  { %v2333_v45 = vpack.c.bf16 %v1981_v38, %v1973_v4  ;;  %v1325_v60 = vunpack.c.1.s8 %v1069_v8  ;;  %v1701_v55 = vcvt.s32.f32 %v1189_v43  ;;  %v1709_v18 = vcvt.s32.f32 %v1197_v9  ;;  %v1054_v4 = vld [vmem:[%s9210_s12 + $0xe8] sm:$0xff] }
 0x2c7   :  { %2658 = vmatpush.bf16.msrb.mxu0 %v2269_v62  ;;  %v1445_v48 = vunpack.c.0.s8 %v1101_v40  ;;  %v1453_v50 = vunpack.c.1.s8 %v1101_v40  ;;  %v2397_v56 = vpack.c.bf16 %v2109_v36, %v2101_v41  ;;  %v1829_v11 = vcvt.s32.f32 %v1317_v1  ;;  %v1086_v43 = vld [vmem:[%s9210_s12 + $0x1e8] sm:$0xff] }
 0x2c8   :  { %2671 = vmatpush.bf16.msrb.mxu1 %v2333_v45  ;;  %v1837_v17 = vcvt.s32.f32 %v1325_v60  ;;  %v1573_v57 = vunpack.c.0.s8 %v1133_v16  ;;  %v2197_v6 = vpack.c.bf16 %v1709_v18, %v1701_v55  ;;  %v1581_v12 = vunpack.c.1.s8 %v1133_v16  ;;  %v1118_v60 = vld [vmem:[%s9210_s12 + $0x2e8] sm:$0xff] }
 0x2c9   :  { %v1957_v54 = vcvt.s32.f32 %v1445_v48  ;;  %v1965_v25 = vcvt.s32.f32 %v1453_v50  ;;  %2684 = vmatpush.bf16.msrb.mxu2 %v2397_v56  ;;  %v1173_v29 = vunpack.c.2.s8 %v1029_v14  ;;  %v1181_v63 = vunpack.c.3.s8 %v1029_v14 }
 0x2ca   :  { %v2261_v61 = vpack.c.bf16 %v1837_v17, %v1829_v11  ;;  %v2085_v13 = vcvt.s32.f32 %v1573_v57  ;;  %2646 = vmatpush.bf16.msra.mxu3 %v2197_v6  ;;  %v2093_v2 = vcvt.s32.f32 %v1581_v12  ;;  %v1301_v49 = vunpack.c.2.s8 %v1061_v21 }
 0x2cb   :  { %v2325_v58 = vpack.c.bf16 %v1965_v25, %v1957_v54  ;;  %v1309_v5 = vunpack.c.3.s8 %v1061_v21  ;;  %v1685_v8 = vcvt.s32.f32 %v1173_v29  ;;  %v1693_v46 = vcvt.s32.f32 %v1181_v63 }
 0x2cc   :  { %2659 = vmatpush.bf16.msrb.mxu0 %v2261_v61  ;;  %v1429_v34 = vunpack.c.2.s8 %v1093_v7  ;;  %v1437_v33 = vunpack.c.3.s8 %v1093_v7  ;;  %v2389_v10 = vpack.c.bf16 %v2093_v2, %v2085_v13  ;;  %v1813_v40 = vcvt.s32.f32 %v1301_v49 }
 0x2cd   :  { %2672 = vmatpush.bf16.msrb.mxu1 %v2325_v58  ;;  %v1821_v42 = vcvt.s32.f32 %v1309_v5  ;;  %v1557_v3 = vunpack.c.2.s8 %v1125_v0  ;;  %v2189_v47 = vpack.c.bf16 %v1693_v46, %v1685_v8  ;;  %v1565_v20 = vunpack.c.3.s8 %v1125_v0 }
 0x2ce   :  { %v1941_v53 = vcvt.s32.f32 %v1429_v34  ;;  %v1949_v16 = vcvt.s32.f32 %v1437_v33  ;;  %2685 = vmatpush.bf16.msrb.mxu2 %v2389_v10  ;;  %v1157_v15 = vunpack.c.0.s8 %v1029_v14  ;;  %v1165_v22 = vunpack.c.1.s8 %v1029_v14  ;;  %v1150_v14 = vld [vmem:[%s9210_s12 + $0x3e8] sm:$0xff] }
 0x2cf   :  { %v2253_v23 = vpack.c.bf16 %v1821_v42, %v1813_v40  ;;  %v2069_v24 = vcvt.s32.f32 %v1557_v3  ;;  %2647 = vmatpush.bf16.msra.mxu3 %v2189_v47  ;;  %v2077_v27 = vcvt.s32.f32 %v1565_v20  ;;  %v1285_v28 = vunpack.c.0.s8 %v1061_v21 }
 0x2d0   :  { %v2317_v26 = vpack.c.bf16 %v1949_v16, %v1941_v53  ;;  %v1293_v30 = vunpack.c.1.s8 %v1061_v21  ;;  %v1669_v32 = vcvt.s32.f32 %v1157_v15  ;;  %v1677_v35 = vcvt.s32.f32 %v1165_v22  ;;  %v1046_v53 = vld [vmem:[%s9210_s12 + $0xa8] sm:$0xff] }
 0x2d1   :  { %2660 = vmatpush.bf16.msrb.mxu0 %v2253_v23  ;;  %v1413_v44 = vunpack.c.0.s8 %v1093_v7  ;;  %v1421_v59 = vunpack.c.1.s8 %v1093_v7  ;;  %v2381_v38 = vpack.c.bf16 %v2077_v27, %v2069_v24  ;;  %v1797_v19 = vcvt.s32.f32 %v1285_v28  ;;  %v1078_v15 = vld [vmem:[%s9210_s12 + $0x1a8] sm:$0xff] }
 0x2d2   :  { %2673 = vmatpush.bf16.msrb.mxu1 %v2317_v26  ;;  %v1805_v62 = vcvt.s32.f32 %v1293_v30  ;;  %v1541_v41 = vunpack.c.0.s8 %v1125_v0  ;;  %v2181_v9 = vpack.c.bf16 %v1677_v35, %v1669_v32  ;;  %v1549_v1 = vunpack.c.1.s8 %v1125_v0  ;;  %v1110_v30 = vld [vmem:[%s9210_s12 + $0x2a8] sm:$0xff] }
 0x2d3   :  { %v1925_v45 = vcvt.s32.f32 %v1413_v44  ;;  %v1933_v36 = vcvt.s32.f32 %v1421_v59  ;;  %2686 = vmatpush.bf16.msrb.mxu2 %v2381_v38  ;;  %v1270_v48 = vunpack.c.2.s8 %v1054_v4  ;;  %v1278_v50 = vunpack.c.3.s8 %v1054_v4 }
 0x2d4   :  { %v2245_v55 = vpack.c.bf16 %v1805_v62, %v1797_v19  ;;  %v2053_v18 = vcvt.s32.f32 %v1541_v41  ;;  %2648 = vmatpush.bf16.msra.mxu3 %v2181_v9  ;;  %v2061_v11 = vcvt.s32.f32 %v1549_v1  ;;  %v1398_v17 = vunpack.c.2.s8 %v1086_v43 }
 0x2d5   :  { %v2309_v56 = vpack.c.bf16 %v1933_v36, %v1925_v45  ;;  %v1406_v57 = vunpack.c.3.s8 %v1086_v43  ;;  %v1782_v21 = vcvt.s32.f32 %v1270_v48  ;;  %v1790_v6 = vcvt.s32.f32 %v1278_v50 }
 0x2d6   :  { %2661 = vmatpush.bf16.msrb.mxu0 %v2245_v55  ;;  %v1526_v54 = vunpack.c.2.s8 %v1118_v60  ;;  %v1534_v25 = vunpack.c.3.s8 %v1118_v60  ;;  %v2373_v12 = vpack.c.bf16 %v2061_v11, %v2053_v18  ;;  %v1910_v7 = vcvt.s32.f32 %v1398_v17 }
 0x2d7   :  { %2674 = vmatpush.bf16.msrb.mxu1 %v2309_v56  ;;  %v1918_v61 = vcvt.s32.f32 %v1406_v57  ;;  %v1654_v13 = vunpack.c.2.s8 %v1150_v14  ;;  %v2238_v29 = vpack.c.bf16 %v1790_v6, %v1782_v21  ;;  %v1662_v58 = vunpack.c.3.s8 %v1150_v14  ;;  %2649 = vmatmul.bf16.vlgmr.msra.gmra.mxu3 %v7392_v51 }
 0x2d8   :  { %v2038_v63 = vcvt.s32.f32 %v1526_v54  ;;  %v2046_v0 = vcvt.s32.f32 %v1534_v25  ;;  %2687 = vmatpush.bf16.msrb.mxu2 %v2373_v12  ;;  %v1254_v5 = vunpack.c.0.s8 %v1054_v4  ;;  %v1262_v8 = vunpack.c.1.s8 %v1054_v4  ;;  %v1142_v4 = vld [vmem:[%s9210_s12 + $0x3a8] sm:$0xff] }
 0x2d9   :  { %v2302_v2 = vpack.c.bf16 %v1918_v61, %v1910_v7  ;;  %v2166_v49 = vcvt.s32.f32 %v1654_v13  ;;  %2662 = vmatmul.bf16.vlgmr.msrb.gmra.mxu0 %v7407_v37  ;;  %2693 = vmatpush.bf16.msrb.mxu3 %v2238_v29  ;;  %v2174_v34 = vcvt.s32.f32 %v1662_v58  ;;  %v1382_v33 = vunpack.c.0.s8 %v1086_v43 }
 0x2da   :  { %v2366_v46 = vpack.c.bf16 %v2046_v0, %v2038_v63  ;;  %2675 = vmatmul.bf16.vlgmr.msrb.gmra.mxu1 %v7409_v31  ;;  %v1390_v10 = vunpack.c.1.s8 %v1086_v43  ;;  %v1766_v40 = vcvt.s32.f32 %v1254_v5  ;;  %v1774_v42 = vcvt.s32.f32 %v1262_v8  ;;  %v1038_v63 = vld [vmem:[%s9210_s12 + $0x68] sm:$0xff] }
 0x2db   :  { %2706 = vmatpush.bf16.msra.mxu0 %v2302_v2  ;;  %v1510_v3 = vunpack.c.0.s8 %v1118_v60  ;;  %v1518_v47 = vunpack.c.1.s8 %v1118_v60  ;;  %v2430_v16 = vpack.c.bf16 %v2174_v34, %v2166_v49  ;;  %2688 = vmatmul.bf16.vlgmr.msrb.gmra.mxu2 %v7356_v39  ;;  %v1894_v20 = vcvt.s32.f32 %v1382_v33  ;;  %v1070_v5 = vld [vmem:[%s9210_s12 + $0x168] sm:$0xff] }
 0x2dc   :  { %2719 = vmatpush.bf16.msra.mxu1 %v2366_v46  ;;  %v1902_v23 = vcvt.s32.f32 %v1390_v10  ;;  %v1638_v24 = vunpack.c.0.s8 %v1150_v14  ;;  %v2230_v22 = vpack.c.bf16 %v1774_v42, %v1766_v40  ;;  %v1646_v28 = vunpack.c.1.s8 %v1150_v14  ;;  %v1102_v10 = vld [vmem:[%s9210_s12 + $0x268] sm:$0xff] }
 0x2dd   :  { %v2022_v26 = vcvt.s32.f32 %v1510_v3  ;;  %v2030_v27 = vcvt.s32.f32 %v1518_v47  ;;  %2732 = vmatpush.bf16.msra.mxu2 %v2430_v16  ;;  %v1238_v44 = vunpack.c.2.s8 %v1046_v53  ;;  %v1246_v59 = vunpack.c.3.s8 %v1046_v53 }
 0x2de   :  { %v2294_v32 = vpack.c.bf16 %v1902_v23, %v1894_v20  ;;  %v2150_v35 = vcvt.s32.f32 %v1638_v24  ;;  %2694 = vmatpush.bf16.msrb.mxu3 %v2230_v22  ;;  %v2158_v19 = vcvt.s32.f32 %v1646_v28  ;;  %v1366_v62 = vunpack.c.2.s8 %v1078_v15 }
 0x2df   :  { %v2358_v38 = vpack.c.bf16 %v2030_v27, %v2022_v26  ;;  %v1374_v41 = vunpack.c.3.s8 %v1078_v15  ;;  %v1750_v43 = vcvt.s32.f32 %v1238_v44  ;;  %v1758_v9 = vcvt.s32.f32 %v1246_v59 }
 0x2e0   :  { %2707 = vmatpush.bf16.msra.mxu0 %v2294_v32  ;;  %v1494_v45 = vunpack.c.2.s8 %v1110_v30  ;;  %v1502_v36 = vunpack.c.3.s8 %v1110_v30  ;;  %v2422_v1 = vpack.c.bf16 %v2158_v19, %v2150_v35  ;;  %v1878_v60 = vcvt.s32.f32 %v1366_v62 }
 0x2e1   :  { %2720 = vmatpush.bf16.msra.mxu1 %v2358_v38  ;;  %v1886_v55 = vcvt.s32.f32 %v1374_v41  ;;  %v1622_v18 = vunpack.c.2.s8 %v1142_v4  ;;  %v2222_v48 = vpack.c.bf16 %v1758_v9, %v1750_v43  ;;  %v1630_v56 = vunpack.c.3.s8 %v1142_v4 }
 0x2e2   :  { %v2006_v50 = vcvt.s32.f32 %v1494_v45  ;;  %v2014_v14 = vcvt.s32.f32 %v1502_v36  ;;  %2733 = vmatpush.bf16.msra.mxu2 %v2422_v1  ;;  %v1222_v57 = vunpack.c.0.s8 %v1046_v53  ;;  %v1230_v21 = vunpack.c.1.s8 %v1046_v53  ;;  %v1134_v53 = vld [vmem:[%s9210_s12 + $0x368] sm:$0xff] }
 0x2e3   :  { %v2286_v11 = vpack.c.bf16 %v1886_v55, %v1878_v60  ;;  %v2134_v17 = vcvt.s32.f32 %v1622_v18  ;;  %2695 = vmatpush.bf16.msrb.mxu3 %v2222_v48  ;;  %v2142_v54 = vcvt.s32.f32 %v1630_v56  ;;  %v1350_v25 = vunpack.c.0.s8 %v1078_v15 }
 0x2e4   :  { %v2350_v6 = vpack.c.bf16 %v2014_v14, %v2006_v50  ;;  %v1358_v12 = vunpack.c.1.s8 %v1078_v15  ;;  %v1734_v7 = vcvt.s32.f32 %v1222_v57  ;;  %v1742_v61 = vcvt.s32.f32 %v1230_v21  ;;  %v1030_v50 = vld [vmem:[%s9210_s12 + $0x28] sm:$0xff]  ;;  %v7603_v21 = vpop.f32.mrf.mxu0 }
 0x2e5   :  { %2708 = vmatpush.bf16.msra.mxu0 %v2286_v11  ;;  %v1478_v13 = vunpack.c.0.s8 %v1110_v30  ;;  %v1486_v29 = vunpack.c.1.s8 %v1110_v30  ;;  %v2414_v0 = vpack.c.bf16 %v2142_v54, %v2134_v17  ;;  %v1862_v58 = vcvt.s32.f32 %v1350_v25  ;;  %v1062_v57 = vld [vmem:[%s9210_s12 + $0x128] sm:$0xff] }
 0x2e6   :  { %2721 = vmatpush.bf16.msra.mxu1 %v2350_v6  ;;  %v1870_v2 = vcvt.s32.f32 %v1358_v12  ;;  %v1606_v49 = vunpack.c.0.s8 %v1142_v4  ;;  %v2214_v8 = vpack.c.bf16 %v1742_v61, %v1734_v7  ;;  %v1614_v33 = vunpack.c.1.s8 %v1142_v4  ;;  %v7605_v6 = vpop.f32.mrf.mxu1  ;;  %v1094_v61 = vld [vmem:[%s9210_s12 + $0x228] sm:$0xff] }
 0x2e7   :  { %v1990_v46 = vcvt.s32.f32 %v1478_v13  ;;  %v1998_v34 = vcvt.s32.f32 %v1486_v29  ;;  %2734 = vmatpush.bf16.msra.mxu2 %v2414_v0  ;;  %v1206_v3 = vunpack.c.2.s8 %v1038_v63  ;;  %v1214_v47 = vunpack.c.3.s8 %v1038_v63 }
 0x2e8   :  { %v2278_v40 = vpack.c.bf16 %v1870_v2, %v1862_v58  ;;  %v2118_v42 = vcvt.s32.f32 %v1606_v49  ;;  %2696 = vmatpush.bf16.msrb.mxu3 %v2214_v8  ;;  %v2126_v20 = vcvt.s32.f32 %v1614_v33  ;;  %v1334_v23 = vunpack.c.2.s8 %v1070_v5  ;;  %v1126_v58 = vld [vmem:[%s9210_s12 + $0x328] sm:$0xff] }
 0x2e9   :  { %v2342_v16 = vpack.c.bf16 %v1998_v34, %v1990_v46  ;;  %v1342_v24 = vunpack.c.3.s8 %v1070_v5  ;;  %v1718_v15 = vcvt.s32.f32 %v1206_v3  ;;  %v1726_v22 = vcvt.s32.f32 %v1214_v47 }
 0x2ea   :  { %2709 = vmatpush.bf16.msra.mxu0 %v2278_v40  ;;  %v1462_v26 = vunpack.c.2.s8 %v1102_v10  ;;  %v1470_v27 = vunpack.c.3.s8 %v1102_v10  ;;  %v2406_v28 = vpack.c.bf16 %v2126_v20, %v2118_v42  ;;  %v1846_v30 = vcvt.s32.f32 %v1334_v23 }
 0x2eb   :  { %2722 = vmatpush.bf16.msra.mxu1 %v2342_v16  ;;  %v1854_v32 = vcvt.s32.f32 %v1342_v24  ;;  %v1590_v35 = vunpack.c.2.s8 %v1134_v53  ;;  %v2206_v44 = vpack.c.bf16 %v1726_v22, %v1718_v15  ;;  %v1598_v38 = vunpack.c.3.s8 %v1134_v53  ;;  %v7615_v16 = vpop.f32.mrf.mxu2 }
 0x2ec   :  { %v1974_v59 = vcvt.s32.f32 %v1462_v26  ;;  %v1982_v4 = vcvt.s32.f32 %v1470_v27  ;;  %2735 = vmatpush.bf16.msra.mxu2 %v2406_v28  ;;  %v1190_v41 = vunpack.c.0.s8 %v1038_v63  ;;  %v1198_v43 = vunpack.c.1.s8 %v1038_v63 }
 0x2ed   :  { %v2270_v19 = vpack.c.bf16 %v1854_v32, %v1846_v30  ;;  %v2102_v62 = vcvt.s32.f32 %v1590_v35  ;;  %2697 = vmatpush.bf16.msrb.mxu3 %v2206_v44  ;;  %v2110_v45 = vcvt.s32.f32 %v1598_v38  ;;  %v1318_v36 = vunpack.c.0.s8 %v1070_v5 }
 0x2ee   :  { %v2334_v9 = vpack.c.bf16 %v1982_v4, %v1974_v59  ;;  %v1326_v1 = vunpack.c.1.s8 %v1070_v5  ;;  %v1702_v60 = vcvt.s32.f32 %v1190_v41  ;;  %v1710_v55 = vcvt.s32.f32 %v1198_v43  ;;  %v2457_v59 = vpop.f32.mrf.mxu0  ;;  %v2470_v4 = vpop.f32.mrf.mxu1  ;;  %v1055_v43 = vld [vmem:[%s9210_s12 + $0xf0] sm:$0xff] }
 0x2ef   :  { %2710 = vmatpush.bf16.msra.mxu0 %v2270_v19  ;;  %v1446_v18 = vunpack.c.0.s8 %v1102_v10  ;;  %v1454_v48 = vunpack.c.1.s8 %v1102_v10  ;;  %v2398_v14 = vpack.c.bf16 %v2110_v45, %v2102_v62  ;;  %v1830_v56 = vcvt.s32.f32 %v1318_v36 }
 0x2f0   :  { %2723 = vmatpush.bf16.msra.mxu1 %v2334_v9  ;;  %v1838_v11 = vcvt.s32.f32 %v1326_v1  ;;  %v1574_v17 = vunpack.c.0.s8 %v1134_v53  ;;  %v2198_v54 = vpack.c.bf16 %v1710_v55, %v1702_v60  ;;  %v1582_v7 = vunpack.c.1.s8 %v1134_v53  ;;  %v7613_v53 = vpop.f32.mrf.mxu3  ;;  %v1087_v60 = vld [vmem:[%s9210_s12 + $0x1f0] sm:$0xff] }
 0x2f1   :  { %v1958_v25 = vcvt.s32.f32 %v1446_v18  ;;  %v1966_v12 = vcvt.s32.f32 %v1454_v48  ;;  %2736 = vmatpush.bf16.msra.mxu2 %v2398_v14  ;;  %v1174_v63 = vunpack.c.2.s8 %v1030_v50  ;;  %v1182_v0 = vunpack.c.3.s8 %v1030_v50  ;;  %v1119_v14 = vld [vmem:[%s9210_s12 + $0x2f0] sm:$0xff] }
 0x2f2   :  { %v2262_v13 = vpack.c.bf16 %v1838_v11, %v1830_v56  ;;  %v2086_v29 = vcvt.s32.f32 %v1574_v17  ;;  %2698 = vmatpush.bf16.msrb.mxu3 %v2198_v54  ;;  %v2094_v49 = vcvt.s32.f32 %v1582_v7  ;;  %v1302_v5 = vunpack.c.2.s8 %v1062_v57  ;;  %v1151_v54 = vld [vmem:[%s9210_s12 + $0x3f0] sm:$0xff] }
 0x2f3   :  { %v2326_v2 = vpack.c.bf16 %v1966_v12, %v1958_v25  ;;  %v1310_v8 = vunpack.c.3.s8 %v1062_v57  ;;  %v1686_v46 = vcvt.s32.f32 %v1174_v63  ;;  %v1694_v34 = vcvt.s32.f32 %v1182_v0 }
 0x2f4   :  { %2711 = vmatpush.bf16.msra.mxu0 %v2262_v13  ;;  %v1430_v33 = vunpack.c.2.s8 %v1094_v61  ;;  %v1438_v10 = vunpack.c.3.s8 %v1094_v61  ;;  %v2390_v40 = vpack.c.bf16 %v2094_v49, %v2086_v29  ;;  %v1814_v42 = vcvt.s32.f32 %v1302_v5  ;;  %v2483_v29 = vpop.f32.mrf.mxu2 }
 0x2f5   :  { %2724 = vmatpush.bf16.msra.mxu1 %v2326_v2  ;;  %v1822_v3 = vcvt.s32.f32 %v1310_v8  ;;  %v1558_v47 = vunpack.c.2.s8 %v1126_v58  ;;  %v2190_v20 = vpack.c.bf16 %v1694_v34, %v1686_v46  ;;  %v1566_v15 = vunpack.c.3.s8 %v1126_v58 }
 0x2f6   :  { %v1942_v23 = vcvt.s32.f32 %v1430_v33  ;;  %v1950_v24 = vcvt.s32.f32 %v1438_v10  ;;  %2737 = vmatpush.bf16.msra.mxu2 %v2390_v40  ;;  %v1158_v27 = vunpack.c.0.s8 %v1030_v50  ;;  %v1166_v28 = vunpack.c.1.s8 %v1030_v50 }
 0x2f7   :  { %v2254_v22 = vpack.c.bf16 %v1822_v3, %v1814_v42  ;;  %v2070_v26 = vcvt.s32.f32 %v1558_v47  ;;  %2699 = vmatpush.bf16.msrb.mxu3 %v2190_v20  ;;  %v2078_v32 = vcvt.s32.f32 %v1566_v15  ;;  %v1286_v35 = vunpack.c.0.s8 %v1062_v57 }
 0x2f8   :  { %v2318_v30 = vpack.c.bf16 %v1950_v24, %v1942_v23  ;;  %v1294_v44 = vunpack.c.1.s8 %v1062_v57  ;;  %v1670_v38 = vcvt.s32.f32 %v1158_v27  ;;  %v1678_v19 = vcvt.s32.f32 %v1166_v28  ;;  %v2444_v13 = vpop.f32.mrf.mxu3 }
 0x2f9   :  { %2712 = vmatpush.bf16.msra.mxu0 %v2254_v22  ;;  %v1414_v62 = vunpack.c.0.s8 %v1094_v61  ;;  %v1422_v41 = vunpack.c.1.s8 %v1094_v61  ;;  %v2382_v9 = vpack.c.bf16 %v2078_v32, %v2070_v26  ;;  %v1798_v45 = vcvt.s32.f32 %v1286_v35  ;;  %v1047_v32 = vld [vmem:[%s9210_s12 + $0xb0] sm:$0xff] }
 0x2fa   :  { %2725 = vmatpush.bf16.msra.mxu1 %v2318_v30  ;;  %v1806_v36 = vcvt.s32.f32 %v1294_v44  ;;  %v1542_v1 = vunpack.c.0.s8 %v1126_v58  ;;  %v2182_v55 = vpack.c.bf16 %v1678_v19, %v1670_v38  ;;  %v1550_v50 = vunpack.c.1.s8 %v1126_v58  ;;  %v1079_v38 = vld [vmem:[%s9210_s12 + $0x1b0] sm:$0xff] }
 0x2fb   :  { %v1926_v18 = vcvt.s32.f32 %v1414_v62  ;;  %v1934_v48 = vcvt.s32.f32 %v1422_v41  ;;  %2738 = vmatpush.bf16.msra.mxu2 %v2382_v9  ;;  %v1271_v17 = vunpack.c.2.s8 %v1055_v43  ;;  %v1279_v57 = vunpack.c.3.s8 %v1055_v43  ;;  %v1111_v9 = vld [vmem:[%s9210_s12 + $0x2b0] sm:$0xff] }
 0x2fc   :  { %v2246_v56 = vpack.c.bf16 %v1806_v36, %v1798_v45  ;;  %v2054_v11 = vcvt.s32.f32 %v1542_v1  ;;  %2700 = vmatpush.bf16.msrb.mxu3 %v2182_v55  ;;  %v2062_v12 = vcvt.s32.f32 %v1550_v50  ;;  %v1399_v7 = vunpack.c.2.s8 %v1087_v60  ;;  %v1143_v55 = vld [vmem:[%s9210_s12 + $0x3b0] sm:$0xff] }
 0x2fd   :  { %v2310_v25 = vpack.c.bf16 %v1934_v48, %v1926_v18  ;;  %v1407_v61 = vunpack.c.3.s8 %v1087_v60  ;;  %v1783_v63 = vcvt.s32.f32 %v1271_v17  ;;  %v1791_v0 = vcvt.s32.f32 %v1279_v57 }
 0x2fe   :  { %2713 = vmatpush.bf16.msra.mxu0 %v2246_v56  ;;  %v1527_v58 = vunpack.c.2.s8 %v1119_v14  ;;  %v1535_v2 = vunpack.c.3.s8 %v1119_v14  ;;  %v2374_v49 = vpack.c.bf16 %v2062_v12, %v2054_v11  ;;  %v1911_v5 = vcvt.s32.f32 %v1399_v7 }
 0x2ff   :  { %2726 = vmatpush.bf16.msra.mxu1 %v2310_v25  ;;  %v1919_v8 = vcvt.s32.f32 %v1407_v61  ;;  %v1655_v46 = vunpack.c.2.s8 %v1151_v54  ;;  %v2239_v34 = vpack.c.bf16 %v1791_v0, %v1783_v63  ;;  %v1663_v40 = vunpack.c.3.s8 %v1151_v54  ;;  %2701 = vmatmul.bf16.vlgmr.msrb.gmra.mxu3 %v7392_v51  ;;  %v7645_v0 = vpop.f32.mrf.mxu0 }
 0x300   :  { %v2039_v33 = vcvt.s32.f32 %v1527_v58  ;;  %v2047_v10 = vcvt.s32.f32 %v1535_v2  ;;  %2739 = vmatpush.bf16.msra.mxu2 %v2374_v49  ;;  %v1255_v47 = vunpack.c.0.s8 %v1055_v43  ;;  %v1263_v20 = vunpack.c.1.s8 %v1055_v43  ;;  %v7647_v58 = vpop.f32.mrf.mxu1 }
 0x301   :  { %v2303_v42 = vpack.c.bf16 %v1919_v8, %v1911_v5  ;;  %v2167_v3 = vcvt.s32.f32 %v1655_v46  ;;  %2714 = vmatmul.bf16.vlgmr.msra.gmra.mxu0 %v7407_v37  ;;  %2745 = vmatpush.bf16.msra.mxu3 %v2239_v34  ;;  %v2175_v24 = vcvt.s32.f32 %v1663_v40  ;;  %v1383_v15 = vunpack.c.0.s8 %v1087_v60 }
 0x302   :  { %v2367_v23 = vpack.c.bf16 %v2047_v10, %v2039_v33  ;;  %2727 = vmatmul.bf16.vlgmr.msra.gmra.mxu1 %v7409_v31  ;;  %v1391_v22 = vunpack.c.1.s8 %v1087_v60  ;;  %v1767_v26 = vcvt.s32.f32 %v1255_v47  ;;  %v1775_v27 = vcvt.s32.f32 %v1263_v20 }
 0x303   :  { %2758 = vmatpush.bf16.msrb.mxu0 %v2303_v42  ;;  %v1511_v28 = vunpack.c.0.s8 %v1119_v14  ;;  %v1519_v30 = vunpack.c.1.s8 %v1119_v14  ;;  %v2431_v35 = vpack.c.bf16 %v2175_v24, %v2167_v3  ;;  %2740 = vmatmul.bf16.vlgmr.msra.gmra.mxu2 %v7356_v39  ;;  %v1895_v44 = vcvt.s32.f32 %v1383_v15 }
 0x304   :  { %2771 = vmatpush.bf16.msrb.mxu1 %v2367_v23  ;;  %v1903_v59 = vcvt.s32.f32 %v1391_v22  ;;  %v1639_v4 = vunpack.c.0.s8 %v1151_v54  ;;  %v2231_v19 = vpack.c.bf16 %v1775_v27, %v1767_v26  ;;  %v1647_v43 = vunpack.c.1.s8 %v1151_v54  ;;  %v1039_v22 = vld [vmem:[%s9210_s12 + $0x70] sm:$0xff] }
 0x305   :  { %v2023_v62 = vcvt.s32.f32 %v1511_v28  ;;  %v2031_v41 = vcvt.s32.f32 %v1519_v30  ;;  %2784 = vmatpush.bf16.msrb.mxu2 %v2431_v35  ;;  %v1239_v1 = vunpack.c.2.s8 %v1047_v32  ;;  %v1247_v60 = vunpack.c.3.s8 %v1047_v32 }
 0x306   :  { %v2295_v45 = vpack.c.bf16 %v1903_v59, %v1895_v44  ;;  %v2151_v36 = vcvt.s32.f32 %v1639_v4  ;;  %2746 = vmatpush.bf16.msra.mxu3 %v2231_v19  ;;  %v2159_v48 = vcvt.s32.f32 %v1647_v43  ;;  %v1367_v50 = vunpack.c.2.s8 %v1079_v38  ;;  %v7660_v4 = vld [vmem:[%s9210_s12 + $0x270] sm:$0xff] }
 0x307   :  { %v2359_v18 = vpack.c.bf16 %v2031_v41, %v2023_v62  ;;  %v1375_v14 = vunpack.c.3.s8 %v1079_v38  ;;  %v1751_v56 = vcvt.s32.f32 %v1239_v1  ;;  %v1759_v11 = vcvt.s32.f32 %v1247_v60  ;;  %v2849_v62 = vld [vmem:[%s9211_s13] sm:$0xff] }
 0x308   :  { %2759 = vmatpush.bf16.msrb.mxu0 %v2295_v45  ;;  %v1495_v17 = vunpack.c.2.s8 %v1111_v9  ;;  %v1503_v57 = vunpack.c.3.s8 %v1111_v9  ;;  %v2423_v54 = vpack.c.bf16 %v2159_v48, %v2151_v36  ;;  %v1879_v25 = vcvt.s32.f32 %v1367_v50  ;;  %v2509_v36 = vpop.f32.mrf.mxu0  ;;  %v2522_v1 = vpop.f32.mrf.mxu1 }
 0x309   :  { %2772 = vmatpush.bf16.msrb.mxu1 %v2359_v18  ;;  %v1887_v12 = vcvt.s32.f32 %v1375_v14  ;;  %v1623_v7 = vunpack.c.2.s8 %v1143_v55  ;;  %v2223_v61 = vpack.c.bf16 %v1759_v11, %v1751_v56  ;;  %v1631_v63 = vunpack.c.3.s8 %v1143_v55 }
 0x30a   :  { %v2007_v13 = vcvt.s32.f32 %v1495_v17  ;;  %v2015_v29 = vcvt.s32.f32 %v1503_v57  ;;  %2785 = vmatpush.bf16.msrb.mxu2 %v2423_v54  ;;  %v1223_v5 = vunpack.c.0.s8 %v1047_v32  ;;  %v1231_v8 = vunpack.c.1.s8 %v1047_v32  ;;  %v1071_v32 = vld [vmem:[%s9210_s12 + $0x170] sm:$0xff] }
 0x30b   :  { %v2287_v2 = vpack.c.bf16 %v1887_v12, %v1879_v25  ;;  %v2135_v49 = vcvt.s32.f32 %v1623_v7  ;;  %2747 = vmatpush.bf16.msra.mxu3 %v2223_v61  ;;  %v2143_v34 = vcvt.s32.f32 %v1631_v63  ;;  %v1351_v33 = vunpack.c.0.s8 %v1079_v38 }
 0x30c   :  { %v2351_v46 = vpack.c.bf16 %v2015_v29, %v2007_v13  ;;  %v1359_v10 = vunpack.c.1.s8 %v1079_v38  ;;  %v1735_v40 = vcvt.s32.f32 %v1223_v5  ;;  %v1743_v42 = vcvt.s32.f32 %v1231_v8  ;;  %v7685_v13 = vpop.f32.mrf.mxu2 }
 0x30d   :  { %2760 = vmatpush.bf16.msrb.mxu0 %v2287_v2  ;;  %v1479_v3 = vunpack.c.0.s8 %v1111_v9  ;;  %v1487_v47 = vunpack.c.1.s8 %v1111_v9  ;;  %v2415_v20 = vpack.c.bf16 %v2143_v34, %v2135_v49  ;;  %v1863_v23 = vcvt.s32.f32 %v1351_v33 }
 0x30e   :  { %2773 = vmatpush.bf16.msrb.mxu1 %v2351_v46  ;;  %v1871_v24 = vcvt.s32.f32 %v1359_v10  ;;  %v1607_v15 = vunpack.c.0.s8 %v1143_v55  ;;  %v2215_v26 = vpack.c.bf16 %v1743_v42, %v1735_v40  ;;  %v1615_v30 = vunpack.c.1.s8 %v1143_v55 }
 0x30f   :  { %v1991_v27 = vcvt.s32.f32 %v1479_v3  ;;  %v1999_v28 = vcvt.s32.f32 %v1487_v47  ;;  %2786 = vmatpush.bf16.msrb.mxu2 %v2415_v20  ;;  %v2456_v59 = vadd.f32 %v7603_v21, %v7613_v53  ;;  %v1207_v41 = vunpack.c.2.s8 %v1039_v22  ;;  %v7671_v53 = vld [vmem:[%s9210_s12 + $0x370] sm:$0xff] }
 0x310   :  { %v2279_v35 = vpack.c.bf16 %v1871_v24, %v1863_v23  ;;  %v2119_v44 = vcvt.s32.f32 %v1607_v15  ;;  %2748 = vmatpush.bf16.msra.mxu3 %v2215_v26  ;;  %v2127_v19 = vcvt.s32.f32 %v1615_v30  ;;  %v7666_v9 = vmul.f32 %v2849_v62, %v2849_v62 }
 0x311   :  { %v2343_v38 = vpack.c.bf16 %v1999_v28, %v1991_v27  ;;  %v2469_v43 = vadd.f32 %v7605_v6, %v2456_v59  ;;  %v1215_v45 = vunpack.c.3.s8 %v1039_v22  ;;  %v1335_v21 = vunpack.c.2.s8 %v1071_v32 }
 0x312   :  { %2761 = vmatpush.bf16.msrb.mxu0 %v2279_v35  ;;  %v2407_v60 = vpack.c.bf16 %v2127_v19, %v2119_v44  ;;  %v1719_v55 = vcvt.s32.f32 %v1207_v41  ;;  %v1343_v18 = vunpack.c.3.s8 %v1071_v32  ;;  %v1463_v48 = vunpack.c.2.s8 %v7660_v4  ;;  %v1063_v44 = vld [vmem:[%s9210_s12 + $0x130] sm:$0xff] }
 0x313   :  { %2774 = vmatpush.bf16.msrb.mxu1 %v2343_v38  ;;  %v7675_v50 = vadd.f32 %v7615_v16, %v2469_v43  ;;  %v1727_v6 = vcvt.s32.f32 %v1215_v45  ;;  %v1847_v14 = vcvt.s32.f32 %v1335_v21  ;;  %v1471_v56 = vunpack.c.3.s8 %v7660_v4  ;;  %v7683_v16 = vpop.f32.mrf.mxu3  ;;  %v1095_v21 = vld [vmem:[%s9210_s12 + $0x230] sm:$0xff] }
 0x314   :  { %2787 = vmatpush.bf16.msrb.mxu2 %v2407_v60  ;;  %v1855_v11 = vcvt.s32.f32 %v1343_v18  ;;  %v1975_v17 = vcvt.s32.f32 %v1463_v48  ;;  %v1591_v57 = vunpack.c.2.s8 %v7671_v53  ;;  %v1599_v54 = vunpack.c.3.s8 %v7671_v53  ;;  %v2535_v1 = vpop.f32.mrf.mxu2 }
 0x315   :  { %v2850_v25 = vrot.slane %v7675_v50, 4  ;;  %v2906_v12 = vmul.f32 %v7675_v50, %v7675_v50  ;;  %v2207_v7 = vpack.c.bf16 %v1727_v6, %v1719_v55  ;;  %v1983_v61 = vcvt.s32.f32 %v1471_v56 }
 0x316   :  { %v2271_v29 = vpack.c.bf16 %v1855_v11, %v1847_v14  ;;  %v2103_v63 = vcvt.s32.f32 %v1591_v57  ;;  %v2111_v2 = vcvt.s32.f32 %v1599_v54  ;;  %v1191_v49 = vunpack.c.0.s8 %v1039_v22  ;;  %v1127_v11 = vld [vmem:[%s9210_s12 + $0x330] sm:$0xff] }
 0x317   :  { %v2851_v5 = vadd.f32 %v2850_v25, %v7675_v50  ;;  %v2914_v8 = vrot.slane %v2906_v12, 4  ;;  %2749 = vmatpush.bf16.msra.mxu3 %v2207_v7  ;;  %v2335_v46 = vpack.c.bf16 %v1983_v61, %v1975_v17  ;;  %v1199_v34 = vunpack.c.1.s8 %v1039_v22  ;;  %v1031_v22 = vld [vmem:[%s9210_s12 + $0x30] sm:$0xff] }
 0x318   :  { %2762 = vmatpush.bf16.msrb.mxu0 %v2271_v29  ;;  %v2399_v33 = vpack.c.bf16 %v2111_v2, %v2103_v63  ;;  %v1703_v10 = vcvt.s32.f32 %v1191_v49  ;;  %v1319_v40 = vunpack.c.0.s8 %v1071_v32  ;;  %v1327_v42 = vunpack.c.1.s8 %v1071_v32 }
 0x319   :  { %v2852_v3 = vrot.slane %v2851_v5, 2  ;;  %v2915_v47 = vadd.f32 %v2914_v8, %v2906_v12  ;;  %2775 = vmatpush.bf16.msrb.mxu1 %v2335_v46  ;;  %v1711_v20 = vcvt.s32.f32 %v1199_v34  ;;  %v1447_v23 = vunpack.c.0.s8 %v7660_v4 }
 0x31a   :  { %2788 = vmatpush.bf16.msrb.mxu2 %v2399_v33  ;;  %v1831_v24 = vcvt.s32.f32 %v1319_v40  ;;  %v1839_v15 = vcvt.s32.f32 %v1327_v42  ;;  %v1455_v26 = vunpack.c.1.s8 %v7660_v4  ;;  %v1575_v27 = vunpack.c.0.s8 %v7671_v53 }
 0x31b   :  { %v2853_v28 = vadd.f32 %v2852_v3, %v2851_v5  ;;  %v2916_v30 = vrot.slane %v2915_v47, 2  ;;  %v2199_v32 = vpack.c.bf16 %v1711_v20, %v1703_v10  ;;  %v1959_v35 = vcvt.s32.f32 %v1447_v23  ;;  %v2496_v36 = vpop.f32.mrf.mxu3 }
 0x31c   :  { %v2263_v59 = vpack.c.bf16 %v1839_v15, %v1831_v24  ;;  %v1967_v38 = vcvt.s32.f32 %v1455_v26  ;;  %v1583_v19 = vunpack.c.1.s8 %v7671_v53  ;;  %v2087_v62 = vcvt.s32.f32 %v1575_v27 }
 0x31d   :  { %v2854_v4 = vrot.slane %v2853_v28, 1  ;;  %v2917_v41 = vadd.f32 %v2916_v30, %v2915_v47  ;;  %2750 = vmatpush.bf16.msra.mxu3 %v2199_v32  ;;  %v1175_v43 = vunpack.c.2.s8 %v1031_v22  ;;  %v1183_v45 = vunpack.c.3.s8 %v1031_v22  ;;  %v7714_v30 = vld [vmem:[%s9210_s12 + $0xf8] sm:$0xff] }
 0x31e   :  { %2763 = vmatpush.bf16.msrb.mxu0 %v2263_v59  ;;  %v2327_v60 = vpack.c.bf16 %v1967_v38, %v1959_v35  ;;  %v2095_v55 = vcvt.s32.f32 %v1583_v19  ;;  %v1303_v18 = vunpack.c.2.s8 %v1063_v44  ;;  %v1311_v48 = vunpack.c.3.s8 %v1063_v44 }
 0x31f   :  { %v2855_v6 = vadd.f32 %v2854_v4, %v2853_v28  ;;  %v2918_v14 = vrot.slane %v2917_v41, 1  ;;  %v1687_v53 = vcvt.s32.f32 %v1175_v43  ;;  %v1695_v56 = vcvt.s32.f32 %v1183_v45  ;;  %v7723_v43 = vpop.f32.mrf.mxu1 }
 0x320   :  { %2776 = vmatpush.bf16.msrb.mxu1 %v2327_v60  ;;  %v2391_v17 = vpack.c.bf16 %v2095_v55, %v2087_v62  ;;  %v1815_v57 = vcvt.s32.f32 %v1303_v18  ;;  %v1823_v54 = vcvt.s32.f32 %v1311_v48  ;;  %v1431_v25 = vunpack.c.2.s8 %v1095_v21 }
 0x321   :  { %v7705_v12 = vmul.f32 %v2855_v6, %v6780_v52  ;;  %v2919_v7 = vadd.f32 %v2918_v14, %v2917_v41  ;;  %v2191_v61 = vpack.c.bf16 %v1695_v56, %v1687_v53  ;;  %v1439_v29 = vunpack.c.3.s8 %v1095_v21  ;;  %v7721_v41 = vpop.f32.mrf.mxu0  ;;  %v1120_v6 = vld [vmem:[%s9210_s12 + $0x2f8] sm:$0xff] }
 0x322   :  { %2789 = vmatpush.bf16.msrb.mxu2 %v2391_v17  ;;  %v2255_v63 = vpack.c.bf16 %v1823_v54, %v1815_v57  ;;  %v1943_v2 = vcvt.s32.f32 %v1431_v25  ;;  %v1559_v49 = vunpack.c.2.s8 %v1127_v11  ;;  %v1567_v5 = vunpack.c.3.s8 %v1127_v11  ;;  %v7736_v14 = vld [vmem:[%s9210_s12 + $0x3f8] sm:$0xff] }
 0x323   :  { %v2962_v8 = vmul.f32 %v2919_v7, %v6780_v52  ;;  %v2970_v46 = vmul.f32 %v7705_v12, %v7705_v12  ;;  %v2989_v34 = vperm.slane %v7666_v9, 0  ;;  %2751 = vmatpush.bf16.msra.mxu3 %v2191_v61  ;;  %v1951_v33 = vcvt.s32.f32 %v1439_v29 }
 0x324   :  { %2764 = vmatpush.bf16.msrb.mxu0 %v2255_v63  ;;  %v2071_v10 = vcvt.s32.f32 %v1559_v49  ;;  %v2079_v40 = vcvt.s32.f32 %v1567_v5  ;;  %v1159_v42 = vunpack.c.0.s8 %v1031_v22  ;;  %v1167_v3 = vunpack.c.1.s8 %v1031_v22  ;;  %v7719_v22 = vld [vmem:[%s9210_s12 + $0x1f8] sm:$0xff] }
 0x325   :  { %v2978_v47 = vsub.f32 %v2962_v8, %v2970_v46  ;;  %v2319_v20 = vpack.c.bf16 %v1951_v33, %v1943_v2  ;;  %v1287_v23 = vunpack.c.0.s8 %v1063_v44  ;;  %v1295_v24 = vunpack.c.1.s8 %v1063_v44 }
 0x326   :  { %v2383_v15 = vpack.c.bf16 %v2079_v40, %v2071_v10  ;;  %v1671_v26 = vcvt.s32.f32 %v1159_v42  ;;  %v1679_v27 = vcvt.s32.f32 %v1167_v3  ;;  %v1415_v28 = vunpack.c.0.s8 %v1095_v21 }
 0x327   :  { %v3005_v32 = vmul.f32 %v2989_v34, %v2978_v47  ;;  %2777 = vmatpush.bf16.msrb.mxu1 %v2319_v20  ;;  %v1799_v35 = vcvt.s32.f32 %v1287_v23  ;;  %v1807_v59 = vcvt.s32.f32 %v1295_v24  ;;  %v1423_v38 = vunpack.c.1.s8 %v1095_v21  ;;  %v2574_v3 = vpop.f32.mrf.mxu1 }
 0x328   :  { %2790 = vmatpush.bf16.msrb.mxu2 %v2383_v15  ;;  %v2183_v44 = vpack.c.bf16 %v1679_v27, %v1671_v26  ;;  %v1927_v19 = vcvt.s32.f32 %v1415_v28  ;;  %v1543_v62 = vunpack.c.0.s8 %v1127_v11  ;;  %v1551_v4 = vunpack.c.1.s8 %v1127_v11 }
 0x329   :  { %v7725_v45 = vadd.f32 1e-05, %v3005_v32  ;;  %v2247_v36 = vpack.c.bf16 %v1807_v59, %v1799_v35  ;;  %v1935_v1 = vcvt.s32.f32 %v1423_v38  ;;  %v1272_v21 = vunpack.c.2.s8 %v7714_v30  ;;  %v2561_v42 = vpop.f32.mrf.mxu0  ;;  %v7760_v35 = vpop.f32.mrf.mxu3 }
 0x32a   :  { %2752 = vmatpush.bf16.msra.mxu3 %v2183_v44  ;;  %v2055_v60 = vcvt.s32.f32 %v1543_v62  ;;  %v2063_v55 = vcvt.s32.f32 %v1551_v4  ;;  %v1280_v18 = vunpack.c.3.s8 %v7714_v30  ;;  %v1400_v48 = vunpack.c.2.s8 %v7719_v22 }
 0x32b   :  { %6575 = vrsqrt.f32 %v7725_v45  ;;  %2765 = vmatpush.bf16.msrb.mxu0 %v2247_v36  ;;  %v2311_v53 = vpack.c.bf16 %v1935_v1, %v1927_v19  ;;  %v1784_v56 = vcvt.s32.f32 %v1272_v21  ;;  %v1408_v57 = vunpack.c.3.s8 %v7719_v22  ;;  %v1048_v19 = vld [vmem:[%s9210_s12 + $0xb8] sm:$0xff] }
 0x32c   :  { %v2375_v11 = vpack.c.bf16 %v2063_v55, %v2055_v60  ;;  %v1792_v17 = vcvt.s32.f32 %v1280_v18  ;;  %v1912_v54 = vcvt.s32.f32 %v1400_v48  ;;  %v1528_v25 = vunpack.c.2.s8 %v1120_v6  ;;  %v7776_v55 = vld [vmem:[%s9210_s12 + $0x1b8] sm:$0xff] }
 0x32d   :  { %2778 = vmatpush.bf16.msrb.mxu1 %v2311_v53  ;;  %v1536_v7 = vunpack.c.3.s8 %v1120_v6  ;;  %v1656_v61 = vunpack.c.2.s8 %v7736_v14  ;;  %v1664_v29 = vunpack.c.3.s8 %v7736_v14  ;;  %2753 = vmatmul.bf16.vlgmr.msra.gmra.mxu3 %v7392_v51  ;;  %v1920_v2 = vcvt.s32.f32 %v1408_v57 }
 0x32e   :  { %2791 = vmatpush.bf16.msrb.mxu2 %v2375_v11  ;;  %v2240_v63 = vpack.c.bf16 %v1792_v17, %v1784_v56  ;;  %v2508_v49 = vadd.f32 %v7645_v0, %v7683_v16  ;;  %2766 = vmatmul.bf16.vlgmr.msrb.gmra.mxu0 %v7407_v37  ;;  %v2040_v5 = vcvt.s32.f32 %v1528_v25  ;;  %v1256_v40 = vunpack.c.0.s8 %v7714_v30 }
 0x32f   :  { %v2048_v8 = vcvt.s32.f32 %v1536_v7  ;;  %v2168_v46 = vcvt.s32.f32 %v1656_v61  ;;  %v2176_v34 = vcvt.s32.f32 %v1664_v29  ;;  %v2304_v33 = vpack.c.bf16 %v1920_v2, %v1912_v54  ;;  %v7782_v54 = vld [vmem:[%s9210_s12 + $0x2b8] sm:$0xff] }
 0x330   :  { %2797 = vmatpush.bf16.msrb.mxu3 %v2240_v63  ;;  %v2521_v10 = vadd.f32 %v7647_v58, %v2508_v49  ;;  %2779 = vmatmul.bf16.vlgmr.msrb.gmra.mxu1 %v7409_v31  ;;  %v1264_v16 = vunpack.c.1.s8 %v7714_v30  ;;  %v1384_v23 = vunpack.c.0.s8 %v7719_v22  ;;  %v1768_v15 = vcvt.s32.f32 %v1256_v40  ;;  %v7762_v30 = vpop.f32.mrf.mxu2 }
 0x331   :  { %v7749_v47 = vpop.eup %6575  ;;  %v2368_v20 = vpack.c.bf16 %v2048_v8, %v2040_v5  ;;  %v2432_v0 = vpack.c.bf16 %v2176_v34, %v2168_v46  ;;  %2792 = vmatmul.bf16.vlgmr.msrb.gmra.mxu2 %v7356_v39  ;;  %2810 = vmatpush.bf16.msra.mxu0 %v2304_v33  ;;  %v1392_v27 = vunpack.c.1.s8 %v7719_v22  ;;  %v1512_v32 = vunpack.c.0.s8 %v1120_v6  ;;  %v1144_v5 = vld [vmem:[%s9210_s12 + $0x3b8] sm:$0xff] }
 0x332   :  { %v3022_v24 = vmul.f32 %v7749_v47, %v7725_v45  ;;  %v7757_v58 = vadd.f32 %v7685_v13, %v2521_v10  ;;  %v1776_v26 = vcvt.s32.f32 %v1264_v16  ;;  %v1896_v28 = vcvt.s32.f32 %v1384_v23  ;;  %v2548_v10 = vpop.f32.mrf.mxu3 }
 0x333   :  { %2823 = vmatpush.bf16.msra.mxu1 %v2368_v20  ;;  %2836 = vmatpush.bf16.msra.mxu2 %v2432_v0  ;;  %v1520_v44 = vunpack.c.1.s8 %v1120_v6  ;;  %v1904_v22 = vcvt.s32.f32 %v1392_v27  ;;  %v2024_v4 = vcvt.s32.f32 %v1512_v32  ;;  %v1640_v36 = vunpack.c.0.s8 %v7736_v14 }
 0x334   :  { %v3023_v59 = vmul.f32 %v7749_v47, %v3022_v24  ;;  %v2856_v38 = vrot.slane %v7757_v58, 4  ;;  %v2907_v13 = vmul.f32 %v7757_v58, %v7757_v58  ;;  %v2232_v62 = vpack.c.bf16 %v1776_v26, %v1768_v15 }
 0x335   :  { %v2032_v60 = vcvt.s32.f32 %v1520_v44  ;;  %v2296_v18 = vpack.c.bf16 %v1904_v22, %v1896_v28  ;;  %v1648_v48 = vunpack.c.1.s8 %v7736_v14  ;;  %v2152_v6 = vcvt.s32.f32 %v1640_v36 }
 0x336   :  { %v2857_v1 = vadd.f32 %v2856_v38, %v7757_v58  ;;  %v2920_v21 = vrot.slane %v2907_v13, 4  ;;  %2798 = vmatpush.bf16.msrb.mxu3 %v2232_v62  ;;  %v1240_v53 = vunpack.c.2.s8 %v1048_v19  ;;  %v3024_v56 = vmul.f32 0.5, %v3023_v59 }
 0x337   :  { %v2360_v57 = vpack.c.bf16 %v2032_v60, %v2024_v4  ;;  %2811 = vmatpush.bf16.msra.mxu0 %v2296_v18  ;;  %v2160_v25 = vcvt.s32.f32 %v1648_v48  ;;  %v1248_v7 = vunpack.c.3.s8 %v1048_v19  ;;  %v1368_v29 = vunpack.c.2.s8 %v7776_v55 }
 0x338   :  { %v2858_v11 = vrot.slane %v2857_v1, 2  ;;  %v2921_v17 = vadd.f32 %v2920_v21, %v2907_v13  ;;  %v1752_v61 = vcvt.s32.f32 %v1240_v53  ;;  %v2990_v14 = vperm.slane %v7666_v9, 1  ;;  %v2587_v40 = vpop.f32.mrf.mxu2 }
 0x339   :  { %2824 = vmatpush.bf16.msra.mxu1 %v2360_v57  ;;  %v1376_v49 = vunpack.c.3.s8 %v7776_v55  ;;  %v2424_v8 = vpack.c.bf16 %v2160_v25, %v2152_v6  ;;  %v1760_v46 = vcvt.s32.f32 %v1248_v7  ;;  %v1880_v34 = vcvt.s32.f32 %v1368_v29 }
 0x33a   :  { %v2859_v63 = vadd.f32 %v2858_v11, %v2857_v1  ;;  %v2922_v2 = vrot.slane %v2921_v17, 2  ;;  %v1496_v33 = vunpack.c.2.s8 %v7782_v54  ;;  %v3025_v42 = vsub.f32 1.5, %v3024_v56  ;;  %v7807_v56 = vld [vmem:[%s9210_s12 + $0x78] sm:$0xff] }
 0x33b   :  { %v1888_v0 = vcvt.s32.f32 %v1376_v49  ;;  %2837 = vmatpush.bf16.msra.mxu2 %v2424_v8  ;;  %v2224_v16 = vpack.c.bf16 %v1760_v46, %v1752_v61  ;;  %v1504_v23 = vunpack.c.3.s8 %v7782_v54  ;;  %v1624_v15 = vunpack.c.2.s8 %v1144_v5 }
 0x33c   :  { %v2860_v3 = vrot.slane %v2859_v63, 1  ;;  %v2923_v20 = vadd.f32 %v2922_v2, %v2921_v17  ;;  %v2008_v24 = vcvt.s32.f32 %v1496_v33  ;;  %v1632_v32 = vunpack.c.3.s8 %v1144_v5 }
 0x33d   :  { %v2288_v28 = vpack.c.bf16 %v1888_v0, %v1880_v34  ;;  %2799 = vmatpush.bf16.msrb.mxu3 %v2224_v16  ;;  %v2016_v59 = vcvt.s32.f32 %v1504_v23  ;;  %v2136_v38 = vcvt.s32.f32 %v1624_v15  ;;  %v1224_v13 = vunpack.c.0.s8 %v1048_v19  ;;  %v1104_v34 = vld [vmem:[%s9210_s12 + $0x278] sm:$0xff] }
 0x33e   :  { %v2861_v26 = vadd.f32 %v2860_v3, %v2859_v63  ;;  %v2924_v27 = vrot.slane %v2923_v20, 1  ;;  %v1232_v44 = vunpack.c.1.s8 %v1048_v19  ;;  %vm3028_vm15 = vweird.f32 %v7749_v47  ;;  %v1072_v63 = vld [vmem:[%s9210_s12 + $0x178] sm:$0xff] }
 0x33f   :  { %2812 = vmatpush.bf16.msra.mxu0 %v2288_v28  ;;  %v2144_v4 = vcvt.s32.f32 %v1632_v32  ;;  %v1352_v36 = vunpack.c.0.s8 %v7776_v55  ;;  %v2352_v1 = vpack.c.bf16 %v2016_v59, %v2008_v24  ;;  %v1736_v21 = vcvt.s32.f32 %v1224_v13  ;;  %v7822_v0 = vld [vmem:[%s9210_s12 + $0x378] sm:$0xff] }
 0x340   :  { %v7794_v62 = vmul.f32 %v2861_v26, %v6780_v52  ;;  %v2925_v22 = vadd.f32 %v2924_v27, %v2923_v20  ;;  %v1744_v60 = vcvt.s32.f32 %v1232_v44  ;;  %v1360_v18 = vunpack.c.1.s8 %v7776_v55 }
 0x341   :  { %v7799_v48 = vmul.f32 %v7749_v47, %v3025_v42  ;;  %v2416_v53 = vpack.c.bf16 %v2144_v4, %v2136_v38  ;;  %2825 = vmatpush.bf16.msra.mxu1 %v2352_v1  ;;  %v1864_v17 = vcvt.s32.f32 %v1352_v36  ;;  %v1480_v55 = vunpack.c.0.s8 %v7782_v54 }
 0x342   :  { %v2963_v19 = vmul.f32 %v2925_v22, %v6780_v52  ;;  %v2971_v6 = vmul.f32 %v7794_v62, %v7794_v62  ;;  %v2216_v11 = vpack.c.bf16 %v1744_v60, %v1736_v21  ;;  %v1872_v57 = vcvt.s32.f32 %v1360_v18 }
 0x343   :  { %2838 = vmatpush.bf16.msra.mxu2 %v2416_v53  ;;  %v1488_v7 = vunpack.c.1.s8 %v7782_v54  ;;  %v1608_v61 = vunpack.c.0.s8 %v1144_v5  ;;  %v1616_v29 = vunpack.c.1.s8 %v1144_v5  ;;  %v1992_v49 = vcvt.s32.f32 %v1480_v55 }
 0x344   :  { %v2979_v25 = vsub.f32 %v2963_v19, %v2971_v6  ;;  %2800 = vmatpush.bf16.msrb.mxu3 %v2216_v11  ;;  %v2280_v2 = vpack.c.bf16 %v1872_v57, %v1864_v17  ;;  %v1208_v8 = vunpack.c.2.s8 %v7807_v56  ;;  %v1216_v46 = vunpack.c.3.s8 %v7807_v56 }
 0x345   :  { %v2000_v10 = vcvt.s32.f32 %v1488_v7  ;;  %v2120_v54 = vcvt.s32.f32 %v1608_v61  ;;  %v2128_v40 = vcvt.s32.f32 %v1616_v29  ;;  %v1336_v3 = vunpack.c.2.s8 %v1072_v63 }
 0x346   :  { %v3006_v33 = vmul.f32 %v2990_v14, %v2979_v25  ;;  %2813 = vmatpush.bf16.msra.mxu0 %v2280_v2  ;;  %v1720_v5 = vcvt.s32.f32 %v1208_v8  ;;  %v1728_v42 = vcvt.s32.f32 %v1216_v46  ;;  %v1344_v20 = vunpack.c.3.s8 %v1072_v63  ;;  %v7861_v2 = vld [vmem:[%s9210_s12 + $0x38] sm:$0xff] }
 0x347   :  { %v2344_v23 = vpack.c.bf16 %v2000_v10, %v1992_v49  ;;  %v2408_v24 = vpack.c.bf16 %v2128_v40, %v2120_v54  ;;  %v1464_v15 = vunpack.c.2.s8 %v1104_v34  ;;  %v1848_v14 = vcvt.s32.f32 %v1336_v3  ;;  %v7873_v3 = vpop.f32.mrf.mxu1 }
 0x348   :  { %v7824_v16 = vadd.f32 1e-05, %v3006_v33  ;;  %v2208_v26 = vpack.c.bf16 %v1728_v42, %v1720_v5  ;;  %v1856_v27 = vcvt.s32.f32 %v1344_v20  ;;  %v1472_v28 = vunpack.c.3.s8 %v1104_v34  ;;  %v7867_v33 = vld [vmem:[%s9210_s12 + $0x138] sm:$0xff]  ;;  %v7871_v42 = vpop.f32.mrf.mxu0 }
 0x349   :  { %vm3027_vm0 = vweird.f32 %v7725_v45  ;;  %2826 = vmatpush.bf16.msra.mxu1 %v2344_v23  ;;  %2839 = vmatpush.bf16.msra.mxu2 %v2408_v24  ;;  %v1976_v32 = vcvt.s32.f32 %v1464_v15  ;;  %v1592_v59 = vunpack.c.2.s8 %v7822_v0  ;;  %v1600_v22 = vunpack.c.3.s8 %v7822_v0 }
 0x34a   :  { %6577 = vrsqrt.f32 %v7824_v16  ;;  %vm7831_vm1 = vmor %vm3027_vm0, %vm3028_vm15  ;;  %2801 = vmatpush.bf16.msrb.mxu3 %v2208_v26  ;;  %v2272_v13 = vpack.c.bf16 %v1856_v27, %v1848_v14  ;;  %v1984_v44 = vcvt.s32.f32 %v1472_v28  ;;  %v2560_v45 = vadd.f32 %v7721_v41, %v7760_v35  ;;  %v7881_v28 = vld [vmem:[%s9210_s12 + $0x238] sm:$0xff] }
 0x34b   :  { %v3030_v4 = vsel %vm7831_vm1, %v7749_v47, %v7799_v48  ;;  %v2104_v36 = vcvt.s32.f32 %v1592_v59  ;;  %v1192_v1 = vunpack.c.0.s8 %v7807_v56  ;;  %v2112_v60 = vcvt.s32.f32 %v1600_v22  ;;  %v7887_v22 = vld [vmem:[%s9210_s12 + $0x338] sm:$0xff] }
 0x34c   :  { %2814 = vmatpush.bf16.msra.mxu0 %v2272_v13  ;;  %v2336_v21 = vpack.c.bf16 %v1984_v44, %v1976_v32  ;;  %v2573_v18 = vadd.f32 %v7723_v43, %v2560_v45  ;;  %v1200_v19 = vunpack.c.1.s8 %v7807_v56  ;;  %v1320_v53 = vunpack.c.0.s8 %v1072_v63 }
 0x34d   :  { %v1704_v6 = vcvt.s32.f32 %v1192_v1  ;;  %v1328_v11 = vunpack.c.1.s8 %v1072_v63  ;;  %v1448_v17 = vunpack.c.0.s8 %v1104_v34  ;;  %v2400_v41 = vpack.c.bf16 %v2112_v60, %v2104_v36 }
 0x34e   :  { %2827 = vmatpush.bf16.msra.mxu1 %v2336_v21  ;;  %v7846_v35 = vadd.f32 %v7762_v30, %v2573_v18  ;;  %v1712_v57 = vcvt.s32.f32 %v1200_v19  ;;  %v1456_v55 = vunpack.c.1.s8 %v1104_v34  ;;  %v1832_v7 = vcvt.s32.f32 %v1320_v53 }
 0x34f   :  { %v1840_v61 = vcvt.s32.f32 %v1328_v11  ;;  %v1960_v29 = vcvt.s32.f32 %v1448_v17  ;;  %v1576_v43 = vunpack.c.0.s8 %v7822_v0  ;;  %vm3037_vm2 = vweird.f32 %v7824_v16  ;;  %2840 = vmatpush.bf16.msra.mxu2 %v2400_v41 }
 0x350   :  { %v7848_v25 = vpop.eup %6577  ;;  %v2862_v30 = vrot.slane %v7846_v35, 4  ;;  %v2908_v63 = vmul.f32 %v7846_v35, %v7846_v35  ;;  %v2200_v49 = vpack.c.bf16 %v1712_v57, %v1704_v6  ;;  %v1968_v46 = vcvt.s32.f32 %v1456_v55  ;;  %v2598_v57 = vpop.f32.mrf.mxu3 }
 0x351   :  { %v3032_v56 = vmul.f32 %v7848_v25, %v7824_v16  ;;  %vm3038_vm3 = vweird.f32 %v7848_v25  ;;  %v2264_v8 = vpack.c.bf16 %v1840_v61, %v1832_v7  ;;  %v1584_v34 = vunpack.c.1.s8 %v7822_v0  ;;  %v2637_v55 = vpop.f32.mrf.mxu2 }
 0x352   :  { %v2863_v54 = vadd.f32 %v2862_v30, %v7846_v35  ;;  %v2926_v40 = vrot.slane %v2908_v63, 4  ;;  %v2088_v5 = vcvt.s32.f32 %v1576_v43  ;;  %2802 = vmatpush.bf16.msrb.mxu3 %v2200_v49  ;;  %v2328_v20 = vpack.c.bf16 %v1968_v46, %v1960_v29  ;;  %vm3039_vm4 = vmor %vm3037_vm2, %vm3038_vm3  ;;  %v2626_v46 = vpop.f32.mrf.mxu1 }
 0x353   :  { %v3033_v10 = vmul.f32 %v7848_v25, %v3032_v56  ;;  %2815 = vmatpush.bf16.msra.mxu0 %v2264_v8  ;;  %v2096_v23 = vcvt.s32.f32 %v1584_v34  ;;  %v1176_v0 = vunpack.c.2.s8 %v7861_v2  ;;  %v1184_v24 = vunpack.c.3.s8 %v7861_v2  ;;  %v2613_v8 = vpop.f32.mrf.mxu0 }
 0x354   :  { %v2864_v26 = vrot.slane %v2863_v54, 2  ;;  %v2927_v14 = vadd.f32 %v2926_v40, %v2908_v63  ;;  %v1304_v27 = vunpack.c.2.s8 %v7867_v33  ;;  %2828 = vmatpush.bf16.msra.mxu1 %v2328_v20  ;;  %v1312_v44 = vunpack.c.3.s8 %v7867_v33 }
 0x355   :  { %v3034_v15 = vmul.f32 0.5, %v3033_v10  ;;  %v2392_v32 = vpack.c.bf16 %v2096_v23, %v2088_v5  ;;  %v1688_v59 = vcvt.s32.f32 %v1176_v0  ;;  %v1696_v13 = vcvt.s32.f32 %v1184_v24 }
 0x356   :  { %v2865_v36 = vadd.f32 %v2864_v26, %v2863_v54  ;;  %v2928_v1 = vrot.slane %v2927_v14, 2  ;;  %v1816_v21 = vcvt.s32.f32 %v1304_v27  ;;  %v1824_v18 = vcvt.s32.f32 %v1312_v44 }
 0x357   :  { %v3035_v45 = vsub.f32 1.5, %v3034_v15  ;;  %2841 = vmatpush.bf16.msra.mxu2 %v2392_v32  ;;  %v2192_v60 = vpack.c.bf16 %v1696_v13, %v1688_v59  ;;  %v1432_v19 = vunpack.c.2.s8 %v7881_v28  ;;  %v1440_v6 = vunpack.c.3.s8 %v7881_v28 }
 0x358   :  { %v2866_v11 = vrot.slane %v2865_v36, 1  ;;  %v2929_v17 = vadd.f32 %v2928_v1, %v2927_v14  ;;  %v1560_v41 = vunpack.c.2.s8 %v7887_v22  ;;  %v2256_v7 = vpack.c.bf16 %v1824_v18, %v1816_v21  ;;  %v2600_v13 = vpop.f32.mrf.mxu3 }
 0x359   :  { %v3036_v53 = vmul.f32 %v7848_v25, %v3035_v45  ;;  %2803 = vmatpush.bf16.msrb.mxu3 %v2192_v60  ;;  %v1944_v61 = vcvt.s32.f32 %v1432_v19  ;;  %v1952_v29 = vcvt.s32.f32 %v1440_v6  ;;  %v1568_v43 = vunpack.c.3.s8 %v7887_v22 }
 0x35a   :  { %v2867_v30 = vadd.f32 %v2866_v11, %v2865_v36  ;;  %v2930_v63 = vrot.slane %v2929_v17, 1  ;;  %v2072_v49 = vcvt.s32.f32 %v1560_v41  ;;  %2816 = vmatpush.bf16.msra.mxu0 %v2256_v7  ;;  %v1160_v16 = vunpack.c.0.s8 %v7861_v2 }
 0x35b   :  { %v3040_v56 = vsel %vm3039_vm4, %v7848_v25, %v3036_v53  ;;  %v2320_v10 = vpack.c.bf16 %v1952_v29, %v1944_v61  ;;  %v2080_v54 = vcvt.s32.f32 %v1568_v43  ;;  %v1168_v20 = vunpack.c.1.s8 %v7861_v2  ;;  %v2663_v43 = vpop.f32.mrf.mxu0 }
 0x35c   :  { %v3109_v34 = vrot.slane %v3040_v56, 7  ;;  %v7901_v40 = vmul.f32 %v2867_v30, %v6780_v52  ;;  %v2931_v5 = vadd.f32 %v2930_v63, %v2929_v17  ;;  %v1288_v23 = vunpack.c.0.s8 %v7867_v33  ;;  %v2676_v56 = vpop.f32.mrf.mxu1 }
 0x35d   :  { %2829 = vmatpush.bf16.msra.mxu1 %v2320_v10  ;;  %v2384_v0 = vpack.c.bf16 %v2080_v54, %v2072_v49  ;;  %v1672_v24 = vcvt.s32.f32 %v1160_v16  ;;  %v1296_v15 = vunpack.c.1.s8 %v7867_v33  ;;  %v1680_v14 = vcvt.s32.f32 %v1168_v20  ;;  %v2639_v33 = vpop.f32.mrf.mxu2 }
 0x35e   :  { %v7911_v25 = vsel %vm297_vm8, %v3030_v4, %v3109_v34  ;;  %v2964_v26 = vmul.f32 %v2931_v5, %v6780_v52  ;;  %v2972_v2 = vmul.f32 %v7901_v40, %v7901_v40  ;;  %v1800_v27 = vcvt.s32.f32 %v1288_v23 }
 0x35f   :  { %2842 = vmatpush.bf16.msra.mxu2 %v2384_v0  ;;  %v1808_v38 = vcvt.s32.f32 %v1296_v15  ;;  %v1416_v32 = vunpack.c.0.s8 %v7881_v28  ;;  %v1424_v47 = vunpack.c.1.s8 %v7881_v28  ;;  %v2184_v48 = vpack.c.bf16 %v1680_v14, %v1672_v24 }
 0x360   :  { %v1544_v4 = vunpack.c.0.s8 %v7887_v22  ;;  %v1552_v59 = vunpack.c.1.s8 %v7887_v22  ;;  %v2612_v1 = vadd.f32 %v7871_v42, %v2598_v57  ;;  %v2980_v21 = vsub.f32 %v2964_v26, %v2972_v2  ;;  %v2650_v49 = vpop.f32.mrf.mxu3 }
 0x361   :  { %v2248_v44 = vpack.c.bf16 %v1808_v38, %v1800_v27  ;;  %v1928_v45 = vcvt.s32.f32 %v1416_v32  ;;  %v1936_v36 = vcvt.s32.f32 %v1424_v47  ;;  %v2991_v60 = vperm.slane %v7666_v9, 2  ;;  %2804 = vmatpush.bf16.msrb.mxu3 %v2184_v48 }
 0x362   :  { %v2056_v18 = vcvt.s32.f32 %v1544_v4  ;;  %v2064_v19 = vcvt.s32.f32 %v1552_v59  ;;  %v2625_v6 = vadd.f32 %v7873_v3, %v2612_v1  ;;  %v2992_v5 = vperm.slane %v7666_v9, 3 }
 0x363   :  { %2817 = vmatpush.bf16.msra.mxu0 %v2248_v44  ;;  %v2312_v28 = vpack.c.bf16 %v1936_v36, %v1928_v45  ;;  %v3007_v11 = vmul.f32 %v2991_v60, %v2980_v21  ;;  %v2665_v24 = vpop.f32.mrf.mxu0 }
 0x364   :  { %v2376_v53 = vpack.c.bf16 %v2064_v19, %v2056_v18  ;;  %2805 = vmatmul.bf16.vlgmr.msrb.gmra.mxu3 %v7392_v51  ;;  %v7925_v22 = vadd.f32 %v2637_v55, %v2625_v6  ;;  %v2678_v15 = vpop.f32.mrf.mxu1 }
 0x365   :  { %2830 = vmatpush.bf16.msra.mxu1 %v2312_v28  ;;  %v3015_v57 = vadd.f32 1e-05, %v3007_v11  ;;  %v2689_v8 = vpop.f32.mrf.mxu2 }
 0x366   :  { %2843 = vmatpush.bf16.msra.mxu2 %v2376_v53  ;;  %2818 = vmatmul.bf16.vlgmr.msra.gmra.mxu0 %v7407_v37  ;;  %v2868_v42 = vrot.slane %v7925_v22, 4  ;;  %v2909_v17 = vmul.f32 %v7925_v22, %v7925_v22 }
 0x367   :  { %6579 = vrsqrt.f32 %v3015_v57  ;;  %vm3047_vm9 = vweird.f32 %v3015_v57 }
 0x368   :  { %2831 = vmatmul.bf16.vlgmr.msra.gmra.mxu1 %v7409_v31  ;;  %v2869_v3 = vadd.f32 %v2868_v42, %v7925_v22  ;;  %v2932_v41 = vrot.slane %v2909_v17, 4  ;;  %v2664_v31 = vadd.f32 %v2663_v43, %v2650_v49  ;;  %v2652_v2 = vpop.f32.mrf.mxu3 }
 0x369   :  { %2844 = vmatmul.bf16.vlgmr.msra.gmra.mxu2 %v7356_v39 }
 0x36a   :  { %v2870_v51 = vrot.slane %v2869_v3, 2  ;;  %v2933_v55 = vadd.f32 %v2932_v41, %v2909_v17  ;;  %v2677_v10 = vadd.f32 %v2676_v56, %v2664_v31 }
 0x36c   :  { %v2871_v7 = vadd.f32 %v2870_v51, %v2869_v3  ;;  %v2934_v61 = vrot.slane %v2933_v55, 2  ;;  %v7941_v20 = vadd.f32 %v2689_v8, %v2677_v10 }
 0x36d   :  { %v6580_v34 = vpop.eup %6579  ;;  %v2691_v14 = vpop.f32.mrf.mxu2 }
 0x36e   :  { %v2872_v29 = vrot.slane %v2871_v7, 1  ;;  %v2935_v37 = vadd.f32 %v2934_v61, %v2933_v55  ;;  %v3042_v23 = vmul.f32 %v6580_v34, %v3015_v57  ;;  %vm3048_vm5 = vweird.f32 %v6580_v34 }
 0x36f   :  { %v2874_v19 = vrot.slane %v7941_v20, 4  ;;  %v2910_v28 = vmul.f32 %v7941_v20, %v7941_v20  ;;  %vm3049_vm10 = vmor %vm3047_vm9, %vm3048_vm5  ;;  %vm3119_vm5 = vcmask 1044484  }
 0x370   :  { %v2873_v30 = vadd.f32 %v2872_v29, %v2871_v7  ;;  %v2936_v63 = vrot.slane %v2935_v37, 1  ;;  %v3043_v27 = vmul.f32 %v6580_v34, %v3042_v23 }
 0x371   :  { %v2875_v55 = vadd.f32 %v2874_v19, %v7941_v20  ;;  %v2938_v7 = vrot.slane %v2910_v28, 4 }
 0x372   :  { %v7935_v39 = vmul.f32 %v2873_v30, %v6780_v52  ;;  %v2937_v46 = vadd.f32 %v2936_v63, %v2935_v37  ;;  %v3044_v32 = vmul.f32 0.5, %v3043_v27 }
 0x373   :  { %v2876_v30 = vrot.slane %v2875_v55, 2  ;;  %v2939_v63 = vadd.f32 %v2938_v7, %v2910_v28 }
 0x374   :  { %v2965_v54 = vmul.f32 %v2937_v46, %v6780_v52  ;;  %v2973_v16 = vmul.f32 %v7935_v39, %v7935_v39  ;;  %v3045_v33 = vsub.f32 1.5, %v3044_v32 }
 0x375   :  { %v2940_v10 = vrot.slane %v2939_v63, 2 }
 0x376   :  { %v2981_v0 = vsub.f32 %v2965_v54, %v2973_v16  ;;  %v3046_v21 = vmul.f32 %v6580_v34, %v3045_v33  ;;  %v2993_v33 = vperm.slane %v7666_v9, 4 }
 0x377   :  { %v2941_v23 = vadd.f32 %v2940_v10, %v2939_v63 }
 0x378   :  { %v3008_v26 = vmul.f32 %v2992_v5, %v2981_v0  ;;  %v3050_v41 = vsel %vm3049_vm10, %v6580_v34, %v3046_v21  ;;  %v2877_v34 = vadd.f32 %v2876_v30, %v2875_v55 }
 0x379   :  { %v3110_v43 = vrot.slane %v3050_v41, 6 }
 0x37a   :  { %v3016_v38 = vadd.f32 1e-05, %v3008_v26  ;;  %v2878_v5 = vrot.slane %v2877_v34, 1  ;;  %v2942_v26 = vrot.slane %v2941_v23, 1 }
 0x37c   :  { %6581 = vrsqrt.f32 %v3016_v38  ;;  %vm3057_vm12 = vweird.f32 %v3016_v38  ;;  %v2879_v15 = vadd.f32 %v2878_v5, %v2877_v34 }
 0x37e   :  { %v2715_v47 = vpop.f32.mrf.mxu0  ;;  %v7959_v27 = vmul.f32 %v2879_v15, %v6780_v52 }
 0x37f   :  { %v2728_v48 = vpop.f32.mrf.mxu1 }
 0x382   :  { %v2702_v4 = vpop.f32.mrf.mxu3  ;;  %v6582_v13 = vpop.eup %6581 }
 0x383   :  { %v2716_v59 = vadd.f32 %v2715_v47, %v2702_v4  ;;  %v3052_v44 = vmul.f32 %v6582_v13, %v3016_v38  ;;  %vm3058_vm11 = vweird.f32 %v6582_v13  ;;  %v2943_v38 = vadd.f32 %v2942_v26, %v2941_v23 }
 0x384   :  { %vm3059_vm13 = vmor %vm3057_vm12, %vm3058_vm11 }
 0x385   :  { %v2729_v45 = vadd.f32 %v2728_v48, %v2716_v59  ;;  %v3053_v1 = vmul.f32 %v6582_v13, %v3052_v44  ;;  %v2966_v47 = vmul.f32 %v2943_v38, %v6780_v52  ;;  %v2974_v48 = vmul.f32 %v7959_v27, %v7959_v27 }
 0x386   :  { %v2741_v36 = vpop.f32.mrf.mxu2  ;;  %v2717_v6 = vpop.f32.mrf.mxu0 }
 0x387   :  { %v7943_v60 = vadd.f32 %v2741_v36, %v2729_v45  ;;  %v3054_v18 = vmul.f32 0.5, %v3053_v1  ;;  %v2730_v53 = vpop.f32.mrf.mxu1  ;;  %v2994_v45 = vperm.slane %v7666_v9, 5 }
 0x389   :  { %v2880_v11 = vrot.slane %v7943_v60, 4  ;;  %v2911_v42 = vmul.f32 %v7943_v60, %v7943_v60  ;;  %v3055_v3 = vsub.f32 1.5, %v3054_v18 }
 0x38a   :  { %v2704_v17 = vpop.f32.mrf.mxu3 }
 0x38b   :  { %v3056_v51 = vmul.f32 %v6582_v13, %v3055_v3  ;;  %v2881_v61 = vadd.f32 %v2880_v11, %v7943_v60  ;;  %v2944_v29 = vrot.slane %v2911_v42, 4 }
 0x38d   :  { %v3060_v37 = vsel %vm3059_vm13, %v6582_v13, %v3056_v51  ;;  %v2882_v8 = vrot.slane %v2881_v61, 2  ;;  %v2945_v31 = vadd.f32 %v2944_v29, %v2911_v42  ;;  %v2982_v13 = vsub.f32 %v2966_v47, %v2974_v48 }
 0x38e   :  { %v2743_v57 = vpop.f32.mrf.mxu2  ;;  %v3111_v56 = vrot.slane %v3060_v37, 5  ;;  %vm3121_vm13 = vcmask 1046534  }
 0x38f   :  { %v2883_v54 = vadd.f32 %v2882_v8, %v2881_v61  ;;  %v2946_v16 = vrot.slane %v2945_v31, 2  ;;  %v3009_v1 = vmul.f32 %v2993_v33, %v2982_v13 }
 0x390   :  { %v3117_v49 = vsel %vm937_vm6, %v3110_v43, %v3111_v56 }
 0x391   :  { %v7956_v46 = vsel %vm939_vm7, %v7911_v25, %v3117_v49  ;;  %v2884_v0 = vrot.slane %v2883_v54, 1  ;;  %v2947_v24 = vadd.f32 %v2946_v16, %v2945_v31  ;;  %v3017_v28 = vadd.f32 1e-05, %v3009_v1 }
 0x393   :  { %v2885_v2 = vadd.f32 %v2884_v0, %v2883_v54  ;;  %v2948_v14 = vrot.slane %v2947_v24, 1  ;;  %6583 = vrsqrt.f32 %v3017_v28  ;;  %vm3067_vm0 = vweird.f32 %v3017_v28 }
 0x395   :  { %v7962_v32 = vmul.f32 %v2885_v2, %v6780_v52  ;;  %v2949_v25 = vadd.f32 %v2948_v14, %v2947_v24  ;;  %v2995_v2 = vperm.slane %v7666_v9, 6 }
 0x397   :  { %v2967_v4 = vmul.f32 %v2949_v25, %v6780_v52  ;;  %v2975_v59 = vmul.f32 %v7962_v32, %v7962_v32 }
 0x399   :  { %v2983_v44 = vsub.f32 %v2967_v4, %v2975_v59  ;;  %v6584_v57 = vpop.eup %6583 }
 0x39a   :  { %v3062_v8 = vmul.f32 %v6584_v57, %v3017_v28  ;;  %vm3068_vm14 = vweird.f32 %v6584_v57 }
 0x39b   :  { %v3010_v18 = vmul.f32 %v2994_v45, %v2983_v44  ;;  %v7991_v44 = vld [vmem:[%s9211_s13] sm:$0xff]  ;;  %vm3069_vm1 = vmor %vm3067_vm0, %vm3068_vm14  ;;  %vm3123_vm14 = vcmask 1045508  }
 0x39c   :  { %v3063_v5 = vmul.f32 %v6584_v57, %v3062_v8  ;;  %v3131_v45 = vperm.slane %v7991_v44, 0  ;;  %v3133_v1 = vperm.slane %v7991_v44, 2 }
 0x39d   :  { %v3018_v53 = vadd.f32 1e-05, %v3010_v18  ;;  %v3135_v18 = vperm.slane %v7991_v44, 4 }
 0x39e   :  { %v3064_v14 = vmul.f32 0.5, %v3063_v5  ;;  %v8008_v28 = vmul.f32 %v3133_v1, %v7901_v40  ;;  %v3308_v40 = vld [vmem:[%s9214_s16 + $0xa8] sm:$0xff] }
 0x39f   :  { %6585 = vrsqrt.f32 %v3018_v53  ;;  %vm3077_vm2 = vweird.f32 %v3018_v53 }
 0x3a0   :  { %v3065_v48 = vsub.f32 1.5, %v3064_v14 }
 0x3a2   :  { %v3066_v13 = vmul.f32 %v6584_v57, %v3065_v48 }
 0x3a5   :  { %v6586_v56 = vpop.eup %6585 }
 0x3a6   :  { %v3072_v31 = vmul.f32 %v6586_v56, %v3018_v53  ;;  %vm3078_vm15 = vweird.f32 %v6586_v56 }
 0x3a7   :  { %vm3079_vm3 = vmor %vm3077_vm2, %vm3078_vm15  ;;  %vm3125_vm15 = vcmask 1043456  }
 0x3a8   :  { %v3073_v23 = vmul.f32 %v6586_v56, %v3072_v31 }
 0x3aa   :  { %v3074_v38 = vmul.f32 0.5, %v3073_v23 }
 0x3ab   :  { %v2767_v36 = vpop.f32.mrf.mxu0 }
 0x3ac   :  { %v3075_v4 = vsub.f32 1.5, %v3074_v38 }
 0x3ad   :  { %v2780_v21 = vpop.f32.mrf.mxu1 }
 0x3ae   :  { %v3076_v33 = vmul.f32 %v6586_v56, %v3075_v4 }
 0x3b0   :  { %v2754_v19 = vpop.f32.mrf.mxu3 }
 0x3b1   :  { %v2768_v6 = vadd.f32 %v2767_v36, %v2754_v19  ;;  %v3132_v36 = vperm.slane %v7991_v44, 1  ;;  %v3136_v19 = vperm.slane %v7991_v44, 5 }
 0x3b3   :  { %v2781_v11 = vadd.f32 %v2780_v21, %v2768_v6  ;;  %v2769_v42 = vpop.f32.mrf.mxu0  ;;  %v3134_v21 = vperm.slane %v7991_v44, 3  ;;  %v3070_v6 = vsel %vm3069_vm1, %v6584_v57, %v3066_v13 }
 0x3b4   :  { %v2793_v17 = vpop.f32.mrf.mxu2  ;;  %v3080_v42 = vsel %vm3079_vm3, %v6586_v56, %v3076_v33 }
 0x3b5   :  { %v7972_v3 = vadd.f32 %v2793_v17, %v2781_v11  ;;  %v2782_v41 = vpop.f32.mrf.mxu1  ;;  %v8002_v17 = vmul.f32 %v3131_v45, %v7705_v12  ;;  %v8013_v53 = vmul.f32 %v3134_v21, %v7935_v39  ;;  %v3113_v12 = vrot.slane %v3080_v42, 3  ;;  %v3336_v39 = vld [vmem:[%s9214_s16 + $0x188] sm:$0xff]  ;;  %v3301_v21 = vld [vmem:[%s9214_s16 + $0x70] sm:$0xff] }
 0x3b6   :  { %v8005_v41 = vmul.f32 %v3132_v36, %v7794_v62  ;;  %v3721_v57 = vunpack.c.2.s8 %v3336_v39  ;;  %v3707_v4 = vunpack.c.0.s8 %v3336_v39  ;;  %v3714_v13 = vunpack.c.1.s8 %v3336_v39 }
 0x3b7   :  { %v2886_v51 = vrot.slane %v7972_v3, 4  ;;  %v2912_v55 = vmul.f32 %v7972_v3, %v7972_v3 }
 0x3b8   :  { %v2756_v7 = vpop.f32.mrf.mxu3  ;;  %v4610_v42 = vcvt.s32.f32 %v3714_v13 }
 0x3b9   :  { %v2887_v61 = vadd.f32 %v2886_v51, %v7972_v3  ;;  %v2950_v29 = vrot.slane %v2912_v55, 4  ;;  %v8016_v7 = vmul.f32 %v3135_v18, %v7959_v27  ;;  %v3364_v27 = vld [vmem:[%s9214_s16 + $0x268] sm:$0xff] }
 0x3ba   :  { %v3819_v33 = vunpack.c.0.s8 %v3364_v27  ;;  %v3826_v1 = vunpack.c.1.s8 %v3364_v27 }
 0x3bb   :  { %v2888_v37 = vrot.slane %v2887_v61, 2  ;;  %v2951_v43 = vadd.f32 %v2950_v29, %v2912_v55  ;;  %v3112_v55 = vrot.slane %v3070_v6, 4  ;;  %v3616_v29 = vunpack.c.3.s8 %v3308_v40 }
 0x3bc   :  { %v2795_v30 = vpop.f32.mrf.mxu2  ;;  %v4603_v6 = vcvt.s32.f32 %v3707_v4  ;;  %v3567_v4 = vunpack.c.0.s8 %v3301_v21 }
 0x3bd   :  { %v2889_v63 = vadd.f32 %v2888_v37, %v2887_v61  ;;  %v2952_v49 = vrot.slane %v2951_v43, 2  ;;  %v8019_v61 = vmul.f32 %v3136_v19, %v7962_v32  ;;  %v3609_v32 = vunpack.c.2.s8 %v3308_v40 }
 0x3be   :  { %v3728_v37 = vunpack.c.3.s8 %v3336_v39  ;;  %v3833_v30 = vunpack.c.2.s8 %v3364_v27  ;;  %v4512_v31 = vcvt.s32.f32 %v3616_v29  ;;  %v3137_v19 = vperm.slane %v7991_v44, 6 }
 0x3bf   :  { %v2890_v34 = vrot.slane %v2889_v63, 1  ;;  %v2953_v10 = vadd.f32 %v2952_v49, %v2951_v43  ;;  %v3392_v43 = vld [vmem:[%s9214_s16 + $0x348] sm:$0xff]  ;;  %v4505_v8 = vcvt.s32.f32 %v3609_v32  ;;  %v3357_v32 = vld [vmem:[%s9214_s16 + $0x230] sm:$0xff]  ;;  %v5401_v29 = vpack.c.bf16 %v4610_v42, %v4603_v6 }
 0x3c0   :  { %v3945_v49 = vunpack.c.2.s8 %v3392_v43  ;;  %v3952_v23 = vunpack.c.3.s8 %v3392_v43  ;;  %v4463_v6 = vcvt.s32.f32 %v3567_v4 }
 0x3c1   :  { %v2891_v54 = vadd.f32 %v2890_v34, %v2889_v63  ;;  %v2954_v16 = vrot.slane %v2953_v10, 1  ;;  %v3840_v63 = vunpack.c.3.s8 %v3364_v27  ;;  %v4617_v34 = vcvt.s32.f32 %v3721_v57 }
 0x3c2   :  { %v4722_v27 = vcvt.s32.f32 %v3826_v1  ;;  %v3931_v57 = vunpack.c.0.s8 %v3392_v43 }
 0x3c3   :  { %v7979_v0 = vmul.f32 %v2891_v54, %v6780_v52  ;;  %v2955_v24 = vadd.f32 %v2954_v16, %v2953_v10  ;;  %v4624_v10 = vcvt.s32.f32 %v3728_v37  ;;  %v4729_v16 = vcvt.s32.f32 %v3833_v30 }
 0x3c4   :  { %v4736_v5 = vcvt.s32.f32 %v3840_v63  ;;  %v3938_v37 = vunpack.c.1.s8 %v3392_v43  ;;  %v3588_v63 = vunpack.c.3.s8 %v3301_v21 }
 0x3c5   :  { %v2968_v15 = vmul.f32 %v2955_v24, %v6780_v52  ;;  %v2976_v26 = vmul.f32 %v7979_v0, %v7979_v0  ;;  %v5352_v24 = vpack.c.bf16 %v4512_v31, %v4505_v8 }
 0x3c6   :  { %v5464_v38 = vpack.c.bf16 %v4736_v5, %v4729_v16  ;;  %v4834_v31 = vcvt.s32.f32 %v3938_v37  ;;  %v4484_v16 = vcvt.s32.f32 %v3588_v63 }
 0x3c7   :  { %v2984_v25 = vsub.f32 %v2968_v15, %v2976_v26  ;;  %v5408_v15 = vpack.c.bf16 %v4624_v10, %v4617_v34  ;;  %v4841_v26 = vcvt.s32.f32 %v3945_v49  ;;  %5751 = vmatpush.bf16.msra.mxu3 %v5352_v24  ;;  %v3805_v10 = vunpack.c.2.s8 %v3357_v32 }
 0x3c8   :  { %5777 = vmatpush.bf16.msrb.mxu1 %v5464_v38 }
 0x3c9   :  { %v3011_v47 = vmul.f32 %v2995_v2, %v2984_v25  ;;  %v3595_v2 = vunpack.c.0.s8 %v3308_v40  ;;  %v4848_v25 = vcvt.s32.f32 %v3952_v23  ;;  %5764 = vmatpush.bf16.msrb.mxu0 %v5408_v15  ;;  %v3812_v23 = vunpack.c.3.s8 %v3357_v32 }
 0x3ca   :  { %v4701_v15 = vcvt.s32.f32 %v3805_v10  ;;  %v8077_v10 = vld [vmem:[%s9214_s16 + $0x1f8] sm:$0xff] }
 0x3cb   :  { %v7985_v59 = vadd.f32 1e-05, %v3011_v47  ;;  %v3602_v47 = vunpack.c.1.s8 %v3308_v40  ;;  %v4491_v48 = vcvt.s32.f32 %v3595_v2  ;;  %v5520_v45 = vpack.c.bf16 %v4848_v25, %v4841_v26 }
 0x3cc   :  { %v8057_v40 = vsel %vm3119_vm5, %v3112_v55, %v3113_v12  ;;  %v3385_v55 = vld [vmem:[%s9214_s16 + $0x310] sm:$0xff]  ;;  %v4827_v12 = vcvt.s32.f32 %v3931_v57  ;;  %v3777_v4 = vunpack.c.2.s8 %v8077_v10 }
 0x3cd   :  { %6587 = vrsqrt.f32 %v7985_v59  ;;  %vm3087_vm9 = vweird.f32 %v7985_v59  ;;  %v4498_v36 = vcvt.s32.f32 %v3602_v47  ;;  %5790 = vmatpush.bf16.msrb.mxu2 %v5520_v45  ;;  %5765 = vmatpush.bf16.msrb.mxu0 %v5401_v29  ;;  %v3917_v26 = vunpack.c.2.s8 %v3385_v55 }
 0x3ce   :  { %v5513_v24 = vpack.c.bf16 %v4834_v31, %v4827_v12  ;;  %v3924_v2 = vunpack.c.3.s8 %v3385_v55  ;;  %v3574_v45 = vunpack.c.1.s8 %v3301_v21  ;;  %v3910_v31 = vunpack.c.1.s8 %v3385_v55 }
 0x3cf   :  { %v5345_v39 = vpack.c.bf16 %v4498_v36, %v4491_v48  ;;  %v4708_v48 = vcvt.s32.f32 %v3812_v23  ;;  %v4813_v13 = vcvt.s32.f32 %v3917_v26  ;;  %v8083_v23 = vld [vmem:[%s9214_s16 + $0x2d8] sm:$0xff] }
 0x3d0   :  { %v4470_v57 = vcvt.s32.f32 %v3574_v45  ;;  %v3784_v45 = vunpack.c.3.s8 %v8077_v10 }
 0x3d1   :  { %5752 = vmatpush.bf16.msra.mxu3 %v5345_v39  ;;  %5791 = vmatpush.bf16.msrb.mxu2 %v5513_v24  ;;  %v5450_v1 = vpack.c.bf16 %v4708_v48, %v4701_v15  ;;  %v8068_v39 = vld [vmem:[%s9214_s16 + $0x38] sm:$0xff]  ;;  %v4806_v15 = vcvt.s32.f32 %v3910_v31 }
 0x3d2   :  { %v3546_v31 = vunpack.c.1.s8 %v8068_v39 }
 0x3d3   :  { %v7999_v11 = vpop.eup %6587 }
 0x3d4   :  { %v3082_v51 = vmul.f32 %v7999_v11, %v7985_v59  ;;  %vm3088_vm4 = vweird.f32 %v7999_v11  ;;  %v3329_v59 = vld [vmem:[%s9214_s16 + $0x150] sm:$0xff] }
 0x3d5   :  { %vm8044_vm10 = vmor %vm3087_vm9, %vm3088_vm4  ;;  %v3693_v49 = vunpack.c.2.s8 %v3329_v59  ;;  %v3700_v8 = vunpack.c.3.s8 %v3329_v59  ;;  %v3679_v36 = vunpack.c.0.s8 %v3329_v59  ;;  %v3686_v42 = vunpack.c.1.s8 %v3329_v59  ;;  %v3322_v59 = vld [vmem:[%s9214_s16 + $0x118] sm:$0xff] }
 0x3d6   :  { %v3083_v62 = vmul.f32 %v7999_v11, %v3082_v51  ;;  %v4715_v51 = vcvt.s32.f32 %v3819_v33  ;;  %v4820_v33 = vcvt.s32.f32 %v3924_v2  ;;  %v3665_v2 = vunpack.c.2.s8 %v3322_v59 }
 0x3d7   :  { %v4589_v5 = vcvt.s32.f32 %v3693_v49  ;;  %v4596_v43 = vcvt.s32.f32 %v3700_v8  ;;  %v4575_v37 = vcvt.s32.f32 %v3679_v36  ;;  %v3903_v49 = vunpack.c.0.s8 %v3385_v55 }
 0x3d8   :  { %v3084_v56 = vmul.f32 0.5, %v3083_v62  ;;  %v5457_v30 = vpack.c.bf16 %v4722_v27, %v4715_v51  ;;  %v3791_v51 = vunpack.c.0.s8 %v3357_v32  ;;  %v5506_v29 = vpack.c.bf16 %v4820_v33, %v4813_v13 }
 0x3d9   :  { %v5394_v47 = vpack.c.bf16 %v4596_v43, %v4589_v5  ;;  %v5331_v8 = vpack.c.bf16 %v4470_v57, %v4463_v6  ;;  %v4799_v5 = vcvt.s32.f32 %v3903_v49  ;;  %v3560_v43 = vunpack.c.3.s8 %v8068_v39 }
 0x3da   :  { %v3085_v54 = vsub.f32 1.5, %v3084_v56  ;;  %v3581_v56 = vunpack.c.2.s8 %v3301_v21  ;;  %5778 = vmatpush.bf16.msrb.mxu1 %v5457_v30  ;;  %v4582_v21 = vcvt.s32.f32 %v3686_v42  ;;  %v4687_v63 = vcvt.s32.f32 %v3791_v51  ;;  %5792 = vmatpush.bf16.msrb.mxu2 %v5506_v29 }
 0x3db   :  { %5766 = vmatpush.bf16.msrb.mxu0 %v5394_v47  ;;  %v3672_v48 = vunpack.c.3.s8 %v3322_v59  ;;  %v5499_v13 = vpack.c.bf16 %v4806_v15, %v4799_v5  ;;  %v4561_v33 = vcvt.s32.f32 %v3665_v2  ;;  %v3889_v36 = vunpack.c.2.s8 %v8083_v23 }
 0x3dc   :  { %v8036_v14 = vmul.f32 %v7999_v11, %v3085_v54  ;;  %v4477_v34 = vcvt.s32.f32 %v3581_v56  ;;  %v3798_v56 = vunpack.c.1.s8 %v3357_v32  ;;  %v4673_v29 = vcvt.s32.f32 %v3777_v4 }
 0x3dd   :  { %v4568_v51 = vcvt.s32.f32 %v3672_v48  ;;  %v4680_v57 = vcvt.s32.f32 %v3784_v45  ;;  %v3539_v49 = vunpack.c.0.s8 %v8068_v39  ;;  %v3658_v5 = vunpack.c.1.s8 %v3322_v59 }
 0x3de   :  { %v3090_v62 = vsel %vm8044_vm10, %v7999_v11, %v8036_v14  ;;  %v5338_v25 = vpack.c.bf16 %v4484_v16, %v4477_v34  ;;  %5779 = vmatpush.bf16.msrb.mxu1 %v5450_v1  ;;  %v4694_v12 = vcvt.s32.f32 %v3798_v56  ;;  %v3553_v34 = vunpack.c.2.s8 %v8068_v39  ;;  %5793 = vmatpush.bf16.msrb.mxu2 %v5499_v13  ;;  %v3287_v39 = vld [vmem:[%s9214_s16] sm:$0xff] }
 0x3df   :  { %v5387_v16 = vpack.c.bf16 %v4582_v21, %v4575_v37  ;;  %v3896_v37 = vunpack.c.3.s8 %v8083_v23  ;;  %v4785_v56 = vcvt.s32.f32 %v3889_v36  ;;  %v3770_v48 = vunpack.c.1.s8 %v8077_v10 }
 0x3e0   :  { %5753 = vmatpush.bf16.msra.mxu3 %v5338_v25  ;;  %v5443_v55 = vpack.c.bf16 %v4694_v12, %v4687_v63  ;;  %v4449_v26 = vcvt.s32.f32 %v3553_v34  ;;  %v5380_v63 = vpack.c.bf16 %v4568_v51, %v4561_v33  ;;  %v3651_v34 = vunpack.c.0.s8 %v3322_v59 }
 0x3e1   :  { %5767 = vmatpush.bf16.msrb.mxu0 %v5387_v16  ;;  %v4792_v12 = vcvt.s32.f32 %v3896_v37  ;;  %v4435_v16 = vcvt.s32.f32 %v3539_v49  ;;  %v3875_v59 = vunpack.c.0.s8 %v8083_v23  ;;  %v3882_v33 = vunpack.c.1.s8 %v8083_v23  ;;  %v3343_v37 = vld [vmem:[%s9214_s16 + $0x1c0] sm:$0xff] }
 0x3e2   :  { %5780 = vmatpush.bf16.msrb.mxu1 %v5443_v55  ;;  %v4442_v55 = vcvt.s32.f32 %v3546_v31  ;;  %v4547_v15 = vcvt.s32.f32 %v3651_v34  ;;  %v8107_v45 = vmul.f32 %v3137_v19, %v7979_v0  ;;  %v8117_v23 = vrot.slane %v3090_v62, 2 }
 0x3e3   :  { %v2819_v54 = vpop.f32.mrf.mxu0  ;;  %v4778_v51 = vcvt.s32.f32 %v3882_v33  ;;  %v3756_v31 = vunpack.c.3.s8 %v3343_v37  ;;  %vm6538_vm9 = vcmask 130048  }
 0x3e4   :  { %5754 = vmatpush.bf16.msra.mxu3 %v5331_v8  ;;  %v5436_v8 = vpack.c.bf16 %v4680_v57, %v4673_v29  ;;  %v5317_v4 = vpack.c.bf16 %v4442_v55, %v4435_v16  ;;  %v3315_v29 = vld [vmem:[%s9214_s16 + $0xe0] sm:$0xff]  ;;  %v3532_v57 = vunpack.c.3.s8 %v3287_v39  ;;  %v3138_v16 = vperm.slane %v7991_v44, 7 }
 0x3e5   :  { %v2832_v38 = vpop.f32.mrf.mxu1  ;;  %5768 = vmatpush.bf16.msrb.mxu0 %v5380_v63  ;;  %v3637_v49 = vunpack.c.2.s8 %v3315_v29  ;;  %v4652_v55 = vcvt.s32.f32 %v3756_v31 }
 0x3e6   :  { %5781 = vmatpush.bf16.msrb.mxu1 %v5436_v8  ;;  %v4428_v62 = vcvt.s32.f32 %v3532_v57  ;;  %v3644_v8 = vunpack.c.3.s8 %v3315_v29 }
 0x3e7   :  { %v2806_v27 = vpop.f32.mrf.mxu3 }
 0x3e8   :  { %v2820_v30 = vadd.f32 %v2819_v54, %v2806_v27 }
 0x3ea   :  { %v2833_v32 = vadd.f32 %v2832_v38, %v2820_v30  ;;  %v4456_v38 = vcvt.s32.f32 %v3560_v43 }
 0x3eb   :  { %v2821_v54 = vpop.f32.mrf.mxu0 }
 0x3ec   :  { %v2845_v24 = vpop.f32.mrf.mxu2  ;;  %v5324_v42 = vpack.c.bf16 %v4456_v38, %v4449_v26  ;;  %v3763_v26 = vunpack.c.0.s8 %v8077_v10  ;;  %v4554_v38 = vcvt.s32.f32 %v3658_v5  ;;  %v4666_v10 = vcvt.s32.f32 %v3770_v48 }
 0x3ed   :  { %v8085_v25 = vadd.f32 %v2845_v24, %v2833_v32  ;;  %v2834_v47 = vpop.f32.mrf.mxu1  ;;  %v5492_v24 = vpack.c.bf16 %v4792_v12, %v4785_v56  ;;  %v3371_v56 = vld [vmem:[%s9214_s16 + $0x2a0] sm:$0xff]  ;;  %v3749_v12 = vunpack.c.2.s8 %v3343_v37  ;;  %v4533_v5 = vcvt.s32.f32 %v3637_v49 }
 0x3ee   :  { %5755 = vmatpush.bf16.msra.mxu3 %v5324_v42  ;;  %v4659_v13 = vcvt.s32.f32 %v3763_v26  ;;  %v4771_v42 = vcvt.s32.f32 %v3875_v59  ;;  %v3861_v34 = vunpack.c.2.s8 %v3371_v56  ;;  %v3868_v26 = vunpack.c.3.s8 %v3371_v56 }
 0x3ef   :  { %v2892_v1 = vrot.slane %v8085_v25, 4  ;;  %v2913_v6 = vmul.f32 %v8085_v25, %v8085_v25  ;;  %v2808_v27 = vpop.f32.mrf.mxu3  ;;  %5794 = vmatpush.bf16.msrb.mxu2 %v5492_v24  ;;  %v4645_v24 = vcvt.s32.f32 %v3749_v12 }
 0x3f0   :  { %v3525_v27 = vunpack.c.2.s8 %v3287_v39  ;;  %v5429_v18 = vpack.c.bf16 %v4666_v10, %v4659_v13  ;;  %v3623_v13 = vunpack.c.0.s8 %v3315_v29  ;;  %v4764_v33 = vcvt.s32.f32 %v3868_v26 }
 0x3f1   :  { %v2893_v30 = vadd.f32 %v2892_v1, %v8085_v25  ;;  %v2956_v21 = vrot.slane %v2913_v6, 4  ;;  %v5422_v48 = vpack.c.bf16 %v4652_v55, %v4645_v24  ;;  %v3735_v10 = vunpack.c.0.s8 %v3343_v37 }
 0x3f2   :  { %5756 = vmatpush.bf16.msra.mxu3 %v5317_v4  ;;  %v4421_v63 = vcvt.s32.f32 %v3525_v27  ;;  %5782 = vmatpush.bf16.msrb.mxu1 %v5429_v18  ;;  %v3518_v4 = vunpack.c.1.s8 %v3287_v39 }
 0x3f3   :  { %v2894_v32 = vrot.slane %v2893_v30, 2  ;;  %v2957_v54 = vadd.f32 %v2956_v21, %v2913_v6  ;;  %v5373_v6 = vpack.c.bf16 %v4554_v38, %v4547_v15  ;;  %v5485_v21 = vpack.c.bf16 %v4778_v51, %v4771_v42 }
 0x3f4   :  { %v2847_v43 = vpop.f32.mrf.mxu2  ;;  %v3742_v42 = vunpack.c.1.s8 %v3343_v37  ;;  %v8140_v37 = vld [vmem:[%s9214_s16 + $0x5e8] sm:$0xff] }
 0x3f5   :  { %v2895_v2 = vadd.f32 %v2894_v32, %v2893_v30  ;;  %v2958_v47 = vrot.slane %v2957_v54, 2  ;;  %5769 = vmatpush.bf16.msrb.mxu0 %v5373_v6  ;;  %v2996_v30 = vperm.slane %v7666_v9, 7  ;;  %5795 = vmatpush.bf16.msrb.mxu2 %v5485_v21  ;;  %v5310_v9 = vpack.c.bf16 %v4428_v62, %v4421_v63 }
 0x3f6   :  { %v4540_v43 = vcvt.s32.f32 %v3644_v8  ;;  %5783 = vmatpush.bf16.msrb.mxu1 %v5422_v48  ;;  %v4519_v6 = vcvt.s32.f32 %v3623_v13  ;;  %v4638_v18 = vcvt.s32.f32 %v3742_v42  ;;  %v3854_v21 = vunpack.c.1.s8 %v3371_v56 }
 0x3f7   :  { %v2896_v36 = vrot.slane %v2895_v2, 1  ;;  %v2959_v1 = vadd.f32 %v2958_v47, %v2957_v54  ;;  %5757 = vmatpush.bf16.msra.mxu3 %v5310_v9  ;;  %v3511_v47 = vunpack.c.0.s8 %v3287_v39  ;;  %v3420_v39 = vld [vmem:[%s9214_s16 + $0x428] sm:$0xff] }
 0x3f8   :  { %v5366_v38 = vpack.c.bf16 %v4540_v43, %v4533_v5  ;;  %v4750_v8 = vcvt.s32.f32 %v3854_v21  ;;  %v4057_v12 = vunpack.c.2.s8 %v3420_v39  ;;  %v4064_v31 = vunpack.c.3.s8 %v3420_v39  ;;  %v3441_v21 = vld [vmem:[%s9214_s16 + $0x4d0] sm:$0xff] }
 0x3f9   :  { %v2897_v0 = vadd.f32 %v2896_v36, %v2895_v2  ;;  %v2960_v19 = vrot.slane %v2959_v1, 1  ;;  %v4757_v2 = vcvt.s32.f32 %v3861_v34  ;;  %v3630_v36 = vunpack.c.1.s8 %v3315_v29  ;;  %v3448_v29 = vld [vmem:[%s9214_s16 + $0x508] sm:$0xff] }
 0x3fa   :  { %5770 = vmatpush.bf16.msrb.mxu0 %v5366_v38  ;;  %v4169_v34 = vunpack.c.2.s8 %v3448_v29  ;;  %v4953_v9 = vcvt.s32.f32 %v4057_v12  ;;  %v4960_v5 = vcvt.s32.f32 %v4064_v31  ;;  %v4043_v48 = vunpack.c.0.s8 %v3420_v39 }
 0x3fb   :  { %v2905_v11 = vmul.f32 %v2897_v0, %v6780_v52  ;;  %v2961_v14 = vadd.f32 %v2960_v19, %v2959_v1  ;;  %v4414_v1 = vcvt.s32.f32 %v3518_v4  ;;  %v5478_v27 = vpack.c.bf16 %v4764_v33, %v4757_v2 }
 0x3fc   :  { %v4526_v0 = vcvt.s32.f32 %v3630_v36  ;;  %v3847_v19 = vunpack.c.0.s8 %v3371_v56  ;;  %v8148_v56 = vld [vmem:[%s9214_s16 + $0x6c8] sm:$0xff]  ;;  %v5065_v24 = vcvt.s32.f32 %v4169_v34  ;;  %v5576_v2 = vpack.c.bf16 %v4960_v5, %v4953_v9  ;;  %v8177_v9 = vld [vmem:[%s9214_s16 + $0x690] sm:$0xff] }
 0x3fd   :  { %v2969_v32 = vmul.f32 %v2961_v14, %v6780_v52  ;;  %v2977_v54 = vmul.f32 %v2905_v11, %v2905_v11  ;;  %v4407_v52 = vcvt.s32.f32 %v3511_v47  ;;  %v8143_v63 = vmul.f32 %v3138_v16, %v2905_v11  ;;  %5796 = vmatpush.bf16.msrb.mxu2 %v5478_v27 }
 0x3fe   :  { %v5359_v14 = vpack.c.bf16 %v4526_v0, %v4519_v6  ;;  %v4743_v62 = vcvt.s32.f32 %v3847_v19  ;;  %v4288_v11 = vunpack.c.3.s8 %v8140_v37  ;;  %v4393_v43 = vunpack.c.2.s8 %v8148_v56  ;;  %v3413_v19 = vld [vmem:[%s9214_s16 + $0x3f0] sm:$0xff] }
 0x3ff   :  { %v2985_v15 = vsub.f32 %v2969_v32, %v2977_v54  ;;  %v5303_v57 = vpack.c.bf16 %v4414_v1, %v4407_v52  ;;  %v4176_v32 = vunpack.c.3.s8 %v3448_v29  ;;  %v4281_v54 = vunpack.c.2.s8 %v8140_v37 }
 0x400   :  { %5771 = vmatpush.bf16.msrb.mxu0 %v5359_v14  ;;  %v5471_v16 = vpack.c.bf16 %v4750_v8, %v4743_v62  ;;  %v5184_v26 = vcvt.s32.f32 %v4288_v11  ;;  %v4400_v47 = vunpack.c.3.s8 %v8148_v56  ;;  %v5289_v38 = vcvt.s32.f32 %v4393_v43 }
 0x401   :  { %v3012_v59 = vmul.f32 %v2996_v30, %v2985_v15  ;;  %v4631_v30 = vcvt.s32.f32 %v3735_v10  ;;  %5758 = vmatpush.bf16.msra.mxu3 %v5303_v57  ;;  %v5072_v55 = vcvt.s32.f32 %v4176_v32  ;;  %v5177_v15 = vcvt.s32.f32 %v4281_v54 }
 0x402   :  { %5797 = vmatpush.bf16.msrb.mxu2 %v5471_v16  ;;  %v4050_v33 = vunpack.c.1.s8 %v3420_v39  ;;  %v4155_v52 = vunpack.c.0.s8 %v3448_v29  ;;  %v5296_v1 = vcvt.s32.f32 %v4400_v47  ;;  %v4939_v6 = vcvt.s32.f32 %v4043_v48 }
 0x403   :  { %v8129_v51 = vadd.f32 1e-05, %v3012_v59  ;;  %v5415_v49 = vpack.c.bf16 %v4638_v18, %v4631_v30  ;;  %v5632_v13 = vpack.c.bf16 %v5072_v55, %v5065_v24  ;;  %v5688_v59 = vpack.c.bf16 %v5184_v26, %v5177_v15 }
 0x404   :  { %v4946_v10 = vcvt.s32.f32 %v4050_v33  ;;  %v4162_v42 = vunpack.c.1.s8 %v3448_v29  ;;  %v5051_v27 = vcvt.s32.f32 %v4155_v52  ;;  %v4267_v0 = vunpack.c.0.s8 %v8140_v37 }
 0x405   :  { %6589 = vrsqrt.f32 %v8129_v51  ;;  %5784 = vmatpush.bf16.msrb.mxu1 %v5415_v49  ;;  %vm3097_vm11 = vweird.f32 %v8129_v51  ;;  %5803 = vmatpush.bf16.msrb.mxu3 %v5576_v2  ;;  %v5744_v57 = vpack.c.bf16 %v5296_v1, %v5289_v38  ;;  %v4274_v30 = vunpack.c.1.s8 %v8140_v37  ;;  %v3469_v37 = vld [vmem:[%s9214_s16 + $0x5b0] sm:$0xff] }
 0x406   :  { %5816 = vmatpush.bf16.msra.mxu0 %v5632_v13  ;;  %v4379_v18 = vunpack.c.0.s8 %v8148_v56  ;;  %v5569_v29 = vpack.c.bf16 %v4946_v10, %v4939_v6  ;;  %v5058_v14 = vcvt.s32.f32 %v4162_v42  ;;  %v5163_v62 = vcvt.s32.f32 %v4267_v0 }
 0x407   :  { %v4386_v49 = vunpack.c.1.s8 %v8148_v56  ;;  %5842 = vmatpush.bf16.msra.mxu2 %v5744_v57  ;;  %v5170_v12 = vcvt.s32.f32 %v4274_v30  ;;  %v4029_v34 = vunpack.c.2.s8 %v3413_v19  ;;  %v4036_v11 = vunpack.c.3.s8 %v3413_v19 }
 0x408   :  { %v5275_v31 = vcvt.s32.f32 %v4379_v18  ;;  %v5625_v32 = vpack.c.bf16 %v5058_v14, %v5051_v27  ;;  %v4141_v16 = vunpack.c.2.s8 %v3441_v21  ;;  %v4148_v24 = vunpack.c.3.s8 %v3441_v21  ;;  %v2986_v14 = vld [vmem:[%s9212_s14] sm:$0xff] }
 0x409   :  { %5829 = vmatpush.bf16.msra.mxu1 %v5688_v59  ;;  %5804 = vmatpush.bf16.msrb.mxu3 %v5569_v29  ;;  %v5282_v54 = vcvt.s32.f32 %v4386_v49  ;;  %v5681_v5 = vpack.c.bf16 %v5170_v12, %v5163_v62  ;;  %v4925_v43 = vcvt.s32.f32 %v4029_v34  ;;  %v4932_v15 = vcvt.s32.f32 %v4036_v11 }
 0x40a   :  { %5817 = vmatpush.bf16.msra.mxu0 %v5625_v32  ;;  %v5037_v26 = vcvt.s32.f32 %v4141_v16  ;;  %v4253_v2 = vunpack.c.2.s8 %v3469_v37  ;;  %v5044_v38 = vcvt.s32.f32 %v4148_v24  ;;  %v4260_v48 = vunpack.c.3.s8 %v3469_v37  ;;  %v8202_v32 = vld [vmem:[%s9214_s16 + $0x498] sm:$0xff] }
 0x40b   :  { %v8154_v4 = vpop.eup %6589  ;;  %v5737_v55 = vpack.c.bf16 %v5282_v54, %v5275_v31  ;;  %v4365_v13 = vunpack.c.2.s8 %v8177_v9  ;;  %v5562_v59 = vpack.c.bf16 %v4932_v15, %v4925_v43  ;;  %v4372_v52 = vunpack.c.3.s8 %v8177_v9 }
 0x40c   :  { %v3092_v36 = vmul.f32 %v8154_v4, %v8129_v51  ;;  %vm3098_vm12 = vweird.f32 %v8154_v4  ;;  %v5149_v33 = vcvt.s32.f32 %v4253_v2  ;;  %v5618_v6 = vpack.c.bf16 %v5044_v38, %v5037_v26 }
 0x40d   :  { %5830 = vmatpush.bf16.msra.mxu1 %v5681_v5  ;;  %vm3099_vm0 = vmor %vm3097_vm11, %vm3098_vm12  ;;  %5843 = vmatpush.bf16.msra.mxu2 %v5737_v55  ;;  %v5156_v10 = vcvt.s32.f32 %v4260_v48  ;;  %v5261_v42 = vcvt.s32.f32 %v4365_v13  ;;  %v5268_v0 = vcvt.s32.f32 %v4372_v52  ;;  %v4127_v51 = vunpack.c.0.s8 %v3441_v21 }
 0x40e   :  { %v3093_v39 = vmul.f32 %v8154_v4, %v3092_v36  ;;  %v4015_v36 = vunpack.c.0.s8 %v3413_v19  ;;  %5805 = vmatpush.bf16.msrb.mxu3 %v5562_v59  ;;  %5818 = vmatpush.bf16.msra.mxu0 %v5618_v6  ;;  %v4134_v18 = vunpack.c.1.s8 %v3441_v21  ;;  %v4239_v29 = vunpack.c.0.s8 %v3469_v37 }
 0x40f   :  { %v5674_v30 = vpack.c.bf16 %v5156_v10, %v5149_v33  ;;  %v5730_v62 = vpack.c.bf16 %v5268_v0, %v5261_v42  ;;  %v5023_v21 = vcvt.s32.f32 %v4127_v51  ;;  %v4351_v11 = vunpack.c.0.s8 %v8177_v9 }
 0x410   :  { %v3094_v8 = vmul.f32 0.5, %v3093_v39  ;;  %v4022_v39 = vunpack.c.1.s8 %v3413_v19  ;;  %v4911_v57 = vcvt.s32.f32 %v4015_v36  ;;  %v8195_v19 = vld [vmem:[%s9214_s16 + $0x3b8] sm:$0xff]  ;;  %v5030_v31 = vcvt.s32.f32 %v4134_v18 }
 0x411   :  { %5831 = vmatpush.bf16.msra.mxu1 %v5674_v30  ;;  %v5135_v34 = vcvt.s32.f32 %v4239_v29  ;;  %5844 = vmatpush.bf16.msra.mxu2 %v5730_v62  ;;  %v4001_v5 = vunpack.c.2.s8 %v8195_v19  ;;  %v5247_v24 = vcvt.s32.f32 %v4351_v11  ;;  %v4008_v55 = vunpack.c.3.s8 %v8195_v19 }
 0x412   :  { %v3095_v56 = vsub.f32 1.5, %v3094_v8  ;;  %v4918_v49 = vcvt.s32.f32 %v4022_v39  ;;  %v4246_v8 = vunpack.c.1.s8 %v3469_v37  ;;  %v4113_v15 = vunpack.c.2.s8 %v8202_v32 }
 0x414   :  { %v3096_v47 = vmul.f32 %v8154_v4, %v3095_v56  ;;  %v5555_v37 = vpack.c.bf16 %v4918_v49, %v4911_v57  ;;  %v5142_v54 = vcvt.s32.f32 %v4246_v8  ;;  %v5611_v56 = vpack.c.bf16 %v5030_v31, %v5023_v21 }
 0x415   :  { %v4120_v31 = vunpack.c.3.s8 %v8202_v32 }
 0x416   :  { %v3100_v1 = vsel %vm3099_vm0, %v8154_v4, %v3096_v47  ;;  %5806 = vmatpush.bf16.msrb.mxu3 %v5555_v37  ;;  %v5667_v43 = vpack.c.bf16 %v5142_v54, %v5135_v34  ;;  %5819 = vmatpush.bf16.msra.mxu0 %v5611_v56  ;;  %v5009_v34 = vcvt.s32.f32 %v4113_v15 }
 0x417   :  { %v3115_v27 = vrot.slane %v3100_v1, 1  ;;  %v5016_v56 = vcvt.s32.f32 %v4120_v31 }
 0x418   :  { %5832 = vmatpush.bf16.msra.mxu1 %v5667_v43  ;;  %v3987_v43 = vunpack.c.0.s8 %v8195_v19 }
 0x419   :  { %v3122_v4 = vsel %vm3121_vm13, %v8117_v23, %v3115_v27  ;;  %v5604_v15 = vpack.c.bf16 %v5016_v56, %v5009_v34 }
 0x41a   :  { %v3124_v12 = vsel %vm3123_vm14, %v8057_v40, %v3122_v4  ;;  %v4358_v40 = vunpack.c.1.s8 %v8177_v9  ;;  %v3490_v4 = vld [vmem:[%s9214_s16 + $0x658] sm:$0xff] }
 0x41b   :  { %v3126_v23 = vsel %vm3125_vm15, %v7956_v46, %v3124_v12  ;;  %v4904_v12 = vcvt.s32.f32 %v4008_v55  ;;  %5820 = vmatpush.bf16.msra.mxu0 %v5604_v15 }
 0x41c   :  { %v3128_v16 = vmul.f32 %v3126_v23, %v2986_v14  ;;  %v5254_v51 = vcvt.s32.f32 %v4358_v40  ;;  %v4897_v14 = vcvt.s32.f32 %v4001_v5  ;;  %v4344_v5 = vunpack.c.3.s8 %v3490_v4 }
 0x41e   :  { %v3156_v26 = vperm.slane %v3128_v16, 0  ;;  %v3157_v46 = vperm.slane %v3128_v16, 1  ;;  %v3158_v2 = vperm.slane %v3128_v16, 2  ;;  %v3159_v47 = vperm.slane %v3128_v16, 3 }
 0x41f   :  { %v3160_v38 = vperm.slane %v3128_v16, 4  ;;  %v3161_v48 = vperm.slane %v3128_v16, 5  ;;  %v3162_v13 = vperm.slane %v3128_v16, 6  ;;  %v3163_v59 = vperm.slane %v3128_v16, 7 }
 0x420   :  { %v3172_v9 = vmul.f32 %v3156_v26, %v8002_v17  ;;  %v3173_v33 = vmul.f32 %v3157_v46, %v8005_v41  ;;  %v3174_v52 = vmul.f32 %v3158_v2, %v8008_v28  ;;  %v3175_v36 = vmul.f32 %v3159_v47, %v8013_v53 }
 0x421   :  { %v3176_v1 = vmul.f32 %v3160_v38, %v8016_v7  ;;  %v3177_v6 = vmul.f32 %v3161_v48, %v8019_v61  ;;  %v3178_v10 = vmul.f32 %v3162_v13, %v8107_v45  ;;  %v3179_v42 = vmul.f32 %v3163_v59, %v8143_v63  ;;  %v3462_v45 = vld [vmem:[%s9214_s16 + $0x578] sm:$0xff] }
 0x422   :  { %v3188_v27 = vrot.slane %v3173_v33, 7  ;;  %v3189_v0 = vrot.slane %v3174_v52, 6  ;;  %v3190_v39 = vrot.slane %v3175_v36, 5  ;;  %v8220_v57 = vmul.f32 %v7991_v44, %v3128_v16  ;;  %v3129_v44 = vld [vmem:[%s9213_s15] sm:$0xff]  ;;  %s6547_s15 = sshll.u32 %s9217_s19, 4  ;;  %s6548_s15 = int_to_ptr.hbm [resolvable:$true] %s6547_s15 }
 0x423   :  { %v3191_v17 = vrot.slane %v3176_v1, 4  ;;  %v3192_v41 = vrot.slane %v3177_v6, 3  ;;  %v3193_v30 = vrot.slane %v3178_v10, 2  ;;  %v3194_v28 = vrot.slane %v3179_v42, 1  ;;  %v3399_v1 = vld [vmem:[%s9214_s16 + $0x380] sm:$0xff] }
 0x424   :  { %v3195_v53 = vsel %vm297_vm8, %v3172_v9, %v3188_v27  ;;  %v3196_v7 = vsel %vm937_vm6, %v3189_v0, %v3190_v39  ;;  %v3213_v61 = vperm.slane %v8220_v57, 7  ;;  %v5723_v8 = vpack.c.bf16 %v5254_v51, %v5247_v24 }
 0x425   :  { %v3197_v63 = vsel %vm939_vm7, %v3195_v53, %v3196_v7  ;;  %v3198_v18 = vsel %vm3119_vm5, %v3191_v17, %v3192_v41  ;;  %v3199_v29 = vsel %vm3121_vm13, %v3193_v30, %v3194_v28  ;;  %v4225_v23 = vunpack.c.2.s8 %v3462_v45  ;;  %v3455_v53 = vld [vmem:[%s9214_s16 + $0x540] sm:$0xff] }
 0x426   :  { %v3200_v62 = vsel %vm3123_vm14, %v3198_v18, %v3199_v29  ;;  %v3229_v49 = vmul.f32 %v3213_v61, %v8085_v25  ;;  %5845 = vmatpush.bf16.msra.mxu2 %v5723_v8  ;;  %v5548_v54 = vpack.c.bf16 %v4904_v12, %v4897_v14  ;;  %v4232_v11 = vunpack.c.3.s8 %v3462_v45  ;;  %v3483_v7 = vld [vmem:[%s9214_s16 + $0x620] sm:$0xff] }
 0x427   :  { %v3201_v21 = vsel %vm3125_vm15, %v3197_v63, %v3200_v62  ;;  %v4337_v16 = vunpack.c.2.s8 %v3490_v4  ;;  %v5121_v40 = vcvt.s32.f32 %v4225_v23  ;;  %v3994_v26 = vunpack.c.1.s8 %v8195_v19 }
 0x428   :  { %v8241_v37 = vsub.f32 %v3129_v44, %v3201_v21  ;;  %5807 = vmatpush.bf16.msrb.mxu3 %v5548_v54  ;;  %v5128_v24 = vcvt.s32.f32 %v4232_v11  ;;  %v5240_v46 = vcvt.s32.f32 %v4344_v5  ;;  %v4883_v2 = vcvt.s32.f32 %v3987_v43 }
 0x429   :  { %v5233_v55 = vcvt.s32.f32 %v4337_v16  ;;  %v4099_v47 = vunpack.c.0.s8 %v8202_v32  ;;  %v4890_v13 = vcvt.s32.f32 %v3994_v26  ;;  %v4106_v59 = vunpack.c.1.s8 %v8202_v32  ;;  %v3427_v32 = vld [vmem:[%s9214_s16 + $0x460] sm:$0xff] }
 0x42a   :  { %v3238_v25 = vperm.slane %v8241_v37, 7  ;;  %v5660_v48 = vpack.c.bf16 %v5128_v24, %v5121_v40  ;;  %v4211_v52 = vunpack.c.0.s8 %v3462_v45  ;;  %v4218_v36 = vunpack.c.1.s8 %v3462_v45 }
 0x42b   :  { %v5716_v9 = vpack.c.bf16 %v5240_v46, %v5233_v55  ;;  %v4995_v33 = vcvt.s32.f32 %v4099_v47  ;;  %v5541_v6 = vpack.c.bf16 %v4890_v13, %v4883_v2  ;;  %v5002_v10 = vcvt.s32.f32 %v4106_v59 }
 0x42c   :  { %v3254_v38 = vadd.f32 %v3238_v25, %v3229_v49  ;;  %5833 = vmatpush.bf16.msra.mxu1 %v5660_v48  ;;  %v5107_v42 = vcvt.s32.f32 %v4211_v52  ;;  %v5114_v27 = vcvt.s32.f32 %v4218_v36  ;;  %v4323_v0 = vunpack.c.0.s8 %v3490_v4 }
 0x42d   :  { %5846 = vmatpush.bf16.msra.mxu2 %v5716_v9  ;;  %v4330_v39 = vunpack.c.1.s8 %v3490_v4  ;;  %5808 = vmatpush.bf16.msrb.mxu3 %v5541_v6  ;;  %v5597_v41 = vpack.c.bf16 %v5002_v10, %v4995_v33  ;;  %v3973_v30 = vunpack.c.2.s8 %v3399_v1  ;;  %v3980_v28 = vunpack.c.3.s8 %v3399_v1 }
 0x42e   :  { %vm3262_vm8 = vcmp.gt.f32.partialorder %v3254_v38, 0.0  ;;  %v3270_v19 = vmul.f32 0.2, %v3254_v38  ;;  %v5653_v51 = vpack.c.bf16 %v5114_v27, %v5107_v42  ;;  %v5219_v45 = vcvt.s32.f32 %v4323_v0  ;;  %v8268_v42 = vld [vmem:[%s9214_s16 + $0xb0] sm:$0xff] }
 0x42f   :  { %v5226_v44 = vcvt.s32.f32 %v4330_v39  ;;  %5821 = vmatpush.bf16.msra.mxu0 %v5597_v41  ;;  %v4869_v63 = vcvt.s32.f32 %v3973_v30  ;;  %v4876_v18 = vcvt.s32.f32 %v3980_v28  ;;  %v4085_v29 = vunpack.c.2.s8 %v3427_v32 }
 0x430   :  { %v3278_v17 = vsel %vm3262_vm8, %v3254_v38, %v3270_v19  ;;  %v4092_v14 = vunpack.c.3.s8 %v3427_v32  ;;  %5834 = vmatpush.bf16.msra.mxu1 %v5653_v51  ;;  %v4197_v62 = vunpack.c.2.s8 %v3455_v53  ;;  %v4204_v49 = vunpack.c.3.s8 %v3455_v53 }
 0x431   :  { %v8260_v61 = vpack.c.bf16 %v3278_v17, %v3278_v17  ;;  %v5709_v4 = vpack.c.bf16 %v5226_v44, %v5219_v45  ;;  %v4309_v8 = vunpack.c.2.s8 %v3483_v7  ;;  %v5534_v12 = vpack.c.bf16 %v4876_v18, %v4869_v63  ;;  %v8276_v17 = vld [vmem:[%s9214_s16 + $0x190] sm:$0xff] }
 0x432   :  { %v4981_v21 = vcvt.s32.f32 %v4085_v29  ;;  %v4988_v31 = vcvt.s32.f32 %v4092_v14  ;;  %v4316_v34 = vunpack.c.3.s8 %v3483_v7  ;;  %v5093_v23 = vcvt.s32.f32 %v4197_v62 }
 0x433   :  { %5847 = vmatpush.bf16.msra.mxu2 %v5709_v4  ;;  %v5100_v54 = vcvt.s32.f32 %v4204_v49  ;;  %v5205_v11 = vcvt.s32.f32 %v4309_v8  ;;  %v3959_v16 = vunpack.c.0.s8 %v3399_v1  ;;  %5809 = vmatpush.bf16.msrb.mxu3 %v5534_v12  ;;  %v3966_v5 = vunpack.c.1.s8 %v3399_v1 }
 0x434   :  { %v5590_v56 = vpack.c.bf16 %v4988_v31, %v4981_v21  ;;  %v5212_v40 = vcvt.s32.f32 %v4316_v34  ;;  %v4071_v43 = vunpack.c.0.s8 %v3427_v32  ;;  %v4078_v55 = vunpack.c.1.s8 %v3427_v32 }
 0x435   :  { %v5646_v25 = vpack.c.bf16 %v5100_v54, %v5093_v23  ;;  %v4855_v24 = vcvt.s32.f32 %v3959_v16  ;;  %v4183_v26 = vunpack.c.0.s8 %v3455_v53  ;;  %v4862_v46 = vcvt.s32.f32 %v3966_v5  ;;  %v3393_v54 = vld [vmem:[%s9214_s16 + $0x350] sm:$0xff] }
 0x436   :  { %5822 = vmatpush.bf16.msra.mxu0 %v5590_v56  ;;  %v5702_v15 = vpack.c.bf16 %v5212_v40, %v5205_v11  ;;  %v4967_v2 = vcvt.s32.f32 %v4071_v43  ;;  %v4190_v47 = vunpack.c.1.s8 %v3455_v53  ;;  %v4974_v38 = vcvt.s32.f32 %v4078_v55 }
 0x437   :  { %5835 = vmatpush.bf16.msra.mxu1 %v5646_v25  ;;  %v5079_v48 = vcvt.s32.f32 %v4183_v26  ;;  %v4295_v13 = vunpack.c.0.s8 %v3483_v7  ;;  %v4302_v59 = vunpack.c.1.s8 %v3483_v7  ;;  %v5527_v9 = vpack.c.bf16 %v4862_v46, %v4855_v24 }
 0x438   :  { %5848 = vmatpush.bf16.msra.mxu2 %v5702_v15  ;;  %v5086_v33 = vcvt.s32.f32 %v4190_v47  ;;  %v3206_v52 = vperm.slane %v8220_v57, 0  ;;  %v3231_v36 = vperm.slane %v8241_v37, 0  ;;  %v5583_v1 = vpack.c.bf16 %v4974_v38, %v4967_v2 }
 0x439   :  { %v5191_v19 = vcvt.s32.f32 %v4295_v13  ;;  %v5198_v6 = vcvt.s32.f32 %v4302_v59  ;;  %v3207_v10 = vperm.slane %v8220_v57, 1  ;;  %5810 = vmatpush.bf16.msrb.mxu3 %v5527_v9  ;;  %v3232_v39 = vperm.slane %v8241_v37, 1 }
 0x43a   :  { %v5639_v27 = vpack.c.bf16 %v5086_v33, %v5079_v48  ;;  %v3222_v0 = vmul.f32 %v3206_v52, %v7675_v50  ;;  %v3208_v32 = vperm.slane %v8220_v57, 2  ;;  %5823 = vmatpush.bf16.msra.mxu0 %v5583_v1  ;;  %v3233_v28 = vperm.slane %v8241_v37, 2 }
 0x43b   :  { %v5695_v41 = vpack.c.bf16 %v5198_v6, %v5191_v19  ;;  %v3223_v30 = vmul.f32 %v3207_v10, %v7757_v58  ;;  %v3209_v53 = vperm.slane %v8220_v57, 3  ;;  %v3234_v51 = vperm.slane %v8241_v37, 3  ;;  %v3302_v6 = vld [vmem:[%s9214_s16 + $0x78] sm:$0xff] }
 0x43c   :  { %5836 = vmatpush.bf16.msra.mxu1 %v5639_v27  ;;  %v3247_v7 = vadd.f32 %v3231_v36, %v3222_v0  ;;  %v3224_v50 = vmul.f32 %v3208_v32, %v7846_v35  ;;  %v3610_v45 = vunpack.c.2.s8 %v8268_v42  ;;  %v3617_v18 = vunpack.c.3.s8 %v8268_v42 }
 0x43d   :  { %5849 = vmatpush.bf16.msra.mxu2 %v5695_v41  ;;  %v3248_v44 = vadd.f32 %v3232_v39, %v3223_v30  ;;  %v3225_v63 = vmul.f32 %v3209_v53, %v7925_v22  ;;  %v3722_v58 = vunpack.c.2.s8 %v8276_v17  ;;  %v3729_v21 = vunpack.c.3.s8 %v8276_v17  ;;  %v3365_v22 = vld [vmem:[%s9214_s16 + $0x270] sm:$0xff]  ;;  %v3330_v39 = vld [vmem:[%s9214_s16 + $0x158] sm:$0xff] }
 0x43e   :  { %vm3255_vm6 = vcmp.gt.f32.partialorder %v3247_v7, 0.0  ;;  %v3263_v29 = vmul.f32 0.2, %v3247_v7  ;;  %v3249_v14 = vadd.f32 %v3233_v28, %v3224_v50  ;;  %v4506_v4 = vcvt.s32.f32 %v3610_v45 }
 0x43f   :  { %vm3256_vm7 = vcmp.gt.f32.partialorder %v3248_v44, 0.0  ;;  %v3264_v62 = vmul.f32 0.2, %v3248_v44  ;;  %v3250_v49 = vadd.f32 %v3234_v51, %v3225_v63  ;;  %v4513_v35 = vcvt.s32.f32 %v3617_v18  ;;  %v3358_v51 = vld [vmem:[%s9214_s16 + $0x238] sm:$0xff] }
 0x440   :  { %v3271_v8 = vsel %vm3255_vm6, %v3247_v7, %v3263_v29  ;;  %vm3257_vm1 = vcmp.gt.f32.partialorder %v3249_v14, 0.0  ;;  %v3265_v12 = vmul.f32 0.2, %v3249_v14  ;;  %v4618_v40 = vcvt.s32.f32 %v3722_v58  ;;  %v3386_v58 = vld [vmem:[%s9214_s16 + $0x318] sm:$0xff] }
 0x441   :  { %v8291_v31 = vpack.c.bf16 %v3271_v8, %v3271_v8  ;;  %v3272_v34 = vsel %vm3256_vm7, %v3248_v44, %v3264_v62  ;;  %vm3258_vm2 = vcmp.gt.f32.partialorder %v3250_v49, 0.0  ;;  %v3266_v23 = vmul.f32 0.2, %v3250_v49 }
 0x442   :  { %v8296_v11 = vpack.c.bf16 %v3272_v34, %v3272_v34  ;;  %v3273_v16 = vsel %vm3257_vm1, %v3249_v14, %v3265_v12  ;;  %v5353_v56 = vpack.c.bf16 %v4513_v35, %v4506_v4  ;;  %v4625_v25 = vcvt.s32.f32 %v3729_v21 }
 0x443   :  { %5759 = vmatmul.bf16.vlgmr.msra.gmra.mxu3 %v8291_v31  ;;  %v8299_v5 = vpack.c.bf16 %v3273_v16, %v3273_v16  ;;  %v3274_v43 = vsel %vm3258_vm2, %v3250_v49, %v3266_v23  ;;  %v3834_v24 = vunpack.c.2.s8 %v3365_v22  ;;  %v3841_v26 = vunpack.c.3.s8 %v3365_v22 }
 0x444   :  { %5772 = vmatmul.bf16.vlgmr.msrb.gmra.mxu0 %v8296_v11  ;;  %v8302_v55 = vpack.c.bf16 %v3274_v43, %v3274_v43  ;;  %5855 = vmatpush.bf16.msra.mxu3 %v5353_v56  ;;  %v3946_v15 = vunpack.c.2.s8 %v3393_v54  ;;  %v3953_v46 = vunpack.c.3.s8 %v3393_v54  ;;  %v5409_v2 = vpack.c.bf16 %v4625_v25, %v4618_v40 }
 0x445   :  { %5785 = vmatmul.bf16.vlgmr.msrb.gmra.mxu1 %v8299_v5  ;;  %v4730_v47 = vcvt.s32.f32 %v3834_v24  ;;  %v3596_v38 = vunpack.c.0.s8 %v8268_v42  ;;  %v3603_v48 = vunpack.c.1.s8 %v8268_v42  ;;  %v4737_v13 = vcvt.s32.f32 %v3841_v26 }
 0x446   :  { %5798 = vmatmul.bf16.vlgmr.msrb.gmra.mxu2 %v8302_v55  ;;  %v4842_v59 = vcvt.s32.f32 %v3946_v15  ;;  %v4849_v9 = vcvt.s32.f32 %v3953_v46  ;;  %v3708_v33 = vunpack.c.0.s8 %v8276_v17  ;;  %5868 = vmatpush.bf16.msrb.mxu0 %v5409_v2  ;;  %v3715_v1 = vunpack.c.1.s8 %v8276_v17 }
 0x447   :  { %v4492_v52 = vcvt.s32.f32 %v3596_v38  ;;  %v4499_v36 = vcvt.s32.f32 %v3603_v48  ;;  %v3820_v19 = vunpack.c.0.s8 %v3365_v22  ;;  %v5465_v10 = vpack.c.bf16 %v4737_v13, %v4730_v47 }
 0x448   :  { %v5521_v27 = vpack.c.bf16 %v4849_v9, %v4842_v59  ;;  %v4604_v42 = vcvt.s32.f32 %v3708_v33  ;;  %v3827_v0 = vunpack.c.1.s8 %v3365_v22  ;;  %v4611_v41 = vcvt.s32.f32 %v3715_v1 }
 0x449   :  { %v5346_v32 = vpack.c.bf16 %v4499_v36, %v4492_v52  ;;  %v4716_v30 = vcvt.s32.f32 %v3820_v19  ;;  %v3932_v28 = vunpack.c.0.s8 %v3393_v54  ;;  %5881 = vmatpush.bf16.msrb.mxu1 %v5465_v10  ;;  %v3939_v53 = vunpack.c.1.s8 %v3393_v54 }
 0x44a   :  { %5894 = vmatpush.bf16.msrb.mxu2 %v5521_v27  ;;  %v4723_v17 = vcvt.s32.f32 %v3827_v0  ;;  %v3582_v7 = vunpack.c.2.s8 %v3302_v6  ;;  %v3589_v50 = vunpack.c.3.s8 %v3302_v6  ;;  %v5402_v45 = vpack.c.bf16 %v4611_v41, %v4604_v42  ;;  %v8327_v27 = vld [vmem:[%s9214_s16 + $0x40] sm:$0xff] }
 0x44b   :  { %5856 = vmatpush.bf16.msra.mxu3 %v5346_v32  ;;  %v4828_v44 = vcvt.s32.f32 %v3932_v28  ;;  %v3694_v63 = vunpack.c.2.s8 %v3330_v39  ;;  %v3701_v18 = vunpack.c.3.s8 %v3330_v39  ;;  %v4835_v14 = vcvt.s32.f32 %v3939_v53  ;;  %v8333_v41 = vld [vmem:[%s9214_s16 + $0x120] sm:$0xff] }
 0x44c   :  { %v5458_v29 = vpack.c.bf16 %v4723_v17, %v4716_v30  ;;  %v4478_v4 = vcvt.s32.f32 %v3582_v7  ;;  %v4485_v62 = vcvt.s32.f32 %v3589_v50  ;;  %5869 = vmatpush.bf16.msrb.mxu0 %v5402_v45  ;;  %v3806_v8 = vunpack.c.2.s8 %v3358_v51  ;;  %v8342_v7 = vld [vmem:[%s9214_s16 + $0x200] sm:$0xff] }
 0x44d   :  { %v4590_v49 = vcvt.s32.f32 %v3694_v63  ;;  %v4597_v35 = vcvt.s32.f32 %v3701_v18  ;;  %v3813_v12 = vunpack.c.3.s8 %v3358_v51  ;;  %v5514_v21 = vpack.c.bf16 %v4835_v14, %v4828_v44 }
 0x44e   :  { %5882 = vmatpush.bf16.msrb.mxu1 %v5458_v29  ;;  %v5339_v22 = vpack.c.bf16 %v4485_v62, %v4478_v4  ;;  %v3918_v34 = vunpack.c.2.s8 %v3386_v58  ;;  %v3925_v23 = vunpack.c.3.s8 %v3386_v58  ;;  %v4702_v16 = vcvt.s32.f32 %v3806_v8 }
 0x44f   :  { %v5395_v54 = vpack.c.bf16 %v4597_v35, %v4590_v49  ;;  %v4709_v56 = vcvt.s32.f32 %v3813_v12  ;;  %v3568_v40 = vunpack.c.0.s8 %v3302_v6  ;;  %5895 = vmatpush.bf16.msrb.mxu2 %v5514_v21  ;;  %v3575_v24 = vunpack.c.1.s8 %v3302_v6 }
 0x450   :  { %5857 = vmatpush.bf16.msra.mxu3 %v5339_v22  ;;  %v4814_v43 = vcvt.s32.f32 %v3918_v34  ;;  %v4821_v25 = vcvt.s32.f32 %v3925_v23  ;;  %v3680_v26 = vunpack.c.0.s8 %v3330_v39  ;;  %v3687_v2 = vunpack.c.1.s8 %v3330_v39 }
 0x451   :  { %5870 = vmatpush.bf16.msrb.mxu0 %v5395_v54  ;;  %v5451_v15 = vpack.c.bf16 %v4709_v56, %v4702_v16  ;;  %v4464_v46 = vcvt.s32.f32 %v3568_v40  ;;  %v3792_v47 = vunpack.c.0.s8 %v3358_v51  ;;  %v4471_v48 = vcvt.s32.f32 %v3575_v24 }
 0x452   :  { %v5507_v38 = vpack.c.bf16 %v4821_v25, %v4814_v43  ;;  %v4576_v13 = vcvt.s32.f32 %v3680_v26  ;;  %v3799_v59 = vunpack.c.1.s8 %v3358_v51  ;;  %v4583_v9 = vcvt.s32.f32 %v3687_v2 }
 0x453   :  { %5883 = vmatpush.bf16.msrb.mxu1 %v5451_v15  ;;  %v4688_v33 = vcvt.s32.f32 %v3792_v47  ;;  %v3904_v52 = vunpack.c.0.s8 %v3386_v58  ;;  %v3911_v36 = vunpack.c.1.s8 %v3386_v58  ;;  %v5332_v1 = vpack.c.bf16 %v4471_v48, %v4464_v46 }
 0x454   :  { %5896 = vmatpush.bf16.msrb.mxu2 %v5507_v38  ;;  %v4695_v19 = vcvt.s32.f32 %v3799_v59  ;;  %v3210_v6 = vperm.slane %v8220_v57, 4  ;;  %v3235_v10 = vperm.slane %v8241_v37, 4  ;;  %v5388_v42 = vpack.c.bf16 %v4583_v9, %v4576_v13 }
 0x455   :  { %v4800_v0 = vcvt.s32.f32 %v3904_v52  ;;  %v4807_v39 = vcvt.s32.f32 %v3911_v36  ;;  %v3211_v32 = vperm.slane %v8220_v57, 5  ;;  %5858 = vmatpush.bf16.msra.mxu3 %v5332_v1  ;;  %v3236_v17 = vperm.slane %v8241_v37, 5  ;;  %v3288_v52 = vld [vmem:[%s9214_s16 + $0x8] sm:$0xff] }
 0x456   :  { %v5444_v30 = vpack.c.bf16 %v4695_v19, %v4688_v33  ;;  %v3226_v28 = vmul.f32 %v3210_v6, %v7941_v20  ;;  %v3212_v53 = vperm.slane %v8220_v57, 6  ;;  %5850 = vmatmul.bf16.vlgmr.msra.gmra.mxu2 %v8260_v61  ;;  %5871 = vmatpush.bf16.msrb.mxu0 %v5388_v42  ;;  %v3237_v45 = vperm.slane %v8241_v37, 6 }
 0x457   :  { %v5500_v50 = vpack.c.bf16 %v4807_v39, %v4800_v0  ;;  %v3227_v51 = vmul.f32 %v3211_v32, %v7943_v60  ;;  %v3554_v44 = vunpack.c.2.s8 %v8327_v27  ;;  %v3561_v57 = vunpack.c.3.s8 %v8327_v27  ;;  %v3344_v32 = vld [vmem:[%s9214_s16 + $0x1c8] sm:$0xff] }
 0x458   :  { %5884 = vmatpush.bf16.msrb.mxu1 %v5444_v30  ;;  %v3251_v20 = vadd.f32 %v3235_v10, %v3226_v28  ;;  %v3228_v63 = vmul.f32 %v3212_v53, %v7972_v3  ;;  %v3666_v18 = vunpack.c.2.s8 %v8333_v41  ;;  %v3673_v14 = vunpack.c.3.s8 %v8333_v41  ;;  %v3379_v3 = vld [vmem:[%s9214_s16 + $0x2e0] sm:$0xff]  ;;  %v3316_v10 = vld [vmem:[%s9214_s16 + $0xe8] sm:$0xff] }
 0x459   :  { %5897 = vmatpush.bf16.msrb.mxu2 %v5500_v50  ;;  %v3252_v58 = vadd.f32 %v3236_v17, %v3227_v51  ;;  %v4450_v29 = vcvt.s32.f32 %v3554_v44  ;;  %v3778_v4 = vunpack.c.2.s8 %v8342_v7  ;;  %v4457_v62 = vcvt.s32.f32 %v3561_v57 }
 0x45a   :  { %vm3259_vm3 = vcmp.gt.f32.partialorder %v3251_v20, 0.0  ;;  %v3267_v60 = vmul.f32 0.2, %v3251_v20  ;;  %v3253_v37 = vadd.f32 %v3237_v45, %v3228_v63  ;;  %v4562_v35 = vcvt.s32.f32 %v3666_v18  ;;  %v3372_v45 = vld [vmem:[%s9214_s16 + $0x2a8] sm:$0xff] }
 0x45b   :  { %vm3260_vm4 = vcmp.gt.f32.partialorder %v3252_v58, 0.0  ;;  %v3268_v49 = vmul.f32 0.2, %v3252_v58  ;;  %v4569_v8 = vcvt.s32.f32 %v3673_v14  ;;  %v5325_v22 = vpack.c.bf16 %v4457_v62, %v4450_v29 }
 0x45c   :  { %v3275_v12 = vsel %vm3259_vm3, %v3251_v20, %v3267_v60  ;;  %vm3261_vm5 = vcmp.gt.f32.partialorder %v3253_v37, 0.0  ;;  %v3269_v21 = vmul.f32 0.2, %v3253_v37  ;;  %v3785_v16 = vunpack.c.3.s8 %v8342_v7 }
 0x45d   :  { %v8355_v34 = vpack.c.bf16 %v3275_v12, %v3275_v12  ;;  %v3276_v23 = vsel %vm3260_vm4, %v3252_v58, %v3268_v49  ;;  %v5381_v54 = vpack.c.bf16 %v4569_v8, %v4562_v35  ;;  %5859 = vmatpush.bf16.msra.mxu3 %v5325_v22  ;;  %v4674_v43 = vcvt.s32.f32 %v3778_v4 }
 0x45e   :  { %v8358_v56 = vpack.c.bf16 %v3276_v23, %v3276_v23  ;;  %v3277_v40 = vsel %vm3261_vm5, %v3253_v37, %v3269_v21  ;;  %v3890_v25 = vunpack.c.2.s8 %v3379_v3  ;;  %v4681_v26 = vcvt.s32.f32 %v3785_v16 }
 0x45f   :  { %5811 = vmatmul.bf16.vlgmr.msrb.gmra.mxu3 %v8355_v34  ;;  %v8361_v24 = vpack.c.bf16 %v3277_v40, %v3277_v40  ;;  %5872 = vmatpush.bf16.msrb.mxu0 %v5381_v54  ;;  %v3897_v15 = vunpack.c.3.s8 %v3379_v3  ;;  %v3540_v46 = vunpack.c.0.s8 %v8327_v27  ;;  %v3547_v47 = vunpack.c.1.s8 %v8327_v27 }
 0x460   :  { %5824 = vmatmul.bf16.vlgmr.msra.gmra.mxu0 %v8358_v56  ;;  %v4786_v2 = vcvt.s32.f32 %v3890_v25  ;;  %v3652_v38 = vunpack.c.0.s8 %v8333_v41  ;;  %v3659_v48 = vunpack.c.1.s8 %v8333_v41  ;;  %v5437_v13 = vpack.c.bf16 %v4681_v26, %v4674_v43  ;;  %v3421_v25 = vld [vmem:[%s9214_s16 + $0x430] sm:$0xff] }
 0x461   :  { %5837 = vmatmul.bf16.vlgmr.msra.gmra.mxu1 %v8361_v24  ;;  %v4793_v59 = vcvt.s32.f32 %v3897_v15  ;;  %v4436_v9 = vcvt.s32.f32 %v3540_v46  ;;  %v3764_v33 = vunpack.c.0.s8 %v8342_v7  ;;  %v4443_v36 = vcvt.s32.f32 %v3547_v47  ;;  %v3449_v47 = vld [vmem:[%s9214_s16 + $0x510] sm:$0xff] }
 0x462   :  { %v4548_v1 = vcvt.s32.f32 %v3652_v38  ;;  %v4555_v19 = vcvt.s32.f32 %v3659_v48  ;;  %v3771_v6 = vunpack.c.1.s8 %v8342_v7  ;;  %5885 = vmatpush.bf16.msrb.mxu1 %v5437_v13  ;;  %v3876_v0 = vunpack.c.0.s8 %v3379_v3 }
 0x463   :  { %v5493_v27 = vpack.c.bf16 %v4793_v59, %v4786_v2  ;;  %v4660_v42 = vcvt.s32.f32 %v3764_v33  ;;  %v3883_v39 = vunpack.c.1.s8 %v3379_v3  ;;  %v5318_v41 = vpack.c.bf16 %v4443_v36, %v4436_v9 }
 0x464   :  { %v5374_v30 = vpack.c.bf16 %v4555_v19, %v4548_v1  ;;  %v4667_v28 = vcvt.s32.f32 %v3771_v6  ;;  %v3526_v17 = vunpack.c.2.s8 %v3288_v52  ;;  %v4772_v53 = vcvt.s32.f32 %v3876_v0  ;;  %v3477_v1 = vld [vmem:[%s9214_s16 + $0x5f0] sm:$0xff] }
 0x465   :  { %5898 = vmatpush.bf16.msrb.mxu2 %v5493_v27  ;;  %v4779_v7 = vcvt.s32.f32 %v3883_v39  ;;  %v3533_v50 = vunpack.c.3.s8 %v3288_v52  ;;  %v3638_v51 = vunpack.c.2.s8 %v3316_v10  ;;  %5860 = vmatpush.bf16.msra.mxu3 %v5318_v41  ;;  %v3645_v63 = vunpack.c.3.s8 %v3316_v10 }
 0x466   :  { %5873 = vmatpush.bf16.msrb.mxu0 %v5374_v30  ;;  %v5430_v44 = vpack.c.bf16 %v4667_v28, %v4660_v42  ;;  %v4422_v20 = vcvt.s32.f32 %v3526_v17  ;;  %v3750_v57 = vunpack.c.2.s8 %v3344_v32  ;;  %v3757_v14 = vunpack.c.3.s8 %v3344_v32  ;;  %v3505_v42 = vld [vmem:[%s9214_s16 + $0x6d0] sm:$0xff] }
 0x467   :  { %v5486_v18 = vpack.c.bf16 %v4779_v7, %v4772_v53  ;;  %v4429_v58 = vcvt.s32.f32 %v3533_v50  ;;  %v4534_v29 = vcvt.s32.f32 %v3638_v51  ;;  %v4541_v4 = vcvt.s32.f32 %v3645_v63 }
 0x468   :  { %5886 = vmatpush.bf16.msrb.mxu1 %v5430_v44  ;;  %v4646_v60 = vcvt.s32.f32 %v3750_v57  ;;  %v3862_v37 = vunpack.c.2.s8 %v3372_v45  ;;  %v3869_v62 = vunpack.c.3.s8 %v3372_v45  ;;  %v4653_v35 = vcvt.s32.f32 %v3757_v14 }
 0x469   :  { %5899 = vmatpush.bf16.msrb.mxu2 %v5486_v18  ;;  %v5311_v49 = vpack.c.bf16 %v4429_v58, %v4422_v20  ;;  %v3512_v8 = vunpack.c.0.s8 %v3288_v52  ;;  %v3519_v3 = vunpack.c.1.s8 %v3288_v52  ;;  %v5367_v12 = vpack.c.bf16 %v4541_v4, %v4534_v29 }
 0x46a   :  { %v4758_v21 = vcvt.s32.f32 %v3862_v37  ;;  %v4765_v22 = vcvt.s32.f32 %v3869_v62  ;;  %v3624_v23 = vunpack.c.0.s8 %v3316_v10  ;;  %v5423_v54 = vpack.c.bf16 %v4653_v35, %v4646_v60 }
 0x46b   :  { %5861 = vmatpush.bf16.msra.mxu3 %v5311_v49  ;;  %v4408_v16 = vcvt.s32.f32 %v3512_v8  ;;  %v4415_v40 = vcvt.s32.f32 %v3519_v3  ;;  %v3631_v43 = vunpack.c.1.s8 %v3316_v10  ;;  %5874 = vmatpush.bf16.msrb.mxu0 %v5367_v12  ;;  %v3736_v46 = vunpack.c.0.s8 %v3344_v32  ;;  %v3414_v49 = vld [vmem:[%s9214_s16 + $0x3f8] sm:$0xff] }
 0x46c   :  { %v5479_v26 = vpack.c.bf16 %v4765_v22, %v4758_v21  ;;  %v4520_v15 = vcvt.s32.f32 %v3624_v23  ;;  %v3743_v2 = vunpack.c.1.s8 %v3344_v32  ;;  %5887 = vmatpush.bf16.msrb.mxu1 %v5423_v54  ;;  %v3848_v13 = vunpack.c.0.s8 %v3372_v45  ;;  %v3442_v21 = vld [vmem:[%s9214_s16 + $0x4d8] sm:$0xff] }
 0x46d   :  { %v5304_v38 = vpack.c.bf16 %v4415_v40, %v4408_v16  ;;  %v4527_v48 = vcvt.s32.f32 %v3631_v43  ;;  %v3855_v59 = vunpack.c.1.s8 %v3372_v45  ;;  %v4632_v9 = vcvt.s32.f32 %v3736_v46 }
 0x46e   :  { %5900 = vmatpush.bf16.msrb.mxu2 %v5479_v26  ;;  %v4639_v33 = vcvt.s32.f32 %v3743_v2  ;;  %v4058_v52 = vunpack.c.2.s8 %v3421_v25  ;;  %v4065_v36 = vunpack.c.3.s8 %v3421_v25  ;;  %v4744_v6 = vcvt.s32.f32 %v3848_v13 }
 0x46f   :  { %5862 = vmatpush.bf16.msra.mxu3 %v5304_v38  ;;  %v5360_v19 = vpack.c.bf16 %v4527_v48, %v4520_v15  ;;  %v4751_v10 = vcvt.s32.f32 %v3855_v59  ;;  %v4170_v27 = vunpack.c.2.s8 %v3449_v47  ;;  %v4177_v41 = vunpack.c.3.s8 %v3449_v47  ;;  %v3470_v15 = vld [vmem:[%s9214_s16 + $0x5b8] sm:$0xff] }
 0x470   :  { %v5416_v0 = vpack.c.bf16 %v4639_v33, %v4632_v9  ;;  %v4954_v39 = vcvt.s32.f32 %v4058_v52  ;;  %v4961_v32 = vcvt.s32.f32 %v4065_v36  ;;  %v4282_v17 = vunpack.c.2.s8 %v3477_v1  ;;  %v3498_v48 = vld [vmem:[%s9214_s16 + $0x698] sm:$0xff] }
 0x471   :  { %5875 = vmatpush.bf16.msrb.mxu0 %v5360_v19  ;;  %v5472_v30 = vpack.c.bf16 %v4751_v10, %v4744_v6  ;;  %v5066_v28 = vcvt.s32.f32 %v4170_v27  ;;  %v4289_v53 = vunpack.c.3.s8 %v3477_v1  ;;  %v5073_v50 = vcvt.s32.f32 %v4177_v41 }
 0x472   :  { %5888 = vmatpush.bf16.msrb.mxu1 %v5416_v0  ;;  %v5577_v7 = vpack.c.bf16 %v4961_v32, %v4954_v39  ;;  %v4394_v51 = vunpack.c.2.s8 %v3505_v42  ;;  %v4401_v45 = vunpack.c.3.s8 %v3505_v42  ;;  %5863 = vmatmul.bf16.vlgmr.msra.gmra.mxu3 %v8291_v31  ;;  %v5178_v44 = vcvt.s32.f32 %v4282_v17 }
 0x473   :  { %5901 = vmatpush.bf16.msrb.mxu2 %v5472_v30  ;;  %v5185_v20 = vcvt.s32.f32 %v4289_v53  ;;  %v4044_v63 = vunpack.c.0.s8 %v3421_v25  ;;  %v4051_v57 = vunpack.c.1.s8 %v3421_v25  ;;  %v5633_v18 = vpack.c.bf16 %v5073_v50, %v5066_v28 }
 0x474   :  { %5907 = vmatpush.bf16.msrb.mxu3 %v5577_v7  ;;  %v5290_v58 = vcvt.s32.f32 %v4394_v51  ;;  %v5297_v29 = vcvt.s32.f32 %v4401_v45  ;;  %5876 = vmatmul.bf16.vlgmr.msrb.gmra.mxu0 %v8296_v11  ;;  %v4156_v14 = vunpack.c.0.s8 %v3449_v47  ;;  %v4163_v62 = vunpack.c.1.s8 %v3449_v47 }
 0x475   :  { %v5689_v4 = vpack.c.bf16 %v5185_v20, %v5178_v44  ;;  %5889 = vmatmul.bf16.vlgmr.msrb.gmra.mxu1 %v8299_v5  ;;  %v4940_v60 = vcvt.s32.f32 %v4044_v63  ;;  %v4947_v37 = vcvt.s32.f32 %v4051_v57  ;;  %5920 = vmatpush.bf16.msra.mxu0 %v5633_v18  ;;  %v4268_v3 = vunpack.c.0.s8 %v3477_v1  ;;  %v3407_v44 = vld [vmem:[%s9214_s16 + $0x3c0] sm:$0xff] }
 0x476   :  { %v5745_v35 = vpack.c.bf16 %v5297_v29, %v5290_v58  ;;  %5902 = vmatmul.bf16.vlgmr.msrb.gmra.mxu2 %v8302_v55  ;;  %v5052_v8 = vcvt.s32.f32 %v4156_v14  ;;  %v4275_v12 = vunpack.c.1.s8 %v3477_v1  ;;  %v5059_v23 = vcvt.s32.f32 %v4163_v62  ;;  %v3435_v58 = vld [vmem:[%s9214_s16 + $0x4a0] sm:$0xff] }
 0x477   :  { %5933 = vmatpush.bf16.msra.mxu1 %v5689_v4  ;;  %v5570_v22 = vpack.c.bf16 %v4947_v37, %v4940_v60  ;;  %v4380_v54 = vunpack.c.0.s8 %v3505_v42  ;;  %v4387_v16 = vunpack.c.1.s8 %v3505_v42  ;;  %v5164_v40 = vcvt.s32.f32 %v4268_v3 }
 0x478   :  { %5946 = vmatpush.bf16.msra.mxu2 %v5745_v35  ;;  %v5171_v43 = vcvt.s32.f32 %v4275_v12  ;;  %v4030_v25 = vunpack.c.2.s8 %v3414_v49  ;;  %v4037_v26 = vunpack.c.3.s8 %v3414_v49  ;;  %v5626_v46 = vpack.c.bf16 %v5059_v23, %v5052_v8  ;;  %v3463_v8 = vld [vmem:[%s9214_s16 + $0x580] sm:$0xff] }
 0x479   :  { %5908 = vmatpush.bf16.msrb.mxu3 %v5570_v22  ;;  %v5276_v2 = vcvt.s32.f32 %v4380_v54  ;;  %v5283_v47 = vcvt.s32.f32 %v4387_v16  ;;  %v4142_v38 = vunpack.c.2.s8 %v3442_v21  ;;  %v4149_v33 = vunpack.c.3.s8 %v3442_v21  ;;  %v3491_v23 = vld [vmem:[%s9214_s16 + $0x660] sm:$0xff] }
 0x47a   :  { %v5682_v13 = vpack.c.bf16 %v5171_v43, %v5164_v40  ;;  %v4926_v59 = vcvt.s32.f32 %v4030_v25  ;;  %v4933_v9 = vcvt.s32.f32 %v4037_v26  ;;  %5921 = vmatpush.bf16.msra.mxu0 %v5626_v46  ;;  %v4254_v1 = vunpack.c.2.s8 %v3470_v15 }
 0x47b   :  { %v5738_v52 = vpack.c.bf16 %v5283_v47, %v5276_v2  ;;  %v5038_v36 = vcvt.s32.f32 %v4142_v38  ;;  %v4261_v19 = vunpack.c.3.s8 %v3470_v15  ;;  %v5045_v10 = vcvt.s32.f32 %v4149_v33 }
 0x47c   :  { %5934 = vmatpush.bf16.msra.mxu1 %v5682_v13  ;;  %v5563_v6 = vpack.c.bf16 %v4933_v9, %v4926_v59  ;;  %v4366_v27 = vunpack.c.2.s8 %v3498_v48  ;;  %v4373_v42 = vunpack.c.3.s8 %v3498_v48  ;;  %v5150_v0 = vcvt.s32.f32 %v4254_v1 }
 0x47d   :  { %5947 = vmatpush.bf16.msra.mxu2 %v5738_v52  ;;  %v5157_v39 = vcvt.s32.f32 %v4261_v19  ;;  %v4016_v32 = vunpack.c.0.s8 %v3414_v49  ;;  %v4023_v41 = vunpack.c.1.s8 %v3414_v49  ;;  %v5619_v30 = vpack.c.bf16 %v5045_v10, %v5038_v36 }
 0x47e   :  { %5909 = vmatpush.bf16.msrb.mxu3 %v5563_v6  ;;  %v5262_v28 = vcvt.s32.f32 %v4366_v27  ;;  %v5269_v17 = vcvt.s32.f32 %v4373_v42  ;;  %v4128_v53 = vunpack.c.0.s8 %v3442_v21  ;;  %v4135_v45 = vunpack.c.1.s8 %v3442_v21 }
 0x47f   :  { %v5675_v7 = vpack.c.bf16 %v5157_v39, %v5150_v0  ;;  %v4912_v50 = vcvt.s32.f32 %v4016_v32  ;;  %v4919_v51 = vcvt.s32.f32 %v4023_v41  ;;  %5922 = vmatpush.bf16.msra.mxu0 %v5619_v30  ;;  %v4240_v57 = vunpack.c.0.s8 %v3470_v15  ;;  %v3400_v0 = vld [vmem:[%s9214_s16 + $0x388] sm:$0xff] }
 0x480   :  { %v5731_v20 = vpack.c.bf16 %v5269_v17, %v5262_v28  ;;  %v5024_v63 = vcvt.s32.f32 %v4128_v53  ;;  %v4247_v18 = vunpack.c.1.s8 %v3470_v15  ;;  %v5031_v14 = vcvt.s32.f32 %v4135_v45  ;;  %v3428_v28 = vld [vmem:[%s9214_s16 + $0x468] sm:$0xff] }
 0x481   :  { %5935 = vmatpush.bf16.msra.mxu1 %v5675_v7  ;;  %v5556_v29 = vpack.c.bf16 %v4919_v51, %v4912_v50  ;;  %v4352_v4 = vunpack.c.0.s8 %v3498_v48  ;;  %v4359_v60 = vunpack.c.1.s8 %v3498_v48  ;;  %v5136_v37 = vcvt.s32.f32 %v4240_v57 }
 0x482   :  { %5948 = vmatpush.bf16.msra.mxu2 %v5731_v20  ;;  %v5143_v62 = vcvt.s32.f32 %v4247_v18  ;;  %v4002_v49 = vunpack.c.2.s8 %v3407_v44  ;;  %v4009_v35 = vunpack.c.3.s8 %v3407_v44  ;;  %v5612_v3 = vpack.c.bf16 %v5031_v14, %v5024_v63  ;;  %v3456_v63 = vld [vmem:[%s9214_s16 + $0x548] sm:$0xff] }
 0x483   :  { %5910 = vmatpush.bf16.msrb.mxu3 %v5556_v29  ;;  %v5248_v12 = vcvt.s32.f32 %v4352_v4  ;;  %v5255_v21 = vcvt.s32.f32 %v4359_v60  ;;  %v4114_v22 = vunpack.c.2.s8 %v3435_v58  ;;  %v4121_v43 = vunpack.c.3.s8 %v3435_v58  ;;  %v3484_v14 = vld [vmem:[%s9214_s16 + $0x628] sm:$0xff] }
 0x484   :  { %v5668_v54 = vpack.c.bf16 %v5143_v62, %v5136_v37  ;;  %v4898_v16 = vcvt.s32.f32 %v4002_v49  ;;  %v4905_v40 = vcvt.s32.f32 %v4009_v35  ;;  %5923 = vmatpush.bf16.msra.mxu0 %v5612_v3  ;;  %v4226_v15 = vunpack.c.2.s8 %v3463_v8 }
 0x485   :  { %v5724_v25 = vpack.c.bf16 %v5255_v21, %v5248_v12  ;;  %v5010_v26 = vcvt.s32.f32 %v4114_v22  ;;  %v4233_v46 = vunpack.c.3.s8 %v3463_v8  ;;  %v5017_v47 = vcvt.s32.f32 %v4121_v43 }
 0x486   :  { %5936 = vmatpush.bf16.msra.mxu1 %v5668_v54  ;;  %v5549_v2 = vpack.c.bf16 %v4905_v40, %v4898_v16  ;;  %v4338_v38 = vunpack.c.2.s8 %v3491_v23  ;;  %v4345_v48 = vunpack.c.3.s8 %v3491_v23  ;;  %v5122_v13 = vcvt.s32.f32 %v4226_v15 }
 0x487   :  { %5949 = vmatpush.bf16.msra.mxu2 %v5724_v25  ;;  %v5129_v59 = vcvt.s32.f32 %v4233_v46  ;;  %v3988_v9 = vunpack.c.0.s8 %v3407_v44  ;;  %v3995_v33 = vunpack.c.1.s8 %v3407_v44  ;;  %v5605_v52 = vpack.c.bf16 %v5017_v47, %v5010_v26 }
 0x488   :  { %5911 = vmatpush.bf16.msrb.mxu3 %v5549_v2  ;;  %v5234_v36 = vcvt.s32.f32 %v4338_v38  ;;  %v5241_v1 = vcvt.s32.f32 %v4345_v48  ;;  %v4100_v19 = vunpack.c.0.s8 %v3435_v58  ;;  %v4107_v42 = vunpack.c.1.s8 %v3435_v58 }
 0x489   :  { %v5661_v6 = vpack.c.bf16 %v5129_v59, %v5122_v13  ;;  %v4884_v10 = vcvt.s32.f32 %v3988_v9  ;;  %v4891_v27 = vcvt.s32.f32 %v3995_v33  ;;  %5924 = vmatpush.bf16.msra.mxu0 %v5605_v52  ;;  %v4212_v41 = vunpack.c.0.s8 %v3463_v8  ;;  %v3310_v13 = vld [vmem:[%s9214_s16 + $0xb8] sm:$0xff] }
 0x48a   :  { %v5717_v39 = vpack.c.bf16 %v5241_v1, %v5234_v36  ;;  %v4996_v32 = vcvt.s32.f32 %v4100_v19  ;;  %v4219_v30 = vunpack.c.1.s8 %v3463_v8  ;;  %v5003_v53 = vcvt.s32.f32 %v4107_v42  ;;  %v3338_v36 = vld [vmem:[%s9214_s16 + $0x198] sm:$0xff] }
 0x48b   :  { %5937 = vmatpush.bf16.msra.mxu1 %v5661_v6  ;;  %v5542_v17 = vpack.c.bf16 %v4891_v27, %v4884_v10  ;;  %v4324_v7 = vunpack.c.0.s8 %v3491_v23  ;;  %v4331_v50 = vunpack.c.1.s8 %v3491_v23  ;;  %v5108_v51 = vcvt.s32.f32 %v4212_v41 }
 0x48c   :  { %5950 = vmatpush.bf16.msra.mxu2 %v5717_v39  ;;  %v5115_v45 = vcvt.s32.f32 %v4219_v30  ;;  %v3974_v44 = vunpack.c.2.s8 %v3400_v0  ;;  %v3981_v20 = vunpack.c.3.s8 %v3400_v0  ;;  %v5598_v57 = vpack.c.bf16 %v5003_v53, %v4996_v32  ;;  %v3366_v32 = vld [vmem:[%s9214_s16 + $0x278] sm:$0xff] }
 0x48d   :  { %5912 = vmatpush.bf16.msrb.mxu3 %v5542_v17  ;;  %v5220_v18 = vcvt.s32.f32 %v4324_v7  ;;  %v5227_v58 = vcvt.s32.f32 %v4331_v50  ;;  %v4086_v29 = vunpack.c.2.s8 %v3428_v28  ;;  %v4093_v62 = vunpack.c.3.s8 %v3428_v28  ;;  %v3394_v53 = vld [vmem:[%s9214_s16 + $0x358] sm:$0xff] }
 0x48e   :  { %v5654_v4 = vpack.c.bf16 %v5115_v45, %v5108_v51  ;;  %v4870_v60 = vcvt.s32.f32 %v3974_v44  ;;  %v4877_v37 = vcvt.s32.f32 %v3981_v20  ;;  %5925 = vmatpush.bf16.msra.mxu0 %v5598_v57  ;;  %v4198_v8 = vunpack.c.2.s8 %v3456_v63 }
 0x48f   :  { %v5710_v49 = vpack.c.bf16 %v5227_v58, %v5220_v18  ;;  %v4982_v35 = vcvt.s32.f32 %v4086_v29  ;;  %v4205_v3 = vunpack.c.3.s8 %v3456_v63  ;;  %v4989_v21 = vcvt.s32.f32 %v4093_v62 }
 0x490   :  { %5938 = vmatpush.bf16.msra.mxu1 %v5654_v4  ;;  %v5535_v12 = vpack.c.bf16 %v4877_v37, %v4870_v60  ;;  %v4310_v22 = vunpack.c.2.s8 %v3484_v14  ;;  %v4317_v23 = vunpack.c.3.s8 %v3484_v14  ;;  %v5094_v54 = vcvt.s32.f32 %v4198_v8 }
 0x491   :  { %5951 = vmatpush.bf16.msra.mxu2 %v5710_v49  ;;  %v5101_v16 = vcvt.s32.f32 %v4205_v3  ;;  %v3960_v40 = vunpack.c.0.s8 %v3400_v0  ;;  %v3967_v43 = vunpack.c.1.s8 %v3400_v0  ;;  %v5591_v25 = vpack.c.bf16 %v4989_v21, %v4982_v35 }
 0x492   :  { %5913 = vmatpush.bf16.msrb.mxu3 %v5535_v12  ;;  %v5206_v26 = vcvt.s32.f32 %v4310_v22  ;;  %v5213_v15 = vcvt.s32.f32 %v4317_v23  ;;  %v4072_v46 = vunpack.c.0.s8 %v3428_v28  ;;  %v4079_v48 = vunpack.c.1.s8 %v3428_v28 }
 0x493   :  { %v5647_v2 = vpack.c.bf16 %v5101_v16, %v5094_v54  ;;  %v4856_v47 = vcvt.s32.f32 %v3960_v40  ;;  %v4863_v38 = vcvt.s32.f32 %v3967_v43  ;;  %5926 = vmatpush.bf16.msra.mxu0 %v5591_v25  ;;  %v4184_v33 = vunpack.c.0.s8 %v3456_v63  ;;  %v3303_v54 = vld [vmem:[%s9214_s16 + $0x80] sm:$0xff] }
 0x494   :  { %v5703_v59 = vpack.c.bf16 %v5213_v15, %v5206_v26  ;;  %v4968_v9 = vcvt.s32.f32 %v4072_v46  ;;  %v4191_v52 = vunpack.c.1.s8 %v3456_v63  ;;  %v4975_v19 = vcvt.s32.f32 %v4079_v48  ;;  %v3331_v26 = vld [vmem:[%s9214_s16 + $0x160] sm:$0xff] }
 0x495   :  { %5939 = vmatpush.bf16.msra.mxu1 %v5647_v2  ;;  %v5528_v1 = vpack.c.bf16 %v4863_v38, %v4856_v47  ;;  %v4296_v6 = vunpack.c.0.s8 %v3484_v14  ;;  %v4303_v10 = vunpack.c.1.s8 %v3484_v14  ;;  %v5080_v27 = vcvt.s32.f32 %v4184_v33 }
 0x496   :  { %5952 = vmatpush.bf16.msra.mxu2 %v5703_v59  ;;  %v5087_v42 = vcvt.s32.f32 %v4191_v52  ;;  %v3611_v0 = vunpack.c.2.s8 %v3310_v13  ;;  %v3618_v39 = vunpack.c.3.s8 %v3310_v13  ;;  %v5584_v41 = vpack.c.bf16 %v4975_v19, %v4968_v9  ;;  %v3359_v9 = vld [vmem:[%s9214_s16 + $0x240] sm:$0xff] }
 0x497   :  { %5914 = vmatpush.bf16.msrb.mxu3 %v5528_v1  ;;  %v5192_v30 = vcvt.s32.f32 %v4296_v6  ;;  %v5199_v28 = vcvt.s32.f32 %v4303_v10  ;;  %v3723_v17 = vunpack.c.2.s8 %v3338_v36  ;;  %v3730_v45 = vunpack.c.3.s8 %v3338_v36  ;;  %v3387_v19 = vld [vmem:[%s9214_s16 + $0x320] sm:$0xff] }
 0x498   :  { %v5640_v7 = vpack.c.bf16 %v5087_v42, %v5080_v27  ;;  %v4507_v50 = vcvt.s32.f32 %v3611_v0  ;;  %v4514_v51 = vcvt.s32.f32 %v3618_v39  ;;  %5927 = vmatpush.bf16.msra.mxu0 %v5584_v41  ;;  %v3835_v63 = vunpack.c.2.s8 %v3366_v32 }
 0x499   :  { %v5696_v44 = vpack.c.bf16 %v5199_v28, %v5192_v30  ;;  %v4619_v20 = vcvt.s32.f32 %v3723_v17  ;;  %v3842_v57 = vunpack.c.3.s8 %v3366_v32  ;;  %v4626_v58 = vcvt.s32.f32 %v3730_v45 }
 0x49a   :  { %5940 = vmatpush.bf16.msra.mxu1 %v5640_v7  ;;  %v5354_v18 = vpack.c.bf16 %v4514_v51, %v4507_v50  ;;  %v3947_v29 = vunpack.c.2.s8 %v3394_v53  ;;  %v3954_v14 = vunpack.c.3.s8 %v3394_v53  ;;  %5915 = vmatmul.bf16.vlgmr.msrb.gmra.mxu3 %v8355_v34  ;;  %v4731_v4 = vcvt.s32.f32 %v3835_v63 }
 0x49b   :  { %5953 = vmatpush.bf16.msra.mxu2 %v5696_v44  ;;  %v4738_v60 = vcvt.s32.f32 %v3842_v57  ;;  %v3597_v37 = vunpack.c.0.s8 %v3310_v13  ;;  %v3604_v62 = vunpack.c.1.s8 %v3310_v13  ;;  %v5410_v49 = vpack.c.bf16 %v4626_v58, %v4619_v20  ;;  %5928 = vmatmul.bf16.vlgmr.msra.gmra.mxu0 %v8358_v56 }
 0x49c   :  { %5959 = vmatpush.bf16.msra.mxu3 %v5354_v18  ;;  %v4843_v35 = vcvt.s32.f32 %v3947_v29  ;;  %v4850_v8 = vcvt.s32.f32 %v3954_v14  ;;  %v3709_v3 = vunpack.c.0.s8 %v3338_v36  ;;  %v3716_v23 = vunpack.c.1.s8 %v3338_v36 }
 0x49d   :  { %v5466_v12 = vpack.c.bf16 %v4738_v60, %v4731_v4  ;;  %5941 = vmatmul.bf16.vlgmr.msra.gmra.mxu1 %v8361_v24  ;;  %v4493_v21 = vcvt.s32.f32 %v3597_v37  ;;  %v4500_v22 = vcvt.s32.f32 %v3604_v62  ;;  %5972 = vmatpush.bf16.msrb.mxu0 %v5410_v49  ;;  %v3821_v43 = vunpack.c.0.s8 %v3366_v32  ;;  %v3296_v4 = vld [vmem:[%s9214_s16 + $0x48] sm:$0xff] }
 0x49e   :  { %v5522_v16 = vpack.c.bf16 %v4850_v8, %v4843_v35  ;;  %5954 = vmatmul.bf16.vlgmr.msra.gmra.mxu2 %v8260_v61  ;;  %v4605_v40 = vcvt.s32.f32 %v3709_v3  ;;  %v3828_v25 = vunpack.c.1.s8 %v3366_v32  ;;  %v4612_v46 = vcvt.s32.f32 %v3716_v23  ;;  %v3324_v35 = vld [vmem:[%s9214_s16 + $0x128] sm:$0xff] }
 0x49f   :  { %5985 = vmatpush.bf16.msrb.mxu1 %v5466_v12  ;;  %v5347_v15 = vpack.c.bf16 %v4500_v22, %v4493_v21  ;;  %v3933_v2 = vunpack.c.0.s8 %v3394_v53  ;;  %v3940_v47 = vunpack.c.1.s8 %v3394_v53  ;;  %v4717_v38 = vcvt.s32.f32 %v3821_v43 }
 0x4a0   :  { %5998 = vmatpush.bf16.msrb.mxu2 %v5522_v16  ;;  %v4724_v48 = vcvt.s32.f32 %v3828_v25  ;;  %v3583_v13 = vunpack.c.2.s8 %v3303_v54  ;;  %v3590_v59 = vunpack.c.3.s8 %v3303_v54  ;;  %v5403_v33 = vpack.c.bf16 %v4612_v46, %v4605_v40  ;;  %v3352_v40 = vld [vmem:[%s9214_s16 + $0x208] sm:$0xff] }
 0x4a1   :  { %5960 = vmatpush.bf16.msra.mxu3 %v5347_v15  ;;  %v4829_v52 = vcvt.s32.f32 %v3933_v2  ;;  %v4836_v36 = vcvt.s32.f32 %v3940_v47  ;;  %v3695_v1 = vunpack.c.2.s8 %v3331_v26  ;;  %v3702_v42 = vunpack.c.3.s8 %v3331_v26  ;;  %v3380_v46 = vld [vmem:[%s9214_s16 + $0x2e8] sm:$0xff] }
 0x4a2   :  { %v5459_v6 = vpack.c.bf16 %v4724_v48, %v4717_v38  ;;  %v4479_v10 = vcvt.s32.f32 %v3583_v13  ;;  %v4486_v27 = vcvt.s32.f32 %v3590_v59  ;;  %5973 = vmatpush.bf16.msrb.mxu0 %v5403_v33  ;;  %v3807_v32 = vunpack.c.2.s8 %v3359_v9 }
 0x4a3   :  { %v5515_v0 = vpack.c.bf16 %v4836_v36, %v4829_v52  ;;  %v4591_v39 = vcvt.s32.f32 %v3695_v1  ;;  %v3814_v41 = vunpack.c.3.s8 %v3359_v9  ;;  %v4598_v28 = vcvt.s32.f32 %v3702_v42 }
 0x4a4   :  { %5986 = vmatpush.bf16.msrb.mxu1 %v5459_v6  ;;  %v5340_v30 = vpack.c.bf16 %v4486_v27, %v4479_v10  ;;  %v3919_v17 = vunpack.c.2.s8 %v3387_v19  ;;  %v3926_v53 = vunpack.c.3.s8 %v3387_v19  ;;  %v4703_v7 = vcvt.s32.f32 %v3807_v32 }
 0x4a5   :  { %5999 = vmatpush.bf16.msrb.mxu2 %v5515_v0  ;;  %v4710_v50 = vcvt.s32.f32 %v3814_v41  ;;  %v3569_v51 = vunpack.c.0.s8 %v3303_v54  ;;  %v3576_v45 = vunpack.c.1.s8 %v3303_v54  ;;  %v5396_v44 = vpack.c.bf16 %v4598_v28, %v4591_v39 }
 0x4a6   :  { %5961 = vmatpush.bf16.msra.mxu3 %v5340_v30  ;;  %v4815_v20 = vcvt.s32.f32 %v3919_v17  ;;  %v4822_v63 = vcvt.s32.f32 %v3926_v53  ;;  %v3681_v57 = vunpack.c.0.s8 %v3331_v26  ;;  %v3688_v14 = vunpack.c.1.s8 %v3331_v26 }
 0x4a7   :  { %v5452_v18 = vpack.c.bf16 %v4710_v50, %v4703_v7  ;;  %v4465_v58 = vcvt.s32.f32 %v3569_v51  ;;  %v4472_v29 = vcvt.s32.f32 %v3576_v45  ;;  %5974 = vmatpush.bf16.msrb.mxu0 %v5396_v44  ;;  %v3793_v62 = vunpack.c.0.s8 %v3359_v9  ;;  %v3289_v7 = vld [vmem:[%s9214_s16 + $0x10] sm:$0xff] }
 0x4a8   :  { %v5508_v60 = vpack.c.bf16 %v4822_v63, %v4815_v20  ;;  %v4577_v37 = vcvt.s32.f32 %v3681_v57  ;;  %v3800_v49 = vunpack.c.1.s8 %v3359_v9  ;;  %v4584_v3 = vcvt.s32.f32 %v3688_v14  ;;  %v3317_v20 = vld [vmem:[%s9214_s16 + $0xf0] sm:$0xff] }
 0x4a9   :  { %5987 = vmatpush.bf16.msrb.mxu1 %v5452_v18  ;;  %v5333_v8 = vpack.c.bf16 %v4472_v29, %v4465_v58  ;;  %v3905_v12 = vunpack.c.0.s8 %v3387_v19  ;;  %v3912_v21 = vunpack.c.1.s8 %v3387_v19  ;;  %v4689_v22 = vcvt.s32.f32 %v3793_v62 }
 0x4aa   :  { %6000 = vmatpush.bf16.msrb.mxu2 %v5508_v60  ;;  %v4696_v23 = vcvt.s32.f32 %v3800_v49  ;;  %v3555_v54 = vunpack.c.2.s8 %v3296_v4  ;;  %v3562_v16 = vunpack.c.3.s8 %v3296_v4  ;;  %v5389_v43 = vpack.c.bf16 %v4584_v3, %v4577_v37  ;;  %v3345_v37 = vld [vmem:[%s9214_s16 + $0x1d0] sm:$0xff] }
 0x4ab   :  { %5962 = vmatpush.bf16.msra.mxu3 %v5333_v8  ;;  %v4801_v25 = vcvt.s32.f32 %v3905_v12  ;;  %v4808_v26 = vcvt.s32.f32 %v3912_v21  ;;  %v3667_v15 = vunpack.c.2.s8 %v3324_v35  ;;  %v3674_v48 = vunpack.c.3.s8 %v3324_v35  ;;  %v3373_v3 = vld [vmem:[%s9214_s16 + $0x2b0] sm:$0xff] }
 0x4ac   :  { %v5445_v2 = vpack.c.bf16 %v4696_v23, %v4689_v22  ;;  %v4451_v47 = vcvt.s32.f32 %v3555_v54  ;;  %v4458_v38 = vcvt.s32.f32 %v3562_v16  ;;  %5975 = vmatpush.bf16.msrb.mxu0 %v5389_v43  ;;  %v3779_v9 = vunpack.c.2.s8 %v3352_v40 }
 0x4ad   :  { %v5501_v13 = vpack.c.bf16 %v4808_v26, %v4801_v25  ;;  %v4563_v59 = vcvt.s32.f32 %v3667_v15  ;;  %v3786_v33 = vunpack.c.3.s8 %v3352_v40  ;;  %v4570_v36 = vcvt.s32.f32 %v3674_v48 }
 0x4ae   :  { %5988 = vmatpush.bf16.msrb.mxu1 %v5445_v2  ;;  %v5326_v52 = vpack.c.bf16 %v4458_v38, %v4451_v47  ;;  %v3891_v1 = vunpack.c.2.s8 %v3380_v46  ;;  %v3898_v19 = vunpack.c.3.s8 %v3380_v46  ;;  %v4675_v6 = vcvt.s32.f32 %v3779_v9 }
 0x4af   :  { %6001 = vmatpush.bf16.msrb.mxu2 %v5501_v13  ;;  %v4682_v10 = vcvt.s32.f32 %v3786_v33  ;;  %v3541_v27 = vunpack.c.0.s8 %v3296_v4  ;;  %v3548_v42 = vunpack.c.1.s8 %v3296_v4  ;;  %v5382_v0 = vpack.c.bf16 %v4570_v36, %v4563_v59 }
 0x4b0   :  { %5963 = vmatpush.bf16.msra.mxu3 %v5326_v52  ;;  %v4787_v39 = vcvt.s32.f32 %v3891_v1  ;;  %v4794_v32 = vcvt.s32.f32 %v3898_v19  ;;  %v3653_v41 = vunpack.c.0.s8 %v3324_v35  ;;  %v3660_v53 = vunpack.c.1.s8 %v3324_v35 }
 0x4b1   :  { %v5438_v30 = vpack.c.bf16 %v4682_v10, %v4675_v6  ;;  %v4437_v28 = vcvt.s32.f32 %v3541_v27  ;;  %v4444_v17 = vcvt.s32.f32 %v3548_v42  ;;  %5976 = vmatpush.bf16.msrb.mxu0 %v5382_v0  ;;  %v3765_v45 = vunpack.c.0.s8 %v3352_v40  ;;  %v3422_v6 = vld [vmem:[%s9214_s16 + $0x438] sm:$0xff] }
 0x4b2   :  { %v5494_v50 = vpack.c.bf16 %v4794_v32, %v4787_v39  ;;  %v4549_v51 = vcvt.s32.f32 %v3653_v41  ;;  %v3772_v44 = vunpack.c.1.s8 %v3352_v40  ;;  %v4556_v57 = vcvt.s32.f32 %v3660_v53  ;;  %v3450_v39 = vld [vmem:[%s9214_s16 + $0x518] sm:$0xff] }
 0x4b3   :  { %5989 = vmatpush.bf16.msrb.mxu1 %v5438_v30  ;;  %v5319_v63 = vpack.c.bf16 %v4444_v17, %v4437_v28  ;;  %v3877_v18 = vunpack.c.0.s8 %v3380_v46  ;;  %v3884_v58 = vunpack.c.1.s8 %v3380_v46  ;;  %v4661_v29 = vcvt.s32.f32 %v3765_v45 }
 0x4b4   :  { %6002 = vmatpush.bf16.msrb.mxu2 %v5494_v50  ;;  %v4668_v14 = vcvt.s32.f32 %v3772_v44  ;;  %v3527_v4 = vunpack.c.2.s8 %v3289_v7  ;;  %v3534_v60 = vunpack.c.3.s8 %v3289_v7  ;;  %v5375_v62 = vpack.c.bf16 %v4556_v57, %v4549_v51  ;;  %v3478_v51 = vld [vmem:[%s9214_s16 + $0x5f8] sm:$0xff] }
 0x4b5   :  { %5964 = vmatpush.bf16.msra.mxu3 %v5319_v63  ;;  %v4773_v49 = vcvt.s32.f32 %v3877_v18  ;;  %v4780_v35 = vcvt.s32.f32 %v3884_v58  ;;  %v3639_v8 = vunpack.c.2.s8 %v3317_v20  ;;  %v3646_v23 = vunpack.c.3.s8 %v3317_v20  ;;  %v3506_v57 = vld [vmem:[%s9214_s16 + $0x6d8] sm:$0xff] }
 0x4b6   :  { %v5431_v12 = vpack.c.bf16 %v4668_v14, %v4661_v29  ;;  %v4423_v21 = vcvt.s32.f32 %v3527_v4  ;;  %v4430_v22 = vcvt.s32.f32 %v3534_v60  ;;  %5977 = vmatpush.bf16.msrb.mxu0 %v5375_v62  ;;  %v3751_v40 = vunpack.c.2.s8 %v3345_v37 }
 0x4b7   :  { %v5487_v54 = vpack.c.bf16 %v4780_v35, %v4773_v49  ;;  %v4535_v16 = vcvt.s32.f32 %v3639_v8  ;;  %v3758_v43 = vunpack.c.3.s8 %v3345_v37  ;;  %v4542_v26 = vcvt.s32.f32 %v3646_v23 }
 0x4b8   :  { %5990 = vmatpush.bf16.msrb.mxu1 %v5431_v12  ;;  %v5312_v25 = vpack.c.bf16 %v4430_v22, %v4423_v21  ;;  %v3863_v15 = vunpack.c.2.s8 %v3373_v3  ;;  %v3870_v46 = vunpack.c.3.s8 %v3373_v3  ;;  %v4647_v2 = vcvt.s32.f32 %v3751_v40 }
 0x4b9   :  { %6003 = vmatpush.bf16.msrb.mxu2 %v5487_v54  ;;  %v4654_v47 = vcvt.s32.f32 %v3758_v43  ;;  %v3513_v38 = vunpack.c.0.s8 %v3289_v7  ;;  %v3520_v48 = vunpack.c.1.s8 %v3289_v7  ;;  %v5368_v13 = vpack.c.bf16 %v4542_v26, %v4535_v16 }
 0x4ba   :  { %5965 = vmatpush.bf16.msra.mxu3 %v5312_v25  ;;  %v4759_v59 = vcvt.s32.f32 %v3863_v15  ;;  %v4766_v9 = vcvt.s32.f32 %v3870_v46  ;;  %v3625_v33 = vunpack.c.0.s8 %v3317_v20  ;;  %v3632_v19 = vunpack.c.1.s8 %v3317_v20 }
 0x4bb   :  { %v5424_v52 = vpack.c.bf16 %v4654_v47, %v4647_v2  ;;  %v4409_v36 = vcvt.s32.f32 %v3513_v38  ;;  %v4416_v1 = vcvt.s32.f32 %v3520_v48  ;;  %5978 = vmatpush.bf16.msrb.mxu0 %v5368_v13  ;;  %v3737_v42 = vunpack.c.0.s8 %v3345_v37  ;;  %v3415_v2 = vld [vmem:[%s9214_s16 + $0x400] sm:$0xff] }
 0x4bc   :  { %v5480_v10 = vpack.c.bf16 %v4766_v9, %v4759_v59  ;;  %v4521_v27 = vcvt.s32.f32 %v3625_v33  ;;  %v3744_v0 = vunpack.c.1.s8 %v3345_v37  ;;  %v4528_v41 = vcvt.s32.f32 %v3632_v19  ;;  %v3443_v59 = vld [vmem:[%s9214_s16 + $0x4e0] sm:$0xff] }
 0x4bd   :  { %5991 = vmatpush.bf16.msrb.mxu1 %v5424_v52  ;;  %v5305_v32 = vpack.c.bf16 %v4416_v1, %v4409_v36  ;;  %v3849_v30 = vunpack.c.0.s8 %v3373_v3  ;;  %v3856_v28 = vunpack.c.1.s8 %v3373_v3  ;;  %v4633_v17 = vcvt.s32.f32 %v3737_v42 }
 0x4be   :  { %6004 = vmatpush.bf16.msrb.mxu2 %v5480_v10  ;;  %v4640_v53 = vcvt.s32.f32 %v3744_v0  ;;  %v4059_v7 = vunpack.c.2.s8 %v3422_v6  ;;  %v4066_v50 = vunpack.c.3.s8 %v3422_v6  ;;  %v5361_v45 = vpack.c.bf16 %v4528_v41, %v4521_v27  ;;  %v3471_v27 = vld [vmem:[%s9214_s16 + $0x5c0] sm:$0xff] }
 0x4bf   :  { %5966 = vmatpush.bf16.msra.mxu3 %v5305_v32  ;;  %v4745_v44 = vcvt.s32.f32 %v3849_v30  ;;  %v4752_v20 = vcvt.s32.f32 %v3856_v28  ;;  %v4171_v63 = vunpack.c.2.s8 %v3450_v39  ;;  %v4178_v14 = vunpack.c.3.s8 %v3450_v39  ;;  %v3499_v41 = vld [vmem:[%s9214_s16 + $0x6a0] sm:$0xff] }
 0x4c0   :  { %v5417_v18 = vpack.c.bf16 %v4640_v53, %v4633_v17  ;;  %v4955_v58 = vcvt.s32.f32 %v4059_v7  ;;  %v4962_v29 = vcvt.s32.f32 %v4066_v50  ;;  %5979 = vmatpush.bf16.msrb.mxu0 %v5361_v45  ;;  %v4283_v37 = vunpack.c.2.s8 %v3478_v51 }
 0x4c1   :  { %v5473_v4 = vpack.c.bf16 %v4752_v20, %v4745_v44  ;;  %v5067_v60 = vcvt.s32.f32 %v4171_v63  ;;  %v4290_v62 = vunpack.c.3.s8 %v3478_v51  ;;  %v5074_v35 = vcvt.s32.f32 %v4178_v14 }
 0x4c2   :  { %5992 = vmatpush.bf16.msrb.mxu1 %v5417_v18  ;;  %v5578_v49 = vpack.c.bf16 %v4962_v29, %v4955_v58  ;;  %v4395_v8 = vunpack.c.2.s8 %v3506_v57  ;;  %v4402_v3 = vunpack.c.3.s8 %v3506_v57  ;;  %5967 = vmatmul.bf16.vlgmr.msra.gmra.mxu3 %v8291_v31  ;;  %v5179_v12 = vcvt.s32.f32 %v4283_v37 }
 0x4c3   :  { %6005 = vmatpush.bf16.msrb.mxu2 %v5473_v4  ;;  %v5186_v21 = vcvt.s32.f32 %v4290_v62  ;;  %v4045_v22 = vunpack.c.0.s8 %v3422_v6  ;;  %v4052_v23 = vunpack.c.1.s8 %v3422_v6  ;;  %v5634_v54 = vpack.c.bf16 %v5074_v35, %v5067_v60  ;;  %5980 = vmatmul.bf16.vlgmr.msrb.gmra.mxu0 %v8296_v11 }
 0x4c4   :  { %6011 = vmatpush.bf16.msrb.mxu3 %v5578_v49  ;;  %v5291_v16 = vcvt.s32.f32 %v4395_v8  ;;  %v5298_v40 = vcvt.s32.f32 %v4402_v3  ;;  %v4157_v43 = vunpack.c.0.s8 %v3450_v39  ;;  %v4164_v46 = vunpack.c.1.s8 %v3450_v39 }
 0x4c5   :  { %v5690_v25 = vpack.c.bf16 %v5186_v21, %v5179_v12  ;;  %5993 = vmatmul.bf16.vlgmr.msrb.gmra.mxu1 %v8299_v5  ;;  %v4941_v26 = vcvt.s32.f32 %v4045_v22  ;;  %v4948_v15 = vcvt.s32.f32 %v4052_v23  ;;  %6024 = vmatpush.bf16.msra.mxu0 %v5634_v54  ;;  %v4269_v48 = vunpack.c.0.s8 %v3478_v51  ;;  %v3408_v12 = vld [vmem:[%s9214_s16 + $0x3c8] sm:$0xff] }
 0x4c6   :  { %v5746_v47 = vpack.c.bf16 %v5298_v40, %v5291_v16  ;;  %6006 = vmatmul.bf16.vlgmr.msrb.gmra.mxu2 %v8302_v55  ;;  %v5053_v38 = vcvt.s32.f32 %v4157_v43  ;;  %v4276_v13 = vunpack.c.1.s8 %v3478_v51  ;;  %v5060_v33 = vcvt.s32.f32 %v4164_v46  ;;  %v3436_v16 = vld [vmem:[%s9214_s16 + $0x4a8] sm:$0xff] }
 0x4c7   :  { %6037 = vmatpush.bf16.msra.mxu1 %v5690_v25  ;;  %v5571_v9 = vpack.c.bf16 %v4948_v15, %v4941_v26  ;;  %v4381_v52 = vunpack.c.0.s8 %v3506_v57  ;;  %v4388_v36 = vunpack.c.1.s8 %v3506_v57  ;;  %v5165_v1 = vcvt.s32.f32 %v4269_v48 }
 0x4c8   :  { %6050 = vmatpush.bf16.msra.mxu2 %v5746_v47  ;;  %v5172_v19 = vcvt.s32.f32 %v4276_v13  ;;  %v4031_v6 = vunpack.c.2.s8 %v3415_v2  ;;  %v4038_v10 = vunpack.c.3.s8 %v3415_v2  ;;  %v5627_v42 = vpack.c.bf16 %v5060_v33, %v5053_v38  ;;  %v3464_v38 = vld [vmem:[%s9214_s16 + $0x588] sm:$0xff] }
 0x4c9   :  { %6012 = vmatpush.bf16.msrb.mxu3 %v5571_v9  ;;  %v5277_v0 = vcvt.s32.f32 %v4381_v52  ;;  %v5284_v39 = vcvt.s32.f32 %v4388_v36  ;;  %v4143_v32 = vunpack.c.2.s8 %v3443_v59  ;;  %v4150_v53 = vunpack.c.3.s8 %v3443_v59  ;;  %v3492_v33 = vld [vmem:[%s9214_s16 + $0x668] sm:$0xff] }
 0x4ca   :  { %v5683_v30 = vpack.c.bf16 %v5172_v19, %v5165_v1  ;;  %v4927_v28 = vcvt.s32.f32 %v4031_v6  ;;  %v4934_v17 = vcvt.s32.f32 %v4038_v10  ;;  %6025 = vmatpush.bf16.msra.mxu0 %v5627_v42  ;;  %v4255_v51 = vunpack.c.2.s8 %v3471_v27 }
 0x4cb   :  { %v5739_v7 = vpack.c.bf16 %v5284_v39, %v5277_v0  ;;  %v5039_v50 = vcvt.s32.f32 %v4143_v32  ;;  %v4262_v45 = vunpack.c.3.s8 %v3471_v27  ;;  %v5046_v20 = vcvt.s32.f32 %v4150_v53 }
 0x4cc   :  { %6038 = vmatpush.bf16.msra.mxu1 %v5683_v30  ;;  %v5564_v44 = vpack.c.bf16 %v4934_v17, %v4927_v28  ;;  %v4367_v63 = vunpack.c.2.s8 %v3499_v41  ;;  %v4374_v57 = vunpack.c.3.s8 %v3499_v41  ;;  %v5151_v18 = vcvt.s32.f32 %v4255_v51 }
 0x4cd   :  { %6051 = vmatpush.bf16.msra.mxu2 %v5739_v7  ;;  %v5158_v58 = vcvt.s32.f32 %v4262_v45  ;;  %v4017_v29 = vunpack.c.0.s8 %v3415_v2  ;;  %v4024_v14 = vunpack.c.1.s8 %v3415_v2  ;;  %v5620_v4 = vpack.c.bf16 %v5046_v20, %v5039_v50 }
 0x4ce   :  { %6013 = vmatpush.bf16.msrb.mxu3 %v5564_v44  ;;  %v5263_v60 = vcvt.s32.f32 %v4367_v63  ;;  %v5270_v37 = vcvt.s32.f32 %v4374_v57  ;;  %v4129_v62 = vunpack.c.0.s8 %v3443_v59  ;;  %v4136_v3 = vunpack.c.1.s8 %v3443_v59 }
 0x4cf   :  { %v5676_v49 = vpack.c.bf16 %v5158_v58, %v5151_v18  ;;  %v4913_v35 = vcvt.s32.f32 %v4017_v29  ;;  %v4920_v8 = vcvt.s32.f32 %v4024_v14  ;;  %6026 = vmatpush.bf16.msra.mxu0 %v5620_v4  ;;  %v4241_v23 = vunpack.c.0.s8 %v3471_v27  ;;  %v3401_v18 = vld [vmem:[%s9214_s16 + $0x390] sm:$0xff] }
 0x4d0   :  { %v5732_v21 = vpack.c.bf16 %v5270_v37, %v5263_v60  ;;  %v5025_v22 = vcvt.s32.f32 %v4129_v62  ;;  %v4248_v54 = vunpack.c.1.s8 %v3471_v27  ;;  %v5032_v43 = vcvt.s32.f32 %v4136_v3  ;;  %v3429_v60 = vld [vmem:[%s9214_s16 + $0x470] sm:$0xff]  ;;  %v8533_v37 = vpop.f32.mrf.mxu0  ;;  %v8535_v62 = vpop.f32.mrf.mxu1 }
 0x4d1   :  { %6039 = vmatpush.bf16.msra.mxu1 %v5676_v49  ;;  %v5557_v40 = vpack.c.bf16 %v4920_v8, %v4913_v35  ;;  %v4353_v25 = vunpack.c.0.s8 %v3499_v41  ;;  %v4360_v26 = vunpack.c.1.s8 %v3499_v41  ;;  %v5137_v15 = vcvt.s32.f32 %v4241_v23 }
 0x4d2   :  { %6052 = vmatpush.bf16.msra.mxu2 %v5732_v21  ;;  %v5144_v46 = vcvt.s32.f32 %v4248_v54  ;;  %v4003_v2 = vunpack.c.2.s8 %v3408_v12  ;;  %v4010_v47 = vunpack.c.3.s8 %v3408_v12  ;;  %v5613_v48 = vpack.c.bf16 %v5032_v43, %v5025_v22  ;;  %v3457_v54 = vld [vmem:[%s9214_s16 + $0x550] sm:$0xff] }
 0x4d3   :  { %6014 = vmatpush.bf16.msrb.mxu3 %v5557_v40  ;;  %v5249_v13 = vcvt.s32.f32 %v4353_v25  ;;  %v5256_v59 = vcvt.s32.f32 %v4360_v26  ;;  %v4115_v9 = vunpack.c.2.s8 %v3436_v16  ;;  %v4122_v19 = vunpack.c.3.s8 %v3436_v16  ;;  %v3485_v26 = vld [vmem:[%s9214_s16 + $0x630] sm:$0xff] }
 0x4d4   :  { %v5669_v52 = vpack.c.bf16 %v5144_v46, %v5137_v15  ;;  %v4899_v36 = vcvt.s32.f32 %v4003_v2  ;;  %v4906_v1 = vcvt.s32.f32 %v4010_v47  ;;  %6027 = vmatpush.bf16.msra.mxu0 %v5613_v48  ;;  %v4227_v27 = vunpack.c.2.s8 %v3464_v38 }
 0x4d5   :  { %v5725_v6 = vpack.c.bf16 %v5256_v59, %v5249_v13  ;;  %v5011_v10 = vcvt.s32.f32 %v4115_v9  ;;  %v4234_v42 = vunpack.c.3.s8 %v3464_v38  ;;  %v5018_v39 = vcvt.s32.f32 %v4122_v19  ;;  %v8543_v9 = vpop.f32.mrf.mxu3 }
 0x4d6   :  { %6040 = vmatpush.bf16.msra.mxu1 %v5669_v52  ;;  %v5550_v0 = vpack.c.bf16 %v4906_v1, %v4899_v36  ;;  %v4339_v32 = vunpack.c.2.s8 %v3492_v33  ;;  %v4346_v41 = vunpack.c.3.s8 %v3492_v33  ;;  %v5123_v30 = vcvt.s32.f32 %v4227_v27 }
 0x4d7   :  { %6053 = vmatpush.bf16.msra.mxu2 %v5725_v6  ;;  %v5130_v28 = vcvt.s32.f32 %v4234_v42  ;;  %v3989_v17 = vunpack.c.0.s8 %v3408_v12  ;;  %v3996_v53 = vunpack.c.1.s8 %v3408_v12  ;;  %v5606_v7 = vpack.c.bf16 %v5018_v39, %v5011_v10 }
 0x4d8   :  { %6015 = vmatpush.bf16.msrb.mxu3 %v5550_v0  ;;  %v5235_v50 = vcvt.s32.f32 %v4339_v32  ;;  %v5242_v51 = vcvt.s32.f32 %v4346_v41  ;;  %v4101_v45 = vunpack.c.0.s8 %v3436_v16  ;;  %v4108_v57 = vunpack.c.1.s8 %v3436_v16 }
 0x4d9   :  { %v5662_v44 = vpack.c.bf16 %v5130_v28, %v5123_v30  ;;  %v4885_v20 = vcvt.s32.f32 %v3989_v17  ;;  %v4892_v63 = vcvt.s32.f32 %v3996_v53  ;;  %6028 = vmatpush.bf16.msra.mxu0 %v5606_v7  ;;  %v4213_v14 = vunpack.c.0.s8 %v3464_v38  ;;  %v5775_v30 = vpop.f32.mrf.mxu0  ;;  %v5788_v28 = vpop.f32.mrf.mxu1 }
 0x4da   :  { %v5718_v58 = vpack.c.bf16 %v5242_v51, %v5235_v50  ;;  %v4997_v29 = vcvt.s32.f32 %v4101_v45  ;;  %v4220_v4 = vunpack.c.1.s8 %v3464_v38  ;;  %v5004_v35 = vcvt.s32.f32 %v4108_v57  ;;  %v3311_v51 = vld [vmem:[%s9214_s16 + $0xc0] sm:$0xff]  ;;  %v3304_v30 = vld [vmem:[%s9214_s16 + $0x88] sm:$0xff] }
 0x4db   :  { %6041 = vmatpush.bf16.msra.mxu1 %v5662_v44  ;;  %v5543_v49 = vpack.c.bf16 %v4892_v63, %v4885_v20  ;;  %v4325_v8 = vunpack.c.0.s8 %v3492_v33  ;;  %v4332_v3 = vunpack.c.1.s8 %v3492_v33  ;;  %v5109_v12 = vcvt.s32.f32 %v4213_v14  ;;  %v8545_v33 = vpop.f32.mrf.mxu2  ;;  %v3339_v57 = vld [vmem:[%s9214_s16 + $0x1a0] sm:$0xff] }
 0x4dc   :  { %6054 = vmatpush.bf16.msra.mxu2 %v5718_v58  ;;  %v5116_v21 = vcvt.s32.f32 %v4220_v4  ;;  %v3975_v22 = vunpack.c.2.s8 %v3401_v18  ;;  %v3982_v23 = vunpack.c.3.s8 %v3401_v18  ;;  %v5599_v16 = vpack.c.bf16 %v5004_v35, %v4997_v29 }
 0x4dd   :  { %6016 = vmatpush.bf16.msrb.mxu3 %v5543_v49  ;;  %v5221_v40 = vcvt.s32.f32 %v4325_v8  ;;  %v5228_v43 = vcvt.s32.f32 %v4332_v3  ;;  %v4087_v25 = vunpack.c.2.s8 %v3429_v60  ;;  %v4094_v47 = vunpack.c.3.s8 %v3429_v60  ;;  %v3367_v8 = vld [vmem:[%s9214_s16 + $0x280] sm:$0xff] }
 0x4de   :  { %v5655_v15 = vpack.c.bf16 %v5116_v21, %v5109_v12  ;;  %v4871_v46 = vcvt.s32.f32 %v3975_v22  ;;  %v4878_v2 = vcvt.s32.f32 %v3982_v23  ;;  %6029 = vmatpush.bf16.msra.mxu0 %v5599_v16  ;;  %v4199_v13 = vunpack.c.2.s8 %v3457_v54  ;;  %v3395_v23 = vld [vmem:[%s9214_s16 + $0x360] sm:$0xff] }
 0x4df   :  { %v5711_v38 = vpack.c.bf16 %v5228_v43, %v5221_v40  ;;  %v4983_v48 = vcvt.s32.f32 %v4087_v25  ;;  %v4206_v59 = vunpack.c.3.s8 %v3457_v54  ;;  %v4990_v36 = vcvt.s32.f32 %v4094_v47 }
 0x4e0   :  { %6042 = vmatpush.bf16.msra.mxu1 %v5655_v15  ;;  %v5536_v52 = vpack.c.bf16 %v4878_v2, %v4871_v46  ;;  %v4311_v1 = vunpack.c.2.s8 %v3485_v26  ;;  %v4318_v19 = vunpack.c.3.s8 %v3485_v26  ;;  %v5095_v6 = vcvt.s32.f32 %v4199_v13 }
 0x4e1   :  { %6055 = vmatpush.bf16.msra.mxu2 %v5711_v38  ;;  %v5102_v10 = vcvt.s32.f32 %v4206_v59  ;;  %v3961_v27 = vunpack.c.0.s8 %v3401_v18  ;;  %v3968_v42 = vunpack.c.1.s8 %v3401_v18  ;;  %v5592_v0 = vpack.c.bf16 %v4990_v36, %v4983_v48 }
 0x4e2   :  { %6017 = vmatpush.bf16.msrb.mxu3 %v5536_v52  ;;  %v5207_v39 = vcvt.s32.f32 %v4311_v1  ;;  %v5214_v32 = vcvt.s32.f32 %v4318_v19  ;;  %v4073_v41 = vunpack.c.0.s8 %v3429_v60  ;;  %v4080_v50 = vunpack.c.1.s8 %v3429_v60 }
 0x4e3   :  { %v5648_v17 = vpack.c.bf16 %v5102_v10, %v5095_v6  ;;  %v4857_v53 = vcvt.s32.f32 %v3961_v27  ;;  %v4864_v7 = vcvt.s32.f32 %v3968_v42  ;;  %6030 = vmatpush.bf16.msra.mxu0 %v5592_v0  ;;  %v4185_v20 = vunpack.c.0.s8 %v3457_v54  ;;  %v5801_v16 = vpop.f32.mrf.mxu2 }
 0x4e4   :  { %v5704_v45 = vpack.c.bf16 %v5214_v32, %v5207_v39  ;;  %v4969_v44 = vcvt.s32.f32 %v4073_v41  ;;  %v4192_v63 = vunpack.c.1.s8 %v3457_v54  ;;  %v4976_v58 = vcvt.s32.f32 %v4080_v50  ;;  %v5762_v54 = vpop.f32.mrf.mxu3  ;;  %v3332_v50 = vld [vmem:[%s9214_s16 + $0x168] sm:$0xff] }
 0x4e5   :  { %6043 = vmatpush.bf16.msra.mxu1 %v5648_v17  ;;  %v5529_v18 = vpack.c.bf16 %v4864_v7, %v4857_v53  ;;  %v4297_v29 = vunpack.c.0.s8 %v3485_v26  ;;  %v4304_v14 = vunpack.c.1.s8 %v3485_v26  ;;  %v5081_v4 = vcvt.s32.f32 %v4185_v20 }
 0x4e6   :  { %6056 = vmatpush.bf16.msra.mxu2 %v5704_v45  ;;  %v5088_v60 = vcvt.s32.f32 %v4192_v63  ;;  %v3612_v49 = vunpack.c.2.s8 %v3311_v51  ;;  %v3619_v35 = vunpack.c.3.s8 %v3311_v51  ;;  %v5585_v3 = vpack.c.bf16 %v4976_v58, %v4969_v44  ;;  %v8569_v63 = vpop.f32.mrf.mxu0 }
 0x4e7   :  { %6018 = vmatpush.bf16.msrb.mxu3 %v5529_v18  ;;  %v5193_v12 = vcvt.s32.f32 %v4297_v29  ;;  %v5200_v21 = vcvt.s32.f32 %v4304_v14  ;;  %v3724_v22 = vunpack.c.2.s8 %v3339_v57  ;;  %v3731_v26 = vunpack.c.3.s8 %v3339_v57 }
 0x4e8   :  { %v5641_v40 = vpack.c.bf16 %v5088_v60, %v5081_v4  ;;  %v4508_v43 = vcvt.s32.f32 %v3612_v49  ;;  %v4515_v25 = vcvt.s32.f32 %v3619_v35  ;;  %6031 = vmatpush.bf16.msra.mxu0 %v5585_v3  ;;  %v3836_v2 = vunpack.c.2.s8 %v3367_v8  ;;  %v3360_v4 = vld [vmem:[%s9214_s16 + $0x248] sm:$0xff] }
 0x4e9   :  { %v5697_v15 = vpack.c.bf16 %v5200_v21, %v5193_v12  ;;  %v4620_v46 = vcvt.s32.f32 %v3724_v22  ;;  %v3843_v47 = vunpack.c.3.s8 %v3367_v8  ;;  %v4627_v48 = vcvt.s32.f32 %v3731_v26  ;;  %v3388_v3 = vld [vmem:[%s9214_s16 + $0x328] sm:$0xff] }
 0x4ea   :  { %6044 = vmatpush.bf16.msra.mxu1 %v5641_v40  ;;  %v5355_v38 = vpack.c.bf16 %v4515_v25, %v4508_v43  ;;  %v3948_v13 = vunpack.c.2.s8 %v3395_v23  ;;  %v3955_v59 = vunpack.c.3.s8 %v3395_v23  ;;  %6019 = vmatmul.bf16.vlgmr.msrb.gmra.mxu3 %v8355_v34  ;;  %v4732_v52 = vcvt.s32.f32 %v3836_v2 }
 0x4eb   :  { %6057 = vmatpush.bf16.msra.mxu2 %v5697_v15  ;;  %v4739_v36 = vcvt.s32.f32 %v3843_v47  ;;  %v3598_v1 = vunpack.c.0.s8 %v3311_v51  ;;  %v3605_v19 = vunpack.c.1.s8 %v3311_v51  ;;  %v5411_v6 = vpack.c.bf16 %v4627_v48, %v4620_v46  ;;  %6032 = vmatmul.bf16.vlgmr.msra.gmra.mxu0 %v8358_v56 }
 0x4ec   :  { %6063 = vmatpush.bf16.msra.mxu3 %v5355_v38  ;;  %v4844_v10 = vcvt.s32.f32 %v3948_v13  ;;  %v4851_v27 = vcvt.s32.f32 %v3955_v59  ;;  %v3710_v42 = vunpack.c.0.s8 %v3339_v57  ;;  %v3717_v41 = vunpack.c.1.s8 %v3339_v57  ;;  %v8571_v57 = vpop.f32.mrf.mxu1 }
 0x4ed   :  { %v5467_v0 = vpack.c.bf16 %v4739_v36, %v4732_v52  ;;  %6045 = vmatmul.bf16.vlgmr.msra.gmra.mxu1 %v8361_v24  ;;  %v4494_v39 = vcvt.s32.f32 %v3598_v1  ;;  %v4501_v32 = vcvt.s32.f32 %v3605_v19  ;;  %6076 = vmatpush.bf16.msrb.mxu0 %v5411_v6  ;;  %v3822_v53 = vunpack.c.0.s8 %v3367_v8 }
 0x4ee   :  { %v5523_v28 = vpack.c.bf16 %v4851_v27, %v4844_v10  ;;  %6058 = vmatmul.bf16.vlgmr.msra.gmra.mxu2 %v8260_v61  ;;  %v4606_v17 = vcvt.s32.f32 %v3710_v42  ;;  %v3829_v7 = vunpack.c.1.s8 %v3367_v8  ;;  %v4613_v45 = vcvt.s32.f32 %v3717_v41  ;;  %v3297_v27 = vld [vmem:[%s9214_s16 + $0x50] sm:$0xff]  ;;  %v5827_v42 = vpop.f32.mrf.mxu0 }
 0x4ef   :  { %6089 = vmatpush.bf16.msrb.mxu1 %v5467_v0  ;;  %v5348_v51 = vpack.c.bf16 %v4501_v32, %v4494_v39  ;;  %v3934_v44 = vunpack.c.0.s8 %v3395_v23  ;;  %v3941_v20 = vunpack.c.1.s8 %v3395_v23  ;;  %v4718_v18 = vcvt.s32.f32 %v3822_v53  ;;  %v3290_v42 = vld [vmem:[%s9214_s16 + $0x18] sm:$0xff] }
 0x4f0   :  { %6102 = vmatpush.bf16.msrb.mxu2 %v5523_v28  ;;  %v4725_v58 = vcvt.s32.f32 %v3829_v7  ;;  %v3584_v29 = vunpack.c.2.s8 %v3304_v30  ;;  %v3591_v14 = vunpack.c.3.s8 %v3304_v30  ;;  %v5404_v60 = vpack.c.bf16 %v4613_v45, %v4606_v17  ;;  %v8587_v45 = vpop.f32.mrf.mxu2 }
 0x4f1   :  { %6064 = vmatpush.bf16.msra.mxu3 %v5348_v51  ;;  %v4830_v49 = vcvt.s32.f32 %v3934_v44  ;;  %v4837_v35 = vcvt.s32.f32 %v3941_v20  ;;  %v3696_v8 = vunpack.c.2.s8 %v3332_v50  ;;  %v3703_v23 = vunpack.c.3.s8 %v3332_v50  ;;  %v8585_v51 = vpop.f32.mrf.mxu3 }
 0x4f2   :  { %v5460_v12 = vpack.c.bf16 %v4725_v58, %v4718_v18  ;;  %v4480_v21 = vcvt.s32.f32 %v3584_v29  ;;  %v4487_v22 = vcvt.s32.f32 %v3591_v14  ;;  %6077 = vmatpush.bf16.msrb.mxu0 %v5404_v60  ;;  %v3808_v40 = vunpack.c.2.s8 %v3360_v4  ;;  %v3353_v29 = vld [vmem:[%s9214_s16 + $0x210] sm:$0xff] }
 0x4f3   :  { %v5516_v54 = vpack.c.bf16 %v4837_v35, %v4830_v49  ;;  %v4592_v16 = vcvt.s32.f32 %v3696_v8  ;;  %v3815_v43 = vunpack.c.3.s8 %v3360_v4  ;;  %v4599_v26 = vcvt.s32.f32 %v3703_v23  ;;  %v3381_v35 = vld [vmem:[%s9214_s16 + $0x2f0] sm:$0xff] }
 0x4f4   :  { %6090 = vmatpush.bf16.msrb.mxu1 %v5460_v12  ;;  %v5341_v25 = vpack.c.bf16 %v4487_v22, %v4480_v21  ;;  %v3920_v15 = vunpack.c.2.s8 %v3388_v3  ;;  %v3927_v46 = vunpack.c.3.s8 %v3388_v3  ;;  %v4704_v2 = vcvt.s32.f32 %v3808_v40  ;;  %v5840_v0 = vpop.f32.mrf.mxu1 }
 0x4f5   :  { %6103 = vmatpush.bf16.msrb.mxu2 %v5516_v54  ;;  %v4711_v47 = vcvt.s32.f32 %v3815_v43  ;;  %v3570_v38 = vunpack.c.0.s8 %v3304_v30  ;;  %v3577_v48 = vunpack.c.1.s8 %v3304_v30  ;;  %v5397_v13 = vpack.c.bf16 %v4599_v26, %v4592_v16 }
 0x4f6   :  { %6065 = vmatpush.bf16.msra.mxu3 %v5341_v25  ;;  %v4816_v59 = vcvt.s32.f32 %v3920_v15  ;;  %v4823_v52 = vcvt.s32.f32 %v3927_v46  ;;  %v3682_v36 = vunpack.c.0.s8 %v3332_v50  ;;  %v3689_v10 = vunpack.c.1.s8 %v3332_v50  ;;  %v3325_v50 = vld [vmem:[%s9214_s16 + $0x130] sm:$0xff] }
 0x4f7   :  { %v5453_v1 = vpack.c.bf16 %v4711_v47, %v4704_v2  ;;  %v4466_v19 = vcvt.s32.f32 %v3570_v38  ;;  %v4473_v6 = vcvt.s32.f32 %v3577_v48  ;;  %6078 = vmatpush.bf16.msrb.mxu0 %v5397_v13  ;;  %v3794_v41 = vunpack.c.0.s8 %v3360_v4 }
 0x4f8   :  { %v5509_v39 = vpack.c.bf16 %v4823_v52, %v4816_v59  ;;  %v4578_v32 = vcvt.s32.f32 %v3682_v36  ;;  %v3801_v30 = vunpack.c.1.s8 %v3360_v4  ;;  %v4585_v17 = vcvt.s32.f32 %v3689_v10 }
 0x4f9   :  { %6091 = vmatpush.bf16.msrb.mxu1 %v5453_v1  ;;  %v5334_v28 = vpack.c.bf16 %v4473_v6, %v4466_v19  ;;  %v3906_v53 = vunpack.c.0.s8 %v3388_v3  ;;  %v3913_v7 = vunpack.c.1.s8 %v3388_v3  ;;  %v4690_v44 = vcvt.s32.f32 %v3794_v41  ;;  %v5814_v36 = vpop.f32.mrf.mxu3  ;;  %v3318_v41 = vld [vmem:[%s9214_s16 + $0xf8] sm:$0xff] }
 0x4fa   :  { %6104 = vmatpush.bf16.msrb.mxu2 %v5509_v39  ;;  %v4697_v20 = vcvt.s32.f32 %v3801_v30  ;;  %v5774_v18 = vadd.f32 %v8533_v37, %v8543_v9  ;;  %v3556_v58 = vunpack.c.2.s8 %v3297_v27  ;;  %v5390_v14 = vpack.c.bf16 %v4585_v17, %v4578_v32 }
 0x4fb   :  { %6066 = vmatpush.bf16.msra.mxu3 %v5334_v28  ;;  %v4802_v4 = vcvt.s32.f32 %v3906_v53  ;;  %v4809_v60 = vcvt.s32.f32 %v3913_v7  ;;  %v3563_v49 = vunpack.c.3.s8 %v3297_v27  ;;  %v3668_v21 = vunpack.c.2.s8 %v3325_v50  ;;  %v3346_v7 = vld [vmem:[%s9214_s16 + $0x1d8] sm:$0xff] }
 0x4fc   :  { %v5446_v8 = vpack.c.bf16 %v4697_v20, %v4690_v44  ;;  %v5787_v3 = vadd.f32 %v8535_v62, %v5774_v18  ;;  %v4452_v12 = vcvt.s32.f32 %v3556_v58  ;;  %6079 = vmatpush.bf16.msrb.mxu0 %v5390_v14  ;;  %v3675_v22 = vunpack.c.3.s8 %v3325_v50 }
 0x4fd   :  { %v5502_v37 = vpack.c.bf16 %v4809_v60, %v4802_v4  ;;  %v4459_v9 = vcvt.s32.f32 %v3563_v49  ;;  %v3780_v23 = vunpack.c.2.s8 %v3353_v29  ;;  %v4564_v16 = vcvt.s32.f32 %v3668_v21  ;;  %v3374_v60 = vld [vmem:[%s9214_s16 + $0x2b8] sm:$0xff]  ;;  %v8615_v21 = vpop.f32.mrf.mxu1 }
 0x4fe   :  { %6092 = vmatpush.bf16.msrb.mxu1 %v5446_v8  ;;  %v8599_v54 = vadd.f32 %v8545_v33, %v5787_v3  ;;  %v3787_v40 = vunpack.c.3.s8 %v3353_v29  ;;  %v3892_v43 = vunpack.c.2.s8 %v3381_v35  ;;  %v4571_v26 = vcvt.s32.f32 %v3675_v22  ;;  %v5853_v33 = vpop.f32.mrf.mxu2 }
 0x4ff   :  { %6105 = vmatpush.bf16.msrb.mxu2 %v5502_v37  ;;  %v5327_v25 = vpack.c.bf16 %v4459_v9, %v4452_v12  ;;  %v4676_v15 = vcvt.s32.f32 %v3780_v23  ;;  %v3899_v46 = vunpack.c.3.s8 %v3381_v35  ;;  %v3542_v47 = vunpack.c.0.s8 %v3297_v27  ;;  %v8613_v12 = vpop.f32.mrf.mxu0  ;;  %v8620_v33 = vld [vmem:[%s9214_s16 + $0x440] sm:$0xff] }
 0x500   :  { %v4683_v62 = vcvt.s32.f32 %v3787_v40  ;;  %v4788_v2 = vcvt.s32.f32 %v3892_v43  ;;  %v3549_v38 = vunpack.c.1.s8 %v3297_v27  ;;  %v5383_v48 = vpack.c.bf16 %v4571_v26, %v4564_v16 }
 0x501   :  { %6067 = vmatpush.bf16.msra.mxu3 %v5327_v25  ;;  %v4795_v13 = vcvt.s32.f32 %v3899_v46  ;;  %v3654_v59 = vunpack.c.0.s8 %v3325_v50  ;;  %v3661_v52 = vunpack.c.1.s8 %v3325_v50  ;;  %v4438_v19 = vcvt.s32.f32 %v3542_v47 }
 0x502   :  { %v5439_v1 = vpack.c.bf16 %v4683_v62, %v4676_v15  ;;  %v4445_v6 = vcvt.s32.f32 %v3549_v38  ;;  %v3766_v10 = vunpack.c.0.s8 %v3353_v29  ;;  %6080 = vmatpush.bf16.msrb.mxu0 %v5383_v48  ;;  %v3773_v27 = vunpack.c.1.s8 %v3353_v29 }
 0x503   :  { %v5495_v0 = vpack.c.bf16 %v4795_v13, %v4788_v2  ;;  %v4550_v39 = vcvt.s32.f32 %v3654_v59  ;;  %v4557_v32 = vcvt.s32.f32 %v3661_v52  ;;  %v3878_v17 = vunpack.c.0.s8 %v3381_v35 }
 0x504   :  { %6093 = vmatpush.bf16.msrb.mxu1 %v5439_v1  ;;  %v5320_v30 = vpack.c.bf16 %v4445_v6, %v4438_v19  ;;  %v4662_v28 = vcvt.s32.f32 %v3766_v10  ;;  %v3885_v53 = vunpack.c.1.s8 %v3381_v35  ;;  %v4669_v44 = vcvt.s32.f32 %v3773_v27 }
 0x505   :  { %6106 = vmatpush.bf16.msrb.mxu2 %v5495_v0  ;;  %v5376_v50 = vpack.c.bf16 %v4557_v32, %v4550_v39  ;;  %v3528_v20 = vunpack.c.2.s8 %v3290_v42  ;;  %v3535_v18 = vunpack.c.3.s8 %v3290_v42  ;;  %v4774_v58 = vcvt.s32.f32 %v3878_v17 }
 0x506   :  { %6068 = vmatpush.bf16.msra.mxu3 %v5320_v30  ;;  %v4781_v29 = vcvt.s32.f32 %v3885_v53  ;;  %v3640_v14 = vunpack.c.2.s8 %v3318_v41  ;;  %v3647_v4 = vunpack.c.3.s8 %v3318_v41  ;;  %v5432_v49 = vpack.c.bf16 %v4669_v44, %v4662_v28 }
 0x507   :  { %6081 = vmatpush.bf16.msrb.mxu0 %v5376_v50  ;;  %v4424_v35 = vcvt.s32.f32 %v3528_v20  ;;  %v4431_v8 = vcvt.s32.f32 %v3535_v18  ;;  %v3752_v3 = vunpack.c.2.s8 %v3346_v7  ;;  %v3759_v23 = vunpack.c.3.s8 %v3346_v7  ;;  %v8636_v50 = vpop.f32.mrf.mxu2 }
 0x508   :  { %v5488_v37 = vpack.c.bf16 %v4781_v29, %v4774_v58  ;;  %v4536_v9 = vcvt.s32.f32 %v3640_v14  ;;  %v4543_v22 = vcvt.s32.f32 %v3647_v4  ;;  %6094 = vmatpush.bf16.msrb.mxu1 %v5432_v49  ;;  %v3864_v43 = vunpack.c.2.s8 %v3374_v60  ;;  %v8643_v29 = vld [vmem:[%s9214_s16 + $0x6e0] sm:$0xff]  ;;  %v5879_v14 = vpop.f32.mrf.mxu0  ;;  %v5892_v4 = vpop.f32.mrf.mxu1 }
 0x509   :  { %v5313_v16 = vpack.c.bf16 %v4431_v8, %v4424_v35  ;;  %v4648_v40 = vcvt.s32.f32 %v3752_v3  ;;  %v3871_v25 = vunpack.c.3.s8 %v3374_v60  ;;  %v4655_v15 = vcvt.s32.f32 %v3759_v23  ;;  %v8649_v3 = vld [vmem:[%s9215_s17] sm:$0x7f] }
 0x50a   :  { %6107 = vmatpush.bf16.msrb.mxu2 %v5488_v37  ;;  %v5369_v26 = vpack.c.bf16 %v4543_v22, %v4536_v9  ;;  %v3514_v46 = vunpack.c.0.s8 %v3290_v42  ;;  %v3521_v62 = vunpack.c.1.s8 %v3290_v42  ;;  %v4760_v2 = vcvt.s32.f32 %v3864_v43  ;;  %v8625_v42 = vld [vmem:[%s9214_s16 + $0x520] sm:$0xff] }
 0x50b   :  { %6069 = vmatpush.bf16.msra.mxu3 %v5313_v16  ;;  %v4767_v47 = vcvt.s32.f32 %v3871_v25  ;;  %v3626_v38 = vunpack.c.0.s8 %v3318_v41  ;;  %v3633_v48 = vunpack.c.1.s8 %v3318_v41  ;;  %v5425_v13 = vpack.c.bf16 %v4655_v15, %v4648_v40  ;;  %v8630_v41 = vld [vmem:[%s9214_s16 + $0x600] sm:$0xff] }
 0x50c   :  { %6082 = vmatpush.bf16.msrb.mxu0 %v5369_v26  ;;  %v4410_v59 = vcvt.s32.f32 %v3514_v46  ;;  %v4417_v52 = vcvt.s32.f32 %v3521_v62  ;;  %v3738_v36 = vunpack.c.0.s8 %v3346_v7  ;;  %v3745_v10 = vunpack.c.1.s8 %v3346_v7  ;;  %v8634_v7 = vpop.f32.mrf.mxu3  ;;  %v8655_v16 = vld [vmem:[%s9216_s18] sm:$0x7f] }
 0x50d   :  { %v5481_v1 = vpack.c.bf16 %v4767_v47, %v4760_v2  ;;  %v4522_v19 = vcvt.s32.f32 %v3626_v38  ;;  %v4529_v6 = vcvt.s32.f32 %v3633_v48  ;;  %6095 = vmatpush.bf16.msrb.mxu1 %v5425_v13  ;;  %v3850_v32 = vunpack.c.0.s8 %v3374_v60 }
 0x50e   :  { %v5306_v0 = vpack.c.bf16 %v4417_v52, %v4410_v59  ;;  %v4634_v39 = vcvt.s32.f32 %v3738_v36  ;;  %v3857_v27 = vunpack.c.1.s8 %v3374_v60  ;;  %v4641_v28 = vcvt.s32.f32 %v3745_v10  ;;  %v3416_v10 = vld [vmem:[%s9214_s16 + $0x408] sm:$0xff] }
 0x50f   :  { %6108 = vmatpush.bf16.msrb.mxu2 %v5481_v1  ;;  %v5362_v30 = vpack.c.bf16 %v4529_v6, %v4522_v19  ;;  %v4060_v17 = vunpack.c.2.s8 %v8620_v33  ;;  %v4067_v53 = vunpack.c.3.s8 %v8620_v33  ;;  %v4746_v44 = vcvt.s32.f32 %v3850_v32 }
 0x510   :  { %6070 = vmatpush.bf16.msra.mxu3 %v5306_v0  ;;  %v4753_v20 = vcvt.s32.f32 %v3857_v27  ;;  %v4172_v18 = vunpack.c.2.s8 %v8625_v42  ;;  %v4179_v58 = vunpack.c.3.s8 %v8625_v42  ;;  %v5418_v60 = vpack.c.bf16 %v4641_v28, %v4634_v39 }
 0x511   :  { %6083 = vmatpush.bf16.msrb.mxu0 %v5362_v30  ;;  %v4956_v49 = vcvt.s32.f32 %v4060_v17  ;;  %v4963_v35 = vcvt.s32.f32 %v4067_v53  ;;  %v4284_v8 = vunpack.c.2.s8 %v8630_v41  ;;  %v4291_v23 = vunpack.c.3.s8 %v8630_v41  ;;  %v3444_v53 = vld [vmem:[%s9214_s16 + $0x4e8] sm:$0xff] }
 0x512   :  { %v5474_v37 = vpack.c.bf16 %v4753_v20, %v4746_v44  ;;  %v5068_v9 = vcvt.s32.f32 %v4172_v18  ;;  %v5075_v22 = vcvt.s32.f32 %v4179_v58  ;;  %6096 = vmatpush.bf16.msrb.mxu1 %v5418_v60  ;;  %v4396_v25 = vunpack.c.2.s8 %v8643_v29 }
 0x513   :  { %v5579_v40 = vpack.c.bf16 %v4963_v35, %v4956_v49  ;;  %v5180_v43 = vcvt.s32.f32 %v4284_v8  ;;  %v4403_v26 = vunpack.c.3.s8 %v8643_v29  ;;  %6071 = vmatmul.bf16.vlgmr.msra.gmra.mxu3 %v8291_v31  ;;  %v5187_v46 = vcvt.s32.f32 %v4291_v23 }
 0x514   :  { %6109 = vmatpush.bf16.msrb.mxu2 %v5474_v37  ;;  %v5635_v15 = vpack.c.bf16 %v5075_v22, %v5068_v9  ;;  %v5813_v62 = vadd.f32 %v8585_v51, %v8599_v54  ;;  %v6481_v2 = vperm.slane %v8649_v3, 0  ;;  %6084 = vmatmul.bf16.vlgmr.msrb.gmra.mxu0 %v8296_v11  ;;  %v5292_v47 = vcvt.s32.f32 %v4396_v25  ;;  %v5866_v0 = vpop.f32.mrf.mxu3 }
 0x515   :  { %6115 = vmatpush.bf16.msrb.mxu3 %v5579_v40  ;;  %v5299_v38 = vcvt.s32.f32 %v4403_v26  ;;  %v6504_v48 = vperm.slane %v8655_v16, 0  ;;  %v4046_v13 = vunpack.c.0.s8 %v8620_v33  ;;  %v5691_v59 = vpack.c.bf16 %v5187_v46, %v5180_v43  ;;  %6097 = vmatmul.bf16.vlgmr.msrb.gmra.mxu1 %v8299_v5 }
 0x516   :  { %6128 = vmatpush.bf16.msra.mxu0 %v5635_v15  ;;  %v5826_v52 = vadd.f32 %v8569_v63, %v5813_v62  ;;  %v4053_v36 = vunpack.c.1.s8 %v8620_v33  ;;  %v4158_v51 = vunpack.c.0.s8 %v8625_v42  ;;  %v4165_v19 = vunpack.c.1.s8 %v8625_v42  ;;  %v5905_v63 = vpop.f32.mrf.mxu2 }
 0x517   :  { %v5747_v54 = vpack.c.bf16 %v5299_v38, %v5292_v47  ;;  %6110 = vmatmul.bf16.vlgmr.msrb.gmra.mxu2 %v8302_v55  ;;  %v4942_v1 = vcvt.s32.f32 %v4046_v13  ;;  %v4270_v6 = vunpack.c.0.s8 %v8630_v41  ;;  %6141 = vmatpush.bf16.msra.mxu1 %v5691_v59  ;;  %v4277_v27 = vunpack.c.1.s8 %v8630_v41  ;;  %v3472_v41 = vld [vmem:[%s9214_s16 + $0x5c8] sm:$0xff] }
 0x518   :  { %v5839_v39 = vadd.f32 %v8571_v57, %v5826_v52  ;;  %v4949_v33 = vcvt.s32.f32 %v4053_v36  ;;  %v5054_v32 = vcvt.s32.f32 %v4158_v51  ;;  %v5061_v30 = vcvt.s32.f32 %v4165_v19 }
 0x519   :  { %6154 = vmatpush.bf16.msra.mxu2 %v5747_v54  ;;  %v5166_v28 = vcvt.s32.f32 %v4270_v6  ;;  %v4382_v42 = vunpack.c.0.s8 %v8643_v29  ;;  %v4389_v17 = vunpack.c.1.s8 %v8643_v29  ;;  %v5173_v18 = vcvt.s32.f32 %v4277_v27  ;;  %v3500_v29 = vld [vmem:[%s9214_s16 + $0x6a8] sm:$0xff]  ;;  %v3409_v6 = vld [vmem:[%s9214_s16 + $0x3d0] sm:$0xff] }
 0x51a   :  { %v5852_v44 = vadd.f32 %v8587_v45, %v5839_v39  ;;  %v5572_v20 = vpack.c.bf16 %v4949_v33, %v4942_v1  ;;  %v4032_v57 = vunpack.c.2.s8 %v3416_v10  ;;  %v5628_v58 = vpack.c.bf16 %v5061_v30, %v5054_v32  ;;  %v8696_v32 = vld [vmem:[%s9214_s16 + $0x4b0] sm:$0xff] }
 0x51b   :  { %v5278_v14 = vcvt.s32.f32 %v4382_v42  ;;  %v5285_v4 = vcvt.s32.f32 %v4389_v17  ;;  %v4039_v60 = vunpack.c.3.s8 %v3416_v10  ;;  %v5684_v35 = vpack.c.bf16 %v5173_v18, %v5166_v28 }
 0x51c   :  { %v6495_v49 = vmul.f32 %v6481_v2, %v5852_v44  ;;  %6116 = vmatpush.bf16.msrb.mxu3 %v5572_v20  ;;  %v4928_v8 = vcvt.s32.f32 %v4032_v57  ;;  %v4144_v45 = vunpack.c.2.s8 %v3444_v53  ;;  %6129 = vmatpush.bf16.msra.mxu0 %v5628_v58  ;;  %v4151_v22 = vunpack.c.3.s8 %v3444_v53  ;;  %v3465_v20 = vld [vmem:[%s9214_s16 + $0x590] sm:$0xff] }
 0x51d   :  { %v5740_v37 = vpack.c.bf16 %v5285_v4, %v5278_v14  ;;  %v4935_v9 = vcvt.s32.f32 %v4039_v60  ;;  %v4256_v23 = vunpack.c.2.s8 %v3472_v41  ;;  %6142 = vmatpush.bf16.msra.mxu1 %v5684_v35  ;;  %v4263_v25 = vunpack.c.3.s8 %v3472_v41  ;;  %v3493_v4 = vld [vmem:[%s9214_s16 + $0x670] sm:$0xff] }
 0x51e   :  { %v6518_v40 = vadd.f32 %v6504_v48, %v6495_v49  ;;  %v5040_v43 = vcvt.s32.f32 %v4144_v45  ;;  %v4368_v26 = vunpack.c.2.s8 %v3500_v29  ;;  %v5047_v46 = vcvt.s32.f32 %v4151_v22 }
 0x51f   :  { %6155 = vmatpush.bf16.msra.mxu2 %v5740_v37  ;;  %v5565_v15 = vpack.c.bf16 %v4935_v9, %v4928_v8  ;;  %v5152_v62 = vcvt.s32.f32 %v4256_v23  ;;  %v4375_v47 = vunpack.c.3.s8 %v3500_v29  ;;  %v5159_v2 = vcvt.s32.f32 %v4263_v25 }
 0x520   :  { %6591 = vtanh.f32 %v6518_v40  ;;  %v5264_v38 = vcvt.s32.f32 %v4368_v26  ;;  %v4018_v13 = vunpack.c.0.s8 %v3416_v10  ;;  %v5621_v59 = vpack.c.bf16 %v5047_v46, %v5040_v43 }
 0x521   :  { %6117 = vmatpush.bf16.msrb.mxu3 %v5565_v15  ;;  %v5271_v52 = vcvt.s32.f32 %v4375_v47  ;;  %v4025_v36 = vunpack.c.1.s8 %v3416_v10  ;;  %v4130_v51 = vunpack.c.0.s8 %v3444_v53  ;;  %v5677_v54 = vpack.c.bf16 %v5159_v2, %v5152_v62 }
 0x522   :  { %v4914_v48 = vcvt.s32.f32 %v4018_v13  ;;  %v4137_v1 = vunpack.c.1.s8 %v3444_v53  ;;  %v4242_v19 = vunpack.c.0.s8 %v3472_v41  ;;  %6130 = vmatpush.bf16.msra.mxu0 %v5621_v59  ;;  %v4249_v33 = vunpack.c.1.s8 %v3472_v41 }
 0x523   :  { %v5733_v0 = vpack.c.bf16 %v5271_v52, %v5264_v38  ;;  %v4921_v63 = vcvt.s32.f32 %v4025_v36  ;;  %v5026_v39 = vcvt.s32.f32 %v4130_v51  ;;  %6143 = vmatpush.bf16.msra.mxu1 %v5677_v54  ;;  %v4354_v30 = vunpack.c.0.s8 %v3500_v29 }
 0x524   :  { %v5033_v10 = vcvt.s32.f32 %v4137_v1  ;;  %v5138_v27 = vcvt.s32.f32 %v4242_v19  ;;  %v4361_v28 = vunpack.c.1.s8 %v3500_v29  ;;  %v5145_v17 = vcvt.s32.f32 %v4249_v33 }
 0x525   :  { %6156 = vmatpush.bf16.msra.mxu2 %v5733_v0  ;;  %v5558_v42 = vpack.c.bf16 %v4921_v63, %v4914_v48  ;;  %v4004_v53 = vunpack.c.2.s8 %v3409_v6  ;;  %v4011_v44 = vunpack.c.3.s8 %v3409_v6  ;;  %v5250_v41 = vcvt.s32.f32 %v4354_v30  ;;  %v3430_v0 = vld [vmem:[%s9214_s16 + $0x478] sm:$0xff]  ;;  %v8720_v63 = vpop.f32.mrf.mxu0 }
 0x526   :  { %v6592_v18 = vpop.eup %6591  ;;  %v5614_v57 = vpack.c.bf16 %v5033_v10, %v5026_v39  ;;  %v5257_v58 = vcvt.s32.f32 %v4361_v28  ;;  %v4116_v14 = vunpack.c.2.s8 %v8696_v32  ;;  %v5670_v60 = vpack.c.bf16 %v5145_v17, %v5138_v27  ;;  %v8722_v39 = vpop.f32.mrf.mxu1 }
 0x527   :  { %6532 = vst [vmem:[#allocation2] sm:$0xff] %v6592_v18  ;;  %6118 = vmatpush.bf16.msrb.mxu3 %v5558_v42  ;;  %v4900_v29 = vcvt.s32.f32 %v4004_v53  ;;  %v4907_v49 = vcvt.s32.f32 %v4011_v44  ;;  %v4123_v35 = vunpack.c.3.s8 %v8696_v32  ;;  %v4228_v37 = vunpack.c.2.s8 %v3465_v20 }
 0x528   :  { %6131 = vmatpush.bf16.msra.mxu0 %v5614_v57  ;;  %v5726_v8 = vpack.c.bf16 %v5257_v58, %v5250_v41  ;;  %v5012_v45 = vcvt.s32.f32 %v4116_v14  ;;  %v4235_v9 = vunpack.c.3.s8 %v3465_v20  ;;  %6144 = vmatpush.bf16.msra.mxu1 %v5670_v60  ;;  %v4340_v40 = vunpack.c.2.s8 %v3493_v4  ;;  %v3486_v57 = vld [vmem:[%s9214_s16 + $0x638] sm:$0xff] }
 0x529   :  { %v5551_v22 = vpack.c.bf16 %v4907_v49, %v4900_v29  ;;  %v5019_v23 = vcvt.s32.f32 %v4123_v35  ;;  %v4347_v43 = vunpack.c.3.s8 %v3493_v4  ;;  %v5124_v25 = vcvt.s32.f32 %v4228_v37 }
 0x52a   :  { %6157 = vmatpush.bf16.msra.mxu2 %v5726_v8  ;;  %v5131_v26 = vcvt.s32.f32 %v4235_v9  ;;  %v5878_v15 = vadd.f32 %v8613_v12, %v8634_v7  ;;  %v3990_v46 = vunpack.c.0.s8 %v3409_v6  ;;  %v5236_v47 = vcvt.s32.f32 %v4340_v40  ;;  %v3402_v12 = vld [vmem:[%s9214_s16 + $0x398] sm:$0xff] }
 0x52b   :  { %6119 = vmatpush.bf16.msrb.mxu3 %v5551_v22  ;;  %v5607_v62 = vpack.c.bf16 %v5019_v23, %v5012_v45  ;;  %v5243_v2 = vcvt.s32.f32 %v4347_v43  ;;  %v3997_v38 = vunpack.c.1.s8 %v3409_v6  ;;  %v4102_v36 = vunpack.c.0.s8 %v8696_v32 }
 0x52c   :  { %v5663_v13 = vpack.c.bf16 %v5131_v26, %v5124_v25  ;;  %v5891_v59 = vadd.f32 %v8615_v21, %v5878_v15  ;;  %v4886_v52 = vcvt.s32.f32 %v3990_v46  ;;  %v4109_v48 = vunpack.c.1.s8 %v8696_v32 }
 0x52d   :  { %6132 = vmatpush.bf16.msra.mxu0 %v5607_v62  ;;  %v5719_v51 = vpack.c.bf16 %v5243_v2, %v5236_v47  ;;  %v4893_v54 = vcvt.s32.f32 %v3997_v38  ;;  %v4214_v1 = vunpack.c.0.s8 %v3465_v20  ;;  %v4998_v19 = vcvt.s32.f32 %v4102_v36  ;;  %v5931_v62 = vpop.f32.mrf.mxu0 }
 0x52e   :  { %6145 = vmatpush.bf16.msra.mxu1 %v5663_v13  ;;  %v8715_v7 = vadd.f32 %v8636_v50, %v5891_v59  ;;  %v4221_v6 = vunpack.c.1.s8 %v3465_v20  ;;  %v4326_v21 = vunpack.c.0.s8 %v3493_v4  ;;  %v5005_v32 = vcvt.s32.f32 %v4109_v48  ;;  %v3458_v50 = vld [vmem:[%s9214_s16 + $0x558] sm:$0xff]  ;;  %v5944_v47 = vpop.f32.mrf.mxu1 }
 0x52f   :  { %6158 = vmatpush.bf16.msra.mxu2 %v5719_v51  ;;  %v5544_v33 = vpack.c.bf16 %v4893_v54, %v4886_v52  ;;  %v5110_v10 = vcvt.s32.f32 %v4214_v1  ;;  %v4333_v27 = vunpack.c.1.s8 %v3493_v4  ;;  %v3976_v42 = vunpack.c.2.s8 %v3402_v12  ;;  %v3312_v52 = vld [vmem:[%s9214_s16 + $0xc8] sm:$0xff] }
 0x530   :  { %v5117_v30 = vcvt.s32.f32 %v4221_v6  ;;  %v5222_v28 = vcvt.s32.f32 %v4326_v21  ;;  %v3983_v17 = vunpack.c.3.s8 %v3402_v12  ;;  %v5600_v53 = vpack.c.bf16 %v5005_v32, %v4998_v19  ;;  %v3340_v1 = vld [vmem:[%s9214_s16 + $0x1a8] sm:$0xff]  ;;  %v8738_v19 = vpop.f32.mrf.mxu2 }
 0x531   :  { %6120 = vmatpush.bf16.msrb.mxu3 %v5544_v33  ;;  %v5229_v44 = vcvt.s32.f32 %v4333_v27  ;;  %v4088_v20 = vunpack.c.2.s8 %v3430_v0  ;;  %v4095_v18 = vunpack.c.3.s8 %v3430_v0  ;;  %v4872_v58 = vcvt.s32.f32 %v3976_v42  ;;  %v3368_v32 = vld [vmem:[%s9214_s16 + $0x288] sm:$0xff] }
 0x532   :  { %v5656_v41 = vpack.c.bf16 %v5117_v30, %v5110_v10  ;;  %v4879_v14 = vcvt.s32.f32 %v3983_v17  ;;  %v4200_v4 = vunpack.c.2.s8 %v3458_v50  ;;  %6133 = vmatpush.bf16.msra.mxu0 %v5600_v53  ;;  %v4207_v35 = vunpack.c.3.s8 %v3458_v50 }
 0x533   :  { %v5712_v60 = vpack.c.bf16 %v5229_v44, %v5222_v28  ;;  %v4984_v29 = vcvt.s32.f32 %v4088_v20  ;;  %v4991_v49 = vcvt.s32.f32 %v4095_v18  ;;  %v4312_v37 = vunpack.c.2.s8 %v3486_v57  ;;  %v3396_v44 = vld [vmem:[%s9214_s16 + $0x368] sm:$0xff] }
 0x534   :  { %6146 = vmatpush.bf16.msra.mxu1 %v5656_v41  ;;  %v5537_v8 = vpack.c.bf16 %v4879_v14, %v4872_v58  ;;  %v5096_v45 = vcvt.s32.f32 %v4200_v4  ;;  %v4319_v9 = vunpack.c.3.s8 %v3486_v57  ;;  %v5103_v23 = vcvt.s32.f32 %v4207_v35 }
 0x535   :  { %6159 = vmatpush.bf16.msra.mxu2 %v5712_v60  ;;  %v5593_v22 = vpack.c.bf16 %v4991_v49, %v4984_v29  ;;  %v3962_v40 = vunpack.c.0.s8 %v3402_v12  ;;  %v3969_v43 = vunpack.c.1.s8 %v3402_v12  ;;  %v5208_v25 = vcvt.s32.f32 %v4312_v37  ;;  %v8736_v12 = vpop.f32.mrf.mxu3 }
 0x536   :  { %6121 = vmatpush.bf16.msrb.mxu3 %v5537_v8  ;;  %v5215_v26 = vcvt.s32.f32 %v4319_v9  ;;  %v4074_v15 = vunpack.c.0.s8 %v3430_v0  ;;  %v4081_v46 = vunpack.c.1.s8 %v3430_v0  ;;  %v5649_v2 = vpack.c.bf16 %v5103_v23, %v5096_v45 }
 0x537   :  { %6134 = vmatpush.bf16.msra.mxu0 %v5593_v22  ;;  %v4858_v38 = vcvt.s32.f32 %v3962_v40  ;;  %v4865_v13 = vcvt.s32.f32 %v3969_v43  ;;  %v4186_v59 = vunpack.c.0.s8 %v3458_v50  ;;  %v4193_v48 = vunpack.c.1.s8 %v3458_v50 }
 0x538   :  { %v5705_v36 = vpack.c.bf16 %v5215_v26, %v5208_v25  ;;  %v4970_v51 = vcvt.s32.f32 %v4074_v15  ;;  %v4977_v54 = vcvt.s32.f32 %v4081_v46  ;;  %6147 = vmatpush.bf16.msra.mxu1 %v5649_v2  ;;  %v4298_v0 = vunpack.c.0.s8 %v3486_v57  ;;  %v5957_v15 = vpop.f32.mrf.mxu2 }
 0x539   :  { %v5530_v6 = vpack.c.bf16 %v4865_v13, %v4858_v38  ;;  %v5082_v21 = vcvt.s32.f32 %v4186_v59  ;;  %v4305_v33 = vunpack.c.1.s8 %v3486_v57  ;;  %v5089_v27 = vcvt.s32.f32 %v4193_v48  ;;  %v3305_v38 = vld [vmem:[%s9214_s16 + $0x90] sm:$0xff]  ;;  %v3298_v15 = vld [vmem:[%s9214_s16 + $0x58] sm:$0xff] }
 0x53a   :  { %6160 = vmatpush.bf16.msra.mxu2 %v5705_v36  ;;  %v5586_v10 = vpack.c.bf16 %v4977_v54, %v4970_v51  ;;  %v3613_v50 = vunpack.c.2.s8 %v3312_v52  ;;  %v3620_v30 = vunpack.c.3.s8 %v3312_v52  ;;  %v5194_v28 = vcvt.s32.f32 %v4298_v0  ;;  %v3333_v51 = vld [vmem:[%s9214_s16 + $0x170] sm:$0xff] }
 0x53b   :  { %6122 = vmatpush.bf16.msrb.mxu3 %v5530_v6  ;;  %v5201_v42 = vcvt.s32.f32 %v4305_v33  ;;  %v3725_v17 = vunpack.c.2.s8 %v3340_v1  ;;  %v3732_v53 = vunpack.c.3.s8 %v3340_v1  ;;  %v5642_v20 = vpack.c.bf16 %v5089_v27, %v5082_v21  ;;  %v3361_v21 = vld [vmem:[%s9214_s16 + $0x250] sm:$0xff] }
 0x53c   :  { %6135 = vmatpush.bf16.msra.mxu0 %v5586_v10  ;;  %v4509_v18 = vcvt.s32.f32 %v3613_v50  ;;  %v4516_v57 = vcvt.s32.f32 %v3620_v30  ;;  %v3837_v41 = vunpack.c.2.s8 %v3368_v32  ;;  %v3844_v60 = vunpack.c.3.s8 %v3368_v32 }
 0x53d   :  { %v5698_v58 = vpack.c.bf16 %v5201_v42, %v5194_v28  ;;  %v4621_v14 = vcvt.s32.f32 %v3725_v17  ;;  %v4628_v4 = vcvt.s32.f32 %v3732_v53  ;;  %6148 = vmatpush.bf16.msra.mxu1 %v5642_v20  ;;  %v3949_v35 = vunpack.c.2.s8 %v3396_v44  ;;  %v5918_v26 = vpop.f32.mrf.mxu3  ;;  %v3389_v42 = vld [vmem:[%s9214_s16 + $0x330] sm:$0xff] }
 0x53e   :  { %v5356_v29 = vpack.c.bf16 %v4516_v57, %v4509_v18  ;;  %v4733_v49 = vcvt.s32.f32 %v3837_v41  ;;  %v3956_v8 = vunpack.c.3.s8 %v3396_v44  ;;  %6123 = vmatmul.bf16.vlgmr.msrb.gmra.mxu3 %v8355_v34  ;;  %v4740_v37 = vcvt.s32.f32 %v3844_v60 }
 0x53f   :  { %6161 = vmatpush.bf16.msra.mxu2 %v5698_v58  ;;  %v5412_v45 = vpack.c.bf16 %v4628_v4, %v4621_v14  ;;  %6136 = vmatmul.bf16.vlgmr.msra.gmra.mxu0 %v8358_v56  ;;  %v3599_v9 = vunpack.c.0.s8 %v3312_v52  ;;  %v3606_v22 = vunpack.c.1.s8 %v3312_v52  ;;  %v4845_v23 = vcvt.s32.f32 %v3949_v35 }
 0x540   :  { %6167 = vmatpush.bf16.msra.mxu3 %v5356_v29  ;;  %v4852_v40 = vcvt.s32.f32 %v3956_v8  ;;  %v3711_v43 = vunpack.c.0.s8 %v3340_v1  ;;  %v3718_v25 = vunpack.c.1.s8 %v3340_v1  ;;  %v5468_v46 = vpack.c.bf16 %v4740_v37, %v4733_v49  ;;  %6149 = vmatmul.bf16.vlgmr.msra.gmra.mxu1 %v8361_v24 }
 0x541   :  { %6180 = vmatpush.bf16.msrb.mxu0 %v5412_v45  ;;  %v4495_v62 = vcvt.s32.f32 %v3599_v9  ;;  %v4502_v47 = vcvt.s32.f32 %v3606_v22  ;;  %v3823_v2 = vunpack.c.0.s8 %v3368_v32  ;;  %v3830_v36 = vunpack.c.1.s8 %v3368_v32 }
 0x542   :  { %v5524_v13 = vpack.c.bf16 %v4852_v40, %v4845_v23  ;;  %6162 = vmatmul.bf16.vlgmr.msra.gmra.mxu2 %v8260_v61  ;;  %v4607_v59 = vcvt.s32.f32 %v3711_v43  ;;  %v4614_v52 = vcvt.s32.f32 %v3718_v25  ;;  %6193 = vmatpush.bf16.msrb.mxu1 %v5468_v46  ;;  %v3935_v1 = vunpack.c.0.s8 %v3396_v44 }
 0x543   :  { %v5349_v54 = vpack.c.bf16 %v4502_v47, %v4495_v62  ;;  %v4719_v48 = vcvt.s32.f32 %v3823_v2  ;;  %v3942_v6 = vunpack.c.1.s8 %v3396_v44  ;;  %v4726_v33 = vcvt.s32.f32 %v3830_v36 }
 0x544   :  { %6206 = vmatpush.bf16.msrb.mxu2 %v5524_v13  ;;  %v5405_v0 = vpack.c.bf16 %v4614_v52, %v4607_v59  ;;  %v3585_v10 = vunpack.c.2.s8 %v3305_v38  ;;  %v3592_v27 = vunpack.c.3.s8 %v3305_v38  ;;  %v4831_v32 = vcvt.s32.f32 %v3935_v1 }
 0x545   :  { %6168 = vmatpush.bf16.msra.mxu3 %v5349_v54  ;;  %v4838_v50 = vcvt.s32.f32 %v3942_v6  ;;  %v3697_v30 = vunpack.c.2.s8 %v3333_v51  ;;  %v3704_v28 = vunpack.c.3.s8 %v3333_v51  ;;  %v5461_v17 = vpack.c.bf16 %v4726_v33, %v4719_v48 }
 0x546   :  { %6181 = vmatpush.bf16.msrb.mxu0 %v5405_v0  ;;  %v4481_v53 = vcvt.s32.f32 %v3585_v10  ;;  %v4488_v44 = vcvt.s32.f32 %v3592_v27  ;;  %v3809_v20 = vunpack.c.2.s8 %v3361_v21  ;;  %v3816_v58 = vunpack.c.3.s8 %v3361_v21  ;;  %v3382_v27 = vld [vmem:[%s9214_s16 + $0x2f8] sm:$0xff] }
 0x547   :  { %v5517_v18 = vpack.c.bf16 %v4838_v50, %v4831_v32  ;;  %v4593_v57 = vcvt.s32.f32 %v3697_v30  ;;  %v4600_v41 = vcvt.s32.f32 %v3704_v28  ;;  %6194 = vmatpush.bf16.msrb.mxu1 %v5461_v17  ;;  %v3921_v60 = vunpack.c.2.s8 %v3389_v42 }
 0x548   :  { %v5342_v14 = vpack.c.bf16 %v4488_v44, %v4481_v53  ;;  %v4705_v4 = vcvt.s32.f32 %v3809_v20  ;;  %v3928_v29 = vunpack.c.3.s8 %v3389_v42  ;;  %v4712_v35 = vcvt.s32.f32 %v3816_v58 }
 0x549   :  { %6207 = vmatpush.bf16.msrb.mxu2 %v5517_v18  ;;  %v5398_v49 = vpack.c.bf16 %v4600_v41, %v4593_v57  ;;  %v3571_v8 = vunpack.c.0.s8 %v3305_v38  ;;  %v3578_v45 = vunpack.c.1.s8 %v3305_v38  ;;  %v4817_v37 = vcvt.s32.f32 %v3921_v60  ;;  %v3326_v38 = vld [vmem:[%s9214_s16 + $0x138] sm:$0xff] }
 0x54a   :  { %6169 = vmatpush.bf16.msra.mxu3 %v5342_v14  ;;  %v4824_v9 = vcvt.s32.f32 %v3928_v29  ;;  %v3683_v22 = vunpack.c.0.s8 %v3333_v51  ;;  %v3690_v23 = vunpack.c.1.s8 %v3333_v51  ;;  %v5454_v40 = vpack.c.bf16 %v4712_v35, %v4705_v4  ;;  %v3354_v51 = vld [vmem:[%s9214_s16 + $0x218] sm:$0xff] }
 0x54b   :  { %6182 = vmatpush.bf16.msrb.mxu0 %v5398_v49  ;;  %v4467_v43 = vcvt.s32.f32 %v3571_v8  ;;  %v4474_v25 = vcvt.s32.f32 %v3578_v45  ;;  %v3795_v26 = vunpack.c.0.s8 %v3361_v21  ;;  %v3802_v2 = vunpack.c.1.s8 %v3361_v21 }
 0x54c   :  { %v5510_v46 = vpack.c.bf16 %v4824_v9, %v4817_v37  ;;  %v4579_v62 = vcvt.s32.f32 %v3683_v22  ;;  %v4586_v47 = vcvt.s32.f32 %v3690_v23  ;;  %6195 = vmatpush.bf16.msrb.mxu1 %v5454_v40  ;;  %v3907_v52 = vunpack.c.0.s8 %v3389_v42 }
 0x54d   :  { %v5335_v13 = vpack.c.bf16 %v4474_v25, %v4467_v43  ;;  %v4691_v59 = vcvt.s32.f32 %v3795_v26  ;;  %v3914_v36 = vunpack.c.1.s8 %v3389_v42  ;;  %v4698_v48 = vcvt.s32.f32 %v3802_v2  ;;  %v8786_v2 = vpop.f32.mrf.mxu0 }
 0x54e   :  { %6208 = vmatpush.bf16.msrb.mxu2 %v5510_v46  ;;  %v5391_v54 = vpack.c.bf16 %v4586_v47, %v4579_v62  ;;  %v3557_v1 = vunpack.c.2.s8 %v3298_v15  ;;  %v3564_v6 = vunpack.c.3.s8 %v3298_v15  ;;  %v4803_v21 = vcvt.s32.f32 %v3907_v52  ;;  %v3319_v47 = vld [vmem:[%s9214_s16 + $0x100] sm:$0xff] }
 0x54f   :  { %6170 = vmatpush.bf16.msra.mxu3 %v5335_v13  ;;  %v4810_v0 = vcvt.s32.f32 %v3914_v36  ;;  %v3669_v33 = vunpack.c.2.s8 %v3326_v38  ;;  %v3676_v10 = vunpack.c.3.s8 %v3326_v38  ;;  %v5447_v32 = vpack.c.bf16 %v4698_v48, %v4691_v59  ;;  %v3347_v36 = vld [vmem:[%s9214_s16 + $0x1e0] sm:$0xff] }
 0x550   :  { %6183 = vmatpush.bf16.msrb.mxu0 %v5391_v54  ;;  %v4453_v50 = vcvt.s32.f32 %v3557_v1  ;;  %v4460_v30 = vcvt.s32.f32 %v3564_v6  ;;  %v3781_v28 = vunpack.c.2.s8 %v3354_v51  ;;  %v3788_v44 = vunpack.c.3.s8 %v3354_v51  ;;  %v3375_v6 = vld [vmem:[%s9214_s16 + $0x2c0] sm:$0xff] }
 0x551   :  { %v5503_v42 = vpack.c.bf16 %v4810_v0, %v4803_v21  ;;  %v4565_v17 = vcvt.s32.f32 %v3669_v33  ;;  %v4572_v53 = vcvt.s32.f32 %v3676_v10  ;;  %6196 = vmatpush.bf16.msrb.mxu1 %v5447_v32  ;;  %v3893_v57 = vunpack.c.2.s8 %v3382_v27 }
 0x552   :  { %v5328_v20 = vpack.c.bf16 %v4460_v30, %v4453_v50  ;;  %v4677_v18 = vcvt.s32.f32 %v3781_v28  ;;  %v3900_v41 = vunpack.c.3.s8 %v3382_v27  ;;  %v4684_v14 = vcvt.s32.f32 %v3788_v44 }
 0x553   :  { %6209 = vmatpush.bf16.msrb.mxu2 %v5503_v42  ;;  %v5384_v58 = vpack.c.bf16 %v4572_v53, %v4565_v17  ;;  %v5917_v4 = vadd.f32 %v8736_v12, %v8715_v7  ;;  %v6482_v60 = vperm.slane %v8649_v3, 1  ;;  %v4789_v29 = vcvt.s32.f32 %v3893_v57  ;;  %v3291_v3 = vld [vmem:[%s9214_s16 + $0x20] sm:$0xff] }
 0x554   :  { %6171 = vmatpush.bf16.msra.mxu3 %v5328_v20  ;;  %v4796_v49 = vcvt.s32.f32 %v3900_v41  ;;  %v6505_v35 = vperm.slane %v8655_v16, 1  ;;  %v3543_v8 = vunpack.c.0.s8 %v3298_v15  ;;  %v5440_v45 = vpack.c.bf16 %v4684_v14, %v4677_v18 }
 0x555   :  { %6184 = vmatpush.bf16.msrb.mxu0 %v5384_v58  ;;  %v5930_v37 = vadd.f32 %v8720_v63, %v5917_v4  ;;  %v3550_v9 = vunpack.c.1.s8 %v3298_v15  ;;  %v3655_v22 = vunpack.c.0.s8 %v3326_v38  ;;  %v3662_v43 = vunpack.c.1.s8 %v3326_v38  ;;  %v8788_v38 = vpop.f32.mrf.mxu1 }
 0x556   :  { %v5496_v23 = vpack.c.bf16 %v4796_v49, %v4789_v29  ;;  %v4439_v40 = vcvt.s32.f32 %v3543_v8  ;;  %v3767_v25 = vunpack.c.0.s8 %v3354_v51  ;;  %6197 = vmatpush.bf16.msrb.mxu1 %v5440_v45  ;;  %v3774_v26 = vunpack.c.1.s8 %v3354_v51  ;;  %v5983_v49 = vpop.f32.mrf.mxu0 }
 0x557   :  { %v5943_v7 = vadd.f32 %v8722_v39, %v5930_v37  ;;  %v4446_v12 = vcvt.s32.f32 %v3550_v9  ;;  %v4551_v16 = vcvt.s32.f32 %v3655_v22  ;;  %v4558_v46 = vcvt.s32.f32 %v3662_v43  ;;  %v3424_v22 = vld [vmem:[%s9214_s16 + $0x448] sm:$0xff] }
 0x558   :  { %6210 = vmatpush.bf16.msrb.mxu2 %v5496_v23  ;;  %v4663_v62 = vcvt.s32.f32 %v3767_v25  ;;  %v3879_v63 = vunpack.c.0.s8 %v3382_v27  ;;  %v3886_v15 = vunpack.c.1.s8 %v3382_v27  ;;  %v4670_v39 = vcvt.s32.f32 %v3774_v26 }
 0x559   :  { %v5956_v13 = vadd.f32 %v8738_v19, %v5943_v7  ;;  %v5321_v59 = vpack.c.bf16 %v4446_v12, %v4439_v40  ;;  %v3529_v52 = vunpack.c.2.s8 %v3291_v3  ;;  %v5377_v51 = vpack.c.bf16 %v4558_v46, %v4551_v16  ;;  %v8805_v7 = vpop.f32.mrf.mxu3  ;;  %v8807_v12 = vpop.f32.mrf.mxu2 }
 0x55a   :  { %v4775_v54 = vcvt.s32.f32 %v3879_v63  ;;  %v4782_v48 = vcvt.s32.f32 %v3886_v15  ;;  %v3536_v1 = vunpack.c.3.s8 %v3291_v3  ;;  %v5433_v0 = vpack.c.bf16 %v4670_v39, %v4663_v62 }
 0x55b   :  { %v6496_v21 = vmul.f32 %v6482_v60, %v5956_v13  ;;  %6172 = vmatpush.bf16.msra.mxu3 %v5321_v59  ;;  %v4425_v33 = vcvt.s32.f32 %v3529_v52  ;;  %v3641_v19 = vunpack.c.2.s8 %v3319_v47  ;;  %6185 = vmatpush.bf16.msrb.mxu0 %v5377_v51  ;;  %v3648_v32 = vunpack.c.3.s8 %v3319_v47  ;;  %v3480_v59 = vld [vmem:[%s9214_s16 + $0x608] sm:$0xff] }
 0x55c   :  { %v5489_v10 = vpack.c.bf16 %v4782_v48, %v4775_v54  ;;  %v4432_v27 = vcvt.s32.f32 %v3536_v1  ;;  %v3753_v50 = vunpack.c.2.s8 %v3347_v36  ;;  %6198 = vmatpush.bf16.msrb.mxu1 %v5433_v0  ;;  %v3760_v42 = vunpack.c.3.s8 %v3347_v36  ;;  %v3508_v48 = vld [vmem:[%s9214_s16 + $0x6e8] sm:$0xff] }
 0x55d   :  { %v6519_v30 = vadd.f32 %v6505_v35, %v6496_v21  ;;  %v4537_v28 = vcvt.s32.f32 %v3641_v19  ;;  %v3865_v17 = vunpack.c.2.s8 %v3375_v6  ;;  %v4544_v44 = vcvt.s32.f32 %v3648_v32  ;;  %v5996_v35 = vpop.f32.mrf.mxu1 }
 0x55e   :  { %6211 = vmatpush.bf16.msrb.mxu2 %v5489_v10  ;;  %v5314_v53 = vpack.c.bf16 %v4432_v27, %v4425_v33  ;;  %v4649_v20 = vcvt.s32.f32 %v3753_v50  ;;  %v3872_v18 = vunpack.c.3.s8 %v3375_v6  ;;  %v4656_v57 = vcvt.s32.f32 %v3760_v42  ;;  %v3417_v35 = vld [vmem:[%s9214_s16 + $0x410] sm:$0xff] }
 0x55f   :  { %6593 = vtanh.f32 %v6519_v30  ;;  %v4761_v41 = vcvt.s32.f32 %v3865_v17  ;;  %v3515_v58 = vunpack.c.0.s8 %v3291_v3  ;;  %v5370_v14 = vpack.c.bf16 %v4544_v44, %v4537_v28 }
 0x560   :  { %6173 = vmatpush.bf16.msra.mxu3 %v5314_v53  ;;  %v4768_v4 = vcvt.s32.f32 %v3872_v18  ;;  %v3522_v60 = vunpack.c.1.s8 %v3291_v3  ;;  %v3627_v29 = vunpack.c.0.s8 %v3319_v47  ;;  %v5426_v8 = vpack.c.bf16 %v4656_v57, %v4649_v20  ;;  %v8803_v3 = vld [vmem:[%s9214_s16 + $0x528] sm:$0xff] }
 0x561   :  { %v4411_v45 = vcvt.s32.f32 %v3515_v58  ;;  %v3634_v37 = vunpack.c.1.s8 %v3319_v47  ;;  %v3739_v9 = vunpack.c.0.s8 %v3347_v36  ;;  %6186 = vmatpush.bf16.msrb.mxu0 %v5370_v14  ;;  %v3746_v25 = vunpack.c.1.s8 %v3347_v36  ;;  %v5970_v58 = vpop.f32.mrf.mxu3  ;;  %v6009_v14 = vpop.f32.mrf.mxu2 }
 0x562   :  { %v5482_v23 = vpack.c.bf16 %v4768_v4, %v4761_v41  ;;  %v4418_v40 = vcvt.s32.f32 %v3522_v60  ;;  %v4523_v43 = vcvt.s32.f32 %v3627_v29  ;;  %6199 = vmatpush.bf16.msrb.mxu1 %v5426_v8  ;;  %v3851_v46 = vunpack.c.0.s8 %v3375_v6 }
 0x563   :  { %v4530_v16 = vcvt.s32.f32 %v3634_v37  ;;  %v4635_v26 = vcvt.s32.f32 %v3739_v9  ;;  %v3858_v62 = vunpack.c.1.s8 %v3375_v6  ;;  %v4642_v15 = vcvt.s32.f32 %v3746_v25 }
 0x564   :  { %6212 = vmatpush.bf16.msrb.mxu2 %v5482_v23  ;;  %v5307_v63 = vpack.c.bf16 %v4418_v40, %v4411_v45  ;;  %v4061_v47 = vunpack.c.2.s8 %v3424_v22  ;;  %v4068_v13 = vunpack.c.3.s8 %v3424_v22  ;;  %v4747_v36 = vcvt.s32.f32 %v3851_v46 }
 0x565   :  { %v6594_v39 = vpop.eup %6593  ;;  %v5363_v52 = vpack.c.bf16 %v4530_v16, %v4523_v43  ;;  %v4754_v51 = vcvt.s32.f32 %v3858_v62  ;;  %v4173_v54 = vunpack.c.2.s8 %v8803_v3  ;;  %v5419_v1 = vpack.c.bf16 %v4642_v15, %v4635_v26  ;;  %v3473_v62 = vld [vmem:[%s9214_s16 + $0x5d0] sm:$0xff] }
 0x566   :  { %6533 = vst [vmem:[#allocation2 + $0x8] sm:$0xff] %v6594_v39  ;;  %6174 = vmatpush.bf16.msra.mxu3 %v5307_v63  ;;  %v4957_v6 = vcvt.s32.f32 %v4061_v47  ;;  %v4964_v21 = vcvt.s32.f32 %v4068_v13  ;;  %v4180_v0 = vunpack.c.3.s8 %v8803_v3  ;;  %v4285_v10 = vunpack.c.2.s8 %v3480_v59 }
 0x567   :  { %6187 = vmatpush.bf16.msrb.mxu0 %v5363_v52  ;;  %v5475_v33 = vpack.c.bf16 %v4754_v51, %v4747_v36  ;;  %v5069_v19 = vcvt.s32.f32 %v4173_v54  ;;  %v4292_v27 = vunpack.c.3.s8 %v3480_v59  ;;  %6200 = vmatpush.bf16.msrb.mxu1 %v5419_v1  ;;  %v4397_v30 = vunpack.c.2.s8 %v3508_v48 }
 0x568   :  { %v5580_v32 = vpack.c.bf16 %v4964_v21, %v4957_v6  ;;  %v5076_v50 = vcvt.s32.f32 %v4180_v0  ;;  %v4404_v28 = vunpack.c.3.s8 %v3508_v48  ;;  %v5181_v42 = vcvt.s32.f32 %v4285_v10 }
 0x569   :  { %6213 = vmatpush.bf16.msrb.mxu2 %v5475_v33  ;;  %v5188_v17 = vcvt.s32.f32 %v4292_v27  ;;  %6175 = vmatmul.bf16.vlgmr.msra.gmra.mxu3 %v8291_v31  ;;  %v4047_v53 = vunpack.c.0.s8 %v3424_v22  ;;  %v4054_v44 = vunpack.c.1.s8 %v3424_v22  ;;  %v5293_v18 = vcvt.s32.f32 %v4397_v30  ;;  %v3445_v22 = vld [vmem:[%s9214_s16 + $0x4f0] sm:$0xff] }
 0x56a   :  { %6219 = vmatpush.bf16.msrb.mxu3 %v5580_v32  ;;  %v5636_v20 = vpack.c.bf16 %v5076_v50, %v5069_v19  ;;  %v5300_v57 = vcvt.s32.f32 %v4404_v28  ;;  %6188 = vmatmul.bf16.vlgmr.msrb.gmra.mxu0 %v8296_v11  ;;  %v4159_v41 = vunpack.c.0.s8 %v8803_v3  ;;  %v4166_v49 = vunpack.c.1.s8 %v8803_v3 }
 0x56b   :  { %v5692_v4 = vpack.c.bf16 %v5188_v17, %v5181_v42  ;;  %6201 = vmatmul.bf16.vlgmr.msrb.gmra.mxu1 %v8299_v5  ;;  %v4943_v60 = vcvt.s32.f32 %v4047_v53  ;;  %v4950_v29 = vcvt.s32.f32 %v4054_v44  ;;  %v4271_v37 = vunpack.c.0.s8 %v3480_v59 }
 0x56c   :  { %6232 = vmatpush.bf16.msra.mxu0 %v5636_v20  ;;  %v5748_v8 = vpack.c.bf16 %v5300_v57, %v5293_v18  ;;  %6214 = vmatmul.bf16.vlgmr.msrb.gmra.mxu2 %v8302_v55  ;;  %v5055_v45 = vcvt.s32.f32 %v4159_v41  ;;  %v4278_v9 = vunpack.c.1.s8 %v3480_v59  ;;  %v5062_v40 = vcvt.s32.f32 %v4166_v49  ;;  %v3501_v59 = vld [vmem:[%s9214_s16 + $0x6b0] sm:$0xff]  ;;  %v3410_v57 = vld [vmem:[%s9214_s16 + $0x3d8] sm:$0xff] }
 0x56d   :  { %6245 = vmatpush.bf16.msra.mxu1 %v5692_v4  ;;  %v5573_v23 = vpack.c.bf16 %v4950_v29, %v4943_v60  ;;  %v4383_v43 = vunpack.c.0.s8 %v3508_v48  ;;  %v4390_v25 = vunpack.c.1.s8 %v3508_v48  ;;  %v5167_v3 = vcvt.s32.f32 %v4271_v37  ;;  %v3438_v60 = vld [vmem:[%s9214_s16 + $0x4b8] sm:$0xff] }
 0x56e   :  { %6258 = vmatpush.bf16.msra.mxu2 %v5748_v8  ;;  %v5174_v16 = vcvt.s32.f32 %v4278_v9  ;;  %v4033_v26 = vunpack.c.2.s8 %v3417_v35  ;;  %v4040_v46 = vunpack.c.3.s8 %v3417_v35  ;;  %v5629_v63 = vpack.c.bf16 %v5062_v40, %v5055_v45 }
 0x56f   :  { %6220 = vmatpush.bf16.msrb.mxu3 %v5573_v23  ;;  %v5279_v15 = vcvt.s32.f32 %v4383_v43  ;;  %v5286_v47 = vcvt.s32.f32 %v4390_v25  ;;  %v4145_v13 = vunpack.c.2.s8 %v3445_v22  ;;  %v4152_v51 = vunpack.c.3.s8 %v3445_v22  ;;  %v3466_v23 = vld [vmem:[%s9214_s16 + $0x598] sm:$0xff] }
 0x570   :  { %v5685_v39 = vpack.c.bf16 %v5174_v16, %v5167_v3  ;;  %v4929_v52 = vcvt.s32.f32 %v4033_v26  ;;  %v4936_v36 = vcvt.s32.f32 %v4040_v46  ;;  %6233 = vmatpush.bf16.msra.mxu0 %v5629_v63  ;;  %v4257_v1 = vunpack.c.2.s8 %v3473_v62  ;;  %v3494_v16 = vld [vmem:[%s9214_s16 + $0x678] sm:$0xff] }
 0x571   :  { %v5741_v54 = vpack.c.bf16 %v5286_v47, %v5279_v15  ;;  %v5041_v48 = vcvt.s32.f32 %v4145_v13  ;;  %v4264_v6 = vunpack.c.3.s8 %v3473_v62  ;;  %v5048_v0 = vcvt.s32.f32 %v4152_v51 }
 0x572   :  { %6246 = vmatpush.bf16.msra.mxu1 %v5685_v39  ;;  %v5566_v21 = vpack.c.bf16 %v4936_v36, %v4929_v52  ;;  %v4369_v33 = vunpack.c.2.s8 %v3501_v59  ;;  %v4376_v19 = vunpack.c.3.s8 %v3501_v59  ;;  %v5153_v10 = vcvt.s32.f32 %v4257_v1 }
 0x573   :  { %6259 = vmatpush.bf16.msra.mxu2 %v5741_v54  ;;  %v5160_v27 = vcvt.s32.f32 %v4264_v6  ;;  %v4019_v32 = vunpack.c.0.s8 %v3417_v35  ;;  %v4026_v50 = vunpack.c.1.s8 %v3417_v35  ;;  %v5622_v30 = vpack.c.bf16 %v5048_v0, %v5041_v48 }
 0x574   :  { %6221 = vmatpush.bf16.msrb.mxu3 %v5566_v21  ;;  %v5265_v28 = vcvt.s32.f32 %v4369_v33  ;;  %v5272_v42 = vcvt.s32.f32 %v4376_v19  ;;  %v4131_v17 = vunpack.c.0.s8 %v3445_v22  ;;  %v4138_v18 = vunpack.c.1.s8 %v3445_v22 }
 0x575   :  { %v5678_v53 = vpack.c.bf16 %v5160_v27, %v5153_v10  ;;  %v4915_v44 = vcvt.s32.f32 %v4019_v32  ;;  %v4922_v20 = vcvt.s32.f32 %v4026_v50  ;;  %6234 = vmatpush.bf16.msra.mxu0 %v5622_v30  ;;  %v4243_v14 = vunpack.c.0.s8 %v3473_v62 }
 0x576   :  { %v5734_v41 = vpack.c.bf16 %v5272_v42, %v5265_v28  ;;  %v5027_v58 = vcvt.s32.f32 %v4131_v17  ;;  %v4250_v4 = vunpack.c.1.s8 %v3473_v62  ;;  %v5034_v49 = vcvt.s32.f32 %v4138_v18  ;;  %v8859_v18 = vpop.f32.mrf.mxu0 }
 0x577   :  { %6247 = vmatpush.bf16.msra.mxu1 %v5678_v53  ;;  %v5559_v29 = vpack.c.bf16 %v4922_v20, %v4915_v44  ;;  %v4355_v35 = vunpack.c.0.s8 %v3501_v59  ;;  %v4362_v8 = vunpack.c.1.s8 %v3501_v59  ;;  %v5139_v45 = vcvt.s32.f32 %v4243_v14 }
 0x578   :  { %6260 = vmatpush.bf16.msra.mxu2 %v5734_v41  ;;  %v5146_v37 = vcvt.s32.f32 %v4250_v4  ;;  %v4005_v9 = vunpack.c.2.s8 %v3410_v57  ;;  %v4012_v22 = vunpack.c.3.s8 %v3410_v57  ;;  %v5615_v40 = vpack.c.bf16 %v5034_v49, %v5027_v58 }
 0x579   :  { %6222 = vmatpush.bf16.msrb.mxu3 %v5559_v29  ;;  %v5251_v43 = vcvt.s32.f32 %v4355_v35  ;;  %v5258_v25 = vcvt.s32.f32 %v4362_v8  ;;  %v4117_v3 = vunpack.c.2.s8 %v3438_v60  ;;  %v4124_v63 = vunpack.c.3.s8 %v3438_v60 }
 0x57a   :  { %v5671_v26 = vpack.c.bf16 %v5146_v37, %v5139_v45  ;;  %v4901_v46 = vcvt.s32.f32 %v4005_v9  ;;  %v4908_v62 = vcvt.s32.f32 %v4012_v22  ;;  %6235 = vmatpush.bf16.msra.mxu0 %v5615_v40  ;;  %v4229_v13 = vunpack.c.2.s8 %v3466_v23  ;;  %v3487_v22 = vld [vmem:[%s9214_s16 + $0x640] sm:$0xff] }
 0x57b   :  { %v5727_v15 = vpack.c.bf16 %v5258_v25, %v5251_v43  ;;  %v5013_v47 = vcvt.s32.f32 %v4117_v3  ;;  %v4236_v59 = vunpack.c.3.s8 %v3466_v23  ;;  %v5020_v52 = vcvt.s32.f32 %v4124_v63 }
 0x57c   :  { %6248 = vmatpush.bf16.msra.mxu1 %v5671_v26  ;;  %v5552_v39 = vpack.c.bf16 %v4908_v62, %v4901_v46  ;;  %v4341_v36 = vunpack.c.2.s8 %v3494_v16  ;;  %v4348_v51 = vunpack.c.3.s8 %v3494_v16  ;;  %v5125_v54 = vcvt.s32.f32 %v4229_v13 }
 0x57d   :  { %6261 = vmatpush.bf16.msra.mxu2 %v5727_v15  ;;  %v5132_v48 = vcvt.s32.f32 %v4236_v59  ;;  %v5982_v1 = vadd.f32 %v8786_v2, %v8805_v7  ;;  %v3991_v6 = vunpack.c.0.s8 %v3410_v57  ;;  %v5608_v21 = vpack.c.bf16 %v5020_v52, %v5013_v47  ;;  %v3403_v2 = vld [vmem:[%s9214_s16 + $0x3a0] sm:$0xff] }
 0x57e   :  { %6223 = vmatpush.bf16.msrb.mxu3 %v5552_v39  ;;  %v5237_v0 = vcvt.s32.f32 %v4341_v36  ;;  %v5244_v33 = vcvt.s32.f32 %v4348_v51  ;;  %v3998_v19 = vunpack.c.1.s8 %v3410_v57  ;;  %v4103_v50 = vunpack.c.0.s8 %v3438_v60  ;;  %v8861_v57 = vpop.f32.mrf.mxu1 }
 0x57f   :  { %v5664_v10 = vpack.c.bf16 %v5132_v48, %v5125_v54  ;;  %v5995_v27 = vadd.f32 %v8788_v38, %v5982_v1  ;;  %v4887_v32 = vcvt.s32.f32 %v3991_v6  ;;  %6236 = vmatpush.bf16.msra.mxu0 %v5608_v21  ;;  %v4110_v42 = vunpack.c.1.s8 %v3438_v60  ;;  %v3431_v38 = vld [vmem:[%s9214_s16 + $0x480] sm:$0xff]  ;;  %v6035_v1 = vpop.f32.mrf.mxu0 }
 0x580   :  { %v5720_v30 = vpack.c.bf16 %v5244_v33, %v5237_v0  ;;  %v4894_v28 = vcvt.s32.f32 %v3998_v19  ;;  %v4215_v17 = vunpack.c.0.s8 %v3466_v23  ;;  %v4999_v53 = vcvt.s32.f32 %v4103_v50 }
 0x581   :  { %6249 = vmatpush.bf16.msra.mxu1 %v5664_v10  ;;  %v8854_v7 = vadd.f32 %v8807_v12, %v5995_v27  ;;  %v4222_v44 = vunpack.c.1.s8 %v3466_v23  ;;  %v4327_v20 = vunpack.c.0.s8 %v3494_v16  ;;  %v5006_v58 = vcvt.s32.f32 %v4110_v42  ;;  %v3459_v12 = vld [vmem:[%s9214_s16 + $0x560] sm:$0xff]  ;;  %v3313_v10 = vld [vmem:[%s9214_s16 + $0xd0] sm:$0xff]  ;;  %v8875_v42 = vpop.f32.mrf.mxu3 }
 0x582   :  { %6262 = vmatpush.bf16.msra.mxu2 %v5720_v30  ;;  %v5545_v41 = vpack.c.bf16 %v4894_v28, %v4887_v32  ;;  %v5111_v14 = vcvt.s32.f32 %v4215_v17  ;;  %v4334_v4 = vunpack.c.1.s8 %v3494_v16  ;;  %v3977_v49 = vunpack.c.2.s8 %v3403_v2  ;;  %v3341_v28 = vld [vmem:[%s9214_s16 + $0x1b0] sm:$0xff]  ;;  %v8877_v17 = vpop.f32.mrf.mxu2 }
 0x583   :  { %v5118_v60 = vcvt.s32.f32 %v4222_v44  ;;  %v5223_v29 = vcvt.s32.f32 %v4327_v20  ;;  %v3984_v35 = vunpack.c.3.s8 %v3403_v2  ;;  %v5601_v8 = vpack.c.bf16 %v5006_v58, %v4999_v53 }
 0x584   :  { %6224 = vmatpush.bf16.msrb.mxu3 %v5545_v41  ;;  %v5230_v45 = vcvt.s32.f32 %v4334_v4  ;;  %v4089_v37 = vunpack.c.2.s8 %v3431_v38  ;;  %v4096_v9 = vunpack.c.3.s8 %v3431_v38  ;;  %v4873_v40 = vcvt.s32.f32 %v3977_v49 }
 0x585   :  { %v5657_v23 = vpack.c.bf16 %v5118_v60, %v5111_v14  ;;  %v4880_v43 = vcvt.s32.f32 %v3984_v35  ;;  %v4201_v25 = vunpack.c.2.s8 %v3459_v12  ;;  %6237 = vmatpush.bf16.msra.mxu0 %v5601_v8  ;;  %v4208_v46 = vunpack.c.3.s8 %v3459_v12  ;;  %v3397_v35 = vld [vmem:[%s9214_s16 + $0x370] sm:$0xff] }
 0x586   :  { %v5713_v3 = vpack.c.bf16 %v5230_v45, %v5223_v29  ;;  %v4985_v16 = vcvt.s32.f32 %v4089_v37  ;;  %v4992_v26 = vcvt.s32.f32 %v4096_v9  ;;  %v4313_v15 = vunpack.c.2.s8 %v3487_v22  ;;  %v6048_v6 = vpop.f32.mrf.mxu1 }
 0x587   :  { %6250 = vmatpush.bf16.msra.mxu1 %v5657_v23  ;;  %v5538_v62 = vpack.c.bf16 %v4880_v43, %v4873_v40  ;;  %v5097_v63 = vcvt.s32.f32 %v4201_v25  ;;  %v4320_v47 = vunpack.c.3.s8 %v3487_v22  ;;  %v5104_v59 = vcvt.s32.f32 %v4208_v46  ;;  %v3306_v6 = vld [vmem:[%s9214_s16 + $0x98] sm:$0xff] }
 0x588   :  { %6263 = vmatpush.bf16.msra.mxu2 %v5713_v3  ;;  %v5594_v13 = vpack.c.bf16 %v4992_v26, %v4985_v16  ;;  %v3963_v39 = vunpack.c.0.s8 %v3403_v2  ;;  %v3970_v52 = vunpack.c.1.s8 %v3403_v2  ;;  %v5209_v36 = vcvt.s32.f32 %v4313_v15 }
 0x589   :  { %6225 = vmatpush.bf16.msrb.mxu3 %v5538_v62  ;;  %v5216_v51 = vcvt.s32.f32 %v4320_v47  ;;  %v4075_v54 = vunpack.c.0.s8 %v3431_v38  ;;  %v4082_v48 = vunpack.c.1.s8 %v3431_v38  ;;  %v5650_v21 = vpack.c.bf16 %v5104_v59, %v5097_v63  ;;  %v3369_v38 = vld [vmem:[%s9214_s16 + $0x290] sm:$0xff] }
 0x58a   :  { %6238 = vmatpush.bf16.msra.mxu0 %v5594_v13  ;;  %v4859_v0 = vcvt.s32.f32 %v3963_v39  ;;  %v4866_v33 = vcvt.s32.f32 %v3970_v52  ;;  %v4187_v19 = vunpack.c.0.s8 %v3459_v12  ;;  %v4194_v30 = vunpack.c.1.s8 %v3459_v12  ;;  %v6022_v52 = vpop.f32.mrf.mxu3 }
 0x58b   :  { %v5706_v27 = vpack.c.bf16 %v5216_v51, %v5209_v36  ;;  %v4971_v32 = vcvt.s32.f32 %v4075_v54  ;;  %v4978_v50 = vcvt.s32.f32 %v4082_v48  ;;  %6251 = vmatpush.bf16.msra.mxu1 %v5650_v21  ;;  %v4299_v44 = vunpack.c.0.s8 %v3487_v22  ;;  %v6061_v36 = vpop.f32.mrf.mxu2 }
 0x58c   :  { %v5531_v2 = vpack.c.bf16 %v4866_v33, %v4859_v0  ;;  %v5083_v53 = vcvt.s32.f32 %v4187_v19  ;;  %v4306_v20 = vunpack.c.1.s8 %v3487_v22  ;;  %v5090_v58 = vcvt.s32.f32 %v4194_v30 }
 0x58d   :  { %6264 = vmatpush.bf16.msra.mxu2 %v5706_v27  ;;  %v5587_v41 = vpack.c.bf16 %v4978_v50, %v4971_v32  ;;  %v3614_v14 = vunpack.c.2.s8 %v3313_v10  ;;  %v3621_v4 = vunpack.c.3.s8 %v3313_v10  ;;  %v5195_v12 = vcvt.s32.f32 %v4299_v44 }
 0x58e   :  { %6226 = vmatpush.bf16.msrb.mxu3 %v5531_v2  ;;  %v5202_v60 = vcvt.s32.f32 %v4306_v20  ;;  %v3726_v29 = vunpack.c.2.s8 %v3341_v28  ;;  %v3733_v49 = vunpack.c.3.s8 %v3341_v28  ;;  %v5643_v8 = vpack.c.bf16 %v5090_v58, %v5083_v53 }
 0x58f   :  { %6239 = vmatpush.bf16.msra.mxu0 %v5587_v41  ;;  %v4510_v45 = vcvt.s32.f32 %v3614_v14  ;;  %v4517_v37 = vcvt.s32.f32 %v3621_v4  ;;  %v3838_v9 = vunpack.c.2.s8 %v3369_v38  ;;  %v3845_v43 = vunpack.c.3.s8 %v3369_v38  ;;  %v3390_v4 = vld [vmem:[%s9214_s16 + $0x338] sm:$0xff] }
 0x590   :  { %v5699_v22 = vpack.c.bf16 %v5202_v60, %v5195_v12  ;;  %v4622_v23 = vcvt.s32.f32 %v3726_v29  ;;  %v4629_v40 = vcvt.s32.f32 %v3733_v49  ;;  %6252 = vmatpush.bf16.msra.mxu1 %v5643_v8  ;;  %v3950_v16 = vunpack.c.2.s8 %v3397_v35 }
 0x591   :  { %v5357_v25 = vpack.c.bf16 %v4517_v37, %v4510_v45  ;;  %v4734_v3 = vcvt.s32.f32 %v3838_v9  ;;  %v3957_v26 = vunpack.c.3.s8 %v3397_v35  ;;  %6227 = vmatmul.bf16.vlgmr.msrb.gmra.mxu3 %v8355_v34  ;;  %v4741_v62 = vcvt.s32.f32 %v3845_v43 }
 0x592   :  { %6265 = vmatpush.bf16.msra.mxu2 %v5699_v22  ;;  %v5413_v46 = vpack.c.bf16 %v4629_v40, %v4622_v23  ;;  %6240 = vmatmul.bf16.vlgmr.msra.gmra.mxu0 %v8358_v56  ;;  %v3600_v63 = vunpack.c.0.s8 %v3313_v10  ;;  %v3607_v15 = vunpack.c.1.s8 %v3313_v10  ;;  %v4846_v47 = vcvt.s32.f32 %v3950_v16  ;;  %v3334_v10 = vld [vmem:[%s9214_s16 + $0x178] sm:$0xff] }
 0x593   :  { %6271 = vmatpush.bf16.msra.mxu3 %v5357_v25  ;;  %v4853_v13 = vcvt.s32.f32 %v3957_v26  ;;  %v3712_v59 = vunpack.c.0.s8 %v3341_v28  ;;  %v3719_v39 = vunpack.c.1.s8 %v3341_v28  ;;  %v5469_v51 = vpack.c.bf16 %v4741_v62, %v4734_v3  ;;  %6253 = vmatmul.bf16.vlgmr.msra.gmra.mxu1 %v8361_v24  ;;  %v3362_v28 = vld [vmem:[%s9214_s16 + $0x258] sm:$0xff] }
 0x594   :  { %6284 = vmatpush.bf16.msrb.mxu0 %v5413_v46  ;;  %v4496_v54 = vcvt.s32.f32 %v3600_v63  ;;  %v4503_v48 = vcvt.s32.f32 %v3607_v15  ;;  %v3824_v1 = vunpack.c.0.s8 %v3369_v38  ;;  %v3831_v19 = vunpack.c.1.s8 %v3369_v38 }
 0x595   :  { %v5525_v21 = vpack.c.bf16 %v4853_v13, %v4846_v47  ;;  %6266 = vmatmul.bf16.vlgmr.msra.gmra.mxu2 %v8260_v61  ;;  %v4608_v0 = vcvt.s32.f32 %v3712_v59  ;;  %v4615_v33 = vcvt.s32.f32 %v3719_v39  ;;  %6297 = vmatpush.bf16.msrb.mxu1 %v5469_v51  ;;  %v3936_v50 = vunpack.c.0.s8 %v3397_v35  ;;  %v3299_v39 = vld [vmem:[%s9214_s16 + $0x60] sm:$0xff] }
 0x596   :  { %v5350_v27 = vpack.c.bf16 %v4503_v48, %v4496_v54  ;;  %v4720_v32 = vcvt.s32.f32 %v3824_v1  ;;  %v3943_v30 = vunpack.c.1.s8 %v3397_v35  ;;  %v4727_v53 = vcvt.s32.f32 %v3831_v19  ;;  %v3327_v48 = vld [vmem:[%s9214_s16 + $0x140] sm:$0xff] }
 0x597   :  { %6310 = vmatpush.bf16.msrb.mxu2 %v5525_v21  ;;  %v5406_v2 = vpack.c.bf16 %v4615_v33, %v4608_v0  ;;  %v3586_v44 = vunpack.c.2.s8 %v3306_v6  ;;  %v3593_v20 = vunpack.c.3.s8 %v3306_v6  ;;  %v4832_v38 = vcvt.s32.f32 %v3936_v50  ;;  %v8910_v33 = vld [vmem:[%s9214_s16 + $0x220] sm:$0xff] }
 0x598   :  { %6272 = vmatpush.bf16.msra.mxu3 %v5350_v27  ;;  %v4839_v41 = vcvt.s32.f32 %v3943_v30  ;;  %v3698_v58 = vunpack.c.2.s8 %v3334_v10  ;;  %v3705_v14 = vunpack.c.3.s8 %v3334_v10  ;;  %v5462_v12 = vpack.c.bf16 %v4727_v53, %v4720_v32  ;;  %v3383_v53 = vld [vmem:[%s9214_s16 + $0x300] sm:$0xff] }
 0x599   :  { %6285 = vmatpush.bf16.msrb.mxu0 %v5406_v2  ;;  %v4482_v60 = vcvt.s32.f32 %v3586_v44  ;;  %v4489_v29 = vcvt.s32.f32 %v3593_v20  ;;  %v3810_v49 = vunpack.c.2.s8 %v3362_v28  ;;  %v3817_v37 = vunpack.c.3.s8 %v3362_v28 }
 0x59a   :  { %v5518_v35 = vpack.c.bf16 %v4839_v41, %v4832_v38  ;;  %v4594_v8 = vcvt.s32.f32 %v3698_v58  ;;  %v4601_v45 = vcvt.s32.f32 %v3705_v14  ;;  %6298 = vmatpush.bf16.msrb.mxu1 %v5462_v12  ;;  %v3922_v23 = vunpack.c.2.s8 %v3390_v4 }
 0x59b   :  { %v5343_v9 = vpack.c.bf16 %v4489_v29, %v4482_v60  ;;  %v4706_v22 = vcvt.s32.f32 %v3810_v49  ;;  %v3929_v40 = vunpack.c.3.s8 %v3390_v4  ;;  %v4713_v25 = vcvt.s32.f32 %v3817_v37 }
 0x59c   :  { %6311 = vmatpush.bf16.msrb.mxu2 %v5518_v35  ;;  %v5399_v43 = vpack.c.bf16 %v4601_v45, %v4594_v8  ;;  %v3572_v3 = vunpack.c.0.s8 %v3306_v6  ;;  %v3579_v16 = vunpack.c.1.s8 %v3306_v6  ;;  %v4818_v26 = vcvt.s32.f32 %v3922_v23 }
 0x59d   :  { %6273 = vmatpush.bf16.msra.mxu3 %v5343_v9  ;;  %v4825_v46 = vcvt.s32.f32 %v3929_v40  ;;  %v3684_v62 = vunpack.c.0.s8 %v3334_v10  ;;  %v3691_v63 = vunpack.c.1.s8 %v3334_v10  ;;  %v5455_v15 = vpack.c.bf16 %v4713_v25, %v4706_v22  ;;  %v8922_v9 = vld [vmem:[%s9215_s17] sm:$0x7f] }
 0x59e   :  { %6286 = vmatpush.bf16.msrb.mxu0 %v5399_v43  ;;  %v4468_v47 = vcvt.s32.f32 %v3572_v3  ;;  %v4475_v13 = vcvt.s32.f32 %v3579_v16  ;;  %v3796_v59 = vunpack.c.0.s8 %v3362_v28  ;;  %v3803_v54 = vunpack.c.1.s8 %v3362_v28  ;;  %v8928_v43 = vld [vmem:[%s9216_s18] sm:$0x7f] }
 0x59f   :  { %v5511_v52 = vpack.c.bf16 %v4825_v46, %v4818_v26  ;;  %v4580_v36 = vcvt.s32.f32 %v3684_v62  ;;  %v4587_v51 = vcvt.s32.f32 %v3691_v63  ;;  %6299 = vmatpush.bf16.msrb.mxu1 %v5455_v15  ;;  %v3908_v21 = vunpack.c.0.s8 %v3390_v4 }
 0x5a0   :  { %v5336_v1 = vpack.c.bf16 %v4475_v13, %v4468_v47  ;;  %v4692_v6 = vcvt.s32.f32 %v3796_v59  ;;  %v3915_v0 = vunpack.c.1.s8 %v3390_v4  ;;  %v4699_v10 = vcvt.s32.f32 %v3803_v54  ;;  %v3292_v47 = vld [vmem:[%s9214_s16 + $0x28] sm:$0xff] }
 0x5a1   :  { %6312 = vmatpush.bf16.msrb.mxu2 %v5511_v52  ;;  %v5392_v19 = vpack.c.bf16 %v4587_v51, %v4580_v36  ;;  %v3558_v27 = vunpack.c.2.s8 %v3299_v39  ;;  %v3565_v32 = vunpack.c.3.s8 %v3299_v39  ;;  %v4804_v50 = vcvt.s32.f32 %v3908_v21 }
 0x5a2   :  { %6274 = vmatpush.bf16.msra.mxu3 %v5336_v1  ;;  %v4811_v30 = vcvt.s32.f32 %v3915_v0  ;;  %v3670_v28 = vunpack.c.2.s8 %v3327_v48  ;;  %v3677_v2 = vunpack.c.3.s8 %v3327_v48  ;;  %v5448_v44 = vpack.c.bf16 %v4699_v10, %v4692_v6  ;;  %v8941_v1 = vpop.f32.mrf.mxu0  ;;  %v8943_v6 = vpop.f32.mrf.mxu1 }
 0x5a3   :  { %6287 = vmatpush.bf16.msrb.mxu0 %v5392_v19  ;;  %v4454_v20 = vcvt.s32.f32 %v3558_v27  ;;  %v4461_v38 = vcvt.s32.f32 %v3565_v32  ;;  %v3782_v41 = vunpack.c.2.s8 %v8910_v33  ;;  %v3789_v12 = vunpack.c.3.s8 %v8910_v33 }
 0x5a4   :  { %v5504_v58 = vpack.c.bf16 %v4811_v30, %v4804_v50  ;;  %v4566_v14 = vcvt.s32.f32 %v3670_v28  ;;  %v4573_v4 = vcvt.s32.f32 %v3677_v2  ;;  %6300 = vmatpush.bf16.msrb.mxu1 %v5448_v44  ;;  %v3894_v49 = vunpack.c.2.s8 %v3383_v53  ;;  %v3376_v30 = vld [vmem:[%s9214_s16 + $0x2c8] sm:$0xff] }
 0x5a5   :  { %v5329_v60 = vpack.c.bf16 %v4461_v38, %v4454_v20  ;;  %v4678_v29 = vcvt.s32.f32 %v3782_v41  ;;  %v3901_v35 = vunpack.c.3.s8 %v3383_v53  ;;  %v4685_v45 = vcvt.s32.f32 %v3789_v12 }
 0x5a6   :  { %6313 = vmatpush.bf16.msrb.mxu2 %v5504_v58  ;;  %v5385_v8 = vpack.c.bf16 %v4573_v4, %v4566_v14  ;;  %v6021_v37 = vadd.f32 %v8875_v42, %v8854_v7  ;;  %v6483_v22 = vperm.slane %v8922_v9, 2  ;;  %v4790_v23 = vcvt.s32.f32 %v3894_v49 }
 0x5a7   :  { %6275 = vmatpush.bf16.msra.mxu3 %v5329_v60  ;;  %v4797_v40 = vcvt.s32.f32 %v3901_v35  ;;  %v6506_v25 = vperm.slane %v8928_v43, 2  ;;  %v3544_v3 = vunpack.c.0.s8 %v3299_v39  ;;  %v5441_v7 = vpack.c.bf16 %v4685_v45, %v4678_v29 }
 0x5a8   :  { %6288 = vmatpush.bf16.msrb.mxu0 %v5385_v8  ;;  %v6034_v42 = vadd.f32 %v8859_v18, %v6021_v37  ;;  %v3551_v16 = vunpack.c.1.s8 %v3299_v39  ;;  %v3656_v26 = vunpack.c.0.s8 %v3327_v48  ;;  %v3663_v63 = vunpack.c.1.s8 %v3327_v48  ;;  %v3320_v48 = vld [vmem:[%s9214_s16 + $0x108] sm:$0xff] }
 0x5a9   :  { %v5497_v46 = vpack.c.bf16 %v4797_v40, %v4790_v23  ;;  %v4440_v62 = vcvt.s32.f32 %v3544_v3  ;;  %v3768_v15 = vunpack.c.0.s8 %v8910_v33  ;;  %6301 = vmatpush.bf16.msrb.mxu1 %v5441_v7  ;;  %v3775_v36 = vunpack.c.1.s8 %v8910_v33  ;;  %v3348_v33 = vld [vmem:[%s9214_s16 + $0x1e8] sm:$0xff] }
 0x5aa   :  { %v6047_v13 = vadd.f32 %v8861_v57, %v6034_v42  ;;  %v4447_v59 = vcvt.s32.f32 %v3551_v16  ;;  %v4552_v52 = vcvt.s32.f32 %v3656_v26  ;;  %v4559_v18 = vcvt.s32.f32 %v3663_v63  ;;  %v6087_v7 = vpop.f32.mrf.mxu0 }
 0x5ab   :  { %6314 = vmatpush.bf16.msrb.mxu2 %v5497_v46  ;;  %v4664_v39 = vcvt.s32.f32 %v3768_v15  ;;  %v3880_v51 = vunpack.c.0.s8 %v3383_v53  ;;  %v3887_v54 = vunpack.c.1.s8 %v3383_v53  ;;  %v4671_v0 = vcvt.s32.f32 %v3775_v36  ;;  %v8962_v36 = vpop.f32.mrf.mxu2 }
 0x5ac   :  { %v6060_v21 = vadd.f32 %v8877_v17, %v6047_v13  ;;  %v5322_v57 = vpack.c.bf16 %v4447_v59, %v4440_v62  ;;  %v3530_v19 = vunpack.c.2.s8 %v3292_v47  ;;  %v5378_v10 = vpack.c.bf16 %v4559_v18, %v4552_v52  ;;  %v3425_v62 = vld [vmem:[%s9214_s16 + $0x450] sm:$0xff]  ;;  %v8960_v52 = vpop.f32.mrf.mxu3 }
 0x5ad   :  { %v4776_v27 = vcvt.s32.f32 %v3880_v51  ;;  %v4783_v32 = vcvt.s32.f32 %v3887_v54  ;;  %v3537_v50 = vunpack.c.3.s8 %v3292_v47  ;;  %v5434_v2 = vpack.c.bf16 %v4671_v0, %v4664_v39 }
 0x5ae   :  { %v6497_v28 = vmul.f32 %v6483_v22, %v6060_v21  ;;  %6276 = vmatpush.bf16.msra.mxu3 %v5322_v57  ;;  %v4426_v53 = vcvt.s32.f32 %v3530_v19  ;;  %v3642_v17 = vunpack.c.2.s8 %v3320_v48  ;;  %6289 = vmatpush.bf16.msrb.mxu0 %v5378_v10  ;;  %v3649_v38 = vunpack.c.3.s8 %v3320_v48  ;;  %v3481_v19 = vld [vmem:[%s9214_s16 + $0x610] sm:$0xff] }
 0x5af   :  { %v5490_v44 = vpack.c.bf16 %v4783_v32, %v4776_v27  ;;  %v4433_v20 = vcvt.s32.f32 %v3537_v50  ;;  %v3754_v41 = vunpack.c.2.s8 %v3348_v33  ;;  %6302 = vmatpush.bf16.msrb.mxu1 %v5434_v2  ;;  %v3761_v4 = vunpack.c.3.s8 %v3348_v33 }
 0x5b0   :  { %v6520_v58 = vadd.f32 %v6506_v25, %v6497_v28  ;;  %v4538_v14 = vcvt.s32.f32 %v3642_v17  ;;  %v3866_v12 = vunpack.c.2.s8 %v3376_v30  ;;  %v4545_v29 = vcvt.s32.f32 %v3649_v38  ;;  %v6100_v25 = vpop.f32.mrf.mxu1  ;;  %v3509_v28 = vld [vmem:[%s9214_s16 + $0x6f0] sm:$0xff] }
 0x5b1   :  { %6315 = vmatpush.bf16.msrb.mxu2 %v5490_v44  ;;  %v5315_v60 = vpack.c.bf16 %v4433_v20, %v4426_v53  ;;  %v4650_v49 = vcvt.s32.f32 %v3754_v41  ;;  %v3873_v35 = vunpack.c.3.s8 %v3376_v30  ;;  %v4657_v8 = vcvt.s32.f32 %v3761_v4 }
 0x5b2   :  { %6595 = vtanh.f32 %v6520_v58  ;;  %v4762_v45 = vcvt.s32.f32 %v3866_v12  ;;  %v3516_v37 = vunpack.c.0.s8 %v3292_v47  ;;  %v5371_v22 = vpack.c.bf16 %v4545_v29, %v4538_v14 }
 0x5b3   :  { %6277 = vmatpush.bf16.msra.mxu3 %v5315_v60  ;;  %v4769_v23 = vcvt.s32.f32 %v3873_v35  ;;  %v3523_v40 = vunpack.c.1.s8 %v3292_v47  ;;  %v3628_v3 = vunpack.c.0.s8 %v3320_v48  ;;  %v5427_v42 = vpack.c.bf16 %v4657_v8, %v4650_v49  ;;  %v8958_v47 = vld [vmem:[%s9214_s16 + $0x530] sm:$0xff] }
 0x5b4   :  { %v4412_v16 = vcvt.s32.f32 %v3516_v37  ;;  %v3635_v26 = vunpack.c.1.s8 %v3320_v48  ;;  %v3740_v46 = vunpack.c.0.s8 %v3348_v33  ;;  %6290 = vmatpush.bf16.msrb.mxu0 %v5371_v22  ;;  %v3747_v59 = vunpack.c.1.s8 %v3348_v33 }
 0x5b5   :  { %v5483_v63 = vpack.c.bf16 %v4769_v23, %v4762_v45  ;;  %v4419_v15 = vcvt.s32.f32 %v3523_v40  ;;  %v4524_v13 = vcvt.s32.f32 %v3628_v3  ;;  %6303 = vmatpush.bf16.msrb.mxu1 %v5427_v42  ;;  %v3852_v51 = vunpack.c.0.s8 %v3376_v30  ;;  %v6074_v23 = vpop.f32.mrf.mxu3  ;;  %v6113_v40 = vpop.f32.mrf.mxu2 }
 0x5b6   :  { %v4531_v18 = vcvt.s32.f32 %v3635_v26  ;;  %v4636_v39 = vcvt.s32.f32 %v3740_v46  ;;  %v3859_v54 = vunpack.c.1.s8 %v3376_v30  ;;  %v4643_v21 = vcvt.s32.f32 %v3747_v59  ;;  %v3411_v23 = vld [vmem:[%s9214_s16 + $0x3e0] sm:$0xff] }
 0x5b7   :  { %6316 = vmatpush.bf16.msrb.mxu2 %v5483_v63  ;;  %v5308_v48 = vpack.c.bf16 %v4419_v15, %v4412_v16  ;;  %v4062_v57 = vunpack.c.2.s8 %v3425_v62  ;;  %v4069_v0 = vunpack.c.3.s8 %v3425_v62  ;;  %v4748_v27 = vcvt.s32.f32 %v3852_v51  ;;  %v3418_v16 = vld [vmem:[%s9214_s16 + $0x418] sm:$0xff] }
 0x5b8   :  { %v6596_v33 = vpop.eup %6595  ;;  %v5364_v10 = vpack.c.bf16 %v4531_v18, %v4524_v13  ;;  %v4755_v32 = vcvt.s32.f32 %v3859_v54  ;;  %v4174_v50 = vunpack.c.2.s8 %v8958_v47  ;;  %v5420_v30 = vpack.c.bf16 %v4643_v21, %v4636_v39  ;;  %v3446_v15 = vld [vmem:[%s9214_s16 + $0x4f8] sm:$0xff] }
 0x5b9   :  { %6534 = vst [vmem:[#allocation2 + $0x10] sm:$0xff] %v6596_v33  ;;  %6278 = vmatpush.bf16.msra.mxu3 %v5308_v48  ;;  %v4958_v2 = vcvt.s32.f32 %v4062_v57  ;;  %v4965_v53 = vcvt.s32.f32 %v4069_v0  ;;  %v4181_v17 = vunpack.c.3.s8 %v8958_v47  ;;  %v4286_v38 = vunpack.c.2.s8 %v3481_v19  ;;  %v3474_v21 = vld [vmem:[%s9214_s16 + $0x5d8] sm:$0xff] }
 0x5ba   :  { %6291 = vmatpush.bf16.msrb.mxu0 %v5364_v10  ;;  %v5476_v44 = vpack.c.bf16 %v4755_v32, %v4748_v27  ;;  %v5070_v20 = vcvt.s32.f32 %v4174_v50  ;;  %v4293_v41 = vunpack.c.3.s8 %v3481_v19  ;;  %6304 = vmatpush.bf16.msrb.mxu1 %v5420_v30  ;;  %v4398_v4 = vunpack.c.2.s8 %v3509_v28  ;;  %v3502_v10 = vld [vmem:[%s9214_s16 + $0x6b8] sm:$0xff] }
 0x5bb   :  { %v5581_v58 = vpack.c.bf16 %v4965_v53, %v4958_v2  ;;  %v5077_v14 = vcvt.s32.f32 %v4181_v17  ;;  %v4405_v12 = vunpack.c.3.s8 %v3509_v28  ;;  %v5182_v60 = vcvt.s32.f32 %v4286_v38 }
 0x5bc   :  { %6317 = vmatpush.bf16.msrb.mxu2 %v5476_v44  ;;  %v5189_v29 = vcvt.s32.f32 %v4293_v41  ;;  %6279 = vmatmul.bf16.vlgmr.msra.gmra.mxu3 %v8291_v31  ;;  %v4048_v49 = vunpack.c.0.s8 %v3425_v62  ;;  %v4055_v35 = vunpack.c.1.s8 %v3425_v62  ;;  %v5294_v45 = vcvt.s32.f32 %v4398_v4 }
 0x5bd   :  { %6323 = vmatpush.bf16.msrb.mxu3 %v5581_v58  ;;  %v5637_v8 = vpack.c.bf16 %v5077_v14, %v5070_v20  ;;  %v5301_v37 = vcvt.s32.f32 %v4405_v12  ;;  %6292 = vmatmul.bf16.vlgmr.msrb.gmra.mxu0 %v8296_v11  ;;  %v4160_v22 = vunpack.c.0.s8 %v8958_v47  ;;  %v4167_v42 = vunpack.c.1.s8 %v8958_v47 }
 0x5be   :  { %v5693_v3 = vpack.c.bf16 %v5189_v29, %v5182_v60  ;;  %6305 = vmatmul.bf16.vlgmr.msrb.gmra.mxu1 %v8299_v5  ;;  %v4944_v7 = vcvt.s32.f32 %v4048_v49  ;;  %v4951_v25 = vcvt.s32.f32 %v4055_v35  ;;  %v4272_v62 = vunpack.c.0.s8 %v3481_v19 }
 0x5bf   :  { %6336 = vmatpush.bf16.msra.mxu0 %v5637_v8  ;;  %v5749_v26 = vpack.c.bf16 %v5301_v37, %v5294_v45  ;;  %6318 = vmatmul.bf16.vlgmr.msrb.gmra.mxu2 %v8302_v55  ;;  %v5056_v46 = vcvt.s32.f32 %v4160_v22  ;;  %v4279_v63 = vunpack.c.1.s8 %v3481_v19  ;;  %v5063_v59 = vcvt.s32.f32 %v4167_v42  ;;  %v3439_v42 = vld [vmem:[%s9214_s16 + $0x4c0] sm:$0xff] }
 0x5c0   :  { %6349 = vmatpush.bf16.msra.mxu1 %v5693_v3  ;;  %v5574_v13 = vpack.c.bf16 %v4951_v25, %v4944_v7  ;;  %v4384_v18 = vunpack.c.0.s8 %v3509_v28  ;;  %v4391_v47 = vunpack.c.1.s8 %v3509_v28  ;;  %v5168_v39 = vcvt.s32.f32 %v4272_v62 }
 0x5c1   :  { %6362 = vmatpush.bf16.msra.mxu2 %v5749_v26  ;;  %v5175_v51 = vcvt.s32.f32 %v4279_v63  ;;  %v4034_v54 = vunpack.c.2.s8 %v3418_v16  ;;  %v4041_v48 = vunpack.c.3.s8 %v3418_v16  ;;  %v5630_v57 = vpack.c.bf16 %v5063_v59, %v5056_v46 }
 0x5c2   :  { %6324 = vmatpush.bf16.msrb.mxu3 %v5574_v13  ;;  %v5280_v0 = vcvt.s32.f32 %v4384_v18  ;;  %v5287_v19 = vcvt.s32.f32 %v4391_v47  ;;  %v4146_v33 = vunpack.c.2.s8 %v3446_v15  ;;  %v4153_v28 = vunpack.c.3.s8 %v3446_v15  ;;  %v3467_v18 = vld [vmem:[%s9214_s16 + $0x5a0] sm:$0xff] }
 0x5c3   :  { %v5686_v27 = vpack.c.bf16 %v5175_v51, %v5168_v39  ;;  %v4930_v32 = vcvt.s32.f32 %v4034_v54  ;;  %v4937_v50 = vcvt.s32.f32 %v4041_v48  ;;  %6337 = vmatpush.bf16.msra.mxu0 %v5630_v57  ;;  %v4258_v53 = vunpack.c.2.s8 %v3474_v21  ;;  %v3495_v48 = vld [vmem:[%s9214_s16 + $0x680] sm:$0xff] }
 0x5c4   :  { %v5742_v30 = vpack.c.bf16 %v5287_v19, %v5280_v0  ;;  %v5042_v2 = vcvt.s32.f32 %v4146_v33  ;;  %v4265_v17 = vunpack.c.3.s8 %v3474_v21  ;;  %v5049_v20 = vcvt.s32.f32 %v4153_v28 }
 0x5c5   :  { %6350 = vmatpush.bf16.msra.mxu1 %v5686_v27  ;;  %v5567_v44 = vpack.c.bf16 %v4937_v50, %v4930_v32  ;;  %v4370_v38 = vunpack.c.2.s8 %v3502_v10  ;;  %v4377_v41 = vunpack.c.3.s8 %v3502_v10  ;;  %v5154_v58 = vcvt.s32.f32 %v4258_v53 }
 0x5c6   :  { %6363 = vmatpush.bf16.msra.mxu2 %v5742_v30  ;;  %v5161_v14 = vcvt.s32.f32 %v4265_v17  ;;  %v4020_v4 = vunpack.c.0.s8 %v3418_v16  ;;  %v4027_v12 = vunpack.c.1.s8 %v3418_v16  ;;  %v5623_v60 = vpack.c.bf16 %v5049_v20, %v5042_v2 }
 0x5c7   :  { %6325 = vmatpush.bf16.msrb.mxu3 %v5567_v44  ;;  %v5266_v29 = vcvt.s32.f32 %v4370_v38  ;;  %v5273_v49 = vcvt.s32.f32 %v4377_v41  ;;  %v4132_v35 = vunpack.c.0.s8 %v3446_v15  ;;  %v4139_v22 = vunpack.c.1.s8 %v3446_v15 }
 0x5c8   :  { %v5679_v8 = vpack.c.bf16 %v5161_v14, %v5154_v58  ;;  %v4916_v45 = vcvt.s32.f32 %v4020_v4  ;;  %v4923_v37 = vcvt.s32.f32 %v4027_v12  ;;  %6338 = vmatpush.bf16.msra.mxu0 %v5623_v60  ;;  %v4244_v7 = vunpack.c.0.s8 %v3474_v21 }
 0x5c9   :  { %v5735_v40 = vpack.c.bf16 %v5273_v49, %v5266_v29  ;;  %v5028_v3 = vcvt.s32.f32 %v4132_v35  ;;  %v4251_v25 = vunpack.c.1.s8 %v3474_v21  ;;  %v5035_v26 = vcvt.s32.f32 %v4139_v22 }
 0x5ca   :  { %6351 = vmatpush.bf16.msra.mxu1 %v5679_v8  ;;  %v5560_v16 = vpack.c.bf16 %v4923_v37, %v4916_v45  ;;  %v4356_v46 = vunpack.c.0.s8 %v3502_v10  ;;  %v4363_v62 = vunpack.c.1.s8 %v3502_v10  ;;  %v5140_v63 = vcvt.s32.f32 %v4244_v7 }
 0x5cb   :  { %6364 = vmatpush.bf16.msra.mxu2 %v5735_v40  ;;  %v5147_v15 = vcvt.s32.f32 %v4251_v25  ;;  %v4006_v13 = vunpack.c.2.s8 %v3411_v23  ;;  %v4013_v59 = vunpack.c.3.s8 %v3411_v23  ;;  %v5616_v47 = vpack.c.bf16 %v5035_v26, %v5028_v3  ;;  %v9014_v40 = vpop.f32.mrf.mxu0  ;;  %v9016_v3 = vpop.f32.mrf.mxu1 }
 0x5cc   :  { %6326 = vmatpush.bf16.msrb.mxu3 %v5560_v16  ;;  %v5252_v39 = vcvt.s32.f32 %v4356_v46  ;;  %v5259_v51 = vcvt.s32.f32 %v4363_v62  ;;  %v4118_v54 = vunpack.c.2.s8 %v3439_v42  ;;  %v4125_v19 = vunpack.c.3.s8 %v3439_v42 }
 0x5cd   :  { %v5672_v21 = vpack.c.bf16 %v5147_v15, %v5140_v63  ;;  %v4902_v57 = vcvt.s32.f32 %v4006_v13  ;;  %v4909_v0 = vcvt.s32.f32 %v4013_v59  ;;  %6339 = vmatpush.bf16.msra.mxu0 %v5616_v47  ;;  %v4230_v27 = vunpack.c.2.s8 %v3467_v18  ;;  %v3488_v47 = vld [vmem:[%s9214_s16 + $0x648] sm:$0xff] }
 0x5ce   :  { %v5728_v33 = vpack.c.bf16 %v5259_v51, %v5252_v39  ;;  %v5014_v10 = vcvt.s32.f32 %v4118_v54  ;;  %v4237_v32 = vunpack.c.3.s8 %v3467_v18  ;;  %v5021_v28 = vcvt.s32.f32 %v4125_v19 }
 0x5cf   :  { %6352 = vmatpush.bf16.msra.mxu1 %v5672_v21  ;;  %v5553_v50 = vpack.c.bf16 %v4909_v0, %v4902_v57  ;;  %v4342_v30 = vunpack.c.2.s8 %v3495_v48  ;;  %v4349_v2 = vunpack.c.3.s8 %v3495_v48  ;;  %v5126_v53 = vcvt.s32.f32 %v4230_v27 }
 0x5d0   :  { %6365 = vmatpush.bf16.msra.mxu2 %v5728_v33  ;;  %v5133_v17 = vcvt.s32.f32 %v4237_v32  ;;  %v6086_v44 = vadd.f32 %v8941_v1, %v8960_v52  ;;  %v3992_v20 = vunpack.c.0.s8 %v3411_v23  ;;  %v5609_v38 = vpack.c.bf16 %v5021_v28, %v5014_v10  ;;  %v3404_v1 = vld [vmem:[%s9214_s16 + $0x3a8] sm:$0xff] }
 0x5d1   :  { %6327 = vmatpush.bf16.msrb.mxu3 %v5553_v50  ;;  %v5238_v41 = vcvt.s32.f32 %v4342_v30  ;;  %v5245_v58 = vcvt.s32.f32 %v4349_v2  ;;  %v3999_v14 = vunpack.c.1.s8 %v3411_v23  ;;  %v4104_v29 = vunpack.c.0.s8 %v3439_v42 }
 0x5d2   :  { %v5665_v4 = vpack.c.bf16 %v5133_v17, %v5126_v53  ;;  %v6099_v12 = vadd.f32 %v8943_v6, %v6086_v44  ;;  %v4888_v60 = vcvt.s32.f32 %v3992_v20  ;;  %6340 = vmatpush.bf16.msra.mxu0 %v5609_v38  ;;  %v4111_v8 = vunpack.c.1.s8 %v3439_v42  ;;  %v3432_v6 = vld [vmem:[%s9214_s16 + $0x488] sm:$0xff] }
 0x5d3   :  { %v5721_v49 = vpack.c.bf16 %v5245_v58, %v5238_v41  ;;  %v4895_v35 = vcvt.s32.f32 %v3999_v14  ;;  %v4216_v45 = vunpack.c.0.s8 %v3467_v18  ;;  %v5000_v37 = vcvt.s32.f32 %v4104_v29  ;;  %v6139_v38 = vpop.f32.mrf.mxu0  ;;  %v6152_v41 = vpop.f32.mrf.mxu1 }
 0x5d4   :  { %6353 = vmatpush.bf16.msra.mxu1 %v5665_v4  ;;  %v9009_v52 = vadd.f32 %v8962_v36, %v6099_v12  ;;  %v4223_v22 = vunpack.c.1.s8 %v3467_v18  ;;  %v4328_v23 = vunpack.c.0.s8 %v3495_v48  ;;  %v5007_v25 = vcvt.s32.f32 %v4111_v8  ;;  %v3460_v36 = vld [vmem:[%s9214_s16 + $0x568] sm:$0xff] }
 0x5d5   :  { %6366 = vmatpush.bf16.msra.mxu2 %v5721_v49  ;;  %v5546_v7 = vpack.c.bf16 %v4895_v35, %v4888_v60  ;;  %v5112_v42 = vcvt.s32.f32 %v4216_v45  ;;  %v4335_v16 = vunpack.c.1.s8 %v3495_v48  ;;  %v3978_v62 = vunpack.c.2.s8 %v3404_v1  ;;  %v3314_v60 = vld [vmem:[%s9214_s16 + $0xd8] sm:$0xff] }
 0x5d6   :  { %v5119_v26 = vcvt.s32.f32 %v4223_v22  ;;  %v5224_v46 = vcvt.s32.f32 %v4328_v23  ;;  %v3985_v63 = vunpack.c.3.s8 %v3404_v1  ;;  %v5602_v15 = vpack.c.bf16 %v5007_v25, %v5000_v37  ;;  %v3342_v45 = vld [vmem:[%s9214_s16 + $0x1b8] sm:$0xff]  ;;  %v9032_v37 = vpop.f32.mrf.mxu2 }
 0x5d7   :  { %6328 = vmatpush.bf16.msrb.mxu3 %v5546_v7  ;;  %v5231_v13 = vcvt.s32.f32 %v4335_v16  ;;  %v4090_v59 = vunpack.c.2.s8 %v3432_v6  ;;  %v4097_v18 = vunpack.c.3.s8 %v3432_v6  ;;  %v4874_v51 = vcvt.s32.f32 %v3978_v62  ;;  %v3370_v25 = vld [vmem:[%s9214_s16 + $0x298] sm:$0xff] }
 0x5d8   :  { %v5658_v39 = vpack.c.bf16 %v5119_v26, %v5112_v42  ;;  %v4881_v54 = vcvt.s32.f32 %v3985_v63  ;;  %v4202_v48 = vunpack.c.2.s8 %v3460_v36  ;;  %6341 = vmatpush.bf16.msra.mxu0 %v5602_v15  ;;  %v4209_v19 = vunpack.c.3.s8 %v3460_v36 }
 0x5d9   :  { %v5714_v21 = vpack.c.bf16 %v5231_v13, %v5224_v46  ;;  %v4986_v57 = vcvt.s32.f32 %v4090_v59  ;;  %v4993_v0 = vcvt.s32.f32 %v4097_v18  ;;  %v4314_v27 = vunpack.c.2.s8 %v3488_v47  ;;  %v3398_v13 = vld [vmem:[%s9214_s16 + $0x378] sm:$0xff] }
 0x5da   :  { %6354 = vmatpush.bf16.msra.mxu1 %v5658_v39  ;;  %v5539_v33 = vpack.c.bf16 %v4881_v54, %v4874_v51  ;;  %v5098_v10 = vcvt.s32.f32 %v4202_v48  ;;  %v4321_v32 = vunpack.c.3.s8 %v3488_v47  ;;  %v5105_v28 = vcvt.s32.f32 %v4209_v19 }
 0x5db   :  { %6367 = vmatpush.bf16.msra.mxu2 %v5714_v21  ;;  %v5595_v50 = vpack.c.bf16 %v4993_v0, %v4986_v57  ;;  %v3964_v30 = vunpack.c.0.s8 %v3404_v1  ;;  %v3971_v2 = vunpack.c.1.s8 %v3404_v1  ;;  %v5210_v53 = vcvt.s32.f32 %v4314_v27  ;;  %v9030_v1 = vpop.f32.mrf.mxu3 }
 0x5dc   :  { %6329 = vmatpush.bf16.msrb.mxu3 %v5539_v33  ;;  %v5217_v17 = vcvt.s32.f32 %v4321_v32  ;;  %v4076_v44 = vunpack.c.0.s8 %v3432_v6  ;;  %v4083_v20 = vunpack.c.1.s8 %v3432_v6  ;;  %v5651_v58 = vpack.c.bf16 %v5105_v28, %v5098_v10 }
 0x5dd   :  { %6342 = vmatpush.bf16.msra.mxu0 %v5595_v50  ;;  %v4860_v14 = vcvt.s32.f32 %v3964_v30  ;;  %v4867_v4 = vcvt.s32.f32 %v3971_v2  ;;  %v4188_v12 = vunpack.c.0.s8 %v3460_v36  ;;  %v4195_v8 = vunpack.c.1.s8 %v3460_v36 }
 0x5de   :  { %v5707_v29 = vpack.c.bf16 %v5217_v17, %v5210_v53  ;;  %v4972_v49 = vcvt.s32.f32 %v4076_v44  ;;  %v4979_v35 = vcvt.s32.f32 %v4083_v20  ;;  %6355 = vmatpush.bf16.msra.mxu1 %v5651_v58  ;;  %v4300_v6 = vunpack.c.0.s8 %v3488_v47  ;;  %v6165_v44 = vpop.f32.mrf.mxu2 }
 0x5df   :  { %v5532_v22 = vpack.c.bf16 %v4867_v4, %v4860_v14  ;;  %v5084_v23 = vcvt.s32.f32 %v4188_v12  ;;  %v4307_v7 = vunpack.c.1.s8 %v3488_v47  ;;  %v5091_v16 = vcvt.s32.f32 %v4195_v8  ;;  %v3307_v14 = vld [vmem:[%s9214_s16 + $0xa0] sm:$0xff]  ;;  %v3300_v44 = vld [vmem:[%s9214_s16 + $0x68] sm:$0xff] }
 0x5e0   :  { %6368 = vmatpush.bf16.msra.mxu2 %v5707_v29  ;;  %v5588_v42 = vpack.c.bf16 %v4979_v35, %v4972_v49  ;;  %v3615_v36 = vunpack.c.2.s8 %v3314_v60  ;;  %v3622_v26 = vunpack.c.3.s8 %v3314_v60  ;;  %v5196_v46 = vcvt.s32.f32 %v4300_v6  ;;  %v3335_v49 = vld [vmem:[%s9214_s16 + $0x180] sm:$0xff] }
 0x5e1   :  { %6330 = vmatpush.bf16.msrb.mxu3 %v5532_v22  ;;  %v5203_v62 = vcvt.s32.f32 %v4307_v7  ;;  %v3727_v63 = vunpack.c.2.s8 %v3342_v45  ;;  %v3734_v15 = vunpack.c.3.s8 %v3342_v45  ;;  %v5644_v59 = vpack.c.bf16 %v5091_v16, %v5084_v23  ;;  %v3363_v23 = vld [vmem:[%s9214_s16 + $0x260] sm:$0xff] }
 0x5e2   :  { %6343 = vmatpush.bf16.msra.mxu0 %v5588_v42  ;;  %v4511_v18 = vcvt.s32.f32 %v3615_v36  ;;  %v4518_v47 = vcvt.s32.f32 %v3622_v26  ;;  %v3839_v39 = vunpack.c.2.s8 %v3370_v25  ;;  %v3846_v21 = vunpack.c.3.s8 %v3370_v25 }
 0x5e3   :  { %v5700_v51 = vpack.c.bf16 %v5203_v62, %v5196_v46  ;;  %v4623_v54 = vcvt.s32.f32 %v3727_v63  ;;  %v4630_v48 = vcvt.s32.f32 %v3734_v15  ;;  %6356 = vmatpush.bf16.msra.mxu1 %v5644_v59  ;;  %v3951_v19 = vunpack.c.2.s8 %v3398_v13  ;;  %v6126_v17 = vpop.f32.mrf.mxu3  ;;  %v3391_v62 = vld [vmem:[%s9214_s16 + $0x340] sm:$0xff] }
 0x5e4   :  { %v5358_v57 = vpack.c.bf16 %v4518_v47, %v4511_v18  ;;  %v4735_v0 = vcvt.s32.f32 %v3839_v39  ;;  %v3958_v33 = vunpack.c.3.s8 %v3398_v13  ;;  %6331 = vmatmul.bf16.vlgmr.msrb.gmra.mxu3 %v8355_v34  ;;  %v4742_v27 = vcvt.s32.f32 %v3846_v21 }
 0x5e5   :  { %6369 = vmatpush.bf16.msra.mxu2 %v5700_v51  ;;  %v5414_v10 = vpack.c.bf16 %v4630_v48, %v4623_v54  ;;  %6344 = vmatmul.bf16.vlgmr.msra.gmra.mxu0 %v8358_v56  ;;  %v3601_v32 = vunpack.c.0.s8 %v3314_v60  ;;  %v3608_v50 = vunpack.c.1.s8 %v3314_v60  ;;  %v4847_v28 = vcvt.s32.f32 %v3951_v19 }
 0x5e6   :  { %6375 = vmatpush.bf16.msra.mxu3 %v5358_v57  ;;  %v4854_v30 = vcvt.s32.f32 %v3958_v33  ;;  %v3713_v2 = vunpack.c.0.s8 %v3342_v45  ;;  %v3720_v53 = vunpack.c.1.s8 %v3342_v45  ;;  %v5470_v20 = vpack.c.bf16 %v4742_v27, %v4735_v0  ;;  %6357 = vmatmul.bf16.vlgmr.msra.gmra.mxu1 %v8361_v24 }
 0x5e7   :  { %6388 = vmatpush.bf16.msrb.mxu0 %v5414_v10  ;;  %v4497_v38 = vcvt.s32.f32 %v3601_v32  ;;  %v4504_v41 = vcvt.s32.f32 %v3608_v50  ;;  %v3825_v58 = vunpack.c.0.s8 %v3370_v25  ;;  %v3832_v29 = vunpack.c.1.s8 %v3370_v25 }
 0x5e8   :  { %v5526_v4 = vpack.c.bf16 %v4854_v30, %v4847_v28  ;;  %6370 = vmatmul.bf16.vlgmr.msra.gmra.mxu2 %v8260_v61  ;;  %v4609_v12 = vcvt.s32.f32 %v3713_v2  ;;  %v4616_v60 = vcvt.s32.f32 %v3720_v53  ;;  %6401 = vmatpush.bf16.msrb.mxu1 %v5470_v20  ;;  %v3937_v45 = vunpack.c.0.s8 %v3398_v13 }
 0x5e9   :  { %v5351_v35 = vpack.c.bf16 %v4504_v41, %v4497_v38  ;;  %v4721_v8 = vcvt.s32.f32 %v3825_v58  ;;  %v3944_v22 = vunpack.c.1.s8 %v3398_v13  ;;  %v4728_v7 = vcvt.s32.f32 %v3832_v29 }
 0x5ea   :  { %6414 = vmatpush.bf16.msrb.mxu2 %v5526_v4  ;;  %v5407_v6 = vpack.c.bf16 %v4616_v60, %v4609_v12  ;;  %v3587_v42 = vunpack.c.2.s8 %v3307_v14  ;;  %v3594_v16 = vunpack.c.3.s8 %v3307_v14  ;;  %v4833_v25 = vcvt.s32.f32 %v3937_v45 }
 0x5eb   :  { %6376 = vmatpush.bf16.msra.mxu3 %v5351_v35  ;;  %v4840_v36 = vcvt.s32.f32 %v3944_v22  ;;  %v3699_v26 = vunpack.c.2.s8 %v3335_v49  ;;  %v3706_v46 = vunpack.c.3.s8 %v3335_v49  ;;  %v5463_v63 = vpack.c.bf16 %v4728_v7, %v4721_v8 }
 0x5ec   :  { %6389 = vmatpush.bf16.msrb.mxu0 %v5407_v6  ;;  %v4483_v15 = vcvt.s32.f32 %v3587_v42  ;;  %v4490_v13 = vcvt.s32.f32 %v3594_v16  ;;  %v3811_v59 = vunpack.c.2.s8 %v3363_v23  ;;  %v3818_v51 = vunpack.c.3.s8 %v3363_v23  ;;  %v3384_v16 = vld [vmem:[%s9214_s16 + $0x308] sm:$0xff] }
 0x5ed   :  { %v5519_v18 = vpack.c.bf16 %v4840_v36, %v4833_v25  ;;  %v4595_v47 = vcvt.s32.f32 %v3699_v26  ;;  %v4602_v39 = vcvt.s32.f32 %v3706_v46  ;;  %6402 = vmatpush.bf16.msrb.mxu1 %v5463_v63  ;;  %v3923_v21 = vunpack.c.2.s8 %v3391_v62 }
 0x5ee   :  { %v5344_v54 = vpack.c.bf16 %v4490_v13, %v4483_v15  ;;  %v4707_v48 = vcvt.s32.f32 %v3811_v59  ;;  %v3930_v57 = vunpack.c.3.s8 %v3391_v62  ;;  %v4714_v19 = vcvt.s32.f32 %v3818_v51 }
 0x5ef   :  { %6415 = vmatpush.bf16.msrb.mxu2 %v5519_v18  ;;  %v5400_v0 = vpack.c.bf16 %v4602_v39, %v4595_v47  ;;  %v3573_v33 = vunpack.c.0.s8 %v3307_v14  ;;  %v3580_v10 = vunpack.c.1.s8 %v3307_v14  ;;  %v4819_v27 = vcvt.s32.f32 %v3923_v21  ;;  %v3328_v14 = vld [vmem:[%s9214_s16 + $0x148] sm:$0xff] }
 0x5f0   :  { %6377 = vmatpush.bf16.msra.mxu3 %v5344_v54  ;;  %v4826_v32 = vcvt.s32.f32 %v3930_v57  ;;  %v3685_v50 = vunpack.c.0.s8 %v3335_v49  ;;  %v3692_v28 = vunpack.c.1.s8 %v3335_v49  ;;  %v5456_v30 = vpack.c.bf16 %v4714_v19, %v4707_v48  ;;  %v3356_v49 = vld [vmem:[%s9214_s16 + $0x228] sm:$0xff] }
 0x5f1   :  { %6390 = vmatpush.bf16.msrb.mxu0 %v5400_v0  ;;  %v4469_v2 = vcvt.s32.f32 %v3573_v33  ;;  %v4476_v53 = vcvt.s32.f32 %v3580_v10  ;;  %v3797_v17 = vunpack.c.0.s8 %v3363_v23  ;;  %v3804_v58 = vunpack.c.1.s8 %v3363_v23 }
 0x5f2   :  { %v5512_v20 = vpack.c.bf16 %v4826_v32, %v4819_v27  ;;  %v4581_v38 = vcvt.s32.f32 %v3685_v50  ;;  %v4588_v41 = vcvt.s32.f32 %v3692_v28  ;;  %6403 = vmatpush.bf16.msrb.mxu1 %v5456_v30  ;;  %v3909_v60 = vunpack.c.0.s8 %v3391_v62 }
 0x5f3   :  { %v5337_v4 = vpack.c.bf16 %v4476_v53, %v4469_v2  ;;  %v4693_v12 = vcvt.s32.f32 %v3797_v17  ;;  %v3916_v29 = vunpack.c.1.s8 %v3391_v62  ;;  %v4700_v8 = vcvt.s32.f32 %v3804_v58  ;;  %v9080_v58 = vpop.f32.mrf.mxu0 }
 0x5f4   :  { %6416 = vmatpush.bf16.msrb.mxu2 %v5512_v20  ;;  %v5393_v35 = vpack.c.bf16 %v4588_v41, %v4581_v38  ;;  %v3559_v45 = vunpack.c.2.s8 %v3300_v44  ;;  %v3566_v22 = vunpack.c.3.s8 %v3300_v44  ;;  %v4805_v23 = vcvt.s32.f32 %v3909_v60  ;;  %v3321_v41 = vld [vmem:[%s9214_s16 + $0x110] sm:$0xff] }
 0x5f5   :  { %6378 = vmatpush.bf16.msra.mxu3 %v5337_v4  ;;  %v4812_v6 = vcvt.s32.f32 %v3916_v29  ;;  %v3671_v7 = vunpack.c.2.s8 %v3328_v14  ;;  %v3678_v42 = vunpack.c.3.s8 %v3328_v14  ;;  %v5449_v25 = vpack.c.bf16 %v4700_v8, %v4693_v12  ;;  %v3349_v29 = vld [vmem:[%s9214_s16 + $0x1f0] sm:$0xff] }
 0x5f6   :  { %6391 = vmatpush.bf16.msrb.mxu0 %v5393_v35  ;;  %v4455_v36 = vcvt.s32.f32 %v3559_v45  ;;  %v4462_v26 = vcvt.s32.f32 %v3566_v22  ;;  %v3783_v46 = vunpack.c.2.s8 %v3356_v49  ;;  %v3790_v13 = vunpack.c.3.s8 %v3356_v49  ;;  %v3377_v22 = vld [vmem:[%s9214_s16 + $0x2d0] sm:$0xff] }
 0x5f7   :  { %v5505_v62 = vpack.c.bf16 %v4812_v6, %v4805_v23  ;;  %v4567_v63 = vcvt.s32.f32 %v3671_v7  ;;  %v4574_v15 = vcvt.s32.f32 %v3678_v42  ;;  %6404 = vmatpush.bf16.msrb.mxu1 %v5449_v25  ;;  %v3895_v47 = vunpack.c.2.s8 %v3384_v16 }
 0x5f8   :  { %v5330_v59 = vpack.c.bf16 %v4462_v26, %v4455_v36  ;;  %v4679_v18 = vcvt.s32.f32 %v3783_v46  ;;  %v3902_v39 = vunpack.c.3.s8 %v3384_v16  ;;  %v4686_v54 = vcvt.s32.f32 %v3790_v13 }
 0x5f9   :  { %6417 = vmatpush.bf16.msrb.mxu2 %v5505_v62  ;;  %v5386_v51 = vpack.c.bf16 %v4574_v15, %v4567_v63  ;;  %v6125_v48 = vadd.f32 %v9030_v1, %v9009_v52  ;;  %v6484_v21 = vperm.slane %v8922_v9, 3  ;;  %v4791_v57 = vcvt.s32.f32 %v3895_v47  ;;  %v3293_v9 = vld [vmem:[%s9214_s16 + $0x30] sm:$0xff] }
 0x5fa   :  { %6379 = vmatpush.bf16.msra.mxu3 %v5330_v59  ;;  %v4798_v0 = vcvt.s32.f32 %v3902_v39  ;;  %v6507_v19 = vperm.slane %v8928_v43, 3  ;;  %v3545_v33 = vunpack.c.0.s8 %v3300_v44  ;;  %v5442_v10 = vpack.c.bf16 %v4686_v54, %v4679_v18 }
 0x5fb   :  { %6392 = vmatpush.bf16.msrb.mxu0 %v5386_v51  ;;  %v6138_v27 = vadd.f32 %v9014_v40, %v6125_v48  ;;  %v3552_v32 = vunpack.c.1.s8 %v3300_v44  ;;  %v3657_v50 = vunpack.c.0.s8 %v3328_v14  ;;  %v3664_v2 = vunpack.c.1.s8 %v3328_v14  ;;  %v9082_v14 = vpop.f32.mrf.mxu1 }
 0x5fc   :  { %v5498_v28 = vpack.c.bf16 %v4798_v0, %v4791_v57  ;;  %v4441_v30 = vcvt.s32.f32 %v3545_v33  ;;  %v3769_v53 = vunpack.c.0.s8 %v3356_v49  ;;  %6405 = vmatpush.bf16.msrb.mxu1 %v5442_v10  ;;  %v3776_v17 = vunpack.c.1.s8 %v3356_v49  ;;  %v6191_v0 = vpop.f32.mrf.mxu0 }
 0x5fd   :  { %v6151_v52 = vadd.f32 %v9016_v3, %v6138_v27  ;;  %v4448_v1 = vcvt.s32.f32 %v3552_v32  ;;  %v4553_v43 = vcvt.s32.f32 %v3657_v50  ;;  %v4560_v20 = vcvt.s32.f32 %v3664_v2  ;;  %v3426_v50 = vld [vmem:[%s9214_s16 + $0x458] sm:$0xff] }
 0x5fe   :  { %6418 = vmatpush.bf16.msrb.mxu2 %v5498_v28  ;;  %v4665_v38 = vcvt.s32.f32 %v3769_v53  ;;  %v3881_v40 = vunpack.c.0.s8 %v3384_v16  ;;  %v3888_v44 = vunpack.c.1.s8 %v3384_v16  ;;  %v4672_v3 = vcvt.s32.f32 %v3776_v17 }
 0x5ff   :  { %v6164_v4 = vadd.f32 %v9032_v37, %v6151_v52  ;;  %v5323_v12 = vpack.c.bf16 %v4448_v1, %v4441_v30  ;;  %v3531_v60 = vunpack.c.2.s8 %v3293_v9  ;;  %v5379_v49 = vpack.c.bf16 %v4560_v20, %v4553_v43  ;;  %v9099_v52 = vpop.f32.mrf.mxu3  ;;  %v9101_v1 = vpop.f32.mrf.mxu2 }
 0x600   :  { %v4777_v35 = vcvt.s32.f32 %v3881_v40  ;;  %v4784_v8 = vcvt.s32.f32 %v3888_v44  ;;  %v3538_v45 = vunpack.c.3.s8 %v3293_v9  ;;  %v5435_v6 = vpack.c.bf16 %v4672_v3, %v4665_v38 }
 0x601   :  { %v6498_v23 = vmul.f32 %v6484_v21, %v6164_v4  ;;  %6380 = vmatpush.bf16.msra.mxu3 %v5323_v12  ;;  %v4427_v7 = vcvt.s32.f32 %v3531_v60  ;;  %v3643_v37 = vunpack.c.2.s8 %v3321_v41  ;;  %6393 = vmatpush.bf16.msrb.mxu0 %v5379_v49  ;;  %v3650_v25 = vunpack.c.3.s8 %v3321_v41  ;;  %v3482_v12 = vld [vmem:[%s9214_s16 + $0x618] sm:$0xff] }
 0x602   :  { %v5491_v42 = vpack.c.bf16 %v4784_v8, %v4777_v35  ;;  %v4434_v16 = vcvt.s32.f32 %v3538_v45  ;;  %v3755_v36 = vunpack.c.2.s8 %v3349_v29  ;;  %6406 = vmatpush.bf16.msrb.mxu1 %v5435_v6  ;;  %v3762_v62 = vunpack.c.3.s8 %v3349_v29  ;;  %v3510_v8 = vld [vmem:[%s9214_s16 + $0x6f8] sm:$0xff] }
 0x603   :  { %v6521_v26 = vadd.f32 %v6507_v19, %v6498_v23  ;;  %v4539_v46 = vcvt.s32.f32 %v3643_v37  ;;  %v3867_v63 = vunpack.c.2.s8 %v3377_v22  ;;  %v4546_v13 = vcvt.s32.f32 %v3650_v25  ;;  %v6204_v19 = vpop.f32.mrf.mxu1 }
 0x604   :  { %6419 = vmatpush.bf16.msrb.mxu2 %v5491_v42  ;;  %v5316_v15 = vpack.c.bf16 %v4434_v16, %v4427_v7  ;;  %v4651_v59 = vcvt.s32.f32 %v3755_v36  ;;  %v3874_v18 = vunpack.c.3.s8 %v3377_v22  ;;  %v4658_v47 = vcvt.s32.f32 %v3762_v62 }
 0x605   :  { %6597 = vtanh.f32 %v6521_v26  ;;  %v4763_v39 = vcvt.s32.f32 %v3867_v63  ;;  %v3517_v51 = vunpack.c.0.s8 %v3293_v9  ;;  %v5372_v54 = vpack.c.bf16 %v4546_v13, %v4539_v46 }
 0x606   :  { %6381 = vmatpush.bf16.msra.mxu3 %v5316_v15  ;;  %v4770_v48 = vcvt.s32.f32 %v3874_v18  ;;  %v3524_v21 = vunpack.c.1.s8 %v3293_v9  ;;  %v3629_v57 = vunpack.c.0.s8 %v3321_v41  ;;  %v5428_v33 = vpack.c.bf16 %v4658_v47, %v4651_v59  ;;  %v9097_v9 = vld [vmem:[%s9214_s16 + $0x538] sm:$0xff] }
 0x607   :  { %v4413_v10 = vcvt.s32.f32 %v3517_v51  ;;  %v3636_v27 = vunpack.c.1.s8 %v3321_v41  ;;  %v3741_v32 = vunpack.c.0.s8 %v3349_v29  ;;  %6394 = vmatpush.bf16.msrb.mxu0 %v5372_v54  ;;  %v3748_v53 = vunpack.c.1.s8 %v3349_v29  ;;  %v6178_v51 = vpop.f32.mrf.mxu3  ;;  %v6217_v54 = vpop.f32.mrf.mxu2 }
 0x608   :  { %v5484_v28 = vpack.c.bf16 %v4770_v48, %v4763_v39  ;;  %v4420_v30 = vcvt.s32.f32 %v3524_v21  ;;  %v4525_v2 = vcvt.s32.f32 %v3629_v57  ;;  %6407 = vmatpush.bf16.msrb.mxu1 %v5428_v33  ;;  %v3853_v20 = vunpack.c.0.s8 %v3377_v22  ;;  %v9139_v54 = vld [vmem:[%s9214_s16 + $0x4c8] sm:$0xff] }
 0x609   :  { %v4532_v43 = vcvt.s32.f32 %v3636_v27  ;;  %v4637_v17 = vcvt.s32.f32 %v3741_v32  ;;  %v3860_v38 = vunpack.c.1.s8 %v3377_v22  ;;  %v4644_v44 = vcvt.s32.f32 %v3748_v53  ;;  %v3447_v27 = vld [vmem:[%s9214_s16 + $0x500] sm:$0xff] }
 0x60a   :  { %6420 = vmatpush.bf16.msrb.mxu2 %v5484_v28  ;;  %v5309_v40 = vpack.c.bf16 %v4420_v30, %v4413_v10  ;;  %v4063_v41 = vunpack.c.2.s8 %v3426_v50  ;;  %v4070_v4 = vunpack.c.3.s8 %v3426_v50  ;;  %v4749_v29 = vcvt.s32.f32 %v3853_v20 }
 0x60b   :  { %v6598_v3 = vpop.eup %6597  ;;  %v5365_v60 = vpack.c.bf16 %v4532_v43, %v4525_v2  ;;  %v4756_v49 = vcvt.s32.f32 %v3860_v38  ;;  %v4175_v35 = vunpack.c.2.s8 %v9097_v9  ;;  %v5421_v45 = vpack.c.bf16 %v4644_v44, %v4637_v17 }
 0x60c   :  { %6535 = vst [vmem:[#allocation2 + $0x18] sm:$0xff] %v6598_v3  ;;  %6382 = vmatpush.bf16.msra.mxu3 %v5309_v40  ;;  %v4959_v22 = vcvt.s32.f32 %v4063_v41  ;;  %v4966_v23 = vcvt.s32.f32 %v4070_v4  ;;  %v4182_v6 = vunpack.c.3.s8 %v9097_v9  ;;  %v4287_v42 = vunpack.c.2.s8 %v3482_v12  ;;  %v3503_v40 = vld [vmem:[%s9214_s16 + $0x6c0] sm:$0xff] }
 0x60d   :  { %6395 = vmatpush.bf16.msrb.mxu0 %v5365_v60  ;;  %v5477_v7 = vpack.c.bf16 %v4756_v49, %v4749_v29  ;;  %v5071_v37 = vcvt.s32.f32 %v4175_v35  ;;  %v4294_v16 = vunpack.c.3.s8 %v3482_v12  ;;  %6408 = vmatpush.bf16.msrb.mxu1 %v5421_v45  ;;  %v4399_v26 = vunpack.c.2.s8 %v3510_v8 }
 0x60e   :  { %v5582_v25 = vpack.c.bf16 %v4966_v23, %v4959_v22  ;;  %v5078_v36 = vcvt.s32.f32 %v4182_v6  ;;  %v4406_v46 = vunpack.c.3.s8 %v3510_v8  ;;  %v5183_v62 = vcvt.s32.f32 %v4287_v42 }
 0x60f   :  { %6421 = vmatpush.bf16.msrb.mxu2 %v5477_v7  ;;  %v5190_v63 = vcvt.s32.f32 %v4294_v16  ;;  %6383 = vmatmul.bf16.vlgmr.msra.gmra.mxu3 %v8291_v31  ;;  %v4049_v15 = vunpack.c.0.s8 %v3426_v50  ;;  %v4056_v13 = vunpack.c.1.s8 %v3426_v50  ;;  %v5295_v18 = vcvt.s32.f32 %v4399_v26  ;;  %v3419_v31 = vld [vmem:[%s9214_s16 + $0x420] sm:$0xff] }
 0x610   :  { %6427 = vmatpush.bf16.msrb.mxu3 %v5582_v25  ;;  %v5638_v59 = vpack.c.bf16 %v5078_v36, %v5071_v37  ;;  %v5302_v47 = vcvt.s32.f32 %v4406_v46  ;;  %6396 = vmatmul.bf16.vlgmr.msrb.gmra.mxu0 %v8296_v11  ;;  %v4161_v39 = vunpack.c.0.s8 %v9097_v9  ;;  %v4168_v0 = vunpack.c.1.s8 %v9097_v9 }
 0x611   :  { %v5694_v48 = vpack.c.bf16 %v5190_v63, %v5183_v62  ;;  %6409 = vmatmul.bf16.vlgmr.msrb.gmra.mxu1 %v8299_v5  ;;  %v4945_v21 = vcvt.s32.f32 %v4049_v15  ;;  %v4952_v57 = vcvt.s32.f32 %v4056_v13  ;;  %v4273_v33 = vunpack.c.0.s8 %v3482_v12  ;;  %v3412_v15 = vld [vmem:[%s9214_s16 + $0x3e8] sm:$0xff]  ;;  %v9132_v13 = vpop.f32.mrf.mxu0 }
 0x612   :  { %6440 = vmatpush.bf16.msra.mxu0 %v5638_v59  ;;  %v5750_v19 = vpack.c.bf16 %v5302_v47, %v5295_v18  ;;  %6422 = vmatmul.bf16.vlgmr.msrb.gmra.mxu2 %v8302_v55  ;;  %v5057_v11 = vcvt.s32.f32 %v4161_v39  ;;  %v4280_v10 = vunpack.c.1.s8 %v3482_v12  ;;  %v5064_v32 = vcvt.s32.f32 %v4168_v0  ;;  %v3475_v55 = vld [vmem:[%s9214_s16 + $0x5e0] sm:$0xff]  ;;  %v9134_v59 = vpop.f32.mrf.mxu1 }
 0x613   :  { %6453 = vmatpush.bf16.msra.mxu1 %v5694_v48  ;;  %v5575_v5 = vpack.c.bf16 %v4952_v57, %v4945_v21  ;;  %v4385_v50 = vunpack.c.0.s8 %v3510_v8  ;;  %v4392_v28 = vunpack.c.1.s8 %v3510_v8  ;;  %v5169_v30 = vcvt.s32.f32 %v4273_v33 }
 0x614   :  { %6466 = vmatpush.bf16.msra.mxu2 %v5750_v19  ;;  %v5176_v2 = vcvt.s32.f32 %v4280_v10  ;;  %v4035_v53 = vunpack.c.2.s8 %v3419_v31  ;;  %v4042_v9 = vunpack.c.3.s8 %v3419_v31  ;;  %v5631_v43 = vpack.c.bf16 %v5064_v32, %v5057_v11  ;;  %v9141_v48 = vpop.f32.mrf.mxu3 }
 0x615   :  { %6428 = vmatpush.bf16.msrb.mxu3 %v5575_v5  ;;  %v5281_v17 = vcvt.s32.f32 %v4385_v50  ;;  %v5288_v20 = vcvt.s32.f32 %v4392_v28  ;;  %v4147_v38 = vunpack.c.2.s8 %v3447_v27  ;;  %v4154_v12 = vunpack.c.3.s8 %v3447_v27  ;;  %v3468_v5 = vld [vmem:[%s9214_s16 + $0x5a8] sm:$0xff] }
 0x616   :  { %v5687_v44 = vpack.c.bf16 %v5176_v2, %v5169_v30  ;;  %v4931_v41 = vcvt.s32.f32 %v4035_v53  ;;  %v4938_v4 = vcvt.s32.f32 %v4042_v9  ;;  %6441 = vmatpush.bf16.msra.mxu0 %v5631_v43  ;;  %v4259_v29 = vunpack.c.2.s8 %v3475_v55  ;;  %v3496_v2 = vld [vmem:[%s9214_s16 + $0x688] sm:$0xff] }
 0x617   :  { %v5743_v3 = vpack.c.bf16 %v5288_v20, %v5281_v17  ;;  %v5043_v60 = vcvt.s32.f32 %v4147_v38  ;;  %v4266_v49 = vunpack.c.3.s8 %v3475_v55  ;;  %v5050_v8 = vcvt.s32.f32 %v4154_v12 }
 0x618   :  { %6454 = vmatpush.bf16.msra.mxu1 %v5687_v44  ;;  %v5568_v35 = vpack.c.bf16 %v4938_v4, %v4931_v41  ;;  %v4371_v45 = vunpack.c.2.s8 %v3503_v40  ;;  %v4378_v22 = vunpack.c.3.s8 %v3503_v40  ;;  %v5155_v23 = vcvt.s32.f32 %v4259_v29  ;;  %v9143_v21 = vpop.f32.mrf.mxu2 }
 0x619   :  { %6467 = vmatpush.bf16.msra.mxu2 %v5743_v3  ;;  %v5162_v6 = vcvt.s32.f32 %v4266_v49  ;;  %v4021_v7 = vunpack.c.0.s8 %v3419_v31  ;;  %v4028_v37 = vunpack.c.1.s8 %v3419_v31  ;;  %v5624_v42 = vpack.c.bf16 %v5050_v8, %v5043_v60 }
 0x61a   :  { %6429 = vmatpush.bf16.msrb.mxu3 %v5568_v35  ;;  %v5267_v16 = vcvt.s32.f32 %v4371_v45  ;;  %v5274_v25 = vcvt.s32.f32 %v4378_v22  ;;  %v4133_v36 = vunpack.c.0.s8 %v3447_v27  ;;  %v4140_v63 = vunpack.c.1.s8 %v3447_v27  ;;  %v6243_v35 = vpop.f32.mrf.mxu0  ;;  %v6256_v8 = vpop.f32.mrf.mxu1 }
 0x61b   :  { %v5680_v26 = vpack.c.bf16 %v5162_v6, %v5155_v23  ;;  %v4917_v46 = vcvt.s32.f32 %v4021_v7  ;;  %v4924_v62 = vcvt.s32.f32 %v4028_v37  ;;  %6442 = vmatpush.bf16.msra.mxu0 %v5624_v42  ;;  %v4245_v39 = vunpack.c.0.s8 %v3475_v55 }
 0x61c   :  { %v5736_v18 = vpack.c.bf16 %v5274_v25, %v5267_v16  ;;  %v5029_v47 = vcvt.s32.f32 %v4133_v36  ;;  %v4252_v51 = vunpack.c.1.s8 %v3475_v55  ;;  %v5036_v0 = vcvt.s32.f32 %v4140_v63  ;;  %v6230_v7 = vpop.f32.mrf.mxu3 }
 0x61d   :  { %6455 = vmatpush.bf16.msra.mxu1 %v5680_v26  ;;  %v5561_v57 = vpack.c.bf16 %v4924_v62, %v4917_v46  ;;  %v4357_v31 = vunpack.c.0.s8 %v3503_v40  ;;  %v4364_v19 = vunpack.c.1.s8 %v3503_v40  ;;  %v5141_v11 = vcvt.s32.f32 %v4245_v39  ;;  %v3405_v62 = vld [vmem:[%s9214_s16 + $0x3b0] sm:$0xff] }
 0x61e   :  { %6468 = vmatpush.bf16.msra.mxu2 %v5736_v18  ;;  %v5148_v33 = vcvt.s32.f32 %v4252_v51  ;;  %v4007_v10 = vunpack.c.2.s8 %v3412_v15  ;;  %v4014_v27 = vunpack.c.3.s8 %v3412_v15  ;;  %v5617_v32 = vpack.c.bf16 %v5036_v0, %v5029_v47  ;;  %v3461_v0 = vld [vmem:[%s9214_s16 + $0x570] sm:$0xff] }
 0x61f   :  { %6430 = vmatpush.bf16.msrb.mxu3 %v5561_v57  ;;  %v5253_v50 = vcvt.s32.f32 %v4357_v31  ;;  %v5260_v28 = vcvt.s32.f32 %v4364_v19  ;;  %v4119_v30 = vunpack.c.2.s8 %v9139_v54  ;;  %v4126_v43 = vunpack.c.3.s8 %v9139_v54 }
 0x620   :  { %v5673_v53 = vpack.c.bf16 %v5148_v33, %v5141_v11  ;;  %v4903_v9 = vcvt.s32.f32 %v4007_v10  ;;  %v4910_v55 = vcvt.s32.f32 %v4014_v27  ;;  %6443 = vmatpush.bf16.msra.mxu0 %v5617_v32  ;;  %v4231_v38 = vunpack.c.2.s8 %v3468_v5  ;;  %v6269_v37 = vpop.f32.mrf.mxu2  ;;  %v3489_v32 = vld [vmem:[%s9214_s16 + $0x650] sm:$0xff] }
 0x621   :  { %v5729_v17 = vpack.c.bf16 %v5260_v28, %v5253_v50  ;;  %v5015_v20 = vcvt.s32.f32 %v4119_v30  ;;  %v4238_v40 = vunpack.c.3.s8 %v3468_v5  ;;  %v5022_v41 = vcvt.s32.f32 %v4126_v43 }
 0x622   :  { %6456 = vmatpush.bf16.msra.mxu1 %v5673_v53  ;;  %v5554_v44 = vpack.c.bf16 %v4910_v55, %v4903_v9  ;;  %v4343_v4 = vunpack.c.2.s8 %v3496_v2  ;;  %v4350_v12 = vunpack.c.3.s8 %v3496_v2  ;;  %v5127_v3 = vcvt.s32.f32 %v4231_v38 }
 0x623   :  { %6469 = vmatpush.bf16.msra.mxu2 %v5729_v17  ;;  %v5134_v60 = vcvt.s32.f32 %v4238_v40  ;;  %v6190_v29 = vadd.f32 %v9080_v58, %v9099_v52  ;;  %v3993_v49 = vunpack.c.0.s8 %v3412_v15  ;;  %v5610_v45 = vpack.c.bf16 %v5022_v41, %v5015_v20 }
 0x624   :  { %6431 = vmatpush.bf16.msrb.mxu3 %v5554_v44  ;;  %v5239_v22 = vcvt.s32.f32 %v4343_v4  ;;  %v5246_v23 = vcvt.s32.f32 %v4350_v12  ;;  %v4000_v6 = vunpack.c.1.s8 %v3412_v15  ;;  %v4105_v36 = vunpack.c.0.s8 %v9139_v54 }
 0x625   :  { %v5666_v42 = vpack.c.bf16 %v5134_v60, %v5127_v3  ;;  %v6203_v16 = vadd.f32 %v9082_v14, %v6190_v29  ;;  %v4889_v25 = vcvt.s32.f32 %v3993_v49  ;;  %6444 = vmatpush.bf16.msra.mxu0 %v5610_v45  ;;  %v4112_v58 = vunpack.c.1.s8 %v9139_v54  ;;  %v3433_v14 = vld [vmem:[%s9214_s16 + $0x490] sm:$0xff] }
 0x626   :  { %v5722_v26 = vpack.c.bf16 %v5246_v23, %v5239_v22  ;;  %v4896_v46 = vcvt.s32.f32 %v4000_v6  ;;  %v4217_v52 = vunpack.c.0.s8 %v3468_v5  ;;  %v5001_v15 = vcvt.s32.f32 %v4105_v36 }
 0x627   :  { %6457 = vmatpush.bf16.msra.mxu1 %v5666_v42  ;;  %v6216_v63 = vadd.f32 %v9101_v1, %v6203_v16  ;;  %v4224_v18 = vunpack.c.1.s8 %v3468_v5  ;;  %v4329_v47 = vunpack.c.0.s8 %v3496_v2  ;;  %v5008_v51 = vcvt.s32.f32 %v4112_v58 }
 0x628   :  { %6470 = vmatpush.bf16.msra.mxu2 %v5722_v26  ;;  %v5547_v39 = vpack.c.bf16 %v4896_v46, %v4889_v25  ;;  %v5113_v57 = vcvt.s32.f32 %v4217_v52  ;;  %v4336_v54 = vunpack.c.1.s8 %v3496_v2  ;;  %v3979_v11 = vunpack.c.2.s8 %v3405_v62 }
 0x629   :  { %v5120_v31 = vcvt.s32.f32 %v4224_v18  ;;  %v5225_v19 = vcvt.s32.f32 %v4329_v47  ;;  %v3986_v1 = vunpack.c.3.s8 %v3405_v62  ;;  %v5603_v33 = vpack.c.bf16 %v5008_v51, %v5001_v15 }
 0x62a   :  { %6432 = vmatpush.bf16.msrb.mxu3 %v5547_v39  ;;  %v5232_v10 = vcvt.s32.f32 %v4336_v54  ;;  %v4091_v27 = vunpack.c.2.s8 %v3433_v14  ;;  %v4098_v5 = vunpack.c.3.s8 %v3433_v14  ;;  %v4875_v28 = vcvt.s32.f32 %v3979_v11  ;;  %v9178_v39 = vld [vmem:[%s9215_s17] sm:$0x7f]  ;;  %s6637_s17 = smov [#allocation2]  }
 0x62b   :  { %v5659_v50 = vpack.c.bf16 %v5120_v31, %v5113_v57  ;;  %v4882_v30 = vcvt.s32.f32 %v3986_v1  ;;  %v4203_v2 = vunpack.c.2.s8 %v3461_v0  ;;  %6445 = vmatpush.bf16.msra.mxu0 %v5603_v33  ;;  %v4210_v43 = vunpack.c.3.s8 %v3461_v0 }
 0x62c   :  { %v5715_v53 = vpack.c.bf16 %v5232_v10, %v5225_v19  ;;  %v4987_v9 = vcvt.s32.f32 %v4091_v27  ;;  %v4994_v55 = vcvt.s32.f32 %v4098_v5  ;;  %v4315_v38 = vunpack.c.2.s8 %v3489_v32 }
 0x62d   :  { %6458 = vmatpush.bf16.msra.mxu1 %v5659_v50  ;;  %v5540_v17 = vpack.c.bf16 %v4882_v30, %v4875_v28  ;;  %v5099_v20 = vcvt.s32.f32 %v4203_v2  ;;  %v4322_v40 = vunpack.c.3.s8 %v3489_v32  ;;  %v5106_v41 = vcvt.s32.f32 %v4210_v43 }
 0x62e   :  { %6471 = vmatpush.bf16.msra.mxu2 %v5715_v53  ;;  %v5596_v44 = vpack.c.bf16 %v4994_v55, %v4987_v9  ;;  %v3965_v4 = vunpack.c.0.s8 %v3405_v62  ;;  %v3972_v12 = vunpack.c.1.s8 %v3405_v62  ;;  %v5211_v3 = vcvt.s32.f32 %v4315_v38 }
 0x62f   :  { %6433 = vmatpush.bf16.msrb.mxu3 %v5540_v17  ;;  %v5218_v60 = vcvt.s32.f32 %v4322_v40  ;;  %v4077_v29 = vunpack.c.0.s8 %v3433_v14  ;;  %v4084_v49 = vunpack.c.1.s8 %v3433_v14  ;;  %v5652_v35 = vpack.c.bf16 %v5106_v41, %v5099_v20 }
 0x630   :  { %6446 = vmatpush.bf16.msra.mxu0 %v5596_v44  ;;  %v4861_v8 = vcvt.s32.f32 %v3965_v4  ;;  %v4868_v45 = vcvt.s32.f32 %v3972_v12  ;;  %v4189_v22 = vunpack.c.0.s8 %v3461_v0  ;;  %v4196_v37 = vunpack.c.1.s8 %v3461_v0 }
 0x631   :  { %v5708_v23 = vpack.c.bf16 %v5218_v60, %v5211_v3  ;;  %v4973_v6 = vcvt.s32.f32 %v4077_v29  ;;  %v4980_v7 = vcvt.s32.f32 %v4084_v49  ;;  %6459 = vmatpush.bf16.msra.mxu1 %v5652_v35  ;;  %v4301_v25 = vunpack.c.0.s8 %v3489_v32 }
 0x632   :  { %v5533_v42 = vpack.c.bf16 %v4868_v45, %v4861_v8  ;;  %v5085_v16 = vcvt.s32.f32 %v4189_v22  ;;  %v4308_v36 = vunpack.c.1.s8 %v3489_v32  ;;  %v5092_v46 = vcvt.s32.f32 %v4196_v37 }
 0x633   :  { %6472 = vmatpush.bf16.msra.mxu2 %v5708_v23  ;;  %v5589_v26 = vpack.c.bf16 %v4980_v7, %v4973_v6  ;;  %v6229_v58 = vadd.f32 %v9141_v48, %v6216_v63  ;;  %v5197_v52 = vcvt.s32.f32 %v4301_v25  ;;  %v6485_v48 = vperm.slane %v9178_v39, 4 }
 0x634   :  { %6434 = vmatpush.bf16.msrb.mxu3 %v5533_v42  ;;  %v5204_v62 = vcvt.s32.f32 %v4308_v36  ;;  %v5645_v15 = vpack.c.bf16 %v5092_v46, %v5085_v16  ;;  %v6486_v53 = vperm.slane %v9178_v39, 5 }
 0x635   :  { %6447 = vmatpush.bf16.msra.mxu0 %v5589_v26  ;;  %v6242_v18 = vadd.f32 %v9132_v13, %v6229_v58  ;;  %v9186_v13 = vld [vmem:[%s9216_s18] sm:$0x7f]  ;;  %v6487_v26 = vperm.slane %v9178_v39, 6  ;;  %s6545_s18 = sshll.u32 %s6637_s17, 4  ;;  %s6546_s18 = int_to_ptr.vmem [resolvable:$true] %s6545_s18 }
 0x636   :  { %v5701_v47 = vpack.c.bf16 %v5204_v62, %v5197_v52  ;;  %6460 = vmatpush.bf16.msra.mxu1 %v5645_v15  ;;  %v6509_v43 = vperm.slane %v9186_v13, 5  ;;  %v6510_v52 = vperm.slane %v9186_v13, 6 }
 0x637   :  { %6435 = vmatmul.bf16.vlgmr.msrb.gmra.mxu3 %v8355_v34  ;;  %v6255_v14 = vadd.f32 %v9134_v59, %v6242_v18  ;;  %v6508_v34 = vperm.slane %v9186_v13, 4 }
 0x638   :  { %6473 = vmatpush.bf16.msra.mxu2 %v5701_v47  ;;  %6448 = vmatmul.bf16.vlgmr.msra.gmra.mxu0 %v8358_v56 }
 0x639   :  { %v6268_v63 = vadd.f32 %v9143_v21, %v6255_v14  ;;  %6461 = vmatmul.bf16.vlgmr.msra.gmra.mxu1 %v8361_v24 }
 0x63a   :  { %v6293_v59 = vpop.f32.mrf.mxu0 }
 0x63b   :  { %6474 = vmatmul.bf16.vlgmr.msra.gmra.mxu2 %v8260_v61  ;;  %v6499_v51 = vmul.f32 %v6485_v48, %v6268_v63  ;;  %v6306_v57 = vpop.f32.mrf.mxu1 }
 0x63d   :  { %v6522_v54 = vadd.f32 %v6508_v34, %v6499_v51 }
 0x63f   :  { %6599 = vtanh.f32 %v6522_v54  ;;  %v6280_v0 = vpop.f32.mrf.mxu3 }
 0x640   :  { %v6294_v33 = vadd.f32 %v6293_v59, %v6280_v0 }
 0x642   :  { %v6319_v56 = vpop.f32.mrf.mxu2  ;;  %v6295_v31 = vpop.f32.mrf.mxu0  ;;  %v6307_v10 = vadd.f32 %v6306_v57, %v6294_v33 }
 0x643   :  { %v6308_v21 = vpop.f32.mrf.mxu1 }
 0x644   :  { %v6320_v24 = vadd.f32 %v6319_v56, %v6307_v10 }
 0x645   :  { %v6600_v19 = vpop.eup %6599 }
 0x646   :  { %6536 = vst [vmem:[#allocation2 + $0x20] sm:$0xff] %v6600_v19 }
 0x647   :  { %v6282_v11 = vpop.f32.mrf.mxu3 }
 0x64a   :  { %v6321_v1 = vpop.f32.mrf.mxu2 }
 0x662   :  { %v6345_v27 = vpop.f32.mrf.mxu0 }
 0x663   :  { %v6358_v5 = vpop.f32.mrf.mxu1 }
 0x667   :  { %v6332_v32 = vpop.f32.mrf.mxu3 }
 0x668   :  { %v6333_v50 = vadd.f32 %v6332_v32, %v6320_v24 }
 0x66a   :  { %v6346_v61 = vadd.f32 %v6345_v27, %v6333_v50  ;;  %v6347_v28 = vpop.f32.mrf.mxu0 }
 0x66b   :  { %v6371_v30 = vpop.f32.mrf.mxu2  ;;  %v6360_v9 = vpop.f32.mrf.mxu1 }
 0x66c   :  { %v6359_v2 = vadd.f32 %v6358_v5, %v6346_v61 }
 0x66e   :  { %v6372_v55 = vadd.f32 %v6371_v30, %v6359_v2 }
 0x66f   :  { %v6334_v17 = vpop.f32.mrf.mxu3 }
 0x670   :  { %v6500_v20 = vmul.f32 %v6486_v53, %v6372_v55 }
 0x672   :  { %v6523_v38 = vadd.f32 %v6509_v43, %v6500_v20 }
 0x673   :  { %v6373_v40 = vpop.f32.mrf.mxu2 }
 0x674   :  { %6601 = vtanh.f32 %v6523_v38 }
 0x67a   :  { %v6602_v44 = vpop.eup %6601 }
 0x67b   :  { %6537 = vst [vmem:[#allocation2 + $0x28] sm:$0xff] %v6602_v44 }
 0x68d   :  { %v6397_v41 = vpop.f32.mrf.mxu0 }
 0x68e   :  { %v6410_v4 = vpop.f32.mrf.mxu1 }
 0x692   :  { %v6384_v12 = vpop.f32.mrf.mxu3 }
 0x693   :  { %v6398_v8 = vadd.f32 %v6397_v41, %v6384_v12 }
 0x695   :  { %v6423_v3 = vpop.f32.mrf.mxu2  ;;  %v6399_v60 = vpop.f32.mrf.mxu0  ;;  %v6411_v45 = vadd.f32 %v6410_v4, %v6398_v8 }
 0x696   :  { %v6412_v29 = vpop.f32.mrf.mxu1 }
 0x697   :  { %v6424_v6 = vadd.f32 %v6423_v3, %v6411_v45 }
 0x69a   :  { %v6386_v49 = vpop.f32.mrf.mxu3 }
 0x69d   :  { %v6425_v35 = vpop.f32.mrf.mxu2 }
 0x6b5   :  { %v6449_v22 = vpop.f32.mrf.mxu0 }
 0x6b6   :  { %v6462_v23 = vpop.f32.mrf.mxu1 }
 0x6ba   :  { %v6436_v7 = vpop.f32.mrf.mxu3 }
 0x6bb   :  { %v6437_v37 = vadd.f32 %v6436_v7, %v6424_v6 }
 0x6bd   :  { %v6450_v42 = vadd.f32 %v6449_v22, %v6437_v37  ;;  %v6451_v16 = vpop.f32.mrf.mxu0 }
 0x6be   :  { %v6475_v25 = vpop.f32.mrf.mxu2  ;;  %v6464_v46 = vpop.f32.mrf.mxu1 }
 0x6bf   :  { %v6463_v36 = vadd.f32 %v6462_v23, %v6450_v42 }
 0x6c1   :  { %v6476_v58 = vadd.f32 %v6475_v25, %v6463_v36 }
 0x6c2   :  { %v6438_v62 = vpop.f32.mrf.mxu3 }
 0x6c3   :  { %v6501_v15 = vmul.f32 %v6487_v26, %v6476_v58 }
 0x6c5   :  { %v6524_v18 = vadd.f32 %v6510_v52, %v6501_v15 }
 0x6c6   :  { %v6477_v47 = vpop.f32.mrf.mxu2 }
 0x6c7   :  { %6603 = vtanh.f32 %v6524_v18 }
 0x6cd   :  { %v6604_v14 = vpop.eup %6603 }
 0x6ce   :  { %6539 = vst.msk [vmem:[#allocation2 + $0x30] sm:$0xff] %vm6538_vm9, %v6604_v14 }
 0x6cf   :  { %6550 = dma.vmem_to_hbm [thread:$0]  %s6546_s18, 896, %s6548_s15, [#allocation3]  }
 0x6d0   :  { %6634 = dma.done.wait [#allocation3], 896  }
 0x6d1   :  { %6635 = vsyncadd [#allocation3], 4294966400 }
 0x6d2   :  { %6555 = vsyncpa [#allocation3], 1 }

</bundles_post_ra>
